<compile_context>
chip_gen: v5e
topology: v5e:2x2
jax: 0.10.0
libtpu: 0.0.40
codegen_flags: <defaults>
</compile_context>

<pallas_src>
import functools

import jax
import jax.numpy as jnp
from jax.experimental import pallas as pl
from jax.experimental.pallas import tpu as pltpu

_LANES = 128


def _round_up(n, m):
    return ((n + m - 1) // m) * m


def _make_block_kernel(H, W, Cp, dil2):
    """Fused BasicBlock body. One grid step == one batch element.

    conv1: 3x3, stride 1, padding 1, dilation 1     (+ folded bn1, bias, relu)
    conv2: 3x3, stride 1, padding dil, dilation dil (+ folded bn2, bias)
    out  = conv2(...) + residual(x)                 (no post-ReLU)
    """
    C3 = 3 * Cp

    def fill_col(col_ref, src, d):
        # src: (H, W, Cp) bf16.  col_ref: (H + 2*d, W, 3*Cp) bf16 scratch.
        # Zero only the halo ring (small, megacore-safe), then write the three
        # kx-shifted copies into contiguous 128-aligned lane groups.
        zrow = jnp.zeros((d, W, C3), jnp.bfloat16)
        zcol = jnp.zeros((H, d, Cp), jnp.bfloat16)
        col_ref[0:d, :, :] = zrow                             # top halo rows
        col_ref[H + d:H + 2 * d, :, :] = zrow                 # bottom halo rows
        col_ref[d:d + H, 0:d, 0:Cp] = zcol                    # kx=0 left edge
        col_ref[d:d + H, W - d:W, 2 * Cp:C3] = zcol           # kx=2 right edge
        col_ref[d:d + H, d:W, 0:Cp] = src[:, 0:W - d, :]      # kx = 0
        col_ref[d:d + H, :, Cp:2 * Cp] = src                  # kx = 1
        col_ref[d:d + H, 0:W - d, 2 * Cp:C3] = src[:, d:W, :] # kx = 2

    def conv3x3(col_ref, w_ref, d):
        # Each ky tap is a leading-dim slice of the im2col slab -> one bf16 MXU
        # matmul contracting over 3*Cp; f32 accumulation.
        acc = jnp.dot(col_ref[0:H].reshape(H * W, C3), w_ref[0],
                      preferred_element_type=jnp.float32)
        for ky in (1, 2):
            acc = acc + jnp.dot(col_ref[ky * d:ky * d + H].reshape(H * W, C3),
                                w_ref[ky], preferred_element_type=jnp.float32)
        return acc                                            # (H*W, Cp) f32

    def kernel(x_ref, w1_ref, b1_ref, w2_ref, b2_ref, o_ref, col1, col2):
        x = x_ref[0]                                          # (H, W, Cp) f32

        # ---- stage 1: conv1 + bn1 (scale folded into w1) + relu ----
        fill_col(col1, x.astype(jnp.bfloat16), 1)
        h = jnp.maximum(conv3x3(col1, w1_ref, 1) + b1_ref[...], 0.0)

        # ---- stage 2: conv2 (dilated) + bn2 + residual (h stays in VMEM) ----
        fill_col(col2, h.reshape(H, W, Cp).astype(jnp.bfloat16), dil2)
        out = conv3x3(col2, w2_ref, dil2) + b2_ref[...] + x.reshape(H * W, Cp)
        o_ref[0] = out.astype(o_ref.dtype)

    return kernel


def _fold_bn(gamma, beta, mean, var, eps=1e-5):
    scale = gamma / jnp.sqrt(var + eps)
    bias = beta - mean * scale
    return scale, bias


@functools.partial(jax.jit, static_argnames=("dilate",))
def basic_block_forward(x_nchw, params, dilate=1):
    """BasicBlock.forward (stride=1, no downsample). x_nchw: (B, C, H, W) f32."""
    x = jnp.transpose(x_nchw, (0, 2, 3, 1))                   # NCHW -> NHWC
    B, H, W, Cin = x.shape
    KH, KW, _, Cmid = params["w1_hwio"].shape
    Cout = params["w2_hwio"].shape[-1]
    assert (KH, KW) == (3, 3) and Cin == Cmid == Cout, \
        "stride=1 / no-downsample BasicBlock requires inplanes == planes"
    # W % 8 == 0 keeps the (H, W, C) <-> (H*W, C) reshapes layout-free.
    assert W % 8 == 0, "W must be a multiple of 8 (sublane alignment)"

    Cp = max(_round_up(Cin, _LANES), _LANES)                  # lane-dense channels

    s1, b1 = _fold_bn(params["bn1_gamma"], params["bn1_beta"],
                      params["bn1_mean"], params["bn1_var"])
    s2, b2 = _fold_bn(params["bn2_gamma"], params["bn2_beta"],
                      params["bn2_mean"], params["bn2_var"])

    # Fold BN scale into the conv weights (exact, trace time), pad channels to
    # Cp with zeros, flatten (kx, ci) so the kernel contracts over 3*Cp per ky
    # tap, and cast the matmul operands to bf16.
    def prep_w(w, s):
        w = w * s
        w = jnp.pad(w, ((0, 0), (0, 0),
                        (0, Cp - w.shape[2]), (0, Cp - w.shape[3])))
        return w.reshape(3, 3 * Cp, Cp).astype(jnp.bfloat16)

    w1p = prep_w(params["w1_hwio"], s1)
    w2p = prep_w(params["w2_hwio"], s2)
    b1p = jnp.pad(b1, (0, Cp - Cmid)).reshape(1, Cp).astype(jnp.float32)
    b2p = jnp.pad(b2, (0, Cp - Cout)).reshape(1, Cp).astype(jnp.float32)
    xp = jnp.pad(x, ((0, 0), (0, 0), (0, 0), (0, Cp - Cin)))  # zero pad channels

    kernel = _make_block_kernel(H, W, Cp, dilate)

    # VMEM budget: double-buffered x/out blocks + weights/biases + both im2col
    # scratches, with margin.  Capped at 64 MiB (v7x physical VMEM per core).
    col_bytes = ((H + 2) + (H + 2 * dilate)) * W * 3 * Cp * 2
    io_bytes = 2 * (H * W * Cp * 4)
    wgt_bytes = 2 * (9 * Cp * Cp) * 2 + 2 * Cp * 4
    vmem_needed = 2 * (io_bytes + wgt_bytes) + col_bytes
    vmem_limit = int(min(max(2 * vmem_needed, 32 * (1 << 20)), 64 * (1 << 20)))

    flops = 2 * B * H * W * 9 * (Cp * Cp + Cp * Cp)
    bytes_accessed = (xp.size * 4 + w1p.size * 2 + w2p.size * 2
                      + (b1p.size + b2p.size) * 4 + B * H * W * Cp * 4)

    out = pl.pallas_call(
        kernel,
        out_shape=jax.ShapeDtypeStruct((B, H * W, Cp), x.dtype),
        grid=(B,),
        in_specs=[
            pl.BlockSpec((1, H, W, Cp), lambda b: (b, 0, 0, 0)),       # x (f32)
            pl.BlockSpec((3, 3 * Cp, Cp), lambda b: (0, 0, 0)),        # w1*s1 bf16
            pl.BlockSpec((1, Cp), lambda b: (0, 0)),                   # b1 f32
            pl.BlockSpec((3, 3 * Cp, Cp), lambda b: (0, 0, 0)),        # w2*s2 bf16
            pl.BlockSpec((1, Cp), lambda b: (0, 0)),                   # b2 f32
        ],
        out_specs=pl.BlockSpec((1, H * W, Cp), lambda b: (b, 0, 0)),   # lane-dense
        scratch_shapes=[
            pltpu.VMEM((H + 2, W, 3 * Cp), jnp.bfloat16),              # im2col conv1
            pltpu.VMEM((H + 2 * dilate, W, 3 * Cp), jnp.bfloat16),     # im2col conv2
        ],
        compiler_params=pltpu.CompilerParams(
            dimension_semantics=("parallel",),
            vmem_limit_bytes=vmem_limit),
        cost_estimate=pl.CostEstimate(flops=int(flops), transcendentals=0,
                                      bytes_accessed=int(bytes_accessed)),
    )(xp, w1p, b1p, w2p, b2p)

    out = out.reshape(B, H, W, Cp)[:, :, :, :Cout]             # drop channel pad
    return jnp.transpose(out, (0, 3, 1, 2))                    # NHWC -> NCHW


# ---------------------------------------------------------------------------
# Pure-JAX reference (for correctness check)
# ---------------------------------------------------------------------------
def _ref_forward(x_nchw, params, dilate=1):
    x = jnp.transpose(x_nchw, (0, 2, 3, 1))

    def conv(inp, w, dil):
        return jax.lax.conv_general_dilated(
            inp, w, window_strides=(1, 1),
            padding=((dil, dil), (dil, dil)), rhs_dilation=(dil, dil),
            dimension_numbers=("NHWC", "HWIO", "NHWC"))

    s1, b1 = _fold_bn(params["bn1_gamma"], params["bn1_beta"],
                      params["bn1_mean"], params["bn1_var"])
    s2, b2 = _fold_bn(params["bn2_gamma"], params["bn2_beta"],
                      params["bn2_mean"], params["bn2_var"])

    h = jnp.maximum(conv(x, params["w1_hwio"], 1) * s1 + b1, 0.0)
    out = conv(h, params["w2_hwio"], dilate) * s2 + b2 + x
    return jnp.transpose(out, (0, 3, 1, 2))


def _init_params(key, inplanes, planes):
    ks = jax.random.split(key, 10)
    fan1 = inplanes * 9
    fan2 = planes * 9
    # PyTorch OIHW -> HWIO
    w1 = jax.random.normal(ks[0], (planes, inplanes, 3, 3), jnp.float32) * (2.0 / fan1) ** 0.5
    w2 = jax.random.normal(ks[1], (planes, planes, 3, 3), jnp.float32) * (2.0 / fan2) ** 0.5
    return {
        "w1_hwio": jnp.transpose(w1, (2, 3, 1, 0)),
        "w2_hwio": jnp.transpose(w2, (2, 3, 1, 0)),
        "bn1_gamma": jax.random.uniform(ks[2], (planes,), jnp.float32, 0.5, 1.5),
        "bn1_beta": 0.1 * jax.random.normal(ks[3], (planes,), jnp.float32),
        "bn1_mean": 0.1 * jax.random.normal(ks[4], (planes,), jnp.float32),
        "bn1_var": jax.random.uniform(ks[5], (planes,), jnp.float32, 0.5, 1.5),
        "bn2_gamma": jax.random.uniform(ks[6], (planes,), jnp.float32, 0.5, 1.5),
        "bn2_beta": 0.1 * jax.random.normal(ks[7], (planes,), jnp.float32),
        "bn2_mean": 0.1 * jax.random.normal(ks[8], (planes,), jnp.float32),
        "bn2_var": jax.random.uniform(ks[9], (planes,), jnp.float32, 0.5, 1.5),
    }


if __name__ == "__main__":
    key = jax.random.PRNGKey(0)
    k_x, k_p = jax.random.split(key)

    B, C, H, W = 2, 4, 16, 16          # inplanes = planes = 4, stride=1
    x = jax.random.normal(k_x, (B, C, H, W), jnp.float32)
    params = _init_params(k_p, inplanes=C, planes=C)

    for dilate in (1, 2):              # exercise both the plain and atrous paths
        out = jax.block_until_ready(basic_block_forward(x, params, dilate=dilate))
        ref = _ref_forward(x, params, dilate=dilate)
        assert out.shape == (B, C, H, W)
        # bf16 MXU operands (f32 accumulation): loosened tolerance vs pure-f32 ref.
        assert jnp.allclose(out, ref, atol=1e-1, rtol=1e-1), \
            f"mismatch (dilate={dilate}), max err={jnp.max(jnp.abs(out - ref))}"

    print("KERNEL_OK")
</pallas_src>

<mosaic_0001>
module attributes {stable_mosaic.version = 11 : i64} {
  func.func @kernel(%arg0: i32, %arg1: memref<1x16x16x128xf32, #tpu.memory_space<vmem>>, %arg2: memref<3x384x128xbf16, #tpu.memory_space<vmem>>, %arg3: memref<1x128xf32, #tpu.memory_space<vmem>>, %arg4: memref<3x384x128xbf16, #tpu.memory_space<vmem>>, %arg5: memref<1x128xf32, #tpu.memory_space<vmem>>, %arg6: memref<1x256x128xf32, #tpu.memory_space<vmem>>, %arg7: memref<18x16x384xbf16, #tpu.memory_space<vmem>>, %arg8: memref<18x16x384xbf16, #tpu.memory_space<vmem>>) attributes {dimension_semantics = [#tpu.dimension_semantics<parallel>], iteration_bounds = array<i64: 2>, scalar_prefetch = 0 : i64, scratch_operands = 2 : i64, tpu.core_type = #tpu.core_type<tc>, window_params = [{transform_indices = @transform_0, window_bounds = array<i64: 1, 16, 16, 128>}, {pipeline_mode = #tpu.pipeline_mode<synchronous>, transform_indices = @transform_1, window_bounds = array<i64: 3, 384, 128>}, {pipeline_mode = #tpu.pipeline_mode<synchronous>, transform_indices = @transform_2, window_bounds = array<i64: 1, 128>}, {pipeline_mode = #tpu.pipeline_mode<synchronous>, transform_indices = @transform_3, window_bounds = array<i64: 3, 384, 128>}, {pipeline_mode = #tpu.pipeline_mode<synchronous>, transform_indices = @transform_4, window_bounds = array<i64: 1, 128>}, {transform_indices = @transform_5, window_bounds = array<i64: 1, 256, 128>}]} {
    %c0 = arith.constant 0 : index
    %c0_0 = arith.constant 0 : index
    %c0_1 = arith.constant 0 : index
    %c0_2 = arith.constant 0 : index
    %0 = vector.load %arg1[%c0, %c0_0, %c0_1, %c0_2] : memref<1x16x16x128xf32, #tpu.memory_space<vmem>>, vector<1x16x16x128xf32>
    %1 = vector.shape_cast %0 : vector<1x16x16x128xf32> to vector<16x16x128xf32>
    %2 = arith.truncf %1 : vector<16x16x128xf32> to vector<16x16x128xbf16>
    %cst = arith.constant 0.000000e+00 : bf16
    %3 = vector.broadcast %cst : bf16 to vector<1x16x384xbf16>
    %cst_3 = arith.constant 0.000000e+00 : bf16
    %4 = vector.broadcast %cst_3 : bf16 to vector<16x1x128xbf16>
    %c0_4 = arith.constant 0 : index
    %c0_5 = arith.constant 0 : index
    %c0_6 = arith.constant 0 : index
    %5 = vector.load %arg7[%c0_4, %c0_5, %c0_6] : memref<18x16x384xbf16, #tpu.memory_space<vmem>>, vector<1x16x384xbf16>
    tpu.vector_store %arg7[%c0_4, %c0_5, %c0_6], %3 {strides = array<i32>} : memref<18x16x384xbf16, #tpu.memory_space<vmem>>, vector<1x16x384xbf16>,
    %c17 = arith.constant 17 : index
    %c0_7 = arith.constant 0 : index
    %c0_8 = arith.constant 0 : index
    %6 = vector.load %arg7[%c17, %c0_7, %c0_8] : memref<18x16x384xbf16, #tpu.memory_space<vmem>>, vector<1x16x384xbf16>
    tpu.vector_store %arg7[%c17, %c0_7, %c0_8], %3 {strides = array<i32>} : memref<18x16x384xbf16, #tpu.memory_space<vmem>>, vector<1x16x384xbf16>,
    %c1 = arith.constant 1 : index
    %c0_9 = arith.constant 0 : index
    %c0_10 = arith.constant 0 : index
    %7 = vector.load %arg7[%c1, %c0_9, %c0_10] : memref<18x16x384xbf16, #tpu.memory_space<vmem>>, vector<16x1x128xbf16>
    tpu.vector_store %arg7[%c1, %c0_9, %c0_10], %4 {strides = array<i32>} : memref<18x16x384xbf16, #tpu.memory_space<vmem>>, vector<16x1x128xbf16>,
    %c1_11 = arith.constant 1 : index
    %c15 = arith.constant 15 : index
    %c256 = arith.constant 256 : index
    %8 = vector.load %arg7[%c1_11, %c15, %c256] : memref<18x16x384xbf16, #tpu.memory_space<vmem>>, vector<16x1x128xbf16>
    tpu.vector_store %arg7[%c1_11, %c15, %c256], %4 {strides = array<i32>} : memref<18x16x384xbf16, #tpu.memory_space<vmem>>, vector<16x1x128xbf16>,
    %9 = vector.extract_strided_slice %2 {offsets = [0, 0, 0], sizes = [16, 15, 128], strides = [1, 1, 1]} : vector<16x16x128xbf16> to vector<16x15x128xbf16>
    %c1_12 = arith.constant 1 : index
    %c1_13 = arith.constant 1 : index
    %c0_14 = arith.constant 0 : index
    %10 = vector.load %arg7[%c1_12, %c1_13, %c0_14] : memref<18x16x384xbf16, #tpu.memory_space<vmem>>, vector<16x15x128xbf16>
    tpu.vector_store %arg7[%c1_12, %c1_13, %c0_14], %9 {strides = array<i32>} : memref<18x16x384xbf16, #tpu.memory_space<vmem>>, vector<16x15x128xbf16>,
    %c1_15 = arith.constant 1 : index
    %c0_16 = arith.constant 0 : index
    %c128 = arith.constant 128 : index
    %11 = vector.load %arg7[%c1_15, %c0_16, %c128] : memref<18x16x384xbf16, #tpu.memory_space<vmem>>, vector<16x16x128xbf16>
    tpu.vector_store %arg7[%c1_15, %c0_16, %c128], %2 {strides = array<i32>} : memref<18x16x384xbf16, #tpu.memory_space<vmem>>, vector<16x16x128xbf16>,
    %12 = vector.extract_strided_slice %2 {offsets = [0, 1, 0], sizes = [16, 15, 128], strides = [1, 1, 1]} : vector<16x16x128xbf16> to vector<16x15x128xbf16>
    %c1_17 = arith.constant 1 : index
    %c0_18 = arith.constant 0 : index
    %c256_19 = arith.constant 256 : index
    %13 = vector.load %arg7[%c1_17, %c0_18, %c256_19] : memref<18x16x384xbf16, #tpu.memory_space<vmem>>, vector<16x15x128xbf16>
    tpu.vector_store %arg7[%c1_17, %c0_18, %c256_19], %12 {strides = array<i32>} : memref<18x16x384xbf16, #tpu.memory_space<vmem>>, vector<16x15x128xbf16>,
    %c0_20 = arith.constant 0 : index
    %c0_21 = arith.constant 0 : index
    %c0_22 = arith.constant 0 : index
    %14 = vector.load %arg7[%c0_20, %c0_21, %c0_22] : memref<18x16x384xbf16, #tpu.memory_space<vmem>>, vector<16x16x384xbf16>
    %15 = vector.shape_cast %14 : vector<16x16x384xbf16> to vector<256x384xbf16>
    %c0_23 = arith.constant 0 : index
    %c0_24 = arith.constant 0 : index
    %c0_25 = arith.constant 0 : index
    %16 = vector.load %arg2[%c0_23, %c0_24, %c0_25] : memref<3x384x128xbf16, #tpu.memory_space<vmem>>, vector<1x384x128xbf16>
    %17 = vector.shape_cast %16 : vector<1x384x128xbf16> to vector<384x128xbf16>
    %cst_26 = arith.constant dense<0.000000e+00> : vector<256x128xf32>
    %18 = tpu.matmul %15, %17, %cst_26 {dimension_numbers = #tpu.dot_dimension_numbers<[1], [0], [0], [1], [0, 0, 1, 1], [], []>} : vector<256x384xbf16>, vector<384x128xbf16>, vector<256x128xf32> -> vector<256x128xf32>
    %c1_27 = arith.constant 1 : index
    %c0_28 = arith.constant 0 : index
    %c0_29 = arith.constant 0 : index
    %19 = vector.load %arg7[%c1_27, %c0_28, %c0_29] : memref<18x16x384xbf16, #tpu.memory_space<vmem>>, vector<16x16x384xbf16>
    %20 = vector.shape_cast %19 : vector<16x16x384xbf16> to vector<256x384xbf16>
    %c1_30 = arith.constant 1 : index
    %c0_31 = arith.constant 0 : index
    %c0_32 = arith.constant 0 : index
    %21 = vector.load %arg2[%c1_30, %c0_31, %c0_32] : memref<3x384x128xbf16, #tpu.memory_space<vmem>>, vector<1x384x128xbf16>
    %22 = vector.shape_cast %21 : vector<1x384x128xbf16> to vector<384x128xbf16>
    %cst_33 = arith.constant dense<0.000000e+00> : vector<256x128xf32>
    %23 = tpu.matmul %20, %22, %cst_33 {dimension_numbers = #tpu.dot_dimension_numbers<[1], [0], [0], [1], [0, 0, 1, 1], [], []>} : vector<256x384xbf16>, vector<384x128xbf16>, vector<256x128xf32> -> vector<256x128xf32>
    %24 = arith.addf %18, %23 : vector<256x128xf32>
    %c2 = arith.constant 2 : index
    %c0_34 = arith.constant 0 : index
    %c0_35 = arith.constant 0 : index
    %25 = vector.load %arg7[%c2, %c0_34, %c0_35] : memref<18x16x384xbf16, #tpu.memory_space<vmem>>, vector<16x16x384xbf16>
    %26 = vector.shape_cast %25 : vector<16x16x384xbf16> to vector<256x384xbf16>
    %c2_36 = arith.constant 2 : index
    %c0_37 = arith.constant 0 : index
    %c0_38 = arith.constant 0 : index
    %27 = vector.load %arg2[%c2_36, %c0_37, %c0_38] : memref<3x384x128xbf16, #tpu.memory_space<vmem>>, vector<1x384x128xbf16>
    %28 = vector.shape_cast %27 : vector<1x384x128xbf16> to vector<384x128xbf16>
    %cst_39 = arith.constant dense<0.000000e+00> : vector<256x128xf32>
    %29 = tpu.matmul %26, %28, %cst_39 {dimension_numbers = #tpu.dot_dimension_numbers<[1], [0], [0], [1], [0, 0, 1, 1], [], []>} : vector<256x384xbf16>, vector<384x128xbf16>, vector<256x128xf32> -> vector<256x128xf32>
    %30 = arith.addf %24, %29 : vector<256x128xf32>
    %c0_40 = arith.constant 0 : index
    %c0_41 = arith.constant 0 : index
    %31 = vector.load %arg3[%c0_40, %c0_41] : memref<1x128xf32, #tpu.memory_space<vmem>>, vector<1x128xf32>
    %32 = vector.broadcast %31 : vector<1x128xf32> to vector<256x128xf32>
    %33 = arith.addf %30, %32 : vector<256x128xf32>
    %cst_42 = arith.constant 0.000000e+00 : f32
    %34 = vector.broadcast %cst_42 : f32 to vector<256x128xf32>
    %35 = arith.maximumf %33, %34 : vector<256x128xf32>
    %36 = vector.shape_cast %35 : vector<256x128xf32> to vector<16x16x128xf32>
    %37 = arith.truncf %36 : vector<16x16x128xf32> to vector<16x16x128xbf16>
    %cst_43 = arith.constant 0.000000e+00 : bf16
    %38 = vector.broadcast %cst_43 : bf16 to vector<1x16x384xbf16>
    %cst_44 = arith.constant 0.000000e+00 : bf16
    %39 = vector.broadcast %cst_44 : bf16 to vector<16x1x128xbf16>
    %c0_45 = arith.constant 0 : index
    %c0_46 = arith.constant 0 : index
    %c0_47 = arith.constant 0 : index
    %40 = vector.load %arg8[%c0_45, %c0_46, %c0_47] : memref<18x16x384xbf16, #tpu.memory_space<vmem>>, vector<1x16x384xbf16>
    tpu.vector_store %arg8[%c0_45, %c0_46, %c0_47], %38 {strides = array<i32>} : memref<18x16x384xbf16, #tpu.memory_space<vmem>>, vector<1x16x384xbf16>,
    %c17_48 = arith.constant 17 : index
    %c0_49 = arith.constant 0 : index
    %c0_50 = arith.constant 0 : index
    %41 = vector.load %arg8[%c17_48, %c0_49, %c0_50] : memref<18x16x384xbf16, #tpu.memory_space<vmem>>, vector<1x16x384xbf16>
    tpu.vector_store %arg8[%c17_48, %c0_49, %c0_50], %38 {strides = array<i32>} : memref<18x16x384xbf16, #tpu.memory_space<vmem>>, vector<1x16x384xbf16>,
    %c1_51 = arith.constant 1 : index
    %c0_52 = arith.constant 0 : index
    %c0_53 = arith.constant 0 : index
    %42 = vector.load %arg8[%c1_51, %c0_52, %c0_53] : memref<18x16x384xbf16, #tpu.memory_space<vmem>>, vector<16x1x128xbf16>
    tpu.vector_store %arg8[%c1_51, %c0_52, %c0_53], %39 {strides = array<i32>} : memref<18x16x384xbf16, #tpu.memory_space<vmem>>, vector<16x1x128xbf16>,
    %c1_54 = arith.constant 1 : index
    %c15_55 = arith.constant 15 : index
    %c256_56 = arith.constant 256 : index
    %43 = vector.load %arg8[%c1_54, %c15_55, %c256_56] : memref<18x16x384xbf16, #tpu.memory_space<vmem>>, vector<16x1x128xbf16>
    tpu.vector_store %arg8[%c1_54, %c15_55, %c256_56], %39 {strides = array<i32>} : memref<18x16x384xbf16, #tpu.memory_space<vmem>>, vector<16x1x128xbf16>,
    %44 = vector.extract_strided_slice %37 {offsets = [0, 0, 0], sizes = [16, 15, 128], strides = [1, 1, 1]} : vector<16x16x128xbf16> to vector<16x15x128xbf16>
    %c1_57 = arith.constant 1 : index
    %c1_58 = arith.constant 1 : index
    %c0_59 = arith.constant 0 : index
    %45 = vector.load %arg8[%c1_57, %c1_58, %c0_59] : memref<18x16x384xbf16, #tpu.memory_space<vmem>>, vector<16x15x128xbf16>
    tpu.vector_store %arg8[%c1_57, %c1_58, %c0_59], %44 {strides = array<i32>} : memref<18x16x384xbf16, #tpu.memory_space<vmem>>, vector<16x15x128xbf16>,
    %c1_60 = arith.constant 1 : index
    %c0_61 = arith.constant 0 : index
    %c128_62 = arith.constant 128 : index
    %46 = vector.load %arg8[%c1_60, %c0_61, %c128_62] : memref<18x16x384xbf16, #tpu.memory_space<vmem>>, vector<16x16x128xbf16>
    tpu.vector_store %arg8[%c1_60, %c0_61, %c128_62], %37 {strides = array<i32>} : memref<18x16x384xbf16, #tpu.memory_space<vmem>>, vector<16x16x128xbf16>,
    %47 = vector.extract_strided_slice %37 {offsets = [0, 1, 0], sizes = [16, 15, 128], strides = [1, 1, 1]} : vector<16x16x128xbf16> to vector<16x15x128xbf16>
    %c1_63 = arith.constant 1 : index
    %c0_64 = arith.constant 0 : index
    %c256_65 = arith.constant 256 : index
    %48 = vector.load %arg8[%c1_63, %c0_64, %c256_65] : memref<18x16x384xbf16, #tpu.memory_space<vmem>>, vector<16x15x128xbf16>
    tpu.vector_store %arg8[%c1_63, %c0_64, %c256_65], %47 {strides = array<i32>} : memref<18x16x384xbf16, #tpu.memory_space<vmem>>, vector<16x15x128xbf16>,
    %c0_66 = arith.constant 0 : index
    %c0_67 = arith.constant 0 : index
    %c0_68 = arith.constant 0 : index
    %49 = vector.load %arg8[%c0_66, %c0_67, %c0_68] : memref<18x16x384xbf16, #tpu.memory_space<vmem>>, vector<16x16x384xbf16>
    %50 = vector.shape_cast %49 : vector<16x16x384xbf16> to vector<256x384xbf16>
    %c0_69 = arith.constant 0 : index
    %c0_70 = arith.constant 0 : index
    %c0_71 = arith.constant 0 : index
    %51 = vector.load %arg4[%c0_69, %c0_70, %c0_71] : memref<3x384x128xbf16, #tpu.memory_space<vmem>>, vector<1x384x128xbf16>
    %52 = vector.shape_cast %51 : vector<1x384x128xbf16> to vector<384x128xbf16>
    %cst_72 = arith.constant dense<0.000000e+00> : vector<256x128xf32>
    %53 = tpu.matmul %50, %52, %cst_72 {dimension_numbers = #tpu.dot_dimension_numbers<[1], [0], [0], [1], [0, 0, 1, 1], [], []>} : vector<256x384xbf16>, vector<384x128xbf16>, vector<256x128xf32> -> vector<256x128xf32>
    %c1_73 = arith.constant 1 : index
    %c0_74 = arith.constant 0 : index
    %c0_75 = arith.constant 0 : index
    %54 = vector.load %arg8[%c1_73, %c0_74, %c0_75] : memref<18x16x384xbf16, #tpu.memory_space<vmem>>, vector<16x16x384xbf16>
    %55 = vector.shape_cast %54 : vector<16x16x384xbf16> to vector<256x384xbf16>
    %c1_76 = arith.constant 1 : index
    %c0_77 = arith.constant 0 : index
    %c0_78 = arith.constant 0 : index
    %56 = vector.load %arg4[%c1_76, %c0_77, %c0_78] : memref<3x384x128xbf16, #tpu.memory_space<vmem>>, vector<1x384x128xbf16>
    %57 = vector.shape_cast %56 : vector<1x384x128xbf16> to vector<384x128xbf16>
    %cst_79 = arith.constant dense<0.000000e+00> : vector<256x128xf32>
    %58 = tpu.matmul %55, %57, %cst_79 {dimension_numbers = #tpu.dot_dimension_numbers<[1], [0], [0], [1], [0, 0, 1, 1], [], []>} : vector<256x384xbf16>, vector<384x128xbf16>, vector<256x128xf32> -> vector<256x128xf32>
    %59 = arith.addf %53, %58 : vector<256x128xf32>
    %c2_80 = arith.constant 2 : index
    %c0_81 = arith.constant 0 : index
    %c0_82 = arith.constant 0 : index
    %60 = vector.load %arg8[%c2_80, %c0_81, %c0_82] : memref<18x16x384xbf16, #tpu.memory_space<vmem>>, vector<16x16x384xbf16>
    %61 = vector.shape_cast %60 : vector<16x16x384xbf16> to vector<256x384xbf16>
    %c2_83 = arith.constant 2 : index
    %c0_84 = arith.constant 0 : index
    %c0_85 = arith.constant 0 : index
    %62 = vector.load %arg4[%c2_83, %c0_84, %c0_85] : memref<3x384x128xbf16, #tpu.memory_space<vmem>>, vector<1x384x128xbf16>
    %63 = vector.shape_cast %62 : vector<1x384x128xbf16> to vector<384x128xbf16>
    %cst_86 = arith.constant dense<0.000000e+00> : vector<256x128xf32>
    %64 = tpu.matmul %61, %63, %cst_86 {dimension_numbers = #tpu.dot_dimension_numbers<[1], [0], [0], [1], [0, 0, 1, 1], [], []>} : vector<256x384xbf16>, vector<384x128xbf16>, vector<256x128xf32> -> vector<256x128xf32>
    %65 = arith.addf %59, %64 : vector<256x128xf32>
    %c0_87 = arith.constant 0 : index
    %c0_88 = arith.constant 0 : index
    %66 = vector.load %arg5[%c0_87, %c0_88] : memref<1x128xf32, #tpu.memory_space<vmem>>, vector<1x128xf32>
    %67 = vector.broadcast %66 : vector<1x128xf32> to vector<256x128xf32>
    %68 = arith.addf %65, %67 : vector<256x128xf32>
    %69 = vector.shape_cast %1 : vector<16x16x128xf32> to vector<256x128xf32>
    %70 = arith.addf %68, %69 : vector<256x128xf32>
    %c0_89 = arith.constant 0 : index
    %c0_90 = arith.constant 0 : index
    %c0_91 = arith.constant 0 : index
    %71 = vector.load %arg6[%c0_89, %c0_90, %c0_91] : memref<1x256x128xf32, #tpu.memory_space<vmem>>, vector<1x256x128xf32>
    %72 = vector.shape_cast %71 : vector<1x256x128xf32> to vector<256x128xf32>
    %73 = vector.shape_cast %70 : vector<256x128xf32> to vector<1x256x128xf32>
    tpu.vector_store %arg6[%c0_89, %c0_90, %c0_91], %73 {strides = array<i32>} : memref<1x256x128xf32, #tpu.memory_space<vmem>>, vector<1x256x128xf32>,
    return
  }
  func.func @transform_0(%arg0: i32) -> (i32, i32, i32, i32) {
    %c0_i32 = arith.constant 0 : i32
    %c0_i32_0 = arith.constant 0 : i32
    %c0_i32_1 = arith.constant 0 : i32
    %c0_i32_2 = arith.constant 0 : i32
    return %arg0, %c0_i32, %c0_i32_0, %c0_i32_1 : i32, i32, i32, i32
  }
  func.func @transform_1(%arg0: i32) -> (i32, i32, i32) {
    %c0_i32 = arith.constant 0 : i32
    %c0_i32_0 = arith.constant 0 : i32
    %c0_i32_1 = arith.constant 0 : i32
    %c0_i32_2 = arith.constant 0 : i32
    return %c0_i32, %c0_i32_0, %c0_i32_1 : i32, i32, i32
  }
  func.func @transform_2(%arg0: i32) -> (i32, i32) {
    %c0_i32 = arith.constant 0 : i32
    %c0_i32_0 = arith.constant 0 : i32
    %c0_i32_1 = arith.constant 0 : i32
    return %c0_i32, %c0_i32_0 : i32, i32
  }
  func.func @transform_3(%arg0: i32) -> (i32, i32, i32) {
    %c0_i32 = arith.constant 0 : i32
    %c0_i32_0 = arith.constant 0 : i32
    %c0_i32_1 = arith.constant 0 : i32
    %c0_i32_2 = arith.constant 0 : i32
    return %c0_i32, %c0_i32_0, %c0_i32_1 : i32, i32, i32
  }
  func.func @transform_4(%arg0: i32) -> (i32, i32) {
    %c0_i32 = arith.constant 0 : i32
    %c0_i32_0 = arith.constant 0 : i32
    %c0_i32_1 = arith.constant 0 : i32
    return %c0_i32, %c0_i32_0 : i32, i32
  }
  func.func @transform_5(%arg0: i32) -> (i32, i32, i32) {
    %c0_i32 = arith.constant 0 : i32
    %c0_i32_0 = arith.constant 0 : i32
    %c0_i32_1 = arith.constant 0 : i32
    return %arg0, %c0_i32, %c0_i32_0 : i32, i32, i32
  }
}

</mosaic_0001>

<bundles_post_ra>
// kernel: basic_block_forward.1
= control target key start
LH: loop header
LB: loop body
LE: loop exit
PB: predicated region body
PF: predicated region fallthrough
CT: control target
= control target key end

     0   :  { %s9229_s18 = smov 0   ;;  %s11449_s0 = inlined_call_operand.vmem [shape: f32[2,16,16,128], index: 0, kind: input, shape index: {}]   ;;  %s11450_s1 = inlined_call_operand.vmem [shape: bf16[3,384,128], index: 1, kind: input, shape index: {}]   ;;  %s11451_s2 = inlined_call_operand.vmem [shape: f32[1,128], index: 2, kind: input, shape index: {}]   ;;  %s11452_s3 = inlined_call_operand.vmem [shape: bf16[3,384,128], index: 3, kind: input, shape index: {}]   ;;  %s11453_s4 = inlined_call_operand.vmem [shape: f32[1,128], index: 4, kind: input, shape index: {}]   ;;  %s11454_s5 = inlined_call_operand.vmem [shape: f32[2,256,128], index: 5, kind: output, shape index: {}]  }
   0x1 LB: > { %s6764_s19 = sadd.s32 4294967295, %s9196_s18   ;;  %p6768_p0 = scmp.ge.s32.totalorder %s9196_s18, 1  ;;  %s9196_s18 = sphi %s9229_s18, %s15_s18  }
   0x2   : > { %p187_p1 = scmp.lt.s32.totalorder %s9196_s18, 3 }
   0x4   : > { %p188_p2 = pnand %p6768_p0, %p187_p1 }
   0x6   : > { %191 = sbr.rel (%p188_p2) target bundleno = 1495 (0x5d7), region = 40 }
   0xb   : > { %v8824_v0 = vld [vmem:[%s11450_s1 + $0xf8] sm:$0xff]  ;;  %p215_p3 = scmp.lt.s32.totalorder %s6764_s19, 1  ;;  %v8823_v2 = vld [vmem:[%s11450_s1 + $0xf0] sm:$0xff]  ;;  %vm300_vm0 = vcmask 1040384   ;;  %vm301_vm1 = vsmask.f32 256 }
   0xc   : > { %v8832_v1 = vld [vmem:[%s11450_s1 + $0x138] sm:$0xff]  ;;  %1660 = vmatpush.bf16.msra.mxu0 %v8824_v0  ;;  %9129 = vmatpush.bf16.msra.mxu2 %v8824_v0  ;;  %v8831_v3 = vld [vmem:[%s11450_s1 + $0x130] sm:$0xff]  ;;  %vm9260_vm2 = vmand %vm300_vm0, %vm301_vm1  ;;  %v11517_v4 = vmov 0  ;;  %vm692_vm3 = vcmask 1043456   ;;  %vm402_vm4 = vsmask.f32 4368 }
   0xd   : > { %s11624_s19 = smov (!%p215_p3, %s6764_s19), 1  ;;  %1749 = vmatpush.bf16.msra.mxu1 %v8832_v1  ;;  %9137 = vmatpush.bf16.msra.mxu3 %v8832_v1  ;;  %v11518_v4 = vsel %vm9260_vm2, 4294967295, %v11517_v4  ;;  %v303_v5 = vld [vmem:[#allocation2 + $0x18] sm:$0x1]  ;;  %v8822_v6 = vld [vmem:[%s11450_s1 + $0xe8] sm:$0xff]  ;;  %v8821_v15 = vld [vmem:[%s11450_s1 + $0xe0] sm:$0xff] }
   0xe   : > { %s8695_s28 = sshll.u32 %s11624_s19, 8  ;;  %11519 = vst [vmem:[#allocation4_spill] sm:$0xff] %v11518_v4  ;;  %v304_v9 = vsel %vm9260_vm2, 0, %v303_v5  ;;  %v8830_v10 = vld [vmem:[%s11450_s1 + $0x128] sm:$0xff]  ;;  %vm693_vm5 = vsmask.f32 7938  ;;  %vm9303_vm6 = vmor %vm301_vm1, %vm402_vm4 }
   0xf   : > { %s9257_s6 = scalar_lea.vmem %s11449_s0, %s8695_s28  ;;  %305 = vst [vmem:[#allocation2 + $0x18] sm:$0x1] %v304_v9  ;;  %v327_v18 = vld [vmem:[#allocation2 + $0xd8] sm:$0x1]  ;;  %v8829_v27 = vld [vmem:[%s11450_s1 + $0x120] sm:$0xff]  ;;  %v11520_v28 = vmov 0  ;;  %vm9317_vm7 = vmand %vm692_vm3, %vm693_vm5  ;;  %s11249_s26 = scalar_lea.vmem %s11454_s5, %s8695_s28 }
  0x10   : > { %1661 = vmatpush.bf16.msra.mxu0 %v8823_v2  ;;  %9130 = vmatpush.bf16.msra.mxu2 %v8823_v2  ;;  %v226_v7 = vld [vmem:[%s9257_s6] sm:$0xff]  ;;  %v227_v8 = vld [vmem:[%s9257_s6 + $0x8] sm:$0xff]  ;;  %v328_v23 = vsel %vm9260_vm2, 0, %v327_v18  ;;  %v11521_v28 = vsel %vm9303_vm6, 4294967295, %v11520_v28  ;;  %v8820_v32 = vld [vmem:[%s11450_s1 + $0xd8] sm:$0xff]  ;;  %v11523_v33 = vmov 0 }
  0x11   : > { %1750 = vmatpush.bf16.msra.mxu1 %v8831_v3  ;;  %9138 = vmatpush.bf16.msra.mxu3 %v8831_v3  ;;  %v9274_v11 = vpack.c.bf16 %v226_v7, %v226_v7  ;;  %v9276_v12 = vpack.c.bf16 %v227_v8, %v227_v8  ;;  %v242_v13 = vld [vmem:[%s9257_s6 + $0x80] sm:$0xff]  ;;  %v243_v14 = vld [vmem:[%s9257_s6 + $0x88] sm:$0xff]  ;;  %11522 = vst [vmem:[#allocation5_spill] sm:$0xff] %v11521_v28  ;;  %v11524_v33 = vsel %vm9317_vm7, 4294967295, %v11523_v33  ;;  %v228_v39 = vld [vmem:[%s9257_s6 + $0x10] sm:$0xff]  ;;  %vm351_vm8 = vcmask 1043459  }
  0x12   : > { %v9283_v16 = vpack.c.bf16 %v242_v13, %v242_v13  ;;  %v9285_v17 = vpack.c.bf16 %v243_v14, %v243_v14  ;;  %329 = vst [vmem:[#allocation2 + $0xd8] sm:$0x1] %v328_v23  ;;  %v229_v40 = vld [vmem:[%s9257_s6 + $0x18] sm:$0xff]  ;;  %v244_v41 = vld [vmem:[%s9257_s6 + $0x90] sm:$0xff]  ;;  %v9338_v46 = vpack.c.bf16 %v228_v39, %v228_v39  ;;  %v230_v1 = vld [vmem:[%s9257_s6 + $0x20] sm:$0xff] }
  0x13   : > { %v405_v19 = vshrl.u32 %v9274_v11, 16  ;;  %v408_v20 = vshll.u32 %v9274_v11, 16  ;;  %v413_v21 = vshrl.u32 %v9276_v12, 16  ;;  %v416_v22 = vshll.u32 %v9276_v12, 16  ;;  %759 = vst [vmem:[#allocation2 + $0x1c] sm:$0xf] %v9274_v11 }
  0x14   : > { %1662 = vmatpush.bf16.msra.mxu0 %v8822_v6  ;;  %9131 = vmatpush.bf16.msra.mxu2 %v8822_v6  ;;  %760 = vst [vmem:[#allocation2 + $0x28] sm:$0xf] %v9276_v12  ;;  %v11470_v24 = vshrl.u32 %v9283_v16, 16  ;;  %v11469_v25 = vshll.u32 %v9283_v16, 16  ;;  %v11471_v26 = vshrl.u32 %v9285_v17, 16  ;;  %v11467_v31 = vshll.u32 %v9285_v17, 16 }
  0x15   : > { %1751 = vmatpush.bf16.msra.mxu1 %v8830_v10  ;;  %9139 = vmatpush.bf16.msra.mxu3 %v8830_v10  ;;  %v407_v29 = vrot.slane %v405_v19, 7  ;;  %v415_v30 = vrot.slane %v413_v21, 7  ;;  %11525 = vst [vmem:[#allocation6_spill] sm:$0xff] %v11524_v33  ;;  %v306_v47 = vld [vmem:[#allocation2 + $0x30] sm:$0x1]  ;;  %v245_v48 = vld [vmem:[%s9257_s6 + $0x98] sm:$0xff]  ;;  %v9348_v52 = vpack.c.bf16 %v229_v40, %v229_v40  ;;  %v9358_v57 = vpack.c.bf16 %v244_v41, %v244_v41 }
  0x16   : > { %v535_v34 = vrot.slane %v11470_v24, 7  ;;  %v543_v35 = vrot.slane %v11471_v26, 7  ;;  %775 = vst [vmem:[#allocation2 + $0xdc] sm:$0xf] %v9283_v16  ;;  %v695_v42 = vld [vmem:[#allocation2 + $0x18] sm:$0xf]  ;;  %v9365_v61 = vpack.c.bf16 %v245_v48, %v245_v48  ;;  %v9388_v18 = vpack.c.bf16 %v230_v1, %v230_v1 }
  0x17   : > { %v410_v36 = vor.u32 %v408_v20, %v407_v29  ;;  %v411_v37 = vrot.slane %v407_v29, 4  ;;  %v418_v38 = vor.u32 %v416_v22, %v415_v30  ;;  %776 = vst [vmem:[#allocation2 + $0xe8] sm:$0xf] %v9285_v17  ;;  %v8828_v49 = vld [vmem:[%s11450_s1 + $0x118] sm:$0xff]  ;;  %v8819_v53 = vld [vmem:[%s11450_s1 + $0xd0] sm:$0xff]  ;;  %v307_v55 = vsel %vm9260_vm2, 0, %v306_v47 }
  0x18   : > { %1663 = vmatpush.bf16.msra.mxu0 %v8821_v15  ;;  %9132 = vmatpush.bf16.msra.mxu2 %v8821_v15  ;;  %v538_v43 = vor.u32 %v11469_v25, %v535_v34  ;;  %v539_v44 = vrot.slane %v535_v34, 4  ;;  %v546_v45 = vor.u32 %v11467_v31, %v543_v35  ;;  %v421_v56 = vshrl.u32 %v9338_v46, 16  ;;  %v8827_v58 = vld [vmem:[%s11450_s1 + $0x110] sm:$0xff]  ;;  %308 = vst [vmem:[#allocation2 + $0x30] sm:$0x1] %v307_v55  ;;  %v231_v7 = vld [vmem:[%s9257_s6 + $0x28] sm:$0xff] }
  0x19   : > { %1752 = vmatpush.bf16.msra.mxu1 %v8829_v27  ;;  %9140 = vmatpush.bf16.msra.mxu3 %v8829_v27  ;;  %v419_v50 = vsel %vm9303_vm6, %v411_v37, %v418_v38  ;;  %v696_v51 = vsel %vm9317_vm7, %v410_v36, %v695_v42  ;;  %v429_v59 = vshrl.u32 %v9348_v52, 16  ;;  %v432_v60 = vshll.u32 %v9348_v52, 16  ;;  %v330_v62 = vld [vmem:[#allocation2 + $0xf0] sm:$0x1]  ;;  %v727_v63 = vld [vmem:[#allocation2 + $0xd8] sm:$0xf] }
  0x1a   : > { %697 = vst [vmem:[#allocation2 + $0x18] sm:$0xf] %v696_v51  ;;  %v547_v54 = vsel %vm9303_vm6, %v539_v44, %v546_v45  ;;  %v423_v0 = vrot.slane %v421_v56, 7  ;;  %v728_v2 = vsel %vm9317_vm7, %v538_v43, %v727_v63  ;;  %v424_v3 = vshll.u32 %v9338_v46, 16  ;;  %v8818_v10 = vld [vmem:[%s11450_s1 + $0xc8] sm:$0xff]  ;;  %v8817_v38 = vld [vmem:[%s11450_s1 + $0xc0] sm:$0xff] }
  0x1b   : > { %698 = vst [vmem:[#allocation2 + $0x24] sm:$0xf] %v419_v50  ;;  %v431_v5 = vrot.slane %v429_v59, 7  ;;  %v11465_v6 = vshrl.u32 %v9358_v57, 16  ;;  %v331_v9 = vsel %vm9260_vm2, 0, %v330_v62  ;;  %v11466_v15 = vshrl.u32 %v9365_v61, 16 }
  0x1c   : > { %1664 = vmatpush.bf16.msra.mxu0 %v8820_v32  ;;  %9133 = vmatpush.bf16.msra.mxu2 %v8820_v32  ;;  %730 = vst [vmem:[#allocation2 + $0xe4] sm:$0xf] %v547_v54  ;;  %v427_v8 = vrot.slane %v423_v0, 4  ;;  %v11464_v23 = vshll.u32 %v9358_v57, 16  ;;  %v11463_v27 = vshll.u32 %v9365_v61, 16  ;;  %v9393_v29 = vpack.c.bf16 %v231_v7, %v231_v7  ;;  %v8826_v32 = vld [vmem:[%s11450_s1 + $0x108] sm:$0xff] }
  0x1d   : > { %1753 = vmatpush.bf16.msra.mxu1 %v8828_v49  ;;  %9141 = vmatpush.bf16.msra.mxu3 %v8828_v49  ;;  %729 = vst [vmem:[#allocation2 + $0xd8] sm:$0xf] %v728_v2  ;;  %v434_v13 = vor.u32 %v432_v60, %v431_v5  ;;  %v551_v14 = vrot.slane %v11465_v6, 7  ;;  %v309_v30 = vld [vmem:[#allocation2 + $0x48] sm:$0x1]  ;;  %v426_v34 = vor.u32 %v424_v3, %v423_v0  ;;  %v559_v37 = vrot.slane %v11466_v15, 7 }
  0x1e   : > { %761 = vst [vmem:[#allocation2 + $0x34] sm:$0xf] %v9338_v46  ;;  %v310_v41 = vsel %vm9260_vm2, 0, %v309_v30  ;;  %v8825_v42 = vld [vmem:[%s11450_s1 + $0x100] sm:$0xff]  ;;  %v8769_v44 = vld [vmem:[#allocation2 + $0x1c] sm:$0xf] }
  0x1f   : > { %762 = vst [vmem:[#allocation2 + $0x40] sm:$0xf] %v9348_v52  ;;  %v435_v35 = vsel %vm9303_vm6, %v427_v8, %v434_v13  ;;  %v555_v36 = vrot.slane %v551_v14, 4  ;;  %v6825_v45 = vld [vmem:[#allocation2 + $0x24] sm:$0xf0]  ;;  %v562_v49 = vor.u32 %v11463_v27, %v559_v37  ;;  %v11501_v50 = vshrl.u32 %v9388_v18, 16 }
  0x20   : > { %1665 = vmatpush.bf16.msra.mxu0 %v8819_v53  ;;  %9134 = vmatpush.bf16.msra.mxu2 %v8819_v53  ;;  %332 = vst [vmem:[#allocation2 + $0xf0] sm:$0x1] %v331_v9  ;;  %v8793_v47 = vld [vmem:[#allocation2 + $0xdc] sm:$0xf]  ;;  %v6921_v48 = vld [vmem:[#allocation2 + $0xe4] sm:$0xf0]  ;;  %v554_v54 = vor.u32 %v11464_v23, %v551_v14 }
  0x21   : > { %1754 = vmatpush.bf16.msra.mxu1 %v8827_v58  ;;  %9142 = vmatpush.bf16.msra.mxu3 %v8827_v58  ;;  %v9407_v39 = vld [vmem:[#allocation2 + $0x18] sm:$0xf]  ;;  %702 = vst [vmem:[#allocation2 + $0x3c] sm:$0xf] %v435_v35  ;;  %v11500_v51 = vshll.u32 %v9388_v18, 16  ;;  %v11497_v55 = vshrl.u32 %v9393_v29, 16  ;;  %v563_v0 = vsel %vm9303_vm6, %v555_v36, %v562_v49  ;;  %v6924_v35 = vor.u32 %v8793_v47, %v6921_v48 }
  0x22   : > { %v8770_v40 = vld [vmem:[#allocation2 + $0x20] sm:$0xf0]  ;;  %777 = vst [vmem:[#allocation2 + $0xf4] sm:$0xf] %v9358_v57  ;;  %v699_v53 = vld [vmem:[#allocation2 + $0x30] sm:$0xf] }
  0x23   : > { %v8794_v43 = vld [vmem:[#allocation2 + $0xe0] sm:$0xf0]  ;;  %778 = vst [vmem:[#allocation2 + $0x100] sm:$0xf] %v9365_v61  ;;  %v11499_v58 = vshll.u32 %v9393_v29, 16  ;;  %v700_v63 = vsel %vm9317_vm7, %v426_v34, %v699_v53  ;;  %v439_v1 = vrot.slane %v11501_v50, 7  ;;  %v6824_v13 = vor.u32 %v8770_v40, %v9407_v39 }
  0x24   : > { %1666 = vmatpush.bf16.msra.mxu0 %v8818_v10  ;;  %9135 = vmatpush.bf16.msra.mxu2 %v8818_v10  ;;  %v6919_v62 = vld [vmem:[#allocation2 + $0xd8] sm:$0xf]  ;;  %311 = vst [vmem:[#allocation2 + $0x48] sm:$0x1] %v310_v41  ;;  %v246_v2 = vld [vmem:[%s9257_s6 + $0xa0] sm:$0xff]  ;;  %v447_v8 = vrot.slane %v11497_v55, 7  ;;  %v6828_v34 = vor.u32 %v8769_v44, %v6825_v45 }
  0x25   : > { %1755 = vmatpush.bf16.msra.mxu1 %v8826_v32  ;;  %9143 = vmatpush.bf16.msra.mxu3 %v8826_v32  ;;  %v8840_v5 = vld [vmem:[%s11450_s1 + $0x178] sm:$0xff]  ;;  %701 = vst [vmem:[#allocation2 + $0x30] sm:$0xf] %v700_v63  ;;  %v247_v9 = vld [vmem:[%s9257_s6 + $0xa8] sm:$0xff]  ;;  %v9440_v10 = vpack.c.bf16 %v246_v2, %v246_v2  ;;  %v6920_v14 = vor.u32 %v8794_v43, %v6919_v62  ;;  %v443_v30 = vrot.slane %v439_v1, 4  ;;  %v8751_v45 = vld [vmem:[%s11450_s1 + $0x30] sm:$0xff] }
  0x26   : > { %v8752_v7 = vld [vmem:[%s11450_s1 + $0x38] sm:$0xff]  ;;  %734 = vst [vmem:[#allocation2 + $0xfc] sm:$0xf] %v563_v0  ;;  %v9443_v32 = vpack.c.bf16 %v247_v9, %v247_v9  ;;  %v450_v37 = vor.u32 %v11499_v58, %v447_v8  ;;  %v333_v41 = vld [vmem:[#allocation2 + $0x108] sm:$0x1]  ;;  %v8759_v0 = vld [vmem:[%s11450_s1 + $0x70] sm:$0xff] }
  0x27   : > { %v731_v36 = vld [vmem:[#allocation2 + $0xf0] sm:$0xf]  ;;  %763 = vst [vmem:[#allocation2 + $0x4c] sm:$0xf] %v9388_v18  ;;  %v8760_v39 = vld [vmem:[%s11450_s1 + $0x78] sm:$0xff]  ;;  %v334_v43 = vsel %vm9260_vm2, 0, %v333_v41 }
  0x28   : > { %1667 = vmatpush.bf16.msra.mxu0 %v8817_v38  ;;  %9136 = vmatpush.bf16.msra.mxu2 %v8817_v38  ;;  %v732_v40 = vsel %vm9317_vm7, %v554_v54, %v731_v36  ;;  %v442_v38 = vor.u32 %v11500_v51, %v439_v1  ;;  %764 = vst [vmem:[#allocation2 + $0x58] sm:$0xf] %v9393_v29  ;;  %v11457_v44 = vshrl.u32 %v9440_v10, 16  ;;  %v11459_v48 = vshrl.u32 %v9443_v32, 16  ;;  %v8750_v8 = vld [vmem:[%s11450_s1 + $0x28] sm:$0xff]  ;;  %v232_v9 = vld [vmem:[%s9257_s6 + $0x30] sm:$0xff] }
  0x29   : > { %1756 = vmatpush.bf16.msra.mxu1 %v8825_v42  ;;  %9144 = vmatpush.bf16.msra.mxu3 %v8825_v42  ;;  %733 = vst [vmem:[#allocation2 + $0xf0] sm:$0xf] %v732_v40  ;;  %v8839_v42 = vld [vmem:[%s11450_s1 + $0x170] sm:$0xff]  ;;  %v451_v47 = vsel %vm9303_vm6, %v443_v30, %v450_v37  ;;  %v11455_v53 = vshll.u32 %v9443_v32, 16  ;;  %v11456_v62 = vshll.u32 %v9440_v10, 16  ;;  %v9499_v36 = vpack.c.bf16 %v232_v9, %v232_v9  ;;  %v241_v58 = vld [vmem:[%s9257_s6 + $0x78] sm:$0xff] }
  0x2a   : > { %706 = vst [vmem:[#allocation2 + $0x54] sm:$0xf] %v451_v47  ;;  %v567_v49 = vrot.slane %v11457_v44, 7  ;;  %v575_v63 = vrot.slane %v11459_v48, 7  ;;  %v9493_v30 = vld [vmem:[#allocation2 + $0x3c] sm:$0xf0] }
  0x2b   : > { %1668 = vmatmul.bf16.vlgmr.msra.gmra.mxu0 %v6824_v13  ;;  %1708 = vmatmul.bf16.vlgmr.msra.gmra.mxu2 %v6920_v14  ;;  %v703_v54 = vld [vmem:[#allocation2 + $0x48] sm:$0xf]  ;;  %335 = vst [vmem:[#allocation2 + $0x108] sm:$0x1] %v334_v43  ;;  %v233_v13 = vld [vmem:[%s9257_s6 + $0x38] sm:$0xff]  ;;  %v256_v50 = vld [vmem:[%s9257_s6 + $0xf0] sm:$0xff] }
  0x2c   : > { %1838 = vmatpush.bf16.msrb.mxu2 %v8840_v5  ;;  %1757 = vmatmul.bf16.vlgmr.msra.gmra.mxu1 %v6828_v34  ;;  %v704_v1 = vsel %vm9317_vm7, %v442_v38, %v703_v54  ;;  %v571_v2 = vrot.slane %v567_v49, 4  ;;  %779 = vst [vmem:[#allocation2 + $0x10c] sm:$0xf] %v9440_v10  ;;  %v578_v5 = vor.u32 %v11455_v53, %v575_v63  ;;  %v9491_v14 = vld [vmem:[#allocation2 + $0x34] sm:$0xf]  ;;  %v8758_v43 = vld [vmem:[%s11450_s1 + $0x68] sm:$0xff] }
  0x2d   : > { %2327 = vmatpush.bf16.msrb.mxu3 %v8752_v7  ;;  %2416 = vmatpush.bf16.msrb.mxu0 %v8760_v39  ;;  %705 = vst [vmem:[#allocation2 + $0x48] sm:$0xf] %v704_v1  ;;  %v8838_v7 = vld [vmem:[%s11450_s1 + $0x168] sm:$0xff]  ;;  %v570_v34 = vor.u32 %v11456_v62, %v567_v49  ;;  %v9501_v37 = vpack.c.bf16 %v233_v13, %v233_v13  ;;  %v312_v41 = vld [vmem:[#allocation2 + $0x60] sm:$0x1]  ;;  %v248_v39 = vld [vmem:[%s9257_s6 + $0xb0] sm:$0xff] }
  0x2e   : > { %1797 = vmatmul.bf16.vlgmr.msra.gmra.mxu3 %v6924_v35  ;;  %780 = vst [vmem:[#allocation2 + $0x118] sm:$0xf] %v9443_v32  ;;  %v579_v35 = vsel %vm9303_vm6, %v571_v2, %v578_v5  ;;  %v6835_v40 = vld [vmem:[#allocation2 + $0x30] sm:$0xf]  ;;  %v8773_v38 = vld [vmem:[#allocation2 + $0x38] sm:$0xf0]  ;;  %v9510_v47 = vpack.c.bf16 %v248_v39, %v248_v39 }
  0x2f   : > { %738 = vst [vmem:[#allocation2 + $0x114] sm:$0xf] %v579_v35  ;;  %v8797_v49 = vld [vmem:[#allocation2 + $0xf8] sm:$0xf0]  ;;  %v11496_v54 = vshrl.u32 %v9499_v36, 16  ;;  %v11495_v63 = vshll.u32 %v9499_v36, 16 }
  0x30   : > { %1839 = vmatpush.bf16.msrb.mxu2 %v8839_v42  ;;  %v313_v42 = vsel %vm9260_vm2, 0, %v312_v41  ;;  %v11477_v2 = vshrl.u32 %v9501_v37, 16  ;;  %v11486_v5 = vshll.u32 %v9501_v37, 16  ;;  %765 = vst [vmem:[#allocation2 + $0x64] sm:$0xf] %v9499_v36  ;;  %v11458_v35 = vshrl.u32 %v9510_v47, 16 }
  0x31   : > { %2328 = vmatpush.bf16.msrb.mxu3 %v8751_v45  ;;  %2417 = vmatpush.bf16.msrb.mxu0 %v8759_v0  ;;  %v249_v45 = vld [vmem:[%s9257_s6 + $0xb8] sm:$0xff]  ;;  %314 = vst [vmem:[#allocation2 + $0x60] sm:$0x1] %v313_v42  ;;  %v8796_v0 = vld [vmem:[#allocation2 + $0xf4] sm:$0xf]  ;;  %v6840_v41 = vor.u32 %v9491_v14, %v9493_v30  ;;  %v8753_v11 = vld [vmem:[%s11450_s1 + $0x40] sm:$0xff] }
  0x32   : > { %v735_v1 = vld [vmem:[#allocation2 + $0x108] sm:$0xf]  ;;  %v9517_v9 = vpack.c.bf16 %v249_v45, %v249_v45  ;;  %v6931_v13 = vld [vmem:[#allocation2 + $0xf0] sm:$0xf]  ;;  %766 = vst [vmem:[#allocation2 + $0x70] sm:$0xf] %v9501_v37  ;;  %v6836_v45 = vor.u32 %v8773_v38, %v6835_v40 }
  0x33   : > { %v6933_v39 = vld [vmem:[#allocation2 + $0xfc] sm:$0xf0]  ;;  %v463_v42 = vrot.slane %v11477_v2, 7  ;;  %v583_v62 = vrot.slane %v11458_v35, 7  ;;  %v6932_v44 = vor.u32 %v8797_v49, %v6931_v13  ;;  %781 = vst [vmem:[#allocation2 + $0x124] sm:$0xf] %v9510_v47 }
  0x34   : > { %1840 = vmatpush.bf16.msrb.mxu2 %v8838_v7  ;;  %v736_v7 = vsel %vm9317_vm7, %v570_v34, %v735_v1  ;;  %v336_v53 = vld [vmem:[#allocation2 + $0x120] sm:$0x1]  ;;  %v315_v40 = vld [vmem:[#allocation2 + $0x78] sm:$0x1]  ;;  %v6936_v38 = vor.u32 %v8796_v0, %v6933_v39  ;;  %v11461_v35 = vshll.u32 %v9517_v9, 16  ;;  %v235_v39 = vld [vmem:[%s9257_s6 + $0x48] sm:$0xff] }
  0x35   : > { %2329 = vmatpush.bf16.msrb.mxu3 %v8750_v8  ;;  %v455_v8 = vrot.slane %v11496_v54, 7  ;;  %737 = vst [vmem:[#allocation2 + $0x108] sm:$0xf] %v736_v7  ;;  %2418 = vmatpush.bf16.msrb.mxu0 %v8758_v43  ;;  %v466_v14 = vor.u32 %v11486_v5, %v463_v42  ;;  %v337_v30 = vsel %vm9260_vm2, 0, %v336_v53  ;;  %v11460_v43 = vshrl.u32 %v9517_v9, 16  ;;  %v234_v42 = vld [vmem:[%s9257_s6 + $0x40] sm:$0xff] }
  0x36   : > { %338 = vst [vmem:[#allocation2 + $0x120] sm:$0x1] %v337_v30  ;;  %v11462_v7 = vshll.u32 %v9510_v47, 16  ;;  %v9550_v30 = vpack.c.bf16 %v234_v42, %v234_v42  ;;  %v316_v48 = vsel %vm9260_vm2, 0, %v315_v40  ;;  %v6849_v23 = vld [vmem:[#allocation2 + $0x54] sm:$0xf0] }
  0x37   : > { %v458_v34 = vor.u32 %v11495_v63, %v455_v8  ;;  %v459_v1 = vrot.slane %v455_v8, 4  ;;  %v587_v8 = vrot.slane %v583_v62, 4  ;;  %v591_v53 = vrot.slane %v11460_v43, 7  ;;  %782 = vst [vmem:[#allocation2 + $0x130] sm:$0xf] %v9517_v9  ;;  %v250_v43 = vld [vmem:[%s9257_s6 + $0xc0] sm:$0xff] }
  0x38   : > { %v707_v13 = vld [vmem:[#allocation2 + $0x60] sm:$0xf]  ;;  %317 = vst [vmem:[#allocation2 + $0x78] sm:$0x1] %v316_v48  ;;  %v8799_v6 = vld [vmem:[#allocation2 + $0x10c] sm:$0xf] }
  0x39   : > { %v467_v49 = vsel %vm9303_vm6, %v459_v1, %v466_v14  ;;  %v708_v0 = vsel %vm9317_vm7, %v458_v34, %v707_v13  ;;  %v594_v1 = vor.u32 %v11461_v35, %v591_v53  ;;  %v9556_v14 = vpack.c.bf16 %v235_v39, %v235_v39  ;;  %767 = vst [vmem:[#allocation2 + $0x7c] sm:$0xf] %v9550_v30  ;;  %v251_v13 = vld [vmem:[%s9257_s6 + $0xc8] sm:$0xff]  ;;  %v324_v63 = vld [vmem:[#allocation2 + $0xc0] sm:$0x1] }
  0x3a   : > { %710 = vst [vmem:[#allocation2 + $0x6c] sm:$0xf] %v467_v49  ;;  %v586_v34 = vor.u32 %v11462_v7, %v583_v62  ;;  %v8837_v49 = vld [vmem:[%s11450_s1 + $0x160] sm:$0xff]  ;;  %v11474_v62 = vshrl.u32 %v9550_v30, 16  ;;  %v9583_v42 = vpack.c.bf16 %v251_v13, %v251_v13  ;;  %v6847_v35 = vld [vmem:[#allocation2 + $0x48] sm:$0xf] }
  0x3b   : > { %1673 = vmatmul.bf16.gmra.mxu0 %v6836_v45  ;;  %1713 = vmatmul.bf16.gmra.mxu2 %v6932_v44  ;;  %709 = vst [vmem:[#allocation2 + $0x60] sm:$0xf] %v708_v0  ;;  %v8749_v44 = vld [vmem:[%s11450_s1 + $0x20] sm:$0xff]  ;;  %v9567_v45 = vpack.c.bf16 %v250_v43, %v250_v43  ;;  %v595_v40 = vsel %vm9303_vm6, %v587_v8, %v594_v1  ;;  %v11475_v48 = vshrl.u32 %v9556_v14, 16  ;;  %v11472_v43 = vshll.u32 %v9556_v14, 16 }
  0x3c   : > { %1762 = vmatmul.bf16.gmra.mxu1 %v6840_v41  ;;  %v8757_v41 = vld [vmem:[%s11450_s1 + $0x60] sm:$0xff]  ;;  %742 = vst [vmem:[#allocation2 + $0x12c] sm:$0xf] %v595_v40  ;;  %1841 = vmatpush.bf16.msrb.mxu2 %v8837_v49  ;;  %v471_v8 = vrot.slane %v11474_v62, 7  ;;  %v339_v49 = vld [vmem:[#allocation2 + $0x138] sm:$0x1] }
  0x3d   : > { %2330 = vmatpush.bf16.msrb.mxu3 %v8749_v44  ;;  %v739_v53 = vld [vmem:[#allocation2 + $0x120] sm:$0xf]  ;;  %2419 = vmatpush.bf16.msrb.mxu0 %v8757_v41  ;;  %768 = vst [vmem:[#allocation2 + $0x88] sm:$0xf] %v9556_v14  ;;  %v11468_v0 = vshrl.u32 %v9567_v45, 16  ;;  %v479_v1 = vrot.slane %v11475_v48, 7 }
  0x3e   : > { %1802 = vmatmul.bf16.gmra.mxu3 %v6936_v38  ;;  %v11473_v38 = vshll.u32 %v9550_v30, 16  ;;  %v740_v39 = vsel %vm9317_vm7, %v586_v34, %v739_v53  ;;  %v475_v40 = vrot.slane %v471_v8, 4  ;;  %v340_v41 = vsel %vm9260_vm2, 0, %v339_v49  ;;  %v8776_v13 = vld [vmem:[#allocation2 + $0x50] sm:$0xf0] }
  0x3f   : > { %741 = vst [vmem:[#allocation2 + $0x120] sm:$0xf] %v740_v39  ;;  %v8800_v7 = vld [vmem:[#allocation2 + $0x110] sm:$0xf0]  ;;  %v482_v27 = vor.u32 %v11472_v43, %v479_v1  ;;  %v599_v34 = vrot.slane %v11468_v0, 7  ;;  %v11480_v53 = vshll.u32 %v9567_v45, 16  ;;  %v6848_v43 = vor.u32 %v8776_v13, %v6847_v35 }
  0x40   : > { %v474_v44 = vor.u32 %v11473_v38, %v471_v8  ;;  %341 = vst [vmem:[#allocation2 + $0x138] sm:$0x1] %v340_v41  ;;  %v8775_v39 = vld [vmem:[#allocation2 + $0x4c] sm:$0xf]  ;;  %v711_v15 = vld [vmem:[#allocation2 + $0x78] sm:$0xf] }
  0x41   : > { %v11476_v8 = vshrl.u32 %v9583_v42, 16  ;;  %v11479_v49 = vshll.u32 %v9583_v42, 16  ;;  %783 = vst [vmem:[#allocation2 + $0x13c] sm:$0xf] %v9567_v45  ;;  %v6943_v31 = vld [vmem:[#allocation2 + $0x108] sm:$0xf]  ;;  %v483_v1 = vsel %vm9303_vm6, %v475_v40, %v482_v27  ;;  %v602_v26 = vor.u32 %v11480_v53, %v599_v34 }
  0x42   : > { %v712_v41 = vsel %vm9317_vm7, %v474_v44, %v711_v15  ;;  %784 = vst [vmem:[#allocation2 + $0x148] sm:$0xf] %v9583_v42  ;;  %v6945_v0 = vld [vmem:[#allocation2 + $0x114] sm:$0xf0]  ;;  %v603_v25 = vrot.slane %v599_v34, 4  ;;  %v6944_v27 = vor.u32 %v8800_v7, %v6943_v31  ;;  %v6852_v44 = vor.u32 %v8775_v39, %v6849_v23  ;;  %v236_v62 = vld [vmem:[%s9257_s6 + $0x50] sm:$0xff] }
  0x43   : > { %713 = vst [vmem:[#allocation2 + $0x78] sm:$0xf] %v712_v41  ;;  %v607_v24 = vrot.slane %v11476_v8, 7  ;;  %v318_v15 = vld [vmem:[#allocation2 + $0x90] sm:$0x1]  ;;  %v6948_v38 = vor.u32 %v8799_v6, %v6945_v0  ;;  %v237_v41 = vld [vmem:[%s9257_s6 + $0x58] sm:$0xff] }
  0x44   : > { %714 = vst [vmem:[#allocation2 + $0x84] sm:$0xf] %v483_v1  ;;  %v9617_v1 = vpack.c.bf16 %v236_v62, %v236_v62  ;;  %v9619_v2 = vpack.c.bf16 %v237_v41, %v237_v41  ;;  %v319_v35 = vsel %vm9260_vm2, 0, %v318_v15  ;;  %v253_v23 = vld [vmem:[%s9257_s6 + $0xd8] sm:$0xff]  ;;  %v342_v6 = vld [vmem:[#allocation2 + $0x150] sm:$0x1] }
  0x45   : > { %v610_v40 = vor.u32 %v11479_v49, %v607_v24  ;;  %v252_v24 = vld [vmem:[%s9257_s6 + $0xd0] sm:$0xff]  ;;  %v8836_v62 = vld [vmem:[%s11450_s1 + $0x158] sm:$0xff]  ;;  %320 = vst [vmem:[#allocation2 + $0x90] sm:$0x1] %v319_v35  ;;  %v343_v34 = vsel %vm9260_vm2, 0, %v342_v6  ;;  %v325_v51 = vsel %vm9260_vm2, 0, %v324_v63 }
  0x46   : > { %v9628_v7 = vpack.c.bf16 %v252_v24, %v252_v24  ;;  %v11485_v13 = vshrl.u32 %v9619_v2, 16  ;;  %1842 = vmatpush.bf16.msrb.mxu2 %v8836_v62  ;;  %v11482_v39 = vshll.u32 %v9619_v2, 16  ;;  %769 = vst [vmem:[#allocation2 + $0x94] sm:$0xf] %v9617_v1  ;;  %v6859_v62 = vld [vmem:[#allocation2 + $0x60] sm:$0xf] }
  0x47   : > { %v611_v48 = vsel %vm9303_vm6, %v603_v25, %v610_v40  ;;  %v743_v8 = vld [vmem:[#allocation2 + $0x138] sm:$0xf]  ;;  %v11484_v25 = vshrl.u32 %v9617_v1, 16  ;;  %770 = vst [vmem:[#allocation2 + $0xa0] sm:$0xf] %v9619_v2  ;;  %v8834_v63 = vld [vmem:[%s11450_s1 + $0x148] sm:$0xff] }
  0x48   : > { %v744_v31 = vsel %vm9317_vm7, %v602_v26, %v743_v8  ;;  %746 = vst [vmem:[#allocation2 + $0x144] sm:$0xf] %v611_v48  ;;  %v8748_v26 = vld [vmem:[%s11450_s1 + $0x18] sm:$0xff]  ;;  %v9636_v48 = vpack.c.bf16 %v253_v23, %v253_v23  ;;  %v11478_v8 = vshrl.u32 %v9628_v7, 16  ;;  %v495_v40 = vrot.slane %v11485_v13, 7 }
  0x49   : > { %745 = vst [vmem:[#allocation2 + $0x138] sm:$0xf] %v744_v31  ;;  %v487_v0 = vrot.slane %v11484_v25, 7  ;;  %2331 = vmatpush.bf16.msrb.mxu3 %v8748_v26  ;;  %v11487_v15 = vshll.u32 %v9628_v7, 16  ;;  %v8779_v26 = vld [vmem:[#allocation2 + $0x68] sm:$0xf0] }
  0x4a   : > { %344 = vst [vmem:[#allocation2 + $0x150] sm:$0x1] %v343_v34  ;;  %v615_v41 = vrot.slane %v11478_v8, 7  ;;  %v11481_v35 = vshrl.u32 %v9636_v48, 16  ;;  %v11488_v31 = vshll.u32 %v9636_v48, 16  ;;  %v498_v24 = vor.u32 %v11482_v39, %v495_v40 }
  0x4b   : > { %1678 = vmatmul.bf16.gmra.mxu0 %v6848_v43  ;;  %1718 = vmatmul.bf16.gmra.mxu2 %v6944_v27  ;;  %v8756_v43 = vld [vmem:[%s11450_s1 + $0x58] sm:$0xff]  ;;  %v491_v27 = vrot.slane %v487_v0, 4  ;;  %785 = vst [vmem:[#allocation2 + $0x154] sm:$0xf] %v9628_v7  ;;  %v6955_v49 = vld [vmem:[#allocation2 + $0x120] sm:$0xf] }
  0x4c   : > { %1767 = vmatmul.bf16.gmra.mxu1 %v6852_v44  ;;  %2420 = vmatpush.bf16.msrb.mxu0 %v8756_v43  ;;  %v619_v23 = vrot.slane %v615_v41, 4  ;;  %v623_v6 = vrot.slane %v11481_v35, 7  ;;  %786 = vst [vmem:[#allocation2 + $0x160] sm:$0xf] %v9636_v48  ;;  %v8778_v43 = vld [vmem:[#allocation2 + $0x64] sm:$0xf]  ;;  %v618_v35 = vor.u32 %v11487_v15, %v615_v41 }
  0x4d   : > { %v499_v34 = vsel %vm9303_vm6, %v491_v27, %v498_v24  ;;  %v715_v8 = vld [vmem:[#allocation2 + $0x90] sm:$0xf]  ;;  %v8803_v53 = vld [vmem:[#allocation2 + $0x128] sm:$0xf0]  ;;  %v6860_v24 = vor.u32 %v8779_v26, %v6859_v62  ;;  %v238_v15 = vld [vmem:[%s9257_s6 + $0x60] sm:$0xff] }
  0x4e   : > { %1807 = vmatmul.bf16.gmra.mxu3 %v6948_v38  ;;  %v11483_v38 = vshll.u32 %v9617_v1, 16  ;;  %718 = vst [vmem:[#allocation2 + $0x9c] sm:$0xf] %v499_v34  ;;  %v626_v39 = vor.u32 %v11488_v31, %v623_v6  ;;  %v6957_v25 = vld [vmem:[#allocation2 + $0x12c] sm:$0xf0]  ;;  %v6956_v13 = vor.u32 %v8803_v53, %v6955_v49  ;;  %v239_v6 = vld [vmem:[%s9257_s6 + $0x68] sm:$0xff]  ;;  %v9682_v31 = vpack.c.bf16 %v238_v15, %v238_v15 }
  0x4f   : > { %v254_v53 = vld [vmem:[%s9257_s6 + $0xe0] sm:$0xff]  ;;  %v8747_v15 = vld [vmem:[%s11450_s1 + $0x10] sm:$0xff]  ;;  %326 = vst [vmem:[#allocation2 + $0xc0] sm:$0x1] %v325_v51  ;;  %vm352_vm9 = vsmask.f32 7950 }
  0x50   : > { %v490_v44 = vor.u32 %v11483_v38, %v487_v0  ;;  %v6861_v0 = vld [vmem:[#allocation2 + $0x6c] sm:$0xf0]  ;;  %v8802_v38 = vld [vmem:[#allocation2 + $0x124] sm:$0xf]  ;;  %v627_v27 = vsel %vm9303_vm6, %v619_v23, %v626_v39  ;;  %v9684_v39 = vpack.c.bf16 %v239_v6, %v239_v6  ;;  %v11491_v49 = vshrl.u32 %v9682_v31, 16  ;;  %2332 = vmatpush.bf16.msrb.mxu3 %v8747_v15  ;;  %vm9803_vm10 = vmand %vm351_vm8, %vm352_vm9 }
  0x51   : > { %v747_v5 = vld [vmem:[#allocation2 + $0x150] sm:$0xf]  ;;  %750 = vst [vmem:[#allocation2 + $0x15c] sm:$0xf] %v627_v27  ;;  %v6960_v34 = vor.u32 %v8802_v38, %v6957_v25  ;;  %v255_v38 = vld [vmem:[%s9257_s6 + $0xe8] sm:$0xff] }
  0x52   : > { %v716_v40 = vsel %vm9317_vm7, %v490_v44, %v715_v8  ;;  %v321_v8 = vld [vmem:[#allocation2 + $0xa8] sm:$0x1]  ;;  %v6864_v44 = vor.u32 %v8778_v43, %v6861_v0  ;;  %v748_v41 = vsel %vm9317_vm7, %v618_v35, %v747_v5  ;;  %v11494_v25 = vshrl.u32 %v9684_v39, 16  ;;  %v8835_v5 = vld [vmem:[%s11450_s1 + $0x150] sm:$0xff]  ;;  %771 = vst [vmem:[#allocation2 + $0xac] sm:$0xf] %v9682_v31 }
  0x53   : > { %717 = vst [vmem:[#allocation2 + $0x90] sm:$0xf] %v716_v40  ;;  %v322_v40 = vsel %vm9260_vm2, 0, %v321_v8  ;;  %v11490_v35 = vshll.u32 %v9682_v31, 16  ;;  %v11489_v23 = vshll.u32 %v9684_v39, 16  ;;  %v8755_v62 = vld [vmem:[%s11450_s1 + $0x50] sm:$0xff]  ;;  %v9708_v0 = vpack.c.bf16 %v255_v38, %v255_v38  ;;  %1843 = vmatpush.bf16.msrb.mxu2 %v8835_v5 }
  0x54   : > { %749 = vst [vmem:[#allocation2 + $0x150] sm:$0xf] %v748_v41  ;;  %v503_v26 = vrot.slane %v11491_v49, 7  ;;  %v511_v43 = vrot.slane %v11494_v25, 7  ;;  %v345_v27 = vld [vmem:[#allocation2 + $0x168] sm:$0x1]  ;;  %2421 = vmatpush.bf16.msrb.mxu0 %v8755_v62 }
  0x55   : > { %323 = vst [vmem:[#allocation2 + $0xa8] sm:$0x1] %v322_v40  ;;  %v11493_v38 = vshrl.u32 %v9708_v0, 16  ;;  %v11503_v5 = vshll.u32 %v9708_v0, 16  ;;  %v6871_v15 = vld [vmem:[#allocation2 + $0x78] sm:$0xf] }
  0x56   : > { %772 = vst [vmem:[#allocation2 + $0xb8] sm:$0xf] %v9684_v39  ;;  %v507_v8 = vrot.slane %v503_v26, 4  ;;  %v6873_v49 = vld [vmem:[#allocation2 + $0x84] sm:$0xf0] }
  0x57   : > { %788 = vst [vmem:[#allocation2 + $0x178] sm:$0xf] %v9708_v0  ;;  %1844 = vmatpush.bf16.msrb.mxu2 %v8834_v63  ;;  %vm791_vm11 = vsmask.f32 3328  ;;  %vm792_vm12 = vsmask.f32 7440 }
  0x58   : > { %vm9832_vm13 = vmor %vm791_vm11, %vm792_vm12 }
  0x59   : > { %vm9840_vm14 = vmand %vm692_vm3, %vm791_vm11 }
  0x5b   : > { %1683 = vmatmul.bf16.gmra.mxu0 %v6860_v24  ;;  %1723 = vmatmul.bf16.gmra.mxu2 %v6956_v13  ;;  %v9698_v13 = vpack.c.bf16 %v254_v53, %v254_v53  ;;  %v506_v24 = vor.u32 %v11490_v35, %v503_v26 }
  0x5c   : > { %1772 = vmatmul.bf16.gmra.mxu1 %v6864_v44  ;;  %v514_v44 = vor.u32 %v11489_v23, %v511_v43  ;;  %v719_v53 = vld [vmem:[#allocation2 + $0xa8] sm:$0xf]  ;;  %v8782_v43 = vld [vmem:[#allocation2 + $0x80] sm:$0xf0] }
  0x5d   : > { %787 = vst [vmem:[#allocation2 + $0x16c] sm:$0xf] %v9698_v13  ;;  %v11492_v41 = vshrl.u32 %v9698_v13, 16  ;;  %v11498_v6 = vshll.u32 %v9698_v13, 16  ;;  %v720_v62 = vsel %vm9317_vm7, %v506_v24, %v719_v53  ;;  %v8805_v24 = vld [vmem:[#allocation2 + $0x13c] sm:$0xf] }
  0x5e   : > { %1812 = vmatmul.bf16.gmra.mxu3 %v6960_v34  ;;  %v346_v34 = vsel %vm9260_vm2, 0, %v345_v27  ;;  %v515_v40 = vsel %vm9303_vm6, %v507_v8, %v514_v44  ;;  %v8781_v27 = vld [vmem:[#allocation2 + $0x7c] sm:$0xf]  ;;  %721 = vst [vmem:[#allocation2 + $0xa8] sm:$0xf] %v720_v62  ;;  %v639_v8 = vrot.slane %v11493_v38, 7 }
  0x5f   : > { %347 = vst [vmem:[#allocation2 + $0x168] sm:$0x1] %v346_v34  ;;  %v631_v26 = vrot.slane %v11492_v41, 7  ;;  %v6967_v44 = vld [vmem:[#allocation2 + $0x138] sm:$0xf]  ;;  %v6872_v41 = vor.u32 %v8782_v43, %v6871_v15  ;;  %v6876_v54 = vor.u32 %v8781_v27, %v6873_v49  ;;  %v9746_v43 = vpack.c.bf16 %v241_v58, %v241_v58  ;;  %v8746_v58 = vld [vmem:[%s11450_s1 + $0x8] sm:$0xff] }
  0x60   : > { %722 = vst [vmem:[#allocation2 + $0xb4] sm:$0xf] %v515_v40  ;;  %v8806_v34 = vld [vmem:[#allocation2 + $0x140] sm:$0xf0]  ;;  %v6969_v40 = vld [vmem:[#allocation2 + $0x144] sm:$0xf0]  ;;  %v642_v53 = vor.u32 %v11503_v5, %v639_v8  ;;  %2333 = vmatpush.bf16.msrb.mxu3 %v8746_v58 }
  0x61   : > { %v634_v23 = vor.u32 %v11498_v6, %v631_v26  ;;  %v635_v35 = vrot.slane %v631_v26, 4  ;;  %v6968_v62 = vor.u32 %v8806_v34, %v6967_v44  ;;  %v6972_v55 = vor.u32 %v8805_v24, %v6969_v40  ;;  %v240_v26 = vld [vmem:[%s9257_s6 + $0x70] sm:$0xff]  ;;  %v348_v8 = vld [vmem:[#allocation2 + $0x180] sm:$0x1]  ;;  %774 = vst [vmem:[#allocation2 + $0xd0] sm:$0xf] %v9746_v43 }
  0x62   : > { %v9744_v15 = vpack.c.bf16 %v240_v26, %v240_v26  ;;  %v11508_v51 = vshrl.u32 %v9746_v43, 16  ;;  %v723_v58 = vld [vmem:[#allocation2 + $0xc0] sm:$0xf]  ;;  %v6979_v5 = vld [vmem:[#allocation2 + $0x150] sm:$0xf] }
  0x63   : > { %v643_v38 = vsel %vm9303_vm6, %v635_v35, %v642_v53  ;;  %v9748_v35 = vpack.c.bf16 %v256_v50, %v256_v50  ;;  %v8754_v50 = vld [vmem:[%s11450_s1 + $0x48] sm:$0xff] }
  0x64   : > { %754 = vst [vmem:[#allocation2 + $0x174] sm:$0xf] %v643_v38  ;;  %v11507_v49 = vshrl.u32 %v9744_v15, 16  ;;  %v527_v38 = vrot.slane %v11508_v51, 7  ;;  %2422 = vmatpush.bf16.msrb.mxu0 %v8754_v50 }
  0x65   : > { %773 = vst [vmem:[#allocation2 + $0xc4] sm:$0xf] %v9744_v15  ;;  %v11502_v44 = vshrl.u32 %v9748_v35, 16  ;;  %v11510_v40 = vshll.u32 %v9748_v35, 16 }
  0x66   : > { %v751_v25 = vld [vmem:[#allocation2 + $0x168] sm:$0xf]  ;;  %789 = vst [vmem:[#allocation2 + $0x184] sm:$0xf] %v9748_v35 }
  0x67   : > { %v752_v6 = vsel %vm9317_vm7, %v634_v23, %v751_v25  ;;  %v11506_v25 = vshll.u32 %v9744_v15, 16  ;;  %v11504_v23 = vshll.u32 %v9746_v43, 16 }
  0x68   : > { %753 = vst [vmem:[#allocation2 + $0x168] sm:$0xf] %v752_v6  ;;  %v349_v6 = vsel %vm9260_vm2, 0, %v348_v8  ;;  %2423 = vmatpush.bf16.msrb.mxu0 %v8753_v11  ;;  %v8763_v11 = vld [vmem:[%s11450_s1 + $0x90] sm:$0xff] }
  0x69   : > { %350 = vst [vmem:[#allocation2 + $0x180] sm:$0x1] %v349_v6  ;;  %v530_v53 = vor.u32 %v11504_v23, %v527_v38  ;;  %v8784_v6 = vld [vmem:[#allocation2 + $0x94] sm:$0xf]  ;;  %v8809_v23 = vld [vmem:[#allocation2 + $0x158] sm:$0xf0] }
  0x6a   : > { %v6909_v52 = vld [vmem:[#allocation2 + $0xcc] sm:$0xf0] }
  0x6b   : > { %1688 = vmatmul.bf16.gmra.mxu0 %v6872_v41  ;;  %1728 = vmatmul.bf16.gmra.mxu2 %v6968_v62  ;;  %v257_v41 = vld [vmem:[%s9257_s6 + $0xf8] sm:$0xff]  ;;  %v647_v62 = vrot.slane %v11502_v44, 7 }
  0x6c   : > { %1777 = vmatmul.bf16.gmra.mxu1 %v6876_v54  ;;  %v519_v54 = vrot.slane %v11507_v49, 7  ;;  %v9775_v27 = vpack.c.bf16 %v257_v41, %v257_v41  ;;  %v8785_v41 = vld [vmem:[#allocation2 + $0x98] sm:$0xf0] }
  0x6d   : > { %v651_v50 = vrot.slane %v647_v62, 4  ;;  %v650_v44 = vor.u32 %v11510_v40, %v647_v62 }
  0x6e   : > { %1817 = vmatmul.bf16.gmra.mxu3 %v6972_v55  ;;  %v8768_v55 = vld [vmem:[%s11450_s1 + $0xb8] sm:$0xff]  ;;  %v522_v34 = vor.u32 %v11506_v25, %v519_v54  ;;  %v523_v24 = vrot.slane %v519_v54, 4  ;;  %v11505_v26 = vshrl.u32 %v9775_v27, 16  ;;  %v11509_v8 = vshll.u32 %v9775_v27, 16  ;;  %790 = vst [vmem:[#allocation2 + $0x190] sm:$0xf] %v9775_v27 }
  0x6f   : > { %2505 = vmatpush.bf16.msrb.mxu1 %v8768_v55  ;;  %v6883_v54 = vld [vmem:[#allocation2 + $0x90] sm:$0xf]  ;;  %v6981_v25 = vld [vmem:[#allocation2 + $0x15c] sm:$0xf0] }
  0x70   : > { %v531_v63 = vsel %vm9303_vm6, %v523_v24, %v530_v53  ;;  %v655_v55 = vrot.slane %v11505_v26, 7  ;;  %v724_v38 = vsel %vm9317_vm7, %v522_v34, %v723_v58  ;;  %v6885_v53 = vld [vmem:[#allocation2 + $0x9c] sm:$0xf0]  ;;  %v8808_v26 = vld [vmem:[#allocation2 + $0x154] sm:$0xf]  ;;  %v6884_v34 = vor.u32 %v8785_v41, %v6883_v54 }
  0x71   : > { %726 = vst [vmem:[#allocation2 + $0xcc] sm:$0xf] %v531_v63  ;;  %v755_v51 = vld [vmem:[#allocation2 + $0x180] sm:$0xf]  ;;  %v6980_v63 = vor.u32 %v8809_v23, %v6979_v5  ;;  %v8767_v5 = vld [vmem:[%s11450_s1 + $0xb0] sm:$0xff]  ;;  %v798_v23 = vrot.slane %v416_v22, 5 }
  0x72   : > { %725 = vst [vmem:[#allocation2 + $0xc0] sm:$0xf] %v724_v38  ;;  %v658_v24 = vor.u32 %v11509_v8, %v655_v55  ;;  %v756_v62 = vsel %vm9317_vm7, %v650_v44, %v755_v51  ;;  %v354_v55 = vld [vmem:[#allocation2 + $0x2c] sm:$0x8]  ;;  %v6888_v38 = vor.u32 %v8784_v6, %v6885_v53  ;;  %v6984_v8 = vor.u32 %v8808_v26, %v6981_v25  ;;  %v8833_v51 = vld [vmem:[%s11450_s1 + $0x140] sm:$0xff] }
  0x73   : > { %757 = vst [vmem:[#allocation2 + $0x180] sm:$0xf] %v756_v62  ;;  %v795_v25 = vrot.slane %v408_v20, 5  ;;  %2506 = vmatpush.bf16.msrb.mxu1 %v8767_v5  ;;  %1845 = vmatpush.bf16.msrb.mxu2 %v8833_v51  ;;  %v8788_v6 = vld [vmem:[#allocation2 + $0xb0] sm:$0xf0] }
  0x74   : > { %v659_v49 = vsel %vm9303_vm6, %v651_v50, %v658_v24  ;;  %v355_v50 = vsel %vm9803_vm10, 0, %v354_v55  ;;  %v800_v24 = vrot.slane %v413_v21, 4  ;;  %v8745_v21 = vld [vmem:[%s11450_s1] sm:$0xff]  ;;  %v6895_v62 = vld [vmem:[#allocation2 + $0xa8] sm:$0xf] }
  0x75   : > { %758 = vst [vmem:[#allocation2 + $0x18c] sm:$0xf] %v659_v49  ;;  %v794_v49 = vrot.slane %v405_v19, 4  ;;  %v8766_v19 = vld [vmem:[%s11450_s1 + $0xa8] sm:$0xff]  ;;  %2334 = vmatpush.bf16.msrb.mxu3 %v8745_v21  ;;  %v8764_v21 = vld [vmem:[%s11450_s1 + $0x98] sm:$0xff] }
  0x76   : > { %356 = vst [vmem:[#allocation2 + $0x2c] sm:$0x8] %v355_v50  ;;  %v801_v44 = vor.u32 %v800_v24, %v798_v23  ;;  %v8787_v55 = vld [vmem:[#allocation2 + $0xac] sm:$0xf]  ;;  %v6991_v50 = vld [vmem:[#allocation2 + $0x168] sm:$0xf] }
  0x77   : > { %v796_v20 = vor.u32 %v795_v25, %v794_v49  ;;  %2507 = vmatpush.bf16.msrb.mxu1 %v8766_v19  ;;  %v8812_v24 = vld [vmem:[#allocation2 + $0x170] sm:$0xf0]  ;;  %v8811_v5 = vld [vmem:[#allocation2 + $0x16c] sm:$0xf]  ;;  %v6993_v49 = vld [vmem:[#allocation2 + $0x174] sm:$0xf0]  ;;  %v6896_v25 = vor.u32 %v8788_v6, %v6895_v62 }
  0x78   : > { %v802_v22 = vrot.slane %v801_v44, 4  ;;  %v6992_v51 = vor.u32 %v8812_v24, %v6991_v50  ;;  %v6996_v19 = vor.u32 %v8811_v5, %v6993_v49  ;;  %v8896_v44 = vld [vmem:[%s11450_s1 + $0x1b8] sm:$0xff]  ;;  %v807_v6 = vrot.slane %v432_v60, 5  ;;  %v8761_v62 = vld [vmem:[%s11450_s1 + $0x80] sm:$0xff]  ;;  %v8791_v60 = vld [vmem:[#allocation2 + $0xc8] sm:$0xf0] }
  0x79   : > { %v797_v12 = vrot.slane %v796_v20, 4  ;;  %v803_v20 = vrot.slane %v421_v56, 4  ;;  %3108 = vmatpush.bf16.msra.mxu2 %v8896_v44  ;;  %v8762_v56 = vld [vmem:[%s11450_s1 + $0x88] sm:$0xff]  ;;  %v8814_v49 = vld [vmem:[#allocation2 + $0x184] sm:$0xf] }
  0x7a   : > { %v7003_v50 = vld [vmem:[#allocation2 + $0x180] sm:$0xf] }
  0x7b   : > { %1693 = vmatmul.bf16.gmra.mxu0 %v6884_v34  ;;  %1733 = vmatmul.bf16.gmra.mxu2 %v6980_v63  ;;  %v799_v53 = vsel %vm9832_vm13, %v797_v12, %v798_v23  ;;  %v9198_v63 = vmov 0   ;;  %v8904_v12 = vld [vmem:[%s11450_s1 + $0x1f8] sm:$0xff] }
  0x7c   : > { %1782 = vmatmul.bf16.gmra.mxu1 %v6888_v38  ;;  %290 = vst [vmem:[#allocation2] sm:$0xff] %v9198_v63  ;;  %v6897_v38 = vld [vmem:[#allocation2 + $0xb4] sm:$0xf0]  ;;  %3197 = vmatpush.bf16.msra.mxu3 %v8904_v12  ;;  %v8815_v24 = vld [vmem:[#allocation2 + $0x188] sm:$0xf0]  ;;  %v11532_v12 = vshrl.u32 %v9388_v18, 16 }
  0x7d   : > { %v972_v41 = vld [vmem:[#allocation2 + $0x2c] sm:$0xf]  ;;  %970 = vst [vmem:[#allocation2 + $0x20] sm:$0xf] %v799_v53  ;;  %v6900_v23 = vor.u32 %v8787_v55, %v6897_v38  ;;  %v809_v53 = vrot.slane %v429_v59, 4 }
  0x7e   : > { %1822 = vmatmul.bf16.gmra.mxu3 %v6984_v8  ;;  %v8765_v8 = vld [vmem:[%s11450_s1 + $0xa0] sm:$0xff]  ;;  %v973_v34 = vsel %vm9840_vm14, %v802_v22, %v972_v41  ;;  %292 = vst [vmem:[#allocation2 + $0xc] sm:$0xff] %v9198_v63  ;;  %v804_v22 = vrot.slane %v424_v3, 5 }
  0x7f   : > { %974 = vst [vmem:[#allocation2 + $0x2c] sm:$0xf] %v973_v34  ;;  %2508 = vmatpush.bf16.msrb.mxu1 %v8765_v8  ;;  %v357_v8 = vld [vmem:[#allocation2 + $0x44] sm:$0x8]  ;;  %v8912_v34 = vld [vmem:[%s11450_s1 + $0x238] sm:$0xff]  ;;  %v810_v5 = vor.u32 %v809_v53, %v807_v6 }
  0x80   : > { %291 = vst [vmem:[#allocation2 + $0x8] sm:$0xf] %v9198_v63  ;;  %v805_v41 = vor.u32 %v804_v22, %v803_v20  ;;  %v358_v46 = vsel %vm9803_vm10, 0, %v357_v8  ;;  %v6907_v55 = vld [vmem:[#allocation2 + $0xc0] sm:$0xf]  ;;  %3286 = vmatpush.bf16.msra.mxu0 %v8912_v34  ;;  %v812_v22 = vrot.slane %v11532_v12, 4 }
  0x81   : > { %293 = vst [vmem:[#allocation2 + $0x14] sm:$0xf] %v9198_v63  ;;  %v8790_v38 = vld [vmem:[#allocation2 + $0xc4] sm:$0xf]  ;;  %v811_v20 = vrot.slane %v810_v5, 4  ;;  %v11533_v8 = vshll.u32 %v9388_v18, 16 }
  0x82   : > { %295 = vst [vmem:[#allocation2 + $0x198] sm:$0xff] %v9198_v63  ;;  %v806_v3 = vrot.slane %v805_v41, 4  ;;  %v11534_v41 = vshll.u32 %v9393_v29, 16 }
  0x83   : > { %2509 = vmatpush.bf16.msrb.mxu1 %v8764_v21  ;;  %296 = vst [vmem:[#allocation2 + $0x1a0] sm:$0xf] %v9198_v63  ;;  %v7004_v21 = vor.u32 %v8815_v24, %v7003_v50  ;;  %v8697_v50 = vld [vmem:[#allocation2 + $0x4] sm:$0xf] }
  0x84   : > { %297 = vst [vmem:[#allocation2 + $0x1a4] sm:$0xff] %v9198_v63  ;;  %v808_v59 = vsel %vm9832_vm13, %v806_v3, %v807_v6  ;;  %v816_v6 = vrot.slane %v11534_v41, 5  ;;  %v6831_v24 = vld [vmem:[#allocation2 + $0x20] sm:$0xf]  ;;  %v11537_v41 = vshll.u32 %v9499_v36, 16 }
  0x85   : > { %298 = vst [vmem:[#allocation2 + $0x1ac] sm:$0xf] %v9198_v63 }
  0x86   : > { %3507 = vst [vmem:[#allocation3] sm:$0xff] %v9198_v63  ;;  %v8771_v5 = vld [vmem:[#allocation2 + $0x28] sm:$0xf0] }
  0x87   : > { %3508 = vst [vmem:[#allocation3 + $0x8] sm:$0xf] %v9198_v63  ;;  %2510 = vmatpush.bf16.msrb.mxu1 %v8763_v11 }
  0x88   : > { %3509 = vst [vmem:[#allocation3 + $0xc] sm:$0xff] %v9198_v63 }
  0x89   : > { %3510 = vst [vmem:[#allocation3 + $0x14] sm:$0xf] %v9198_v63 }
  0x8a   : > { %3512 = vst [vmem:[#allocation3 + $0x198] sm:$0xff] %v9198_v63 }
  0x8b   : > { %1698 = vmatmul.bf16.gmra.mxu0 %v6896_v25  ;;  %1738 = vmatmul.bf16.gmra.mxu2 %v6992_v51  ;;  %3513 = vst [vmem:[#allocation3 + $0x1a0] sm:$0xf] %v9198_v63  ;;  %v7005_v25 = vld [vmem:[#allocation2 + $0x18c] sm:$0xf0]  ;;  %v6908_v51 = vor.u32 %v8791_v60, %v6907_v55 }
  0x8c   : > { %1787 = vmatmul.bf16.gmra.mxu1 %v6900_v23  ;;  %3514 = vst [vmem:[#allocation3 + $0x1a4] sm:$0xff] %v9198_v63  ;;  %v360_v23 = vld [vmem:[#allocation2 + $0x5c] sm:$0x8]  ;;  %v7008_v11 = vor.u32 %v8814_v49, %v7005_v25  ;;  %v8698_v49 = vld [vmem:[#allocation2 + $0x8] sm:$0xf0] }
  0x8d   : > { %2511 = vmatpush.bf16.msrb.mxu1 %v8762_v56  ;;  %3515 = vst [vmem:[#allocation3 + $0x1ac] sm:$0xf] %v9198_v63  ;;  %v361_v63 = vsel %vm9803_vm10, 0, %v360_v23  ;;  %v813_v56 = vrot.slane %v11533_v8, 5  ;;  %v7119_v25 = vld [vmem:[#allocation2 + $0x8] sm:$0xf] }
  0x8e   : > { %1827 = vmatmul.bf16.gmra.mxu3 %v6996_v19  ;;  %359 = vst [vmem:[#allocation2 + $0x44] sm:$0x8] %v358_v46  ;;  %v6912_v19 = vor.u32 %v8790_v38, %v6909_v52  ;;  %v11535_v46 = vshrl.u32 %v9393_v29, 16  ;;  %v7113_v29 = vld [vmem:[#allocation2 + $0xc] sm:$0xf0]  ;;  %v11536_v8 = vshrl.u32 %v9499_v36, 16 }
  0x8f   : > { %975 = vst [vmem:[#allocation2 + $0x38] sm:$0xf] %v808_v59  ;;  %v814_v34 = vor.u32 %v813_v56, %v812_v22  ;;  %v7111_v59 = vld [vmem:[#allocation2] sm:$0xf]  ;;  %v7116_v23 = vor.u32 %v8697_v50, %v7113_v29 }
  0x90   : > { %362 = vst [vmem:[#allocation2 + $0x5c] sm:$0x8] %v361_v63  ;;  %v818_v3 = vrot.slane %v11535_v46, 4  ;;  %v821_v56 = vrot.slane %v11536_v8, 4  ;;  %v8903_v46 = vld [vmem:[%s11450_s1 + $0x1f0] sm:$0xff] }
  0x91   : > { %2512 = vmatpush.bf16.msrb.mxu1 %v8761_v62  ;;  %v815_v55 = vrot.slane %v814_v34, 4  ;;  %3198 = vmatpush.bf16.msra.mxu3 %v8903_v46 }
  0x92   : > { %v819_v62 = vor.u32 %v818_v3, %v816_v6  ;;  %v11538_v3 = vshll.u32 %v9501_v37, 16 }
  0x93   : > { %v817_v18 = vsel %vm9832_vm13, %v815_v55, %v816_v6  ;;  %v822_v6 = vrot.slane %v11537_v41, 5 }
  0x94   : > { %v820_v60 = vrot.slane %v819_v62, 4  ;;  %979 = vst [vmem:[#allocation2 + $0x50] sm:$0xf] %v817_v18  ;;  %v825_v34 = vrot.slane %v11538_v3, 5  ;;  %v11539_v62 = vshrl.u32 %v9501_v37, 16  ;;  %v8911_v37 = vld [vmem:[%s11450_s1 + $0x230] sm:$0xff] }
  0x95   : > { %v976_v44 = vld [vmem:[#allocation2 + $0x44] sm:$0xf]  ;;  %3287 = vmatpush.bf16.msra.mxu0 %v8911_v37 }
  0x96   : > { %v977_v53 = vsel %vm9840_vm14, %v811_v20, %v976_v44  ;;  %v7112_v20 = vor.u32 %v8698_v49, %v7111_v59  ;;  %v827_v55 = vrot.slane %v11539_v62, 4 }
  0x97   : > { %978 = vst [vmem:[#allocation2 + $0x44] sm:$0xf] %v977_v53  ;;  %v980_v38 = vld [vmem:[#allocation2 + $0x5c] sm:$0xf]  ;;  %v8895_v53 = vld [vmem:[%s11450_s1 + $0x1b0] sm:$0xff] }
  0x98   : > { %v981_v52 = vsel %vm9840_vm14, %v820_v60, %v980_v38  ;;  %v823_v60 = vor.u32 %v822_v6, %v821_v56  ;;  %3109 = vmatpush.bf16.msra.mxu2 %v8895_v53  ;;  %v828_v36 = vor.u32 %v827_v55, %v825_v34  ;;  %v366_v53 = vld [vmem:[#allocation2 + $0x8c] sm:$0x8] }
  0x99   : > { %982 = vst [vmem:[#allocation2 + $0x5c] sm:$0xf] %v981_v52  ;;  %v367_v55 = vsel %vm9803_vm10, 0, %v366_v53  ;;  %v8703_v53 = vld [vmem:[#allocation2 + $0x34] sm:$0xf] }
  0x9a   : > { %v824_v52 = vrot.slane %v823_v60, 4  ;;  %v11540_v60 = vshrl.u32 %v9556_v14, 16  ;;  %368 = vst [vmem:[#allocation2 + $0x8c] sm:$0x8] %v367_v55 }
  0x9b   : > { %1703 = vmatmul.bf16.gmra.mxu0 %v6908_v51  ;;  %1743 = vmatmul.bf16.gmra.mxu2 %v7004_v21  ;;  %v8699_v51 = vld [vmem:[#allocation2 + $0x10] sm:$0xf0]  ;;  %v6832_v21 = vor.u32 %v8771_v5, %v6831_v24  ;;  %v829_v24 = vrot.slane %v828_v36, 4 }
  0x9c   : > { %1792 = vmatmul.bf16.gmra.mxu1 %v6912_v19  ;;  %v363_v19 = vld [vmem:[#allocation2 + $0x74] sm:$0x8]  ;;  %v7120_v63 = vor.u32 %v8699_v51, %v7119_v25  ;;  %v826_v29 = vsel %vm9832_vm13, %v824_v52, %v825_v34  ;;  %v7123_v51 = vld [vmem:[#allocation2 + $0x18] sm:$0xf]  ;;  %v11541_v52 = vshrl.u32 %v9550_v30, 16 }
  0x9d   : > { %v364_v44 = vsel %vm9803_vm10, 0, %v363_v19  ;;  %983 = vst [vmem:[#allocation2 + $0x68] sm:$0xf] %v826_v29  ;;  %v11543_v29 = vshll.u32 %v9556_v14, 16 }
  0x9e   : > { %1832 = vmatmul.bf16.gmra.mxu3 %v7008_v11  ;;  %365 = vst [vmem:[#allocation2 + $0x74] sm:$0x8] %v364_v44  ;;  %v7131_v44 = vld [vmem:[#allocation2 + $0x20] sm:$0xf]  ;;  %v8705_v55 = vld [vmem:[#allocation2 + $0x40] sm:$0xf0] }
  0x9f   : > { %v834_v37 = vrot.slane %v11543_v29, 5 }
  0xa5   : > { %v984_v25 = vld [vmem:[#allocation2 + $0x74] sm:$0xf] }
  0xa6   : > { %v985_v19 = vsel %vm9840_vm14, %v829_v24, %v984_v25  ;;  %v11542_v24 = vshll.u32 %v9550_v30, 16  ;;  %v988_v30 = vld [vmem:[#allocation2 + $0x8c] sm:$0xf] }
  0xa7   : > { %986 = vst [vmem:[#allocation2 + $0x74] sm:$0xf] %v985_v19 }
  0xa8   : > { %v1669_v11 = vpop.f32.mrf.mxu0 }
  0xa9   : > { %v1758_v12 = vpop.f32.mrf.mxu1 }
  0xaa   : > { %v9899_v22 = vadd.f32 %v1758_v12, %v1669_v11  ;;  %v6843_v11 = vld [vmem:[#allocation2 + $0x38] sm:$0xf]  ;;  %v8702_v12 = vld [vmem:[#allocation2 + $0x28] sm:$0xf0] }
  0xab   : > { %1846 = vmatmul.bf16.vlgmr.msrb.gmra.mxu2 %v6832_v21  ;;  %2424 = vmatmul.bf16.vlgmr.msrb.gmra.mxu0 %v7116_v23  ;;  %v8700_v21 = vld [vmem:[#allocation2 + $0x1c] sm:$0xf]  ;;  %v7125_v23 = vld [vmem:[#allocation2 + $0x24] sm:$0xf0]  ;;  %v7132_v62 = vor.u32 %v8702_v12, %v7131_v44 }
  0xac   : > { %2513 = vmatmul.bf16.vlgmr.msrb.gmra.mxu1 %v7120_v63  ;;  %v8701_v63 = vld [vmem:[#allocation2 + $0x20] sm:$0xf0]  ;;  %v7128_v6 = vor.u32 %v8700_v21, %v7125_v23 }
  0xad   : > { %v7124_v34 = vor.u32 %v8701_v63, %v7123_v51 }
  0xae   : > { %2335 = vmatmul.bf16.vlgmr.msrb.gmra.mxu3 %v7112_v20  ;;  %v1709_v18 = vpop.f32.mrf.mxu2  ;;  %v8774_v20 = vld [vmem:[#allocation2 + $0x40] sm:$0xf0] }
  0xaf   : > { %v6844_v41 = vor.u32 %v8774_v20, %v6843_v11 }
  0xb0   : > { %v1671_v50 = vpop.f32.mrf.mxu0 }
  0xb1   : > { %v1798_v38 = vpop.f32.mrf.mxu3  ;;  %v1760_v5 = vpop.f32.mrf.mxu1 }
  0xb2   : > { %v9915_v59 = vadd.f32 %v1798_v38, %v1709_v18  ;;  %v9919_v49 = vadd.f32 %v1760_v5, %v1671_v50  ;;  %v836_v18 = vrot.slane %v11540_v60, 4  ;;  %v830_v50 = vrot.slane %v11541_v52, 4 }
  0xb3   : > { %v831_v5 = vrot.slane %v11542_v24, 5 }
  0xb4   : > { %v837_v51 = vor.u32 %v836_v18, %v834_v37 }
  0xb5   : > { %v832_v25 = vor.u32 %v831_v5, %v830_v50  ;;  %v369_v50 = vld [vmem:[#allocation2 + $0xa4] sm:$0x8] }
  0xb6   : > { %v1711_v8 = vpop.f32.mrf.mxu2  ;;  %v838_v11 = vrot.slane %v837_v51, 4 }
  0xb7   : > { %v833_v19 = vrot.slane %v832_v25, 4  ;;  %v370_v25 = vsel %vm9803_vm10, 0, %v369_v50 }
  0xb8   : > { %v1674_v3 = vpop.f32.mrf.mxu0  ;;  %v989_v14 = vsel %vm9840_vm14, %v838_v11, %v988_v30  ;;  %371 = vst [vmem:[#allocation2 + $0xa4] sm:$0x8] %v370_v25  ;;  %v11545_v11 = vshrl.u32 %v9617_v1, 16  ;;  %v8894_v30 = vld [vmem:[%s11450_s1 + $0x1a8] sm:$0xff] }
  0xb9   : > { %v1800_v56 = vpop.f32.mrf.mxu3  ;;  %v1763_v36 = vpop.f32.mrf.mxu1  ;;  %v835_v12 = vsel %vm9832_vm13, %v833_v19, %v834_v37  ;;  %990 = vst [vmem:[#allocation2 + $0x8c] sm:$0xf] %v989_v14  ;;  %v8902_v14 = vld [vmem:[%s11450_s1 + $0x1e8] sm:$0xff]  ;;  %3110 = vmatpush.bf16.msra.mxu2 %v8894_v30 }
  0xba   : > { %v9926_v46 = vadd.f32 %v1800_v56, %v1711_v8  ;;  %v9932_v38 = vadd.f32 %v1763_v36, %v1674_v3  ;;  %987 = vst [vmem:[#allocation2 + $0x80] sm:$0xf] %v835_v12  ;;  %v6855_v56 = vld [vmem:[#allocation2 + $0x50] sm:$0xf]  ;;  %v7137_v3 = vld [vmem:[#allocation2 + $0x3c] sm:$0xf0]  ;;  %3199 = vmatpush.bf16.msra.mxu3 %v8902_v14 }
  0xbb   : > { %1851 = vmatmul.bf16.gmra.mxu2 %v6844_v41  ;;  %2429 = vmatmul.bf16.gmra.mxu0 %v7128_v6  ;;  %v7135_v41 = vld [vmem:[#allocation2 + $0x30] sm:$0xf]  ;;  %v8777_v6 = vld [vmem:[#allocation2 + $0x58] sm:$0xf0]  ;;  %v7140_v52 = vor.u32 %v8703_v53, %v7137_v3 }
  0xbc   : > { %2518 = vmatmul.bf16.gmra.mxu1 %v7132_v62  ;;  %v7143_v62 = vld [vmem:[#allocation2 + $0x38] sm:$0xf]  ;;  %v6856_v36 = vor.u32 %v8777_v6, %v6855_v56  ;;  %v11547_v56 = vshll.u32 %v9619_v2, 16 }
  0xbd   : > { %v7144_v37 = vor.u32 %v8705_v55, %v7143_v62 }
  0xbe   : > { %2340 = vmatmul.bf16.gmra.mxu3 %v7124_v34  ;;  %v1714_v21 = vpop.f32.mrf.mxu2  ;;  %v8704_v34 = vld [vmem:[#allocation2 + $0x38] sm:$0xf0] }
  0xbf   : > { %v7136_v29 = vor.u32 %v8704_v34, %v7135_v41  ;;  %v843_v41 = vrot.slane %v11547_v56, 5  ;;  %v992_v50 = vld [vmem:[#allocation2 + $0xa4] sm:$0xf]  ;;  %v372_v56 = vld [vmem:[#allocation2 + $0xbc] sm:$0x8] }
  0xc0   : > { %v1676_v63 = vpop.f32.mrf.mxu0 }
  0xc1   : > { %v1803_v23 = vpop.f32.mrf.mxu3  ;;  %v1765_v44 = vpop.f32.mrf.mxu1 }
  0xc2   : > { %v9940_v20 = vadd.f32 %v1803_v23, %v1714_v21  ;;  %v9944_v8 = vadd.f32 %v1765_v44, %v1676_v63  ;;  %v11544_v21 = vshrl.u32 %v9619_v2, 16  ;;  %v839_v63 = vrot.slane %v11545_v11, 4  ;;  %v8910_v2 = vld [vmem:[%s11450_s1 + $0x228] sm:$0xff]  ;;  %v7155_v11 = vld [vmem:[#allocation2 + $0x50] sm:$0xf] }
  0xc3   : > { %v11546_v44 = vshll.u32 %v9617_v1, 16  ;;  %3288 = vmatpush.bf16.msra.mxu0 %v8910_v2 }
  0xc4   : > { %v845_v23 = vrot.slane %v11544_v21, 4  ;;  %v7149_v21 = vld [vmem:[#allocation2 + $0x54] sm:$0xf0] }
  0xc5   : > { %v840_v12 = vrot.slane %v11546_v44, 5 }
  0xc6   : > { %v1716_v60 = vpop.f32.mrf.mxu2  ;;  %v846_v3 = vor.u32 %v845_v23, %v843_v41  ;;  %v8707_v23 = vld [vmem:[#allocation2 + $0x50] sm:$0xf0] }
  0xc7   : > { %v841_v6 = vor.u32 %v840_v12, %v839_v63  ;;  %v8708_v63 = vld [vmem:[#allocation2 + $0x58] sm:$0xf0] }
  0xc8   : > { %v1679_v5 = vpop.f32.mrf.mxu0 }
  0xc9   : > { %v1805_v18 = vpop.f32.mrf.mxu3  ;;  %v1768_v51 = vpop.f32.mrf.mxu1  ;;  %v842_v34 = vrot.slane %v841_v6, 4 }
  0xca   : > { %v9948_v24 = vadd.f32 %v1805_v18, %v1716_v60  ;;  %v9954_v19 = vadd.f32 %v1768_v51, %v1679_v5  ;;  %v847_v60 = vrot.slane %v846_v3, 4  ;;  %v6867_v5 = vld [vmem:[#allocation2 + $0x68] sm:$0xf]  ;;  %v8780_v51 = vld [vmem:[#allocation2 + $0x70] sm:$0xf0]  ;;  %v7156_v3 = vor.u32 %v8708_v63, %v7155_v11 }
  0xcb   : > { %1856 = vmatmul.bf16.gmra.mxu2 %v6856_v36  ;;  %2434 = vmatmul.bf16.gmra.mxu0 %v7140_v52  ;;  %v844_v36 = vsel %vm9832_vm13, %v842_v34, %v843_v41  ;;  %v6868_v30 = vor.u32 %v8780_v51, %v6867_v5  ;;  %v11548_v34 = vshrl.u32 %v9684_v39, 16 }
  0xcc   : > { %2523 = vmatmul.bf16.gmra.mxu1 %v7144_v37  ;;  %991 = vst [vmem:[#allocation2 + $0x98] sm:$0xf] %v844_v36  ;;  %v8706_v37 = vld [vmem:[#allocation2 + $0x4c] sm:$0xf]  ;;  %v993_v25 = vsel %vm9840_vm14, %v847_v60, %v992_v50  ;;  %v11549_v36 = vshrl.u32 %v9682_v31, 16  ;;  %v11550_v50 = vshll.u32 %v9682_v31, 16 }
  0xcd   : > { %994 = vst [vmem:[#allocation2 + $0xa4] sm:$0xf] %v993_v25  ;;  %v7152_v14 = vor.u32 %v8706_v37, %v7149_v21 }
  0xce   : > { %2345 = vmatmul.bf16.gmra.mxu3 %v7136_v29  ;;  %v1719_v53 = vpop.f32.mrf.mxu2  ;;  %v7147_v29 = vld [vmem:[#allocation2 + $0x48] sm:$0xf]  ;;  %v848_v2 = vrot.slane %v11549_v36, 4  ;;  %v849_v5 = vrot.slane %v11550_v50, 5  ;;  %v8711_v36 = vld [vmem:[#allocation2 + $0x70] sm:$0xf0] }
  0xd0   : > { %v1681_v55 = vpop.f32.mrf.mxu0  ;;  %v850_v25 = vor.u32 %v849_v5, %v848_v2 }
  0xd1   : > { %v1808_v1 = vpop.f32.mrf.mxu3  ;;  %v1770_v18 = vpop.f32.mrf.mxu1 }
  0xd2   : > { %v9968_v62 = vadd.f32 %v1808_v1, %v1719_v53  ;;  %v9972_v52 = vadd.f32 %v1770_v18, %v1681_v55  ;;  %v7148_v53 = vor.u32 %v8707_v23, %v7147_v29  ;;  %v373_v1 = vsel %vm9803_vm10, 0, %v372_v56 }
  0xd3   : > { %v854_v55 = vrot.slane %v11548_v34, 4  ;;  %374 = vst [vmem:[#allocation2 + $0xbc] sm:$0x8] %v373_v1  ;;  %v11551_v29 = vshll.u32 %v9684_v39, 16  ;;  %v851_v11 = vrot.slane %v850_v25, 4 }
  0xd4   : > { %v8709_v1 = vld [vmem:[#allocation2 + $0x64] sm:$0xf]  ;;  %v7161_v34 = vld [vmem:[#allocation2 + $0x6c] sm:$0xf0] }
  0xd5   : > { %v852_v37 = vrot.slane %v11551_v29, 5  ;;  %v7164_v29 = vor.u32 %v8709_v1, %v7161_v34  ;;  %v8901_v1 = vld [vmem:[%s11450_s1 + $0x1e0] sm:$0xff]  ;;  %v11555_v34 = vshll.u32 %v9746_v43, 16 }
  0xd6   : > { %v1721_v44 = vpop.f32.mrf.mxu2  ;;  %3200 = vmatpush.bf16.msra.mxu3 %v8901_v1  ;;  %v8714_v1 = vld [vmem:[#allocation2 + $0x88] sm:$0xf0] }
  0xd7   : > { %v855_v51 = vor.u32 %v854_v55, %v852_v37  ;;  %v8710_v55 = vld [vmem:[#allocation2 + $0x68] sm:$0xf0] }
  0xd8   : > { %v1684_v6 = vpop.f32.mrf.mxu0 }
  0xd9   : > { %v1810_v12 = vpop.f32.mrf.mxu3  ;;  %v1773_v60 = vpop.f32.mrf.mxu1  ;;  %v856_v63 = vrot.slane %v855_v51, 4 }
  0xda   : > { %v9979_v41 = vadd.f32 %v1810_v12, %v1721_v44  ;;  %v9985_v18 = vadd.f32 %v1773_v60, %v1684_v6  ;;  %v996_v31 = vld [vmem:[#allocation2 + $0xbc] sm:$0xf]  ;;  %v6879_v6 = vld [vmem:[#allocation2 + $0x80] sm:$0xf]  ;;  %v7167_v60 = vld [vmem:[#allocation2 + $0x68] sm:$0xf] }
  0xdb   : > { %1861 = vmatmul.bf16.gmra.mxu2 %v6868_v30  ;;  %2439 = vmatmul.bf16.gmra.mxu0 %v7152_v14  ;;  %v853_v14 = vsel %vm9832_vm13, %v851_v11, %v852_v37  ;;  %v997_v39 = vsel %vm9840_vm14, %v856_v63, %v996_v31  ;;  %v375_v37 = vld [vmem:[#allocation2 + $0xd4] sm:$0x8]  ;;  %v11553_v31 = vshrl.u32 %v9744_v15, 16 }
  0xdc   : > { %2528 = vmatmul.bf16.gmra.mxu1 %v7156_v3  ;;  %995 = vst [vmem:[#allocation2 + $0xb0] sm:$0xf] %v853_v14  ;;  %v8783_v3 = vld [vmem:[#allocation2 + $0x88] sm:$0xf0]  ;;  %v376_v11 = vsel %vm9803_vm10, 0, %v375_v37 }
  0xdd   : > { %998 = vst [vmem:[#allocation2 + $0xbc] sm:$0xf] %v997_v39  ;;  %v6880_v5 = vor.u32 %v8783_v3, %v6879_v6  ;;  %v857_v39 = vrot.slane %v11553_v31, 4  ;;  %v11554_v6 = vshll.u32 %v9744_v15, 16 }
  0xde   : > { %2350 = vmatmul.bf16.gmra.mxu3 %v7148_v53  ;;  %v1724_v21 = vpop.f32.mrf.mxu2  ;;  %v7159_v53 = vld [vmem:[#allocation2 + $0x60] sm:$0xf]  ;;  %377 = vst [vmem:[#allocation2 + $0xd4] sm:$0x8] %v376_v11 }
  0xdf   : > { %v858_v3 = vrot.slane %v11554_v6, 5  ;;  %v7173_v6 = vld [vmem:[#allocation2 + $0x84] sm:$0xf0] }
  0xe0   : > { %v1686_v12 = vpop.f32.mrf.mxu0 }
  0xe1   : > { %v1813_v23 = vpop.f32.mrf.mxu3  ;;  %v1775_v30 = vpop.f32.mrf.mxu1 }
  0xe2   : > { %v9993_v44 = vadd.f32 %v1813_v23, %v1724_v21  ;;  %v9997_v56 = vadd.f32 %v1775_v30, %v1686_v12  ;;  %v7160_v21 = vor.u32 %v8710_v55, %v7159_v53  ;;  %v7168_v23 = vor.u32 %v8711_v36, %v7167_v60  ;;  %v8893_v53 = vld [vmem:[%s11450_s1 + $0x1a0] sm:$0xff] }
  0xe3   : > { %v11552_v12 = vshrl.u32 %v9746_v43, 16  ;;  %v861_v55 = vrot.slane %v11555_v34, 5  ;;  %v859_v60 = vor.u32 %v858_v3, %v857_v39  ;;  %3111 = vmatpush.bf16.msra.mxu2 %v8893_v53  ;;  %v8909_v43 = vld [vmem:[%s11450_s1 + $0x220] sm:$0xff] }
  0xe4   : > { %v8786_v39 = vld [vmem:[#allocation2 + $0xa0] sm:$0xf0]  ;;  %3289 = vmatpush.bf16.msra.mxu0 %v8909_v43  ;;  %v7179_v53 = vld [vmem:[#allocation2 + $0x80] sm:$0xf] }
  0xe5   : > { %v863_v30 = vrot.slane %v11552_v12, 4  ;;  %v1000_v11 = vld [vmem:[#allocation2 + $0xd4] sm:$0xf]  ;;  %v7171_v12 = vld [vmem:[#allocation2 + $0x78] sm:$0xf] }
  0xe6   : > { %v1726_v2 = vpop.f32.mrf.mxu2  ;;  %v8713_v3 = vld [vmem:[#allocation2 + $0x80] sm:$0xf0] }
  0xe8   : > { %v1689_v51 = vpop.f32.mrf.mxu0 }
  0xe9   : > { %v1815_v50 = vpop.f32.mrf.mxu3  ;;  %v1778_v63 = vpop.f32.mrf.mxu1 }
  0xea   : > { %v10001_v25 = vadd.f32 %v1815_v50, %v1726_v2  ;;  %v10007_v14 = vadd.f32 %v1778_v63, %v1689_v51  ;;  %v864_v2 = vor.u32 %v863_v30, %v861_v55  ;;  %v860_v50 = vrot.slane %v859_v60, 4  ;;  %v6891_v63 = vld [vmem:[#allocation2 + $0x98] sm:$0xf]  ;;  %v8712_v30 = vld [vmem:[#allocation2 + $0x7c] sm:$0xf] }
  0xeb   : > { %1866 = vmatmul.bf16.gmra.mxu2 %v6880_v5  ;;  %2444 = vmatmul.bf16.gmra.mxu0 %v7164_v29  ;;  %v6892_v60 = vor.u32 %v8786_v39, %v6891_v63  ;;  %v11557_v63 = vshrl.u32 %v9283_v16, 16  ;;  %v11558_v39 = vshll.u32 %v9283_v16, 16 }
  0xec   : > { %2533 = vmatmul.bf16.gmra.mxu1 %v7168_v23  ;;  %v865_v37 = vrot.slane %v864_v2, 4  ;;  %v378_v2 = vld [vmem:[#allocation2 + $0xec] sm:$0x8] }
  0xee   : > { %2355 = vmatmul.bf16.gmra.mxu3 %v7160_v21  ;;  %v1729_v36 = vpop.f32.mrf.mxu2  ;;  %v862_v21 = vsel %vm9832_vm13, %v860_v50, %v861_v55  ;;  %v1001_v31 = vsel %vm9840_vm14, %v865_v37, %v1000_v11  ;;  %v379_v37 = vsel %vm9803_vm10, 0, %v378_v2 }
  0xef   : > { %999 = vst [vmem:[#allocation2 + $0xc8] sm:$0xf] %v862_v21  ;;  %v11556_v21 = vshrl.u32 %v9285_v17, 16 }
  0xf0   : > { %v1691_v29 = vpop.f32.mrf.mxu0  ;;  %1002 = vst [vmem:[#allocation2 + $0xd4] sm:$0xf] %v1001_v31 }
  0xf1   : > { %v1818_v15 = vpop.f32.mrf.mxu3  ;;  %v1780_v51 = vpop.f32.mrf.mxu1  ;;  %v872_v43 = vrot.slane %v11556_v21, 4  ;;  %380 = vst [vmem:[#allocation2 + $0xec] sm:$0x8] %v379_v37 }
  0xf2   : > { %v10021_v5 = vadd.f32 %v1818_v15, %v1729_v36  ;;  %v10025_v23 = vadd.f32 %v1780_v51, %v1691_v29  ;;  %v7176_v36 = vor.u32 %v8712_v30, %v7173_v6  ;;  %v7172_v29 = vor.u32 %v8713_v3, %v7171_v12 }
  0xf3   : > { %v7180_v51 = vor.u32 %v8714_v1, %v7179_v53  ;;  %v866_v30 = vrot.slane %v11557_v63, 4  ;;  %v867_v6 = vrot.slane %v11558_v39, 5  ;;  %v11559_v12 = vshll.u32 %v9285_v17, 16  ;;  %v8715_v63 = vld [vmem:[#allocation2 + $0x94] sm:$0xf] }
  0xf4   : > { %v8716_v39 = vld [vmem:[#allocation2 + $0x98] sm:$0xf0] }
  0xf5   : > { %v870_v3 = vrot.slane %v11559_v12, 5  ;;  %v868_v53 = vor.u32 %v867_v6, %v866_v30  ;;  %v7185_v30 = vld [vmem:[#allocation2 + $0x9c] sm:$0xf0]  ;;  %v7191_v6 = vld [vmem:[#allocation2 + $0x98] sm:$0xf] }
  0xf6   : > { %v1731_v34 = vpop.f32.mrf.mxu2  ;;  %v8717_v12 = vld [vmem:[#allocation2 + $0xa0] sm:$0xf0] }
  0xf7   : > { %v873_v1 = vor.u32 %v872_v43, %v870_v3  ;;  %v869_v2 = vrot.slane %v868_v53, 4  ;;  %v8789_v43 = vld [vmem:[#allocation2 + $0xb8] sm:$0xf0] }
  0xf8   : > { %v1694_v50 = vpop.f32.mrf.mxu0  ;;  %v1004_v16 = vld [vmem:[#allocation2 + $0xec] sm:$0xf] }
  0xf9   : > { %v1820_v55 = vpop.f32.mrf.mxu3  ;;  %v1783_v11 = vpop.f32.mrf.mxu1  ;;  %v871_v21 = vsel %vm9832_vm13, %v869_v2, %v870_v3  ;;  %v7188_v3 = vor.u32 %v8715_v63, %v7185_v30  ;;  %v11562_v63 = vshll.u32 %v9358_v57, 16 }
  0xfa   : > { %v10032_v15 = vadd.f32 %v1820_v55, %v1731_v34  ;;  %v10038_v31 = vadd.f32 %v1783_v11, %v1694_v50  ;;  %v874_v50 = vrot.slane %v873_v1, 4  ;;  %1003 = vst [vmem:[#allocation2 + $0xe0] sm:$0xf] %v871_v21  ;;  %v7192_v21 = vor.u32 %v8717_v12, %v7191_v6 }
  0xfb   : > { %1871 = vmatmul.bf16.gmra.mxu2 %v6892_v60  ;;  %2449 = vmatmul.bf16.gmra.mxu0 %v7176_v36  ;;  %v876_v30 = vrot.slane %v11562_v63, 5  ;;  %v11563_v6 = vshll.u32 %v9365_v61, 16 }
  0xfc   : > { %2538 = vmatmul.bf16.gmra.mxu1 %v7180_v51  ;;  %v1005_v17 = vsel %vm9840_vm14, %v874_v50, %v1004_v16  ;;  %v7183_v51 = vld [vmem:[#allocation2 + $0x90] sm:$0xf] }
  0xfd   : > { %1006 = vst [vmem:[#allocation2 + $0xec] sm:$0xf] %v1005_v17  ;;  %v11560_v17 = vshrl.u32 %v9365_v61, 16  ;;  %v879_v12 = vrot.slane %v11563_v6, 5  ;;  %v7203_v6 = vld [vmem:[#allocation2 + $0xb0] sm:$0xf] }
  0xfe   : > { %2360 = vmatmul.bf16.gmra.mxu3 %v7172_v29  ;;  %v1734_v34 = vpop.f32.mrf.mxu2  ;;  %v6903_v29 = vld [vmem:[#allocation2 + $0xb0] sm:$0xf] }
  0xff   : > { %v881_v40 = vrot.slane %v11560_v17, 4 }
 0x100   : > { %v1696_v60 = vpop.f32.mrf.mxu0 }
 0x101   : > { %v1823_v55 = vpop.f32.mrf.mxu3  ;;  %v1785_v36 = vpop.f32.mrf.mxu1 }
 0x102   : > { %v10046_v37 = vadd.f32 %v1823_v55, %v1734_v34  ;;  %v10050_v11 = vadd.f32 %v1785_v36, %v1696_v60  ;;  %v6904_v34 = vor.u32 %v8789_v43, %v6903_v29  ;;  %v381_v55 = vld [vmem:[#allocation2 + $0x104] sm:$0x8]  ;;  %v7184_v36 = vor.u32 %v8716_v39, %v7183_v51  ;;  %v8892_v51 = vld [vmem:[%s11450_s1 + $0x198] sm:$0xff] }
 0x103   : > { %v382_v50 = vsel %vm9803_vm10, 0, %v381_v55  ;;  %v11561_v29 = vshrl.u32 %v9358_v57, 16  ;;  %v8900_v39 = vld [vmem:[%s11450_s1 + $0x1d8] sm:$0xff]  ;;  %3112 = vmatpush.bf16.msra.mxu2 %v8892_v51 }
 0x104   : > { %383 = vst [vmem:[#allocation2 + $0x104] sm:$0x8] %v382_v50  ;;  %3201 = vmatpush.bf16.msra.mxu3 %v8900_v39  ;;  %v8908_v50 = vld [vmem:[%s11450_s1 + $0x218] sm:$0xff]  ;;  %v8719_v39 = vld [vmem:[#allocation2 + $0xb0] sm:$0xf0] }
 0x105   : > { %v875_v43 = vrot.slane %v11561_v29, 4  ;;  %v6915_v29 = vld [vmem:[#allocation2 + $0xc8] sm:$0xf]  ;;  %3290 = vmatpush.bf16.msra.mxu0 %v8908_v50  ;;  %v7197_v51 = vld [vmem:[#allocation2 + $0xb4] sm:$0xf0] }
 0x106   : > { %v1736_v53 = vpop.f32.mrf.mxu2 }
 0x108   : > { %v1699_v60 = vpop.f32.mrf.mxu0 }
 0x109   : > { %v1825_v1 = vpop.f32.mrf.mxu3  ;;  %v1788_v16 = vpop.f32.mrf.mxu1 }
 0x10a   : > { %v10054_v2 = vadd.f32 %v1825_v1, %v1736_v53  ;;  %v10060_v28 = vadd.f32 %v1788_v16, %v1699_v60  ;;  %v877_v53 = vor.u32 %v876_v30, %v875_v43  ;;  %v8718_v43 = vld [vmem:[#allocation2 + $0xac] sm:$0xf]  ;;  %v8792_v30 = vld [vmem:[#allocation2 + $0xd0] sm:$0xf0] }
 0x10b   : > { %1876 = vmatmul.bf16.gmra.mxu2 %v6904_v34  ;;  %2454 = vmatmul.bf16.gmra.mxu0 %v7188_v3  ;;  %v882_v34 = vor.u32 %v881_v40, %v879_v12  ;;  %v1008_v17 = vld [vmem:[#allocation2 + $0x104] sm:$0xf]  ;;  %v7195_v40 = vld [vmem:[#allocation2 + $0xa8] sm:$0xf] }
 0x10c   : > { %2543 = vmatmul.bf16.gmra.mxu1 %v7192_v21  ;;  %v878_v3 = vrot.slane %v877_v53, 4  ;;  %v8720_v53 = vld [vmem:[#allocation2 + $0xb8] sm:$0xf0] }
 0x10d   : > { %v7204_v33 = vor.u32 %v8720_v53, %v7203_v6 }
 0x10e   : > { %2365 = vmatmul.bf16.gmra.mxu3 %v7184_v36  ;;  %v1739_v1 = vpop.f32.mrf.mxu2  ;;  %v883_v36 = vrot.slane %v882_v34, 4  ;;  %v880_v61 = vsel %vm9832_vm13, %v878_v3, %v879_v12  ;;  %v6916_v12 = vor.u32 %v8792_v30, %v6915_v29  ;;  %v384_v3 = vld [vmem:[#allocation2 + $0x11c] sm:$0x8]  ;;  %v11566_v29 = vshrl.u32 %v9440_v10, 16 }
 0x10f   : > { %1007 = vst [vmem:[#allocation2 + $0xf8] sm:$0xf] %v880_v61  ;;  %v7196_v61 = vor.u32 %v8719_v39, %v7195_v40  ;;  %v385_v50 = vsel %vm9803_vm10, 0, %v384_v3  ;;  %v11567_v30 = vshll.u32 %v9440_v10, 16  ;;  %v11568_v40 = vshll.u32 %v9443_v32, 16 }
 0x110   : > { %v1701_v60 = vpop.f32.mrf.mxu0  ;;  %v1009_v63 = vsel %vm9840_vm14, %v883_v36, %v1008_v17  ;;  %v11565_v36 = vshrl.u32 %v9443_v32, 16  ;;  %386 = vst [vmem:[#allocation2 + $0x11c] sm:$0x8] %v385_v50  ;;  %v6927_v32 = vld [vmem:[#allocation2 + $0xe0] sm:$0xf] }
 0x111   : > { %v1828_v57 = vpop.f32.mrf.mxu3  ;;  %v1790_v21 = vpop.f32.mrf.mxu1  ;;  %1010 = vst [vmem:[#allocation2 + $0x104] sm:$0xf] %v1009_v63  ;;  %v888_v39 = vrot.slane %v11568_v40, 5  ;;  %v8723_v40 = vld [vmem:[#allocation2 + $0xd0] sm:$0xf0] }
 0x112   : > { %v10074_v55 = vadd.f32 %v1828_v57, %v1739_v1  ;;  %v10081_v16 = vadd.f32 %v1790_v21, %v1701_v60  ;;  %v7200_v57 = vor.u32 %v8718_v43, %v7197_v51  ;;  %v890_v17 = vrot.slane %v11565_v36, 4 }
 0x113   : > { %v884_v43 = vrot.slane %v11566_v29, 4  ;;  %v885_v51 = vrot.slane %v11567_v30, 5  ;;  %v8721_v29 = vld [vmem:[#allocation2 + $0xc4] sm:$0xf]  ;;  %v8722_v30 = vld [vmem:[#allocation2 + $0xc8] sm:$0xf0] }
 0x114   : > { %v891_v53 = vor.u32 %v890_v17, %v888_v39  ;;  %v8795_v17 = vld [vmem:[#allocation2 + $0xe8] sm:$0xf0] }
 0x115   : > { %v886_v6 = vor.u32 %v885_v51, %v884_v43  ;;  %v7209_v43 = vld [vmem:[#allocation2 + $0xcc] sm:$0xf0]  ;;  %v7215_v51 = vld [vmem:[#allocation2 + $0xc8] sm:$0xf] }
 0x116   : > { %v1741_v1 = vpop.f32.mrf.mxu2 }
 0x117   : > { %v887_v3 = vrot.slane %v886_v6, 4  ;;  %v1012_v10 = vld [vmem:[#allocation2 + $0x11c] sm:$0xf] }
 0x118   : > { %v1704_v21 = vpop.f32.mrf.mxu0 }
 0x119   : > { %v1830_v34 = vpop.f32.mrf.mxu3  ;;  %v1793_v63 = vpop.f32.mrf.mxu1  ;;  %v889_v36 = vsel %vm9832_vm13, %v887_v3, %v888_v39  ;;  %v7212_v39 = vor.u32 %v8721_v29, %v7209_v43  ;;  %v8899_v43 = vld [vmem:[%s11450_s1 + $0x1d0] sm:$0xff] }
 0x11a   : > { %v10085_v60 = vadd.f32 %v1830_v34, %v1741_v1  ;;  %v10091_v4 = vadd.f32 %v1793_v63, %v1704_v21  ;;  %v892_v21 = vrot.slane %v891_v53, 4  ;;  %1011 = vst [vmem:[#allocation2 + $0x110] sm:$0xf] %v889_v36  ;;  %v7216_v36 = vor.u32 %v8723_v40, %v7215_v51  ;;  %3202 = vmatpush.bf16.msra.mxu3 %v8899_v43  ;;  %v8798_v43 = vld [vmem:[#allocation2 + $0x100] sm:$0xf0] }
 0x11b   : > { %1881 = vmatmul.bf16.gmra.mxu2 %v6916_v12  ;;  %2459 = vmatmul.bf16.gmra.mxu0 %v7200_v57 }
 0x11c   : > { %11564 = vst [vmem:[#allocation7_spill] sm:$0xff] %v10085_v60  ;;  %2548 = vmatmul.bf16.gmra.mxu1 %v7204_v33  ;;  %v1013_v33 = vsel %vm9840_vm14, %v892_v21, %v1012_v10  ;;  %v11572_v60 = vshrl.u32 %v9510_v47, 16 }
 0x11d   : > { %1014 = vst [vmem:[#allocation2 + $0x11c] sm:$0xf] %v1013_v33  ;;  %v11571_v33 = vshrl.u32 %v9517_v9, 16 }
 0x11e   : > { %2370 = vmatmul.bf16.gmra.mxu3 %v7196_v61  ;;  %v1744_v1 = vpop.f32.mrf.mxu2  ;;  %v7207_v61 = vld [vmem:[#allocation2 + $0xc0] sm:$0xf] }
 0x120   : > { %v1706_v12 = vpop.f32.mrf.mxu0 }
 0x121   : > { %v1833_v34 = vpop.f32.mrf.mxu3  ;;  %v1795_v57 = vpop.f32.mrf.mxu1 }
 0x122   : > { %v10099_v50 = vadd.f32 %v1833_v34, %v1744_v1  ;;  %v10103_v63 = vadd.f32 %v1795_v57, %v1706_v12  ;;  %v6928_v1 = vor.u32 %v8795_v17, %v6927_v32  ;;  %v387_v34 = vld [vmem:[#allocation2 + $0x134] sm:$0x8]  ;;  %v7208_v57 = vor.u32 %v8722_v30, %v7207_v61 }
 0x123   : > { %v388_v21 = vsel %vm9803_vm10, 0, %v387_v34  ;;  %v893_v32 = vrot.slane %v11572_v60, 4  ;;  %v11573_v17 = vshll.u32 %v9510_v47, 16  ;;  %v8891_v61 = vld [vmem:[%s11450_s1 + $0x190] sm:$0xff]  ;;  %v11574_v30 = vshll.u32 %v9517_v9, 16 }
 0x124   : > { %11569 = vst [vmem:[#allocation8_spill] sm:$0xff] %v10099_v50  ;;  %v899_v50 = vrot.slane %v11571_v33, 4  ;;  %3113 = vmatpush.bf16.msra.mxu2 %v8891_v61  ;;  %v6939_v33 = vld [vmem:[#allocation2 + $0xf8] sm:$0xf] }
 0x125   : > { %389 = vst [vmem:[#allocation2 + $0x134] sm:$0x8] %v388_v21  ;;  %v894_v29 = vrot.slane %v11573_v17, 5  ;;  %v897_v51 = vrot.slane %v11574_v30, 5  ;;  %v8907_v21 = vld [vmem:[%s11450_s1 + $0x210] sm:$0xff] }
 0x126   : > { %v1746_v6 = vpop.f32.mrf.mxu2  ;;  %3291 = vmatpush.bf16.msra.mxu0 %v8907_v21  ;;  %v7221_v30 = vld [vmem:[#allocation2 + $0xe4] sm:$0xf0]  ;;  %v390_v21 = vld [vmem:[#allocation2 + $0x14c] sm:$0x8] }
 0x127   : > { %v895_v40 = vor.u32 %v894_v29, %v893_v32  ;;  %v900_v60 = vor.u32 %v899_v50, %v897_v51  ;;  %v7219_v50 = vld [vmem:[#allocation2 + $0xd8] sm:$0xf]  ;;  %v8725_v29 = vld [vmem:[#allocation2 + $0xe0] sm:$0xf0] }
 0x128   : > { %v2425_v12 = vpop.f32.mrf.mxu0 }
 0x129   : > { %v1835_v53 = vpop.f32.mrf.mxu3  ;;  %v2514_v10 = vpop.f32.mrf.mxu1  ;;  %v901_v34 = vrot.slane %v900_v60, 4  ;;  %v8726_v60 = vld [vmem:[#allocation2 + $0xe8] sm:$0xf0] }
 0x12a   : > { %v10107_v3 = vadd.f32 %v1835_v53, %v1746_v6 }
 0x12b   : > { %1886 = vmatmul.bf16.gmra.mxu2 %v6928_v1  ;;  %2464 = vmatmul.bf16.gmra.mxu0 %v7212_v39  ;;  %v896_v1 = vrot.slane %v895_v40, 4 }
 0x12c   : > { %11570 = vst [vmem:[#allocation9_spill] sm:$0xff] %v10107_v3  ;;  %2553 = vmatmul.bf16.gmra.mxu1 %v7216_v36  ;;  %v1016_v32 = vld [vmem:[#allocation2 + $0x134] sm:$0xf] }
 0x12d   : > { %v898_v9 = vsel %vm9832_vm13, %v896_v1, %v897_v51  ;;  %v1017_v61 = vsel %vm9840_vm14, %v901_v34, %v1016_v32  ;;  %v9040_v51 = vld [vmem:[%s11452_s3 + $0xf8] sm:$0xff]  ;;  %v6940_v1 = vor.u32 %v8798_v43, %v6939_v33  ;;  %v11577_v33 = vshrl.u32 %v9567_v45, 16 }
 0x12e   : > { %2375 = vmatmul.bf16.gmra.mxu3 %v7208_v57  ;;  %v1847_v6 = vpop.f32.mrf.mxu2  ;;  %1015 = vst [vmem:[#allocation2 + $0x128] sm:$0xf] %v898_v9  ;;  %4862 = vmatpush.bf16.msra.mxu1 %v9040_v51  ;;  %v7220_v9 = vor.u32 %v8725_v29, %v7219_v50  ;;  %v11578_v43 = vshll.u32 %v9567_v45, 16  ;;  %v11579_v50 = vshll.u32 %v9583_v42, 16 }
 0x12f   : > { %v1848_v47 = vadd.f32 %v1847_v6, %v9899_v22  ;;  %v8724_v22 = vld [vmem:[#allocation2 + $0xdc] sm:$0xf]  ;;  %1018 = vst [vmem:[#allocation2 + $0x134] sm:$0xf] %v1017_v61  ;;  %v7227_v6 = vld [vmem:[#allocation2 + $0xe0] sm:$0xf] }
 0x130   : > { %v2427_v39 = vpop.f32.mrf.mxu0  ;;  %v7228_v32 = vor.u32 %v8726_v60, %v7227_v6  ;;  %v906_v29 = vrot.slane %v11579_v50, 5 }
 0x131   : > { %v2336_v53 = vpop.f32.mrf.mxu3  ;;  %v2516_v36 = vpop.f32.mrf.mxu1 }
 0x132   : > { %v2337_v57 = vadd.f32 %v2336_v53, %v1848_v47 }
 0x134   : > { %v2426_v17 = vadd.f32 %v2425_v12, %v2337_v57  ;;  %v7224_v57 = vor.u32 %v8724_v22, %v7221_v30  ;;  %v902_v22 = vrot.slane %v11577_v33, 4  ;;  %v903_v30 = vrot.slane %v11578_v43, 5  ;;  %v8728_v33 = vld [vmem:[#allocation2 + $0xf8] sm:$0xf0]  ;;  %v8729_v43 = vld [vmem:[#allocation2 + $0x100] sm:$0xf0] }
 0x136   : > { %v10133_v40 = vadd.f32 %v2514_v10, %v2426_v17  ;;  %v1849_v47 = vpop.f32.mrf.mxu2  ;;  %v391_v10 = vsel %vm9803_vm10, 0, %v390_v21  ;;  %v904_v60 = vor.u32 %v903_v30, %v902_v22  ;;  %v7239_v22 = vld [vmem:[#allocation2 + $0xf8] sm:$0xf] }
 0x137   : > { %v1850_v12 = vadd.f32 %v1849_v47, %v9919_v49  ;;  %392 = vst [vmem:[#allocation2 + $0x14c] sm:$0x8] %v391_v10  ;;  %v7231_v10 = vld [vmem:[#allocation2 + $0xf0] sm:$0xf] }
 0x138   : > { %11575 = vst [vmem:[#allocation10_spill] sm:$0xff] %v10133_v40  ;;  %v2430_v34 = vpop.f32.mrf.mxu0  ;;  %v11576_v40 = vshrl.u32 %v9583_v42, 16 }
 0x139   : > { %v2338_v53 = vpop.f32.mrf.mxu3  ;;  %v2519_v61 = vpop.f32.mrf.mxu1 }
 0x13a   : > { %v2339_v17 = vadd.f32 %v2338_v53, %v1850_v12  ;;  %v908_v3 = vrot.slane %v11576_v40, 4 }
 0x13b   : > { %1891 = vmatmul.bf16.gmra.mxu2 %v6940_v1  ;;  %2469 = vmatmul.bf16.gmra.mxu0 %v7224_v57 }
 0x13c   : > { %v2428_v49 = vadd.f32 %v2427_v39, %v2339_v17  ;;  %2558 = vmatmul.bf16.gmra.mxu1 %v7228_v32  ;;  %v909_v40 = vor.u32 %v908_v3, %v906_v29  ;;  %v905_v39 = vrot.slane %v904_v60, 4  ;;  %v6951_v32 = vld [vmem:[#allocation2 + $0x110] sm:$0xf]  ;;  %v8801_v3 = vld [vmem:[#allocation2 + $0x118] sm:$0xf0] }
 0x13d   : > { %v7233_v17 = vld [vmem:[#allocation2 + $0xfc] sm:$0xf0]  ;;  %v6952_v60 = vor.u32 %v8801_v3, %v6951_v32 }
 0x13e   : > { %2380 = vmatmul.bf16.gmra.mxu3 %v7220_v9  ;;  %v10149_v6 = vadd.f32 %v2516_v36, %v2428_v49  ;;  %v1852_v51 = vpop.f32.mrf.mxu2  ;;  %v910_v1 = vrot.slane %v909_v40, 4  ;;  %v907_v45 = vsel %vm9832_vm13, %v905_v39, %v906_v29  ;;  %v1020_v9 = vld [vmem:[#allocation2 + $0x14c] sm:$0xf]  ;;  %v393_v40 = vld [vmem:[#allocation2 + $0x164] sm:$0x8] }
 0x13f   : > { %v1853_v47 = vadd.f32 %v1852_v51, %v9932_v38  ;;  %1019 = vst [vmem:[#allocation2 + $0x140] sm:$0xf] %v907_v45  ;;  %v8727_v38 = vld [vmem:[#allocation2 + $0xf4] sm:$0xf]  ;;  %v394_v39 = vsel %vm9803_vm10, 0, %v393_v40 }
 0x140   : > { %v2432_v53 = vpop.f32.mrf.mxu0  ;;  %v1021_v42 = vsel %vm9840_vm14, %v910_v1, %v1020_v9  ;;  %v7236_v51 = vor.u32 %v8727_v38, %v7233_v17  ;;  %395 = vst [vmem:[#allocation2 + $0x164] sm:$0x8] %v394_v39  ;;  %v11583_v38 = vshll.u32 %v9636_v48, 16 }
 0x141   : > { %v2341_v12 = vpop.f32.mrf.mxu3  ;;  %v2521_v21 = vpop.f32.mrf.mxu1  ;;  %1022 = vst [vmem:[#allocation2 + $0x14c] sm:$0xf] %v1021_v42  ;;  %v8898_v42 = vld [vmem:[%s11450_s1 + $0x1c8] sm:$0xff] }
 0x142   : > { %v2342_v57 = vadd.f32 %v2341_v12, %v1853_v47  ;;  %v7240_v12 = vor.u32 %v8729_v43, %v7239_v22  ;;  %3203 = vmatpush.bf16.msra.mxu3 %v8898_v42 }
 0x144   : > { %v2431_v36 = vadd.f32 %v2430_v34, %v2342_v57  ;;  %v7232_v34 = vor.u32 %v8728_v33, %v7231_v10  ;;  %v11582_v10 = vshll.u32 %v9628_v7, 16 }
 0x146   : > { %v10156_v49 = vadd.f32 %v2519_v61, %v2431_v36  ;;  %v1854_v30 = vpop.f32.mrf.mxu2  ;;  %v11580_v61 = vshrl.u32 %v9636_v48, 16  ;;  %v11581_v36 = vshrl.u32 %v9628_v7, 16  ;;  %v912_v3 = vrot.slane %v11582_v10, 5  ;;  %v8906_v7 = vld [vmem:[%s11450_s1 + $0x208] sm:$0xff]  ;;  %v9039_v10 = vld [vmem:[%s11452_s3 + $0xf0] sm:$0xff] }
 0x147   : > { %v1855_v50 = vadd.f32 %v1854_v30, %v9944_v8  ;;  %v8890_v8 = vld [vmem:[%s11450_s1 + $0x188] sm:$0xff]  ;;  %3292 = vmatpush.bf16.msra.mxu0 %v8906_v7  ;;  %4863 = vmatpush.bf16.msra.mxu1 %v9039_v10 }
 0x148   : > { %v2435_v47 = vpop.f32.mrf.mxu0  ;;  %v917_v45 = vrot.slane %v11580_v61, 4  ;;  %v911_v32 = vrot.slane %v11581_v36, 4  ;;  %3114 = vmatpush.bf16.msra.mxu2 %v8890_v8  ;;  %v6963_v48 = vld [vmem:[#allocation2 + $0x128] sm:$0xf]  ;;  %v8731_v61 = vld [vmem:[#allocation2 + $0x110] sm:$0xf0] }
 0x149   : > { %v2343_v29 = vpop.f32.mrf.mxu3  ;;  %v2524_v57 = vpop.f32.mrf.mxu1  ;;  %v7245_v8 = vld [vmem:[#allocation2 + $0x114] sm:$0xf0]  ;;  %v7251_v36 = vld [vmem:[#allocation2 + $0x110] sm:$0xf] }
 0x14a   : > { %v2344_v1 = vadd.f32 %v2343_v29, %v1855_v50  ;;  %v913_v22 = vor.u32 %v912_v3, %v911_v32  ;;  %v8732_v32 = vld [vmem:[#allocation2 + $0x118] sm:$0xf0] }
 0x14b   : > { %1896 = vmatmul.bf16.gmra.mxu2 %v6952_v60  ;;  %2474 = vmatmul.bf16.gmra.mxu0 %v7236_v51 }
 0x14c   : > { %v2433_v9 = vadd.f32 %v2432_v53, %v2344_v1  ;;  %2563 = vmatmul.bf16.gmra.mxu1 %v7240_v12  ;;  %v915_v53 = vrot.slane %v11583_v38, 5  ;;  %v914_v60 = vrot.slane %v913_v22, 4  ;;  %v1024_v12 = vld [vmem:[#allocation2 + $0x164] sm:$0xf]  ;;  %v7243_v1 = vld [vmem:[#allocation2 + $0x108] sm:$0xf] }
 0x14d   : > { %v396_v22 = vld [vmem:[#allocation2 + $0x17c] sm:$0x8] }
 0x14e   : > { %2385 = vmatmul.bf16.gmra.mxu3 %v7232_v34  ;;  %v10175_v17 = vadd.f32 %v2521_v21, %v2433_v9  ;;  %v1857_v33 = vpop.f32.mrf.mxu2  ;;  %v918_v43 = vor.u32 %v917_v45, %v915_v53  ;;  %v916_v21 = vsel %vm9832_vm13, %v914_v60, %v915_v53  ;;  %v8730_v45 = vld [vmem:[#allocation2 + $0x10c] sm:$0xf]  ;;  %v8804_v9 = vld [vmem:[#allocation2 + $0x130] sm:$0xf0] }
 0x14f   : > { %v1858_v30 = vadd.f32 %v1857_v33, %v9954_v19  ;;  %1023 = vst [vmem:[#allocation2 + $0x158] sm:$0xf] %v916_v21  ;;  %v6964_v53 = vor.u32 %v8804_v9, %v6963_v48  ;;  %v7248_v33 = vor.u32 %v8730_v45, %v7245_v8  ;;  %v11585_v48 = vshrl.u32 %v9698_v13, 16 }
 0x150   : > { %v2437_v29 = vpop.f32.mrf.mxu0  ;;  %v919_v51 = vrot.slane %v918_v43, 4 }
 0x151   : > { %v2346_v50 = vpop.f32.mrf.mxu3  ;;  %v2526_v34 = vpop.f32.mrf.mxu1  ;;  %v920_v21 = vrot.slane %v11585_v48, 4 }
 0x152   : > { %v2347_v40 = vadd.f32 %v2346_v50, %v1858_v30  ;;  %v1025_v19 = vsel %vm9840_vm14, %v919_v51, %v1024_v12  ;;  %v7244_v30 = vor.u32 %v8731_v61, %v7243_v1  ;;  %v7252_v50 = vor.u32 %v8732_v32, %v7251_v36 }
 0x153   : > { %1026 = vst [vmem:[#allocation2 + $0x164] sm:$0xf] %v1025_v19  ;;  %v11586_v12 = vshll.u32 %v9698_v13, 16  ;;  %v11587_v1 = vshll.u32 %v9708_v0, 16 }
 0x154   : > { %v2436_v39 = vadd.f32 %v2435_v47, %v2347_v40  ;;  %v11584_v40 = vshrl.u32 %v9708_v0, 16 }
 0x155   : > { %v924_v61 = vrot.slane %v11587_v1, 5  ;;  %v399_v1 = vld [vmem:[#allocation2 + $0x194] sm:$0x8] }
 0x156   : > { %v10185_v42 = vadd.f32 %v2524_v57, %v2436_v39  ;;  %v1859_v47 = vpop.f32.mrf.mxu2  ;;  %v397_v57 = vsel %vm9803_vm10, 0, %v396_v22  ;;  %v926_v7 = vrot.slane %v11584_v40, 4  ;;  %v921_v39 = vrot.slane %v11586_v12, 5  ;;  %v7255_v22 = vld [vmem:[#allocation2 + $0x120] sm:$0xf] }
 0x157   : > { %v1860_v3 = vadd.f32 %v1859_v47, %v9972_v52  ;;  %398 = vst [vmem:[#allocation2 + $0x17c] sm:$0x8] %v397_v57  ;;  %v7263_v40 = vld [vmem:[#allocation2 + $0x128] sm:$0xf] }
 0x158   : > { %v2440_v43 = vpop.f32.mrf.mxu0  ;;  %v922_v19 = vor.u32 %v921_v39, %v920_v21  ;;  %v927_v8 = vor.u32 %v926_v7, %v924_v61  ;;  %v8735_v7 = vld [vmem:[#allocation2 + $0x130] sm:$0xf0] }
 0x159   : > { %v2348_v38 = vpop.f32.mrf.mxu3  ;;  %v2529_v51 = vpop.f32.mrf.mxu1 }
 0x15a   : > { %v2349_v60 = vadd.f32 %v2348_v38, %v1860_v3  ;;  %v928_v47 = vrot.slane %v927_v8, 4 }
 0x15b   : > { %1901 = vmatmul.bf16.gmra.mxu2 %v6964_v53  ;;  %2479 = vmatmul.bf16.gmra.mxu0 %v7248_v33  ;;  %v6975_v33 = vld [vmem:[#allocation2 + $0x140] sm:$0xf] }
 0x15c   : > { %v2438_v52 = vadd.f32 %v2437_v29, %v2349_v60  ;;  %2568 = vmatmul.bf16.gmra.mxu1 %v7252_v50  ;;  %v923_v29 = vrot.slane %v922_v19, 4  ;;  %v7257_v50 = vld [vmem:[#allocation2 + $0x12c] sm:$0xf0]  ;;  %v8734_v60 = vld [vmem:[#allocation2 + $0x128] sm:$0xf0]  ;;  %v7264_v19 = vor.u32 %v8735_v7, %v7263_v40 }
 0x15e   : > { %2390 = vmatmul.bf16.gmra.mxu3 %v7244_v30  ;;  %v10201_v45 = vadd.f32 %v2526_v34, %v2438_v52  ;;  %v1862_v9 = vpop.f32.mrf.mxu2  ;;  %v925_v13 = vsel %vm9832_vm13, %v923_v29, %v924_v61  ;;  %v1028_v53 = vld [vmem:[#allocation2 + $0x17c] sm:$0xf]  ;;  %v8807_v30 = vld [vmem:[#allocation2 + $0x148] sm:$0xf0] }
 0x15f   : > { %v1863_v36 = vadd.f32 %v1862_v9, %v9985_v18  ;;  %1027 = vst [vmem:[#allocation2 + $0x170] sm:$0xf] %v925_v13  ;;  %v1029_v0 = vsel %vm9840_vm14, %v928_v47, %v1028_v53  ;;  %v8733_v18 = vld [vmem:[#allocation2 + $0x124] sm:$0xf]  ;;  %v6976_v12 = vor.u32 %v8807_v30, %v6975_v33  ;;  %v400_v9 = vsel %vm9803_vm10, 0, %v399_v1 }
 0x160   : > { %v2442_v10 = vpop.f32.mrf.mxu0  ;;  %1030 = vst [vmem:[#allocation2 + $0x17c] sm:$0xf] %v1029_v0  ;;  %v7260_v39 = vor.u32 %v8733_v18, %v7257_v50  ;;  %v8897_v47 = vld [vmem:[%s11450_s1 + $0x1c0] sm:$0xff]  ;;  %v11590_v53 = vshll.u32 %v9748_v35, 16  ;;  %v7267_v1 = vld [vmem:[#allocation2 + $0x138] sm:$0xf] }
 0x161   : > { %v2351_v32 = vpop.f32.mrf.mxu3  ;;  %v2531_v38 = vpop.f32.mrf.mxu1  ;;  %401 = vst [vmem:[#allocation2 + $0x194] sm:$0x8] %v400_v9  ;;  %3204 = vmatpush.bf16.msra.mxu3 %v8897_v47  ;;  %v8810_v9 = vld [vmem:[#allocation2 + $0x160] sm:$0xf0] }
 0x162   : > { %v2352_v3 = vadd.f32 %v2351_v32, %v1863_v36  ;;  %v930_v0 = vrot.slane %v11590_v53, 5 }
 0x164   : > { %v2441_v34 = vadd.f32 %v2440_v43, %v2352_v3  ;;  %v7256_v43 = vor.u32 %v8734_v60, %v7255_v22  ;;  %v11589_v3 = vshrl.u32 %v9748_v35, 16  ;;  %v8905_v35 = vld [vmem:[%s11450_s1 + $0x200] sm:$0xff] }
 0x165   : > { %3293 = vmatpush.bf16.msra.mxu0 %v8905_v35 }
 0x166   : > { %v10208_v57 = vadd.f32 %v2529_v51, %v2441_v34  ;;  %v1864_v52 = vpop.f32.mrf.mxu2  ;;  %v11588_v51 = vshrl.u32 %v9775_v27, 16  ;;  %v929_v13 = vrot.slane %v11589_v3, 4  ;;  %v11591_v34 = vshll.u32 %v9775_v27, 16  ;;  %v6999_v35 = vld [vmem:[#allocation2 + $0x170] sm:$0xf] }
 0x167   : > { %v1865_v48 = vadd.f32 %v1864_v52, %v9997_v56  ;;  %v8889_v56 = vld [vmem:[%s11450_s1 + $0x180] sm:$0xff] }
 0x168   : > { %v2445_v61 = vpop.f32.mrf.mxu0  ;;  %v935_v32 = vrot.slane %v11588_v51, 4  ;;  %3115 = vmatpush.bf16.msra.mxu2 %v8889_v56  ;;  %v931_v30 = vor.u32 %v930_v0, %v929_v13 }
 0x169   : > { %v2353_v21 = vpop.f32.mrf.mxu3  ;;  %v2534_v36 = vpop.f32.mrf.mxu1 }
 0x16a   : > { %v2354_v8 = vadd.f32 %v2353_v21, %v1865_v48  ;;  %v932_v7 = vrot.slane %v931_v30, 4 }
 0x16b   : > { %1906 = vmatmul.bf16.gmra.mxu2 %v6976_v12  ;;  %2484 = vmatmul.bf16.gmra.mxu0 %v7260_v39  ;;  %v6987_v39 = vld [vmem:[#allocation2 + $0x158] sm:$0xf] }
 0x16c   : > { %v2443_v29 = vadd.f32 %v2442_v10, %v2354_v8  ;;  %2573 = vmatmul.bf16.gmra.mxu1 %v7264_v19  ;;  %v933_v10 = vrot.slane %v11591_v34, 5  ;;  %v7269_v8 = vld [vmem:[#allocation2 + $0x144] sm:$0xf0]  ;;  %v6988_v13 = vor.u32 %v8810_v9, %v6987_v39  ;;  %v7281_v39 = vld [vmem:[#allocation2 + $0x15c] sm:$0xf0] }
 0x16e   : > { %2395 = vmatmul.bf16.gmra.mxu3 %v7256_v43  ;;  %v10227_v33 = vadd.f32 %v2531_v38, %v2443_v29  ;;  %v1867_v22 = vpop.f32.mrf.mxu2  ;;  %v936_v18 = vor.u32 %v935_v32, %v933_v10  ;;  %v934_v27 = vsel %vm9832_vm13, %v932_v7, %v933_v10  ;;  %v1032_v38 = vld [vmem:[#allocation2 + $0x194] sm:$0xf]  ;;  %v8737_v43 = vld [vmem:[#allocation2 + $0x140] sm:$0xf0]  ;;  %v7275_v32 = vld [vmem:[#allocation2 + $0x140] sm:$0xf] }
 0x16f   : > { %v1868_v50 = vadd.f32 %v1867_v22, %v10007_v14  ;;  %v8736_v14 = vld [vmem:[#allocation2 + $0x13c] sm:$0xf]  ;;  %1031 = vst [vmem:[#allocation2 + $0x188] sm:$0xf] %v934_v27  ;;  %v8738_v29 = vld [vmem:[#allocation2 + $0x148] sm:$0xf0]  ;;  %v7268_v34 = vor.u32 %v8737_v43, %v7267_v1 }
 0x170   : > { %v2447_v40 = vpop.f32.mrf.mxu0  ;;  %v937_v52 = vrot.slane %v936_v18, 4  ;;  %v7272_v53 = vor.u32 %v8736_v14, %v7269_v8  ;;  %v7276_v10 = vor.u32 %v8738_v29, %v7275_v32  ;;  %v7279_v27 = vld [vmem:[#allocation2 + $0x150] sm:$0xf]  ;;  %v7287_v43 = vld [vmem:[#allocation2 + $0x158] sm:$0xf] }
 0x171   : > { %v2356_v60 = vpop.f32.mrf.mxu3  ;;  %v10230_v21 = vpop.f32.mrf.mxu1  ;;  %v8741_v14 = vld [vmem:[#allocation2 + $0x160] sm:$0xf0] }
 0x172   : > { %v2357_v48 = vadd.f32 %v2356_v60, %v1868_v50  ;;  %v1033_v19 = vsel %vm9840_vm14, %v937_v52, %v1032_v38  ;;  %v8813_v38 = vld [vmem:[#allocation2 + $0x178] sm:$0xf0] }
 0x173   : > { %1034 = vst [vmem:[#allocation2 + $0x194] sm:$0xf] %v1033_v19  ;;  %v7000_v8 = vor.u32 %v8813_v38, %v6999_v35  ;;  %v7293_v35 = vld [vmem:[#allocation2 + $0x174] sm:$0xf0]  ;;  %v8744_v38 = vld [vmem:[#allocation2 + $0x178] sm:$0xf0] }
 0x174   : > { %v2446_v12 = vadd.f32 %v2445_v61, %v2357_v48  ;;  %v9038_v61 = vld [vmem:[%s11452_s3 + $0xe8] sm:$0xff] }
 0x175   : > { %4864 = vmatpush.bf16.msra.mxu1 %v9038_v61 }
 0x176   : > { %v10239_v51 = vadd.f32 %v2534_v36, %v2446_v12  ;;  %v1869_v56 = vpop.f32.mrf.mxu2  ;;  %v8739_v12 = vld [vmem:[#allocation2 + $0x154] sm:$0xf] }
 0x177   : > { %v1870_v47 = vadd.f32 %v1869_v56, %v10025_v23  ;;  %v7284_v32 = vor.u32 %v8739_v12, %v7281_v39  ;;  %v7288_v56 = vor.u32 %v8741_v14, %v7287_v43 }
 0x178   : > { %v2450_v0 = vpop.f32.mrf.mxu0 }
 0x179   : > { %v2358_v3 = vpop.f32.mrf.mxu3  ;;  %v2539_v30 = vpop.f32.mrf.mxu1 }
 0x17a   : > { %v2359_v22 = vadd.f32 %v2358_v3, %v1870_v47 }
 0x17b   : > { %1911 = vmatmul.bf16.gmra.mxu2 %v6988_v13  ;;  %2489 = vmatmul.bf16.gmra.mxu0 %v7272_v53 }
 0x17c   : > { %v10245_v36 = vadd.f32 %v2447_v40, %v2359_v22  ;;  %2578 = vmatmul.bf16.gmra.mxu1 %v7276_v10  ;;  %v8740_v40 = vld [vmem:[#allocation2 + $0x158] sm:$0xf0] }
 0x17d   : > { %v7280_v61 = vor.u32 %v8740_v40, %v7279_v27 }
 0x17e   : > { %2400 = vmatmul.bf16.gmra.mxu3 %v7268_v34  ;;  %v1872_v18 = vpop.f32.mrf.mxu2 }
 0x17f   : > { %v1873_v50 = vadd.f32 %v1872_v18, %v10038_v31  ;;  %v7291_v18 = vld [vmem:[#allocation2 + $0x168] sm:$0xf] }
 0x180   : > { %v2452_v23 = vpop.f32.mrf.mxu0 }
 0x181   : > { %v2361_v60 = vpop.f32.mrf.mxu3  ;;  %v10248_v52 = vpop.f32.mrf.mxu1 }
 0x182   : > { %v2362_v7 = vadd.f32 %v2361_v60, %v1873_v50  ;;  %v8743_v50 = vld [vmem:[#allocation2 + $0x170] sm:$0xf0]  ;;  %v8742_v60 = vld [vmem:[#allocation2 + $0x16c] sm:$0xf] }
 0x183   : > { %v7296_v14 = vor.u32 %v8742_v60, %v7293_v35  ;;  %v8841_v60 = vld [vmem:[#allocation2 + $0x34] sm:$0xf] }
 0x184   : > { %v2451_v48 = vadd.f32 %v2450_v0, %v2362_v7  ;;  %v7011_v7 = vld [vmem:[#allocation2 + $0x188] sm:$0xf] }
 0x186   : > { %v10250_v1 = vadd.f32 %v2539_v30, %v2451_v48  ;;  %v1874_v19 = vpop.f32.mrf.mxu2  ;;  %v8816_v48 = vld [vmem:[#allocation2 + $0x190] sm:$0xf0] }
 0x187   : > { %v1875_v9 = vadd.f32 %v1874_v19, %v10050_v11  ;;  %v7012_v43 = vor.u32 %v8816_v48, %v7011_v7 }
 0x188   : > { %v2455_v29 = vpop.f32.mrf.mxu0 }
 0x189   : > { %v2363_v31 = vpop.f32.mrf.mxu3  ;;  %v2544_v3 = vpop.f32.mrf.mxu1 }
 0x18a   : > { %v2364_v47 = vadd.f32 %v2363_v31, %v1875_v9  ;;  %v7292_v9 = vor.u32 %v8743_v50, %v7291_v18  ;;  %v8843_v18 = vld [vmem:[#allocation2 + $0x40] sm:$0xf0] }
 0x18b   : > { %1916 = vmatmul.bf16.gmra.mxu2 %v7000_v8  ;;  %2494 = vmatmul.bf16.gmra.mxu0 %v7284_v32 }
 0x18c   : > { %v10253_v13 = vadd.f32 %v2452_v23, %v2364_v47  ;;  %2583 = vmatmul.bf16.gmra.mxu1 %v7288_v56  ;;  %v7299_v23 = vld [vmem:[#allocation2 + $0x170] sm:$0xf] }
 0x18d   : > { %v7300_v31 = vor.u32 %v8744_v38, %v7299_v23 }
 0x18e   : > { %2405 = vmatmul.bf16.gmra.mxu3 %v7280_v61  ;;  %v1877_v53 = vpop.f32.mrf.mxu2 }
 0x18f   : > { %v1878_v0 = vadd.f32 %v1877_v53, %v10060_v28  ;;  %v9037_v28 = vld [vmem:[%s11452_s3 + $0xe0] sm:$0xff] }
 0x190   : > { %v2457_v10 = vpop.f32.mrf.mxu0  ;;  %4865 = vmatpush.bf16.msra.mxu1 %v9037_v28 }
 0x191   : > { %v2366_v34 = vpop.f32.mrf.mxu3  ;;  %v10256_v22 = vpop.f32.mrf.mxu1 }
 0x192   : > { %v2367_v11 = vadd.f32 %v2366_v34, %v1878_v0  ;;  %v7447_v34 = vld [vmem:[#allocation2 + $0x30] sm:$0xf] }
 0x194   : > { %v2456_v30 = vadd.f32 %v2455_v29, %v2367_v11  ;;  %v8842_v11 = vld [vmem:[#allocation2 + $0x38] sm:$0xf0] }
 0x195   : > { %v7448_v23 = vor.u32 %v8842_v11, %v7447_v34  ;;  %v7461_v34 = vld [vmem:[#allocation2 + $0x54] sm:$0xf0] }
 0x196   : > { %v10258_v27 = vadd.f32 %v2544_v3, %v2456_v30  ;;  %v1879_v12 = vpop.f32.mrf.mxu2  ;;  %v7455_v30 = vld [vmem:[#allocation2 + $0x38] sm:$0xf] }
 0x197   : > { %v1880_v39 = vadd.f32 %v1879_v12, %v10081_v16 }
 0x198   : > { %v2460_v19 = vpop.f32.mrf.mxu0 }
 0x199   : > { %v2368_v40 = vpop.f32.mrf.mxu3  ;;  %v2549_v32 = vpop.f32.mrf.mxu1 }
 0x19a   : > { %v2369_v8 = vadd.f32 %v2368_v40, %v1880_v39 }
 0x19b   : > { %1921 = vmatmul.bf16.gmra.mxu2 %v7012_v43  ;;  %2499 = vmatmul.bf16.gmra.mxu0 %v7296_v14 }
 0x19c   : > { %v10264_v29 = vadd.f32 %v2457_v10, %v2369_v8  ;;  %2588 = vmatmul.bf16.gmra.mxu1 %v7300_v31  ;;  %v7449_v10 = vld [vmem:[#allocation2 + $0x3c] sm:$0xf0] }
 0x19d   : > { %v7452_v28 = vor.u32 %v8841_v60, %v7449_v10 }
 0x19e   : > { %2410 = vmatmul.bf16.gmra.mxu3 %v7292_v9  ;;  %v1882_v61 = vpop.f32.mrf.mxu2 }
 0x19f   : > { %v1883_v56 = vadd.f32 %v1882_v61, %v10091_v4  ;;  %v7456_v4 = vor.u32 %v8843_v18, %v7455_v30  ;;  %v8845_v61 = vld [vmem:[#allocation2 + $0x50] sm:$0xf0] }
 0x1a0   : > { %v2462_v16 = vpop.f32.mrf.mxu0 }
 0x1a1   : > { %v2371_v47 = vpop.f32.mrf.mxu3  ;;  %v10267_v53 = vpop.f32.mrf.mxu1 }
 0x1a2   : > { %v2372_v3 = vadd.f32 %v2371_v47, %v1883_v56  ;;  %v7467_v56 = vld [vmem:[#allocation2 + $0x50] sm:$0xf]  ;;  %v8846_v47 = vld [vmem:[#allocation2 + $0x58] sm:$0xf0] }
 0x1a3   : > { %v7468_v60 = vor.u32 %v8846_v47, %v7467_v56  ;;  %v7473_v56 = vld [vmem:[#allocation2 + $0x6c] sm:$0xf0] }
 0x1a4   : > { %v2461_v0 = vadd.f32 %v2460_v19, %v2372_v3 }
 0x1a6   : > { %v10269_v50 = vadd.f32 %v2549_v32, %v2461_v0  ;;  %v1884_v7 = vpop.f32.mrf.mxu2  ;;  %v7459_v32 = vld [vmem:[#allocation2 + $0x48] sm:$0xf]  ;;  %v8844_v0 = vld [vmem:[#allocation2 + $0x4c] sm:$0xf] }
 0x1a7   : > { %v1885_v48 = vadd.f32 %v1884_v7, %v10103_v63  ;;  %v7460_v18 = vor.u32 %v8845_v61, %v7459_v32  ;;  %v7464_v7 = vor.u32 %v8844_v0, %v7461_v34  ;;  %v8847_v61 = vld [vmem:[#allocation2 + $0x64] sm:$0xf] }
 0x1a8   : > { %v2465_v38 = vpop.f32.mrf.mxu0 }
 0x1a9   : > { %v2373_v35 = vpop.f32.mrf.mxu3  ;;  %v2554_v39 = vpop.f32.mrf.mxu1 }
 0x1aa   : > { %v2374_v12 = vadd.f32 %v2373_v35, %v1885_v48 }
 0x1ab   : > { %3116 = vmatmul.bf16.vlgmr.msra.gmra.mxu2 %v7448_v23  ;;  %3294 = vmatmul.bf16.vlgmr.msra.gmra.mxu0 %v7456_v4 }
 0x1ac   : > { %v10272_v40 = vadd.f32 %v2462_v16, %v2374_v12  ;;  %v9036_v16 = vld [vmem:[%s11452_s3 + $0xd8] sm:$0xff] }
 0x1ad   : > { %4866 = vmatpush.bf16.msra.mxu1 %v9036_v16 }
 0x1ae   : > { %3205 = vmatmul.bf16.vlgmr.msra.gmra.mxu3 %v7452_v28  ;;  %v1887_v43 = vpop.f32.mrf.mxu2 }
 0x1af   : > { %v1888_v14 = vadd.f32 %v1887_v43, %v9915_v59 }
 0x1b0   : > { %v2467_v9 = vpop.f32.mrf.mxu0 }
 0x1b1   : > { %v2376_v19 = vpop.f32.mrf.mxu3  ;;  %v10275_v8 = vpop.f32.mrf.mxu1 }
 0x1b2   : > { %v2377_v31 = vadd.f32 %v2376_v19, %v1888_v14  ;;  %v7471_v14 = vld [vmem:[#allocation2 + $0x60] sm:$0xf]  ;;  %v8848_v19 = vld [vmem:[#allocation2 + $0x68] sm:$0xf0] }
 0x1b3   : > { %v7472_v34 = vor.u32 %v8848_v19, %v7471_v14  ;;  %v8850_v19 = vld [vmem:[#allocation2 + $0x7c] sm:$0xf] }
 0x1b4   : > { %v2466_v63 = vadd.f32 %v2465_v38, %v2377_v31  ;;  %v7479_v31 = vld [vmem:[#allocation2 + $0x68] sm:$0xf] }
 0x1b6   : > { %v10277_v3 = vadd.f32 %v2554_v39, %v2466_v63  ;;  %v1889_v11 = vpop.f32.mrf.mxu2  ;;  %v8849_v63 = vld [vmem:[#allocation2 + $0x70] sm:$0xf0] }
 0x1b7   : > { %v1890_v59 = vadd.f32 %v1889_v11, %v9926_v46  ;;  %v7476_v11 = vor.u32 %v8847_v61, %v7473_v56 }
 0x1b8   : > { %v2470_v10 = vpop.f32.mrf.mxu0 }
 0x1b9   : > { %v2378_v30 = vpop.f32.mrf.mxu3  ;;  %v2559_v35 = vpop.f32.mrf.mxu1 }
 0x1ba   : > { %v2379_v48 = vadd.f32 %v2378_v30, %v1890_v59 }
 0x1bb   : > { %3121 = vmatmul.bf16.gmra.mxu2 %v7460_v18  ;;  %3299 = vmatmul.bf16.gmra.mxu0 %v7468_v60 }
 0x1bc   : > { %v10283_v23 = vadd.f32 %v2467_v9, %v2379_v48 }
 0x1be   : > { %3210 = vmatmul.bf16.gmra.mxu3 %v7464_v7  ;;  %v1892_v4 = vpop.f32.mrf.mxu2 }
 0x1bf   : > { %v1893_v38 = vadd.f32 %v1892_v4, %v9940_v20  ;;  %v7480_v20 = vor.u32 %v8849_v63, %v7479_v31  ;;  %v7485_v31 = vld [vmem:[#allocation2 + $0x84] sm:$0xf0] }
 0x1c0   : > { %v2472_v12 = vpop.f32.mrf.mxu0 }
 0x1c1   : > { %v2381_v28 = vpop.f32.mrf.mxu3  ;;  %v10286_v46 = vpop.f32.mrf.mxu1 }
 0x1c2   : > { %v2382_v39 = vadd.f32 %v2381_v28, %v1893_v38  ;;  %v7483_v38 = vld [vmem:[#allocation2 + $0x78] sm:$0xf]  ;;  %v8851_v28 = vld [vmem:[#allocation2 + $0x80] sm:$0xf0] }
 0x1c3   : > { %v7484_v56 = vor.u32 %v8851_v28, %v7483_v38  ;;  %v7503_v38 = vld [vmem:[#allocation2 + $0x98] sm:$0xf]  ;;  %v8855_v28 = vld [vmem:[#allocation2 + $0xa0] sm:$0xf0] }
 0x1c4   : > { %v2471_v43 = vadd.f32 %v2470_v10, %v2382_v39  ;;  %v7491_v39 = vld [vmem:[#allocation2 + $0x80] sm:$0xf] }
 0x1c6   : > { %v10288_v32 = vadd.f32 %v2559_v35, %v2471_v43  ;;  %v1894_v9 = vpop.f32.mrf.mxu2  ;;  %v8852_v43 = vld [vmem:[#allocation2 + $0x88] sm:$0xf0] }
 0x1c7   : > { %v1895_v47 = vadd.f32 %v1894_v9, %v9948_v24  ;;  %v7492_v9 = vor.u32 %v8852_v43, %v7491_v39  ;;  %v8853_v43 = vld [vmem:[#allocation2 + $0x94] sm:$0xf] }
 0x1c8   : > { %v2475_v16 = vpop.f32.mrf.mxu0 }
 0x1c9   : > { %v2383_v0 = vpop.f32.mrf.mxu3  ;;  %v2564_v30 = vpop.f32.mrf.mxu1 }
 0x1ca   : > { %v2384_v59 = vadd.f32 %v2383_v0, %v1895_v47  ;;  %v7488_v0 = vor.u32 %v8850_v19, %v7485_v31  ;;  %v7497_v19 = vld [vmem:[#allocation2 + $0x9c] sm:$0xf0] }
 0x1cb   : > { %3126 = vmatmul.bf16.gmra.mxu2 %v7472_v34  ;;  %3304 = vmatmul.bf16.gmra.mxu0 %v7480_v20 }
 0x1cc   : > { %v10291_v18 = vadd.f32 %v2472_v12, %v2384_v59  ;;  %v9035_v12 = vld [vmem:[%s11452_s3 + $0xd0] sm:$0xff] }
 0x1cd   : > { %4867 = vmatpush.bf16.msra.mxu1 %v9035_v12 }
 0x1ce   : > { %3215 = vmatmul.bf16.gmra.mxu3 %v7476_v11  ;;  %v1897_v60 = vpop.f32.mrf.mxu2 }
 0x1cf   : > { %v1898_v10 = vadd.f32 %v1897_v60, %v9968_v62 }
 0x1d0   : > { %v2477_v48 = vpop.f32.mrf.mxu0 }
 0x1d1   : > { %v2386_v7 = vpop.f32.mrf.mxu3  ;;  %v10294_v4 = vpop.f32.mrf.mxu1 }
 0x1d2   : > { %v2387_v35 = vadd.f32 %v2386_v7, %v1898_v10 }
 0x1d4   : > { %v2476_v24 = vadd.f32 %v2475_v16, %v2387_v35  ;;  %v7495_v35 = vld [vmem:[#allocation2 + $0x90] sm:$0xf] }
 0x1d6   : > { %v10296_v14 = vadd.f32 %v2564_v30, %v2476_v24  ;;  %v1899_v63 = vpop.f32.mrf.mxu2  ;;  %v8854_v24 = vld [vmem:[#allocation2 + $0x98] sm:$0xf0] }
 0x1d7   : > { %v1900_v62 = vadd.f32 %v1899_v63, %v9979_v41  ;;  %v7496_v63 = vor.u32 %v8854_v24, %v7495_v35  ;;  %v7515_v35 = vld [vmem:[#allocation2 + $0xb0] sm:$0xf]  ;;  %v8858_v24 = vld [vmem:[#allocation2 + $0xb8] sm:$0xf0] }
 0x1d8   : > { %v2480_v47 = vpop.f32.mrf.mxu0 }
 0x1d9   : > { %v2388_v61 = vpop.f32.mrf.mxu3  ;;  %v2569_v20 = vpop.f32.mrf.mxu1 }
 0x1da   : > { %v2389_v34 = vadd.f32 %v2388_v61, %v1900_v62  ;;  %v7500_v61 = vor.u32 %v8853_v43, %v7497_v19  ;;  %v7509_v43 = vld [vmem:[#allocation2 + $0xb4] sm:$0xf0] }
 0x1db   : > { %3131 = vmatmul.bf16.gmra.mxu2 %v7484_v56  ;;  %3309 = vmatmul.bf16.gmra.mxu0 %v7492_v9 }
 0x1dc   : > { %v10302_v16 = vadd.f32 %v2477_v48, %v2389_v34 }
 0x1de   : > { %3220 = vmatmul.bf16.gmra.mxu3 %v7488_v0  ;;  %v1902_v11 = vpop.f32.mrf.mxu2 }
 0x1df   : > { %v1903_v59 = vadd.f32 %v1902_v11, %v9993_v44  ;;  %v7504_v44 = vor.u32 %v8855_v28, %v7503_v38  ;;  %v8856_v28 = vld [vmem:[#allocation2 + $0xac] sm:$0xf] }
 0x1e0   : > { %v2482_v60 = vpop.f32.mrf.mxu0 }
 0x1e1   : > { %v2391_v30 = vpop.f32.mrf.mxu3  ;;  %v10305_v41 = vpop.f32.mrf.mxu1 }
 0x1e2   : > { %v2392_v10 = vadd.f32 %v2391_v30, %v1903_v59  ;;  %11592 = vst [vmem:[#allocation11_spill] sm:$0xff] %v10305_v41 }
 0x1e4   : > { %v2481_v7 = vadd.f32 %v2480_v47, %v2392_v10  ;;  %v7507_v10 = vld [vmem:[#allocation2 + $0xa8] sm:$0xf] }
 0x1e6   : > { %v10307_v39 = vadd.f32 %v2569_v20, %v2481_v7  ;;  %v1904_v48 = vpop.f32.mrf.mxu2  ;;  %v8857_v7 = vld [vmem:[#allocation2 + $0xb0] sm:$0xf0] }
 0x1e7   : > { %v1905_v31 = vadd.f32 %v1904_v48, %v10001_v25 }
 0x1e8   : > { %v2485_v62 = vpop.f32.mrf.mxu0 }
 0x1e9   : > { %v2393_v12 = vpop.f32.mrf.mxu3  ;;  %v2574_v9 = vpop.f32.mrf.mxu1 }
 0x1ea   : > { %v2394_v56 = vadd.f32 %v2393_v12, %v1905_v31  ;;  %v7508_v31 = vor.u32 %v8857_v7, %v7507_v10  ;;  %v7516_v12 = vor.u32 %v8858_v24, %v7515_v35  ;;  %v8860_v10 = vld [vmem:[#allocation2 + $0xc8] sm:$0xf0]  ;;  %v7527_v7 = vld [vmem:[#allocation2 + $0xc8] sm:$0xf]  ;;  %v8861_v35 = vld [vmem:[#allocation2 + $0xd0] sm:$0xf0] }
 0x1eb   : > { %3136 = vmatmul.bf16.gmra.mxu2 %v7496_v63  ;;  %3314 = vmatmul.bf16.gmra.mxu0 %v7504_v44  ;;  %v7512_v44 = vor.u32 %v8856_v28, %v7509_v43  ;;  %v8859_v43 = vld [vmem:[#allocation2 + $0xc4] sm:$0xf] }
 0x1ec   : > { %v10310_v47 = vadd.f32 %v2482_v60, %v2394_v56  ;;  %v9034_v60 = vld [vmem:[%s11452_s3 + $0xc8] sm:$0xff] }
 0x1ed   : > { %4868 = vmatpush.bf16.msra.mxu1 %v9034_v60  ;;  %v7521_v60 = vld [vmem:[#allocation2 + $0xcc] sm:$0xf0] }
 0x1ee   : > { %3225 = vmatmul.bf16.gmra.mxu3 %v7500_v61  ;;  %v1907_v0 = vpop.f32.mrf.mxu2 }
 0x1ef   : > { %v1908_v34 = vadd.f32 %v1907_v0, %v10021_v5 }
 0x1f0   : > { %v2487_v11 = vpop.f32.mrf.mxu0 }
 0x1f1   : > { %v2396_v20 = vpop.f32.mrf.mxu3  ;;  %v10313_v30 = vpop.f32.mrf.mxu1 }
 0x1f2   : > { %v2397_v59 = vadd.f32 %v2396_v20, %v1908_v34  ;;  %11593 = vst [vmem:[#allocation12_spill] sm:$0xff] %v10313_v30 }
 0x1f4   : > { %v2486_v25 = vadd.f32 %v2485_v62, %v2397_v59 }
 0x1f6   : > { %v10315_v38 = vadd.f32 %v2574_v9, %v2486_v25  ;;  %v1909_v19 = vpop.f32.mrf.mxu2  ;;  %v7519_v25 = vld [vmem:[#allocation2 + $0xc0] sm:$0xf] }
 0x1f7   : > { %v1910_v5 = vadd.f32 %v1909_v19, %v10032_v15 }
 0x1f8   : > { %11594 = vst [vmem:[#allocation13_spill] sm:$0xff] %v10315_v38  ;;  %v2490_v63 = vpop.f32.mrf.mxu0 }
 0x1f9   : > { %v2398_v48 = vpop.f32.mrf.mxu3  ;;  %v2579_v61 = vpop.f32.mrf.mxu1 }
 0x1fa   : > { %v2399_v62 = vadd.f32 %v2398_v48, %v1910_v5  ;;  %v7520_v48 = vor.u32 %v8860_v10, %v7519_v25  ;;  %v7539_v25 = vld [vmem:[#allocation2 + $0xe0] sm:$0xf]  ;;  %v8864_v10 = vld [vmem:[#allocation2 + $0xe8] sm:$0xf0] }
 0x1fb   : > { %3141 = vmatmul.bf16.gmra.mxu2 %v7508_v31  ;;  %3319 = vmatmul.bf16.gmra.mxu0 %v7516_v12  ;;  %v7524_v12 = vor.u32 %v8859_v43, %v7521_v60  ;;  %v7533_v43 = vld [vmem:[#allocation2 + $0xe4] sm:$0xf0] }
 0x1fc   : > { %v10321_v56 = vadd.f32 %v2487_v11, %v2399_v62 }
 0x1fe   : > { %11595 = vst [vmem:[#allocation14_spill] sm:$0xff] %v10321_v56  ;;  %3230 = vmatmul.bf16.gmra.mxu3 %v7512_v44  ;;  %v1912_v9 = vpop.f32.mrf.mxu2 }
 0x1ff   : > { %v1913_v0 = vadd.f32 %v1912_v9, %v10046_v37  ;;  %v7528_v37 = vor.u32 %v8861_v35, %v7527_v7  ;;  %v8862_v35 = vld [vmem:[#allocation2 + $0xdc] sm:$0xf] }
 0x200   : > { %v2492_v20 = vpop.f32.mrf.mxu0 }
 0x201   : > { %v2401_v34 = vpop.f32.mrf.mxu3  ;;  %v10324_v24 = vpop.f32.mrf.mxu1 }
 0x202   : > { %v2402_v59 = vadd.f32 %v2401_v34, %v1913_v0  ;;  %11596 = vst [vmem:[#allocation15_spill] sm:$0xff] %v10324_v24 }
 0x204   : > { %v2491_v15 = vadd.f32 %v2490_v63, %v2402_v59 }
 0x206   : > { %v10326_v28 = vadd.f32 %v2579_v61, %v2491_v15  ;;  %v1914_v11 = vpop.f32.mrf.mxu2 }
 0x207   : > { %v1915_v19 = vadd.f32 %v1914_v11, %v10054_v2  ;;  %v7531_v2 = vld [vmem:[#allocation2 + $0xd8] sm:$0xf]  ;;  %v8863_v11 = vld [vmem:[#allocation2 + $0xe0] sm:$0xf0] }
 0x208   : > { %11597 = vst [vmem:[#allocation16_spill] sm:$0xff] %v10326_v28  ;;  %v2495_v31 = vpop.f32.mrf.mxu0 }
 0x209   : > { %v2403_v5 = vpop.f32.mrf.mxu3  ;;  %v2584_v9 = vpop.f32.mrf.mxu1 }
 0x20a   : > { %v2404_v44 = vadd.f32 %v2403_v5, %v1915_v19 }
 0x20b   : > { %3146 = vmatmul.bf16.gmra.mxu2 %v7520_v48  ;;  %3324 = vmatmul.bf16.gmra.mxu0 %v7528_v37  ;;  %v7532_v48 = vor.u32 %v8863_v11, %v7531_v2  ;;  %v7540_v37 = vor.u32 %v8864_v10, %v7539_v25 }
 0x20c   : > { %v10329_v63 = vadd.f32 %v2492_v20, %v2404_v44  ;;  %v11600_v20 = vld [vmem:[#allocation7_spill] sm:$0xff] }
 0x20e   : > { %11598 = vst [vmem:[#allocation17_spill] sm:$0xff] %v10329_v63  ;;  %3235 = vmatmul.bf16.gmra.mxu3 %v7524_v12  ;;  %v1917_v62 = vpop.f32.mrf.mxu2 }
 0x20f   : > { %v1918_v61 = vadd.f32 %v1917_v62, %v10074_v55  ;;  %v7536_v55 = vor.u32 %v8862_v35, %v7533_v43  ;;  %v3517_v62 = vld [vmem:[#allocation3 + $0x18] sm:$0x1]  ;;  %v3565_v35 = vld [vmem:[#allocation3 + $0x2c] sm:$0x8] }
 0x210   : > { %v2497_v34 = vpop.f32.mrf.mxu0 }
 0x211   : > { %v2406_v0 = vpop.f32.mrf.mxu3  ;;  %v10335_v44 = vpop.f32.mrf.mxu1 }
 0x212   : > { %v2407_v59 = vadd.f32 %v2406_v0, %v1918_v61  ;;  %11601 = vst [vmem:[#allocation7_spill] sm:$0xff] %v10335_v44  ;;  %v3518_v0 = vsel %vm9260_vm2, 0, %v3517_v62  ;;  %v8865_v62 = vld [vmem:[#allocation2 + $0xf4] sm:$0xf] }
 0x213   : > { %3519 = vst [vmem:[#allocation3 + $0x18] sm:$0x1] %v3518_v0 }
 0x214   : > { %v2496_v15 = vadd.f32 %v2495_v31, %v2407_v59 }
 0x216   : > { %v10332_v7 = vadd.f32 %v2584_v9, %v2496_v15  ;;  %v1919_v60 = vpop.f32.mrf.mxu2  ;;  %v11604_v15 = vld [vmem:[#allocation8_spill] sm:$0xff] }
 0x217   : > { %v1920_v19 = vadd.f32 %v1919_v60, %v11600_v20  ;;  %v7543_v20 = vld [vmem:[#allocation2 + $0xf0] sm:$0xf] }
 0x218   : > { %11599 = vst [vmem:[#allocation18_spill] sm:$0xff] %v10332_v7  ;;  %v2500_v12 = vpop.f32.mrf.mxu0  ;;  %v3520_v7 = vld [vmem:[#allocation3 + $0x30] sm:$0x1] }
 0x219   : > { %v2408_v5 = vpop.f32.mrf.mxu3  ;;  %v2589_v10 = vpop.f32.mrf.mxu1 }
 0x21a   : > { %v2409_v31 = vadd.f32 %v2408_v5, %v1920_v19  ;;  %v8866_v19 = vld [vmem:[#allocation2 + $0xf8] sm:$0xf0]  ;;  %v9033_v5 = vld [vmem:[%s11452_s3 + $0xc0] sm:$0xff] }
 0x21b   : > { %3151 = vmatmul.bf16.gmra.mxu2 %v7532_v48  ;;  %3329 = vmatmul.bf16.gmra.mxu0 %v7540_v37  ;;  %v7551_v48 = vld [vmem:[#allocation2 + $0xf8] sm:$0xf]  ;;  %v8867_v37 = vld [vmem:[#allocation2 + $0x100] sm:$0xf0] }
 0x21c   : > { %v10339_v9 = vadd.f32 %v2497_v34, %v2409_v31  ;;  %v3566_v34 = vsel %vm9803_vm10, 0, %v3565_v35  ;;  %v7545_v31 = vld [vmem:[#allocation2 + $0xfc] sm:$0xf0]  ;;  %4869 = vmatpush.bf16.msra.mxu1 %v9033_v5  ;;  %v3521_v35 = vsel %vm9260_vm2, 0, %v3520_v7 }
 0x21d   : > { %3567 = vst [vmem:[#allocation3 + $0x2c] sm:$0x8] %v3566_v34  ;;  %v7548_v44 = vor.u32 %v8865_v62, %v7545_v31  ;;  %v7563_v62 = vld [vmem:[#allocation2 + $0x110] sm:$0xf]  ;;  %v8870_v31 = vld [vmem:[#allocation2 + $0x118] sm:$0xf0] }
 0x21e   : > { %11603 = vst [vmem:[#allocation4_spill] sm:$0xff] %v10339_v9  ;;  %3240 = vmatmul.bf16.gmra.mxu3 %v7536_v55  ;;  %v1922_v59 = vpop.f32.mrf.mxu2 }
 0x21f   : > { %v1923_v60 = vadd.f32 %v1922_v59, %v11604_v15  ;;  %v11606_v59 = vld [vmem:[#allocation9_spill] sm:$0xff]  ;;  %3522 = vst [vmem:[#allocation3 + $0x30] sm:$0x1] %v3521_v35  ;;  %v7564_v35 = vor.u32 %v8870_v31, %v7563_v62 }
 0x220   : > { %v2502_v11 = vpop.f32.mrf.mxu0 }
 0x221   : > { %v2411_v2 = vpop.f32.mrf.mxu3 }
 0x222   : > { %v2412_v25 = vadd.f32 %v2411_v2, %v1923_v60  ;;  %v7544_v60 = vor.u32 %v8866_v19, %v7543_v20  ;;  %v7552_v2 = vor.u32 %v8867_v37, %v7551_v48  ;;  %v10357_v20 = vld [vmem:[%s11451_s2] ss:$0 sm:$0xff]  ;;  %v7555_v19 = vld [vmem:[#allocation2 + $0x108] sm:$0xf]  ;;  %v8869_v48 = vld [vmem:[#allocation2 + $0x110] sm:$0xf0] }
 0x223   : > { %v11608_v37 = vld [vmem:[#allocation10_spill] sm:$0xff] }
 0x224   : > { %v2501_v43 = vadd.f32 %v2500_v12, %v2412_v25 }
 0x226   : > { %v10347_v55 = vadd.f32 %v2589_v10, %v2501_v43  ;;  %v1924_v0 = vpop.f32.mrf.mxu2 }
 0x227   : > { %v1925_v12 = vadd.f32 %v1924_v0, %v11606_v59 }
 0x228   : > { %11605 = vst [vmem:[#allocation8_spill] sm:$0xff] %v10347_v55  ;;  %v3295_v25 = vpop.f32.mrf.mxu0  ;;  %v3523_v55 = vld [vmem:[#allocation3 + $0x48] sm:$0x1] }
 0x229   : > { %v2413_v15 = vpop.f32.mrf.mxu3  ;;  %v3524_v24 = vsel %vm9260_vm2, 0, %v3523_v55 }
 0x22a   : > { %v2414_v9 = vadd.f32 %v2413_v15, %v1925_v12  ;;  %v7557_v12 = vld [vmem:[#allocation2 + $0x114] sm:$0xf0]  ;;  %3525 = vst [vmem:[#allocation3 + $0x48] sm:$0x1] %v3524_v24 }
 0x22b   : > { %3156 = vmatmul.bf16.gmra.mxu2 %v7544_v60  ;;  %3334 = vmatmul.bf16.gmra.mxu0 %v7552_v2 }
 0x22c   : > { %v10352_v10 = vadd.f32 %v2502_v11, %v2414_v9  ;;  %v3568_v9 = vld [vmem:[#allocation3 + $0x44] sm:$0x8]  ;;  %v8868_v11 = vld [vmem:[#allocation2 + $0x10c] sm:$0xf] }
 0x22e   : > { %11607 = vst [vmem:[#allocation9_spill] sm:$0xff] %v10352_v10  ;;  %3245 = vmatmul.bf16.gmra.mxu3 %v7548_v44  ;;  %v3117_v43 = vpop.f32.mrf.mxu2  ;;  %v3569_v44 = vsel %vm9803_vm10, 0, %v3568_v9  ;;  %v7560_v10 = vor.u32 %v8868_v11, %v7557_v12  ;;  %v3901_v12 = vld [vmem:[#allocation3 + $0x18] sm:$0xf] }
 0x22f   : > { %3570 = vst [vmem:[#allocation3 + $0x44] sm:$0x8] %v3569_v44 }
 0x230   : > { %v3297_v0 = vpop.f32.mrf.mxu0 }
 0x231   : > { %v3206_v5 = vpop.f32.mrf.mxu3 }
 0x232   : > { %v3207_v34 = vadd.f32 %v3206_v5, %v3117_v43 }
 0x234   : > { %v3296_v59 = vadd.f32 %v3295_v25, %v3207_v34  ;;  %v7556_v25 = vor.u32 %v8869_v48, %v7555_v19  ;;  %v9056_v19 = vld [vmem:[%s11452_s3 + $0x178] sm:$0xff] }
 0x235   : > { %5040 = vmatpush.bf16.msrb.mxu3 %v9056_v19  ;;  %v8976_v19 = vld [vmem:[%s11452_s3 + $0x78] sm:$0xff] }
 0x236   : > { %v3375_v7 = vadd.f32 %v3296_v59, %v11608_v37  ;;  %v3119_v60 = vpop.f32.mrf.mxu2  ;;  %5618 = vmatpush.bf16.msrb.mxu1 %v8976_v19 }
 0x238   : > { %v3411_v15 = vadd.f32 %v10357_v20, %v3375_v7  ;;  %v3300_v34 = vpop.f32.mrf.mxu0 }
 0x239   : > { %v3208_v2 = vpop.f32.mrf.mxu3 }
 0x23a   : > { %v3443_v43 = vmax.f32 %v3411_v15, 0.0  ;;  %v3209_v5 = vadd.f32 %v3208_v2, %v3119_v60 }
 0x23b   : > { %3161 = vmatmul.bf16.gmra.mxu2 %v7556_v25  ;;  %3339 = vmatmul.bf16.gmra.mxu0 %v7564_v35  ;;  %v8872_v25 = vld [vmem:[#allocation2 + $0x128] sm:$0xf0] }
 0x23c   : > { %v3475_v59 = vpack.c.bf16 %v3443_v43, %v3443_v43  ;;  %v3298_v37 = vadd.f32 %v3297_v0, %v3209_v5  ;;  %v8871_v5 = vld [vmem:[#allocation2 + $0x124] sm:$0xf] }
 0x23e   : > { %v3614_v9 = vshrl.u32 %v3475_v59, 16  ;;  %v3617_v63 = vshll.u32 %v3475_v59, 16  ;;  %3965 = vst [vmem:[#allocation3 + $0x1c] sm:$0xf] %v3475_v59  ;;  %v3376_v7 = vadd.f32 %v3298_v37, %v10149_v6  ;;  %3250 = vmatmul.bf16.gmra.mxu3 %v7560_v10  ;;  %v3122_v11 = vpop.f32.mrf.mxu2  ;;  %v7567_v10 = vld [vmem:[#allocation2 + $0x120] sm:$0xf] }
 0x23f   : > { %v7569_v59 = vld [vmem:[#allocation2 + $0x12c] sm:$0xf0]  ;;  %v7575_v37 = vld [vmem:[#allocation2 + $0x128] sm:$0xf] }
 0x240   : > { %v3616_v48 = vrot.slane %v3614_v9, 7  ;;  %v3997_v62 = vrot.slane %v3614_v9, 4  ;;  %v3998_v0 = vrot.slane %v3617_v63, 5  ;;  %v3412_v31 = vadd.f32 %v10357_v20, %v3376_v7  ;;  %v3302_v60 = vpop.f32.mrf.mxu0  ;;  %v9048_v7 = vld [vmem:[%s11452_s3 + $0x138] sm:$0xff] }
 0x241   : > { %v3211_v44 = vpop.f32.mrf.mxu3  ;;  %4951 = vmatpush.bf16.msrb.mxu2 %v9048_v7  ;;  %v7572_v38 = vor.u32 %v8871_v5, %v7569_v59 }
 0x242   : > { %v3619_v55 = vor.u32 %v3617_v63, %v3616_v48  ;;  %v3444_v15 = vmax.f32 %v3412_v31, 0.0  ;;  %v3999_v2 = vor.u32 %v3998_v0, %v3997_v62  ;;  %v3212_v6 = vadd.f32 %v3211_v44, %v3122_v11  ;;  %v8968_v63 = vld [vmem:[%s11452_s3 + $0x38] sm:$0xff]  ;;  %v8873_v31 = vld [vmem:[#allocation2 + $0x130] sm:$0xf0]  ;;  %v3571_v44 = vld [vmem:[#allocation3 + $0x5c] sm:$0x8] }
 0x243   : > { %5529 = vmatpush.bf16.msrb.mxu0 %v8968_v63  ;;  %v3572_v28 = vsel %vm9803_vm10, 0, %v3571_v44  ;;  %v3620_v30 = vrot.slane %v3616_v48, 4  ;;  %v4174_v63 = vld [vmem:[#allocation3 + $0x2c] sm:$0xf] }
 0x244   : > { %v3902_v43 = vsel %vm9317_vm7, %v3619_v55, %v3901_v12  ;;  %v3476_v24 = vpack.c.bf16 %v3444_v15, %v3444_v15  ;;  %v3301_v9 = vadd.f32 %v3300_v34, %v3212_v6  ;;  %v4000_v11 = vrot.slane %v3999_v2, 4  ;;  %3573 = vst [vmem:[#allocation3 + $0x5c] sm:$0x8] %v3572_v28 }
 0x245   : > { %3903 = vst [vmem:[#allocation3 + $0x18] sm:$0xf] %v3902_v43  ;;  %v7568_v34 = vor.u32 %v8872_v25, %v7567_v10  ;;  %v7576_v2 = vor.u32 %v8873_v31, %v7575_v37 }
 0x246   : > { %v3622_v62 = vshrl.u32 %v3476_v24, 16  ;;  %v3625_v0 = vshll.u32 %v3476_v24, 16  ;;  %3966 = vst [vmem:[#allocation3 + $0x28] sm:$0xf] %v3476_v24  ;;  %v3377_v12 = vadd.f32 %v3301_v9, %v10156_v49  ;;  %v3124_v43 = vpop.f32.mrf.mxu2 }
 0x248   : > { %v3624_v55 = vrot.slane %v3622_v62, 7  ;;  %v4001_v15 = vrot.slane %v3625_v0, 5  ;;  %v4003_v6 = vrot.slane %v3622_v62, 4  ;;  %v3413_v56 = vadd.f32 %v10357_v20, %v3377_v12  ;;  %v3305_v7 = vpop.f32.mrf.mxu0  ;;  %v3526_v12 = vld [vmem:[#allocation3 + $0x60] sm:$0x1] }
 0x249   : > { %v3213_v24 = vpop.f32.mrf.mxu3  ;;  %v3527_v28 = vsel %vm9260_vm2, 0, %v3526_v12  ;;  %v7587_v12 = vld [vmem:[#allocation2 + $0x140] sm:$0xf] }
 0x24a   : > { %v3627_v49 = vor.u32 %v3625_v0, %v3624_v55  ;;  %v4002_v10 = vsel %vm9832_vm13, %v4000_v11, %v4001_v15  ;;  %v4004_v25 = vor.u32 %v4003_v6, %v4001_v15  ;;  %v3214_v9 = vadd.f32 %v3213_v24, %v3124_v43  ;;  %3528 = vst [vmem:[#allocation3 + $0x60] sm:$0x1] %v3527_v28  ;;  %v3905_v15 = vld [vmem:[#allocation3 + $0x30] sm:$0xf]  ;;  %v3574_v28 = vld [vmem:[#allocation3 + $0x74] sm:$0x8] }
 0x24b   : > { %4173 = vst [vmem:[#allocation3 + $0x20] sm:$0xf] %v4002_v10  ;;  %v3445_v19 = vmax.f32 %v3413_v56, 0.0  ;;  %3166 = vmatmul.bf16.gmra.mxu2 %v7568_v34  ;;  %3344 = vmatmul.bf16.gmra.mxu0 %v7576_v2 }
 0x24c   : > { %v3628_v44 = vsel %vm9303_vm6, %v3620_v30, %v3627_v49  ;;  %v4005_v48 = vrot.slane %v4004_v25, 4  ;;  %v3303_v41 = vadd.f32 %v3302_v60, %v3214_v9  ;;  %v7579_v25 = vld [vmem:[#allocation2 + $0x138] sm:$0xf]  ;;  %v8875_v9 = vld [vmem:[#allocation2 + $0x140] sm:$0xf0] }
 0x24d   : > { %3904 = vst [vmem:[#allocation3 + $0x24] sm:$0xf] %v3628_v44  ;;  %v3477_v5 = vpack.c.bf16 %v3445_v19, %v3445_v19  ;;  %v7581_v19 = vld [vmem:[#allocation2 + $0x144] sm:$0xf0] }
 0x24e   : > { %v4175_v59 = vsel %vm9840_vm14, %v4005_v48, %v4174_v63  ;;  %v3378_v37 = vadd.f32 %v3303_v41, %v10175_v17  ;;  %3255 = vmatmul.bf16.gmra.mxu3 %v7572_v38  ;;  %v3127_v0 = vpop.f32.mrf.mxu2  ;;  %v7783_v38 = vld [vmem:[#allocation3 + $0x18] sm:$0xf]  ;;  %v8874_v63 = vld [vmem:[#allocation2 + $0x13c] sm:$0xf] }
 0x24f   : > { %4176 = vst [vmem:[#allocation3 + $0x2c] sm:$0xf] %v4175_v59  ;;  %v3630_v56 = vshrl.u32 %v3477_v5, 16  ;;  %v3633_v30 = vshll.u32 %v3477_v5, 16 }
 0x250   : > { %3967 = vst [vmem:[#allocation3 + $0x34] sm:$0xf] %v3477_v5  ;;  %v3414_v60 = vadd.f32 %v10357_v20, %v3378_v37  ;;  %v3307_v24 = vpop.f32.mrf.mxu0  ;;  %v8876_v5 = vld [vmem:[#allocation2 + $0x148] sm:$0xf0] }
 0x251   : > { %v3632_v31 = vrot.slane %v3630_v56, 7  ;;  %v4006_v11 = vrot.slane %v3630_v56, 4  ;;  %v4007_v34 = vrot.slane %v3633_v30, 5  ;;  %v3216_v55 = vpop.f32.mrf.mxu3 }
 0x252   : > { %v3446_v6 = vmax.f32 %v3414_v60, 0.0  ;;  %v3217_v43 = vadd.f32 %v3216_v55, %v3127_v0 }
 0x253   : > { %v3635_v2 = vor.u32 %v3633_v30, %v3632_v31  ;;  %v4008_v49 = vor.u32 %v4007_v34, %v4006_v11 }
 0x254   : > { %v3478_v17 = vpack.c.bf16 %v3446_v6, %v3446_v6  ;;  %v3306_v41 = vadd.f32 %v3305_v7, %v3217_v43  ;;  %v8986_v10 = vld [vmem:[#allocation3 + $0x20] sm:$0xf0]  ;;  %v3575_v7 = vsel %vm9803_vm10, 0, %v3574_v28  ;;  %v7580_v43 = vor.u32 %v8875_v9, %v7579_v25 }
 0x255   : > { %v3906_v44 = vsel %vm9317_vm7, %v3635_v2, %v3905_v15  ;;  %v7784_v48 = vor.u32 %v8986_v10, %v7783_v38  ;;  %v4009_v30 = vrot.slane %v4008_v49, 4  ;;  %3576 = vst [vmem:[#allocation3 + $0x74] sm:$0x8] %v3575_v7  ;;  %v3636_v15 = vrot.slane %v3632_v31, 4  ;;  %v3529_v31 = vld [vmem:[#allocation3 + $0x78] sm:$0x1] }
 0x256   : > { %3907 = vst [vmem:[#allocation3 + $0x30] sm:$0xf] %v3906_v44  ;;  %v3638_v59 = vshrl.u32 %v3478_v17, 16  ;;  %v3641_v37 = vshll.u32 %v3478_v17, 16  ;;  %v3379_v56 = vadd.f32 %v3306_v41, %v10185_v42  ;;  %v3129_v55 = vpop.f32.mrf.mxu2  ;;  %v7584_v2 = vor.u32 %v8874_v63, %v7581_v19  ;;  %v4178_v44 = vld [vmem:[#allocation3 + $0x44] sm:$0xf] }
 0x257   : > { %3968 = vst [vmem:[#allocation3 + $0x40] sm:$0xf] %v3478_v17  ;;  %4870 = vmatmul.bf16.vlgmr.msra.gmra.mxu1 %v7784_v48  ;;  %v7588_v38 = vor.u32 %v8876_v5, %v7587_v12  ;;  %v3530_v9 = vsel %vm9260_vm2, 0, %v3529_v31 }
 0x258   : > { %v3640_v60 = vrot.slane %v3638_v59, 7  ;;  %v4010_v0 = vrot.slane %v3641_v37, 5  ;;  %v4012_v11 = vrot.slane %v3638_v59, 4  ;;  %v3415_v34 = vadd.f32 %v10357_v20, %v3379_v56  ;;  %v3310_v17 = vpop.f32.mrf.mxu0  ;;  %3531 = vst [vmem:[#allocation3 + $0x78] sm:$0x1] %v3530_v9  ;;  %v8967_v9 = vld [vmem:[%s11452_s3 + $0x30] sm:$0xff] }
 0x259   : > { %v3218_v6 = vpop.f32.mrf.mxu3  ;;  %5530 = vmatpush.bf16.msrb.mxu0 %v8967_v9 }
 0x25a   : > { %v3643_v10 = vor.u32 %v3641_v37, %v3640_v60  ;;  %v4011_v42 = vsel %vm9832_vm13, %v4009_v30, %v4010_v0  ;;  %v4013_v41 = vor.u32 %v4012_v11, %v4010_v0  ;;  %v3447_v49 = vmax.f32 %v3415_v34, 0.0  ;;  %v9055_v37 = vld [vmem:[%s11452_s3 + $0x170] sm:$0xff]  ;;  %v3909_v0 = vld [vmem:[#allocation3 + $0x48] sm:$0xf] }
 0x25b   : > { %4177 = vst [vmem:[#allocation3 + $0x38] sm:$0xf] %v4011_v42  ;;  %v3219_v48 = vadd.f32 %v3218_v6, %v3129_v55  ;;  %3171 = vmatmul.bf16.gmra.mxu2 %v7580_v43  ;;  %3349 = vmatmul.bf16.gmra.mxu0 %v7588_v38  ;;  %v7591_v43 = vld [vmem:[#allocation2 + $0x150] sm:$0xf] }
 0x25c   : > { %v3644_v28 = vsel %vm9303_vm6, %v3636_v15, %v3643_v10  ;;  %v4014_v59 = vrot.slane %v4013_v41, 4  ;;  %v3479_v56 = vpack.c.bf16 %v3447_v49, %v3447_v49  ;;  %5041 = vmatpush.bf16.msrb.mxu3 %v9055_v37  ;;  %v8878_v49 = vld [vmem:[#allocation2 + $0x158] sm:$0xf0] }
 0x25d   : > { %3908 = vst [vmem:[#allocation3 + $0x3c] sm:$0xf] %v3644_v28  ;;  %v3308_v25 = vadd.f32 %v3307_v24, %v3219_v48  ;;  %v7795_v42 = vld [vmem:[#allocation3 + $0x30] sm:$0xf]  ;;  %v8877_v28 = vld [vmem:[#allocation2 + $0x154] sm:$0xf] }
 0x25e   : > { %v4179_v63 = vsel %vm9840_vm14, %v4014_v59, %v4178_v44  ;;  %v3646_v19 = vshrl.u32 %v3479_v56, 16  ;;  %v3649_v12 = vshll.u32 %v3479_v56, 16  ;;  %3969 = vst [vmem:[#allocation3 + $0x4c] sm:$0xf] %v3479_v56  ;;  %3260 = vmatmul.bf16.gmra.mxu3 %v7584_v2  ;;  %v3132_v60 = vpop.f32.mrf.mxu2  ;;  %v7599_v59 = vld [vmem:[#allocation2 + $0x158] sm:$0xf] }
 0x25f   : > { %4180 = vst [vmem:[#allocation3 + $0x44] sm:$0xf] %v4179_v63  ;;  %v3380_v5 = vadd.f32 %v3308_v25, %v10201_v45  ;;  %v8879_v56 = vld [vmem:[#allocation2 + $0x160] sm:$0xf0]  ;;  %v9047_v25 = vld [vmem:[%s11452_s3 + $0x130] sm:$0xff] }
 0x260   : > { %v10413_v24 = vrot.slane %v3646_v19, 7  ;;  %v4015_v7 = vrot.slane %v3646_v19, 4  ;;  %v4016_v30 = vrot.slane %v3649_v12, 5  ;;  %v3312_v6 = vpop.f32.mrf.mxu0  ;;  %4952 = vmatpush.bf16.msrb.mxu2 %v9047_v25 }
 0x261   : > { %v3416_v11 = vadd.f32 %v10357_v20, %v3380_v5  ;;  %v3221_v34 = vpop.f32.mrf.mxu3 }
 0x262   : > { %v3651_v55 = vor.u32 %v3649_v12, %v10413_v24  ;;  %v3222_v15 = vadd.f32 %v3221_v34, %v3132_v60  ;;  %v4017_v38 = vor.u32 %v4016_v30, %v4015_v7  ;;  %v7593_v12 = vld [vmem:[#allocation2 + $0x15c] sm:$0xf0]  ;;  %v7592_v7 = vor.u32 %v8878_v49, %v7591_v43  ;;  %v3577_v60 = vld [vmem:[#allocation3 + $0x8c] sm:$0x8] }
 0x263   : > { %v3448_v45 = vmax.f32 %v3416_v11, 0.0  ;;  %v7600_v30 = vor.u32 %v8879_v56, %v7599_v59  ;;  %v3532_v56 = vld [vmem:[#allocation3 + $0x90] sm:$0x1] }
 0x264   : > { %v3910_v2 = vsel %vm9317_vm7, %v3651_v55, %v3909_v0  ;;  %v3311_v10 = vadd.f32 %v3310_v17, %v3222_v15  ;;  %v8989_v41 = vld [vmem:[#allocation3 + $0x38] sm:$0xf0]  ;;  %v8975_v17 = vld [vmem:[%s11452_s3 + $0x70] sm:$0xff]  ;;  %v4018_v5 = vrot.slane %v4017_v38, 4  ;;  %v3578_v15 = vsel %vm9803_vm10, 0, %v3577_v60 }
 0x265   : > { %3911 = vst [vmem:[#allocation3 + $0x48] sm:$0xf] %v3910_v2  ;;  %v3480_v44 = vpack.c.bf16 %v3448_v45, %v3448_v45  ;;  %v7796_v48 = vor.u32 %v8989_v41, %v7795_v42  ;;  %5619 = vmatpush.bf16.msrb.mxu1 %v8975_v17  ;;  %v7596_v38 = vor.u32 %v8877_v28, %v7593_v12  ;;  %v3652_v42 = vrot.slane %v10413_v24, 4 }
 0x266   : > { %v3381_v31 = vadd.f32 %v3311_v10, %v10208_v57  ;;  %v3134_v37 = vpop.f32.mrf.mxu2  ;;  %3579 = vst [vmem:[#allocation3 + $0x8c] sm:$0x8] %v3578_v15  ;;  %v3533_v17 = vsel %vm9260_vm2, 0, %v3532_v56 }
 0x267   : > { %v3654_v63 = vshrl.u32 %v3480_v44, 16  ;;  %v3657_v19 = vshll.u32 %v3480_v44, 16  ;;  %3970 = vst [vmem:[#allocation3 + $0x58] sm:$0xf] %v3480_v44  ;;  %4875 = vmatmul.bf16.gmra.mxu1 %v7796_v48  ;;  %v4182_v44 = vld [vmem:[#allocation3 + $0x5c] sm:$0xf] }
 0x268   : > { %v3417_v57 = vadd.f32 %v10357_v20, %v3381_v31  ;;  %v3315_v10 = vpop.f32.mrf.mxu0  ;;  %3534 = vst [vmem:[#allocation3 + $0x90] sm:$0x1] %v3533_v17  ;;  %v8966_v17 = vld [vmem:[%s11452_s3 + $0x28] sm:$0xff] }
 0x269   : > { %v3656_v0 = vrot.slane %v3654_v63, 7  ;;  %v4019_v11 = vrot.slane %v3657_v19, 5  ;;  %v4021_v34 = vrot.slane %v3654_v63, 4  ;;  %v3223_v55 = vpop.f32.mrf.mxu3  ;;  %5531 = vmatpush.bf16.msrb.mxu0 %v8966_v17 }
 0x26a   : > { %v3449_v45 = vmax.f32 %v3417_v57, 0.0  ;;  %v3224_v2 = vadd.f32 %v3223_v55, %v3134_v37  ;;  %v3913_v37 = vld [vmem:[#allocation3 + $0x60] sm:$0xf] }
 0x26b   : > { %v3659_v43 = vor.u32 %v3657_v19, %v3656_v0  ;;  %v4020_v41 = vsel %vm9832_vm13, %v4018_v5, %v4019_v11  ;;  %v4022_v49 = vor.u32 %v4021_v34, %v4019_v11  ;;  %3176 = vmatmul.bf16.gmra.mxu2 %v7592_v7  ;;  %3354 = vmatmul.bf16.gmra.mxu0 %v7600_v30  ;;  %v7603_v11 = vld [vmem:[#allocation2 + $0x168] sm:$0xf]  ;;  %v8881_v34 = vld [vmem:[#allocation2 + $0x170] sm:$0xf0] }
 0x26c   : > { %4181 = vst [vmem:[#allocation3 + $0x50] sm:$0xf] %v4020_v41  ;;  %v3481_v48 = vpack.c.bf16 %v3449_v45, %v3449_v45  ;;  %v3313_v59 = vadd.f32 %v3312_v6, %v3224_v2  ;;  %v7807_v2 = vld [vmem:[#allocation3 + $0x48] sm:$0xf]  ;;  %v8882_v41 = vld [vmem:[#allocation2 + $0x178] sm:$0xf0] }
 0x26d   : > { %v3660_v31 = vsel %vm9303_vm6, %v3652_v42, %v3659_v43  ;;  %v4023_v25 = vrot.slane %v4022_v49, 4  ;;  %v7605_v42 = vld [vmem:[#allocation2 + $0x174] sm:$0xf0]  ;;  %v7611_v43 = vld [vmem:[#allocation2 + $0x170] sm:$0xf] }
 0x26e   : > { %3912 = vst [vmem:[#allocation3 + $0x54] sm:$0xf] %v3660_v31  ;;  %v3662_v28 = vshrl.u32 %v3481_v48, 16  ;;  %v3665_v9 = vshll.u32 %v3481_v48, 16  ;;  %v3382_v24 = vadd.f32 %v3313_v59, %v10227_v33  ;;  %3265 = vmatmul.bf16.gmra.mxu3 %v7596_v38  ;;  %v3137_v57 = vpop.f32.mrf.mxu2  ;;  %v8880_v38 = vld [vmem:[#allocation2 + $0x16c] sm:$0xf] }
 0x26f   : > { %v4183_v63 = vsel %vm9840_vm14, %v4023_v25, %v4182_v44  ;;  %3971 = vst [vmem:[#allocation3 + $0x64] sm:$0xf] %v3481_v48  ;;  %v3580_v48 = vld [vmem:[#allocation3 + $0xa4] sm:$0x8] }
 0x270   : > { %4184 = vst [vmem:[#allocation3 + $0x5c] sm:$0xf] %v4183_v63  ;;  %v10442_v6 = vrot.slane %v3662_v28, 7  ;;  %v4024_v19 = vrot.slane %v3662_v28, 4  ;;  %v4025_v12 = vrot.slane %v3665_v9, 5  ;;  %v3418_v5 = vadd.f32 %v10357_v20, %v3382_v24  ;;  %v3317_v60 = vpop.f32.mrf.mxu0  ;;  %v9054_v24 = vld [vmem:[%s11452_s3 + $0x168] sm:$0xff] }
 0x271   : > { %v3226_v7 = vpop.f32.mrf.mxu3  ;;  %v3581_v25 = vsel %vm9803_vm10, 0, %v3580_v48  ;;  %5042 = vmatpush.bf16.msrb.mxu3 %v9054_v24  ;;  %v3535_v48 = vld [vmem:[#allocation3 + $0xa8] sm:$0x1] }
 0x272   : > { %v3667_v33 = vor.u32 %v3665_v9, %v10442_v6  ;;  %v3450_v30 = vmax.f32 %v3418_v5, 0.0  ;;  %v3227_v0 = vadd.f32 %v3226_v7, %v3137_v57  ;;  %v4026_v15 = vor.u32 %v4025_v12, %v4024_v19  ;;  %3582 = vst [vmem:[#allocation3 + $0xa4] sm:$0x8] %v3581_v25 }
 0x273   : > { %v7604_v9 = vor.u32 %v8881_v34, %v7603_v11  ;;  %v3668_v57 = vrot.slane %v10442_v6, 4  ;;  %v9045_v6 = vld [vmem:[%s11452_s3 + $0x120] sm:$0xff] }
 0x274   : > { %v3914_v55 = vsel %vm9317_vm7, %v3667_v33, %v3913_v37  ;;  %v3482_v45 = vpack.c.bf16 %v3450_v30, %v3450_v30  ;;  %v3316_v49 = vadd.f32 %v3315_v10, %v3227_v0  ;;  %v9046_v10 = vld [vmem:[%s11452_s3 + $0x128] sm:$0xff]  ;;  %v4027_v63 = vrot.slane %v4026_v15, 4 }
 0x275   : > { %3915 = vst [vmem:[#allocation3 + $0x60] sm:$0xf] %v3914_v55  ;;  %v8992_v44 = vld [vmem:[#allocation3 + $0x50] sm:$0xf0]  ;;  %v7608_v33 = vor.u32 %v8880_v38, %v7605_v42  ;;  %v7612_v30 = vor.u32 %v8882_v41, %v7611_v43  ;;  %4953 = vmatpush.bf16.msrb.mxu2 %v9046_v10  ;;  %v2537_v43 = vadd.f32 %v10230_v21, %v10245_v36 }
 0x276   : > { %v3670_v59 = vshrl.u32 %v3482_v45, 16  ;;  %v3673_v56 = vshll.u32 %v3482_v45, 16  ;;  %3972 = vst [vmem:[#allocation3 + $0x70] sm:$0xf] %v3482_v45  ;;  %v7808_v31 = vor.u32 %v8992_v44, %v7807_v2  ;;  %v3383_v28 = vadd.f32 %v3316_v49, %v10239_v51  ;;  %v3139_v51 = vpop.f32.mrf.mxu2  ;;  %v4186_v55 = vld [vmem:[#allocation3 + $0x74] sm:$0xf] }
 0x277   : > { %v9053_v38 = vld [vmem:[%s11452_s3 + $0x160] sm:$0xff] }
 0x278   : > { %v3672_v19 = vrot.slane %v3670_v59, 7  ;;  %v4028_v12 = vrot.slane %v3673_v56, 5  ;;  %v4030_v5 = vrot.slane %v3670_v59, 4  ;;  %4880 = vmatmul.bf16.gmra.mxu1 %v7808_v31  ;;  %v3419_v37 = vadd.f32 %v10357_v20, %v3383_v28  ;;  %v3320_v45 = vpop.f32.mrf.mxu0  ;;  %v8965_v42 = vld [vmem:[%s11452_s3 + $0x20] sm:$0xff]  ;;  %5043 = vmatpush.bf16.msrb.mxu3 %v9053_v38  ;;  %v10501_v38 = vld [vmem:[#allocation2 + $0x18c] sm:$0xf0] }
 0x279   : > { %v3228_v7 = vpop.f32.mrf.mxu3  ;;  %4954 = vmatpush.bf16.msrb.mxu2 %v9045_v6  ;;  %5532 = vmatpush.bf16.msrb.mxu0 %v8965_v42  ;;  %v10499_v6 = vld [vmem:[#allocation2 + $0x184] sm:$0xf]  ;;  %v7623_v42 = vld [vmem:[#allocation2 + $0x188] sm:$0xf] }
 0x27a   : > { %v3675_v0 = vor.u32 %v3673_v56, %v3672_v19  ;;  %v4029_v11 = vsel %vm9832_vm13, %v4027_v63, %v4028_v12  ;;  %v4031_v34 = vor.u32 %v4030_v5, %v4028_v12  ;;  %v3229_v15 = vadd.f32 %v3228_v7, %v3139_v51  ;;  %v9044_v63 = vld [vmem:[%s11452_s3 + $0x118] sm:$0xff]  ;;  %v3917_v19 = vld [vmem:[#allocation3 + $0x78] sm:$0xf] }
 0x27b   : > { %4185 = vst [vmem:[#allocation3 + $0x68] sm:$0xf] %v4029_v11  ;;  %v3451_v2 = vmax.f32 %v3419_v37, 0.0  ;;  %3181 = vmatmul.bf16.gmra.mxu2 %v7604_v9  ;;  %3359 = vmatmul.bf16.gmra.mxu0 %v7612_v30  ;;  %v3536_v56 = vsel %vm9260_vm2, 0, %v3535_v48  ;;  %v8964_v37 = vld [vmem:[%s11452_s3 + $0x18] sm:$0xff]  ;;  %v9043_v30 = vld [vmem:[%s11452_s3 + $0x110] sm:$0xff] }
 0x27c   : > { %v3676_v41 = vsel %vm9303_vm6, %v3668_v57, %v3675_v0  ;;  %v4032_v49 = vrot.slane %v4031_v34, 4  ;;  %v3318_v44 = vadd.f32 %v3317_v60, %v3229_v15  ;;  %3537 = vst [vmem:[#allocation3 + $0xa8] sm:$0x1] %v3536_v56  ;;  %v9052_v57 = vld [vmem:[%s11452_s3 + $0x158] sm:$0xff]  ;;  %v7819_v34 = vld [vmem:[#allocation3 + $0x60] sm:$0xf] }
 0x27d   : > { %3916 = vst [vmem:[#allocation3 + $0x6c] sm:$0xf] %v3676_v41  ;;  %v3483_v59 = vpack.c.bf16 %v3451_v2, %v3451_v2  ;;  %4955 = vmatpush.bf16.msrb.mxu2 %v9044_v63  ;;  %v7615_v15 = vld [vmem:[#allocation2 + $0x180] sm:$0xf]  ;;  %v8884_v2 = vld [vmem:[#allocation2 + $0x188] sm:$0xf0]  ;;  %5044 = vmatpush.bf16.msrb.mxu3 %v9052_v57  ;;  %v7620_v57 = vor.u32 %v10499_v6, %v10501_v38 }
 0x27e   : > { %v4187_v31 = vsel %vm9840_vm14, %v4032_v49, %v4186_v55  ;;  %v3384_v25 = vadd.f32 %v3318_v44, %v2537_v43  ;;  %3270 = vmatmul.bf16.gmra.mxu3 %v7608_v33  ;;  %v3142_v28 = vpop.f32.mrf.mxu2  ;;  %v8885_v43 = vld [vmem:[#allocation2 + $0x190] sm:$0xf0]  ;;  %5533 = vmatpush.bf16.msrb.mxu0 %v8964_v37  ;;  %v8974_v44 = vld [vmem:[%s11452_s3 + $0x68] sm:$0xff] }
 0x27f   : > { %4188 = vst [vmem:[#allocation3 + $0x74] sm:$0xf] %v4187_v31  ;;  %v3678_v21 = vshrl.u32 %v3483_v59, 16  ;;  %v3681_v36 = vshll.u32 %v3483_v59, 16  ;;  %v9051_v41 = vld [vmem:[%s11452_s3 + $0x150] sm:$0xff]  ;;  %5620 = vmatpush.bf16.msrb.mxu1 %v8974_v44  ;;  %v7624_v37 = vor.u32 %v8885_v43, %v7623_v42  ;;  %v9049_v43 = vld [vmem:[%s11452_s3 + $0x140] sm:$0xff] }
 0x280   : > { %3973 = vst [vmem:[#allocation3 + $0x7c] sm:$0xf] %v3483_v59  ;;  %v3420_v60 = vadd.f32 %v10357_v20, %v3384_v25  ;;  %v10487_v51 = vpop.f32.mrf.mxu0  ;;  %v3583_v48 = vld [vmem:[#allocation3 + $0xbc] sm:$0x8]  ;;  %v8963_v59 = vld [vmem:[%s11452_s3 + $0x10] sm:$0xff] }
 0x281   : > { %v10482_v9 = vrot.slane %v3678_v21, 7  ;;  %v4033_v24 = vrot.slane %v3678_v21, 4  ;;  %v4034_v10 = vrot.slane %v3681_v36, 5  ;;  %v3231_v17 = vpop.f32.mrf.mxu3  ;;  %v3584_v21 = vsel %vm9803_vm10, 0, %v3583_v48  ;;  %4956 = vmatpush.bf16.msrb.mxu2 %v9043_v30  ;;  %5045 = vmatpush.bf16.msrb.mxu3 %v9051_v41  ;;  %v3538_v42 = vld [vmem:[#allocation3 + $0xc0] sm:$0x1] }
 0x282   : > { %v3452_v12 = vmax.f32 %v3420_v60, 0.0  ;;  %v3232_v5 = vadd.f32 %v3231_v17, %v3142_v28  ;;  %v9042_v60 = vld [vmem:[%s11452_s3 + $0x108] sm:$0xff]  ;;  %3585 = vst [vmem:[#allocation3 + $0xbc] sm:$0x8] %v3584_v21  ;;  %5534 = vmatpush.bf16.msrb.mxu0 %v8963_v59  ;;  %v2542_v41 = vadd.f32 %v10248_v52, %v10253_v13  ;;  %v8961_v52 = vld [vmem:[%s11452_s3] sm:$0xff] }
 0x283   : > { %v3683_v7 = vor.u32 %v3681_v36, %v10482_v9  ;;  %v4035_v33 = vor.u32 %v4034_v10, %v4033_v24 }
 0x284   : > { %v3484_v0 = vpack.c.bf16 %v3452_v12, %v3452_v12  ;;  %v3321_v11 = vadd.f32 %v3320_v45, %v3232_v5  ;;  %v8995_v55 = vld [vmem:[#allocation3 + $0x68] sm:$0xf0]  ;;  %v7616_v5 = vor.u32 %v8884_v2, %v7615_v15  ;;  %v9041_v15 = vld [vmem:[%s11452_s3 + $0x100] sm:$0xff] }
 0x285   : > { %v3918_v49 = vsel %vm9317_vm7, %v3683_v7, %v3917_v19  ;;  %v7820_v45 = vor.u32 %v8995_v55, %v7819_v34  ;;  %v4036_v36 = vrot.slane %v4035_v33, 4  ;;  %v3684_v19 = vrot.slane %v10482_v9, 4  ;;  %v8962_v34 = vld [vmem:[%s11452_s3 + $0x8] sm:$0xff]  ;;  %v4190_v9 = vld [vmem:[#allocation3 + $0x8c] sm:$0xf]  ;;  %4957 = vmatpush.bf16.msrb.mxu2 %v9042_v60 }
 0x286   : > { %3919 = vst [vmem:[#allocation3 + $0x78] sm:$0xf] %v3918_v49  ;;  %v3686_v56 = vshrl.u32 %v3484_v0, 16  ;;  %v3689_v31 = vshll.u32 %v3484_v0, 16  ;;  %v3385_v25 = vadd.f32 %v3321_v11, %v10250_v1  ;;  %v3144_v63 = vpop.f32.mrf.mxu2  ;;  %v9050_v1 = vld [vmem:[%s11452_s3 + $0x148] sm:$0xff]  ;;  %5535 = vmatpush.bf16.msrb.mxu0 %v8962_v34 }
 0x287   : > { %3974 = vst [vmem:[#allocation3 + $0x88] sm:$0xf] %v3484_v0  ;;  %5046 = vmatpush.bf16.msrb.mxu3 %v9050_v1 }
 0x288   : > { %v3688_v28 = vrot.slane %v3686_v56, 7  ;;  %v4037_v24 = vrot.slane %v3689_v31, 5  ;;  %v4039_v10 = vrot.slane %v3686_v56, 4  ;;  %v3421_v17 = vadd.f32 %v10357_v20, %v3385_v25  ;;  %4885 = vmatmul.bf16.gmra.mxu1 %v7820_v45  ;;  %v3325_v11 = vpop.f32.mrf.mxu0 }
 0x289   : > { %v3233_v12 = vpop.f32.mrf.mxu3  ;;  %v3539_v45 = vsel %vm9260_vm2, 0, %v3538_v42  ;;  %4958 = vmatpush.bf16.msrb.mxu2 %v9041_v15 }
 0x28a   : > { %v3691_v7 = vor.u32 %v3689_v31, %v3688_v28  ;;  %v4038_v33 = vsel %vm9832_vm13, %v4036_v36, %v4037_v24  ;;  %v4040_v30 = vor.u32 %v4039_v10, %v4037_v24  ;;  %v3453_v0 = vmax.f32 %v3421_v17, 0.0  ;;  %3540 = vst [vmem:[#allocation3 + $0xc0] sm:$0x1] %v3539_v45  ;;  %v3921_v31 = vld [vmem:[#allocation3 + $0x90] sm:$0xf]  ;;  %5536 = vmatpush.bf16.msrb.mxu0 %v8961_v52 }
 0x28b   : > { %4189 = vst [vmem:[#allocation3 + $0x80] sm:$0xf] %v4038_v33  ;;  %v3234_v55 = vadd.f32 %v3233_v12, %v3144_v63  ;;  %3186 = vmatmul.bf16.gmra.mxu2 %v7616_v5  ;;  %3364 = vmatmul.bf16.gmra.mxu0 %v7624_v37  ;;  %v7627_v63 = vld [vmem:[#allocation2 + $0x198] sm:$0xf] }
 0x28c   : > { %v3692_v2 = vsel %vm9303_vm6, %v3684_v19, %v3691_v7  ;;  %v4041_v6 = vrot.slane %v4040_v30, 4  ;;  %v3485_v38 = vpack.c.bf16 %v3453_v0, %v3453_v0  ;;  %5047 = vmatpush.bf16.msrb.mxu3 %v9049_v43  ;;  %v7635_v30 = vld [vmem:[#allocation2 + $0x1a0] sm:$0xf]  ;;  %v8888_v0 = vld [vmem:[#allocation2 + $0x1a8] sm:$0xf0] }
 0x28d   : > { %3920 = vst [vmem:[#allocation3 + $0x84] sm:$0xf] %v3692_v2  ;;  %v3323_v49 = vadd.f32 %v10487_v51, %v3234_v55  ;;  %v7831_v12 = vld [vmem:[#allocation3 + $0x78] sm:$0xf]  ;;  %v3586_v55 = vld [vmem:[#allocation3 + $0xd4] sm:$0x8]  ;;  %v7636_v43 = vor.u32 %v8888_v0, %v7635_v30 }
 0x28e   : > { %v4191_v44 = vsel %vm9840_vm14, %v4041_v6, %v4190_v9  ;;  %v3694_v48 = vshrl.u32 %v3485_v38, 16  ;;  %v3697_v59 = vshll.u32 %v3485_v38, 16  ;;  %3975 = vst [vmem:[#allocation3 + $0x94] sm:$0xf] %v3485_v38  ;;  %3275 = vmatmul.bf16.gmra.mxu3 %v7620_v57  ;;  %v3147_v56 = vpop.f32.mrf.mxu2  ;;  %v8887_v57 = vld [vmem:[#allocation2 + $0x1a0] sm:$0xf0] }
 0x28f   : > { %4192 = vst [vmem:[#allocation3 + $0x8c] sm:$0xf] %v4191_v44  ;;  %v3386_v13 = vadd.f32 %v3323_v49, %v2542_v41  ;;  %v8886_v9 = vld [vmem:[#allocation2 + $0x19c] sm:$0xf]  ;;  %v7629_v6 = vld [vmem:[#allocation2 + $0x1a4] sm:$0xf0]  ;;  %v7628_v42 = vor.u32 %v8887_v57, %v7627_v63 }
 0x290   : > { %v3696_v51 = vrot.slane %v3694_v48, 7  ;;  %v4042_v25 = vrot.slane %v3694_v48, 4  ;;  %v4043_v21 = vrot.slane %v3697_v59, 5  ;;  %v3327_v10 = vpop.f32.mrf.mxu0  ;;  %v3587_v41 = vsel %vm9803_vm10, 0, %v3586_v55 }
 0x291   : > { %v3422_v36 = vadd.f32 %v10357_v20, %v3386_v13  ;;  %v3236_v60 = vpop.f32.mrf.mxu3  ;;  %3588 = vst [vmem:[#allocation3 + $0xd4] sm:$0x8] %v3587_v41 }
 0x292   : > { %v3699_v28 = vor.u32 %v3697_v59, %v3696_v51  ;;  %v3237_v24 = vadd.f32 %v3236_v60, %v3147_v56  ;;  %v4044_v37 = vor.u32 %v4043_v21, %v4042_v25  ;;  %v7632_v56 = vor.u32 %v8886_v9, %v7629_v6 }
 0x293   : > { %v3454_v17 = vmax.f32 %v3422_v36, 0.0  ;;  %v2547_v60 = vadd.f32 %v10256_v22, %v10264_v29  ;;  %v3541_v22 = vld [vmem:[#allocation3 + $0xd8] sm:$0x1] }
 0x294   : > { %v3922_v1 = vsel %vm9317_vm7, %v3699_v28, %v3921_v31  ;;  %v3326_v19 = vadd.f32 %v3325_v11, %v3237_v24  ;;  %v8998_v5 = vld [vmem:[#allocation3 + $0x80] sm:$0xf0]  ;;  %v4045_v49 = vrot.slane %v4044_v37, 4  ;;  %v3700_v31 = vrot.slane %v3696_v51, 4 }
 0x295   : > { %3923 = vst [vmem:[#allocation3 + $0x90] sm:$0xf] %v3922_v1  ;;  %v3486_v7 = vpack.c.bf16 %v3454_v17, %v3454_v17  ;;  %v7832_v33 = vor.u32 %v8998_v5, %v7831_v12  ;;  %v4194_v28 = vld [vmem:[#allocation3 + $0xa4] sm:$0xf]  ;;  %v3542_v0 = vsel %vm9260_vm2, 0, %v3541_v22 }
 0x296   : > { %v3387_v34 = vadd.f32 %v3326_v19, %v10258_v27  ;;  %v3149_v11 = vpop.f32.mrf.mxu2  ;;  %3543 = vst [vmem:[#allocation3 + $0xd8] sm:$0x1] %v3542_v0  ;;  %v8985_v22 = vld [vmem:[#allocation3 + $0x1c] sm:$0xf] }
 0x297   : > { %v3702_v15 = vshrl.u32 %v3486_v7, 16  ;;  %v3705_v2 = vshll.u32 %v3486_v7, 16  ;;  %3976 = vst [vmem:[#allocation3 + $0xa0] sm:$0xf] %v3486_v7 }
 0x298   : > { %v3423_v38 = vadd.f32 %v10357_v20, %v3387_v34  ;;  %4890 = vmatmul.bf16.gmra.mxu1 %v7832_v33  ;;  %v3330_v13 = vpop.f32.mrf.mxu0  ;;  %v3925_v33 = vld [vmem:[#allocation3 + $0xa8] sm:$0xf] }
 0x299   : > { %v3704_v45 = vrot.slane %v3702_v15, 7  ;;  %v4046_v44 = vrot.slane %v3705_v2, 5  ;;  %v4048_v48 = vrot.slane %v3702_v15, 4  ;;  %v3238_v27 = vpop.f32.mrf.mxu3 }
 0x29a   : > { %v3455_v59 = vmax.f32 %v3423_v38, 0.0  ;;  %v3239_v52 = vadd.f32 %v3238_v27, %v3149_v11  ;;  %v3589_v27 = vld [vmem:[#allocation3 + $0xec] sm:$0x8] }
 0x29b   : > { %v3707_v25 = vor.u32 %v3705_v2, %v3704_v45  ;;  %v4047_v21 = vsel %vm9832_vm13, %v4045_v49, %v4046_v44  ;;  %v4049_v36 = vor.u32 %v4048_v48, %v4046_v44  ;;  %3191 = vmatmul.bf16.gmra.mxu2 %v7628_v42  ;;  %3369 = vmatmul.bf16.gmra.mxu0 %v7636_v43  ;;  %v8071_v42 = vld [vmem:[#allocation3] sm:$0xf]  ;;  %v8914_v43 = vld [vmem:[#allocation3 + $0x8] sm:$0xf0]  ;;  %v8973_v49 = vld [vmem:[%s11452_s3 + $0x60] sm:$0xff] }
 0x29c   : > { %4193 = vst [vmem:[#allocation3 + $0x98] sm:$0xf] %v4047_v21  ;;  %v3487_v24 = vpack.c.bf16 %v3455_v59, %v3455_v59  ;;  %v3328_v17 = vadd.f32 %v3327_v10, %v3239_v52  ;;  %v7843_v11 = vld [vmem:[#allocation3 + $0x90] sm:$0xf]  ;;  %v7785_v52 = vld [vmem:[#allocation3 + $0x24] sm:$0xf0]  ;;  %5621 = vmatpush.bf16.msrb.mxu1 %v8973_v49 }
 0x29d   : > { %v3708_v63 = vsel %vm9303_vm6, %v3700_v31, %v3707_v25  ;;  %v4050_v1 = vrot.slane %v4049_v36, 4  ;;  %v3929_v49 = vld [vmem:[#allocation3 + $0xc0] sm:$0xf] }
 0x29e   : > { %3924 = vst [vmem:[#allocation3 + $0x9c] sm:$0xf] %v3708_v63  ;;  %v3710_v51 = vshrl.u32 %v3487_v24, 16  ;;  %v3713_v19 = vshll.u32 %v3487_v24, 16  ;;  %v3388_v12 = vadd.f32 %v3328_v17, %v2547_v60  ;;  %3280 = vmatmul.bf16.gmra.mxu3 %v7632_v56  ;;  %v3152_v7 = vpop.f32.mrf.mxu2  ;;  %v3590_v56 = vsel %vm9803_vm10, 0, %v3589_v27 }
 0x29f   : > { %v4195_v5 = vsel %vm9840_vm14, %v4050_v1, %v4194_v28  ;;  %3977 = vst [vmem:[#allocation3 + $0xac] sm:$0xf] %v3487_v24  ;;  %v10579_v28 = vld [vmem:[%s11451_s2] ss:$0 sm:$0xff]  ;;  %v8987_v17 = vld [vmem:[#allocation3 + $0x28] sm:$0xf0]  ;;  %v8072_v63 = vor.u32 %v8914_v43, %v8071_v42 }
 0x2a0   : > { %4196 = vst [vmem:[#allocation3 + $0xa4] sm:$0xf] %v4195_v5  ;;  %v3712_v29 = vrot.slane %v3710_v51, 7  ;;  %v4051_v57 = vrot.slane %v3710_v51, 4  ;;  %v4052_v10 = vrot.slane %v3713_v19, 5  ;;  %v3424_v37 = vadd.f32 %v10357_v20, %v3388_v12  ;;  %v3332_v55 = vpop.f32.mrf.mxu0 }
 0x2a1   : > { %v3241_v30 = vpop.f32.mrf.mxu3  ;;  %3591 = vst [vmem:[#allocation3 + $0xec] sm:$0x8] %v3590_v56 }
 0x2a2   : > { %v3715_v34 = vor.u32 %v3713_v19, %v3712_v29  ;;  %v3456_v9 = vmax.f32 %v3424_v37, 0.0  ;;  %v3242_v15 = vadd.f32 %v3241_v30, %v3152_v7  ;;  %v4053_v6 = vor.u32 %v4052_v10, %v4051_v57  ;;  %v7791_v57 = vld [vmem:[#allocation3 + $0x20] sm:$0xf]  ;;  %v4198_v10 = vld [vmem:[#allocation3 + $0xbc] sm:$0xf] }
 0x2a3   : > { %v3716_v60 = vrot.slane %v3712_v29, 4  ;;  %v2552_v29 = vadd.f32 %v10267_v53, %v10272_v40  ;;  %v7788_v7 = vor.u32 %v8985_v22, %v7785_v52 }
 0x2a4   : > { %v3926_v2 = vsel %vm9317_vm7, %v3715_v34, %v3925_v33  ;;  %v3488_v38 = vpack.c.bf16 %v3456_v9, %v3456_v9  ;;  %v3331_v20 = vadd.f32 %v3330_v13, %v3242_v15  ;;  %v4054_v31 = vrot.slane %v4053_v6, 4 }
 0x2a5   : > { %3927 = vst [vmem:[#allocation3 + $0xa8] sm:$0xf] %v3926_v2  ;;  %v9001_v41 = vld [vmem:[#allocation3 + $0x98] sm:$0xf0]  ;;  %v7792_v34 = vor.u32 %v8987_v17, %v7791_v57  ;;  %v8917_v17 = vld [vmem:[#allocation3 + $0x20] sm:$0xf0] }
 0x2a6   : > { %v3718_v45 = vshrl.u32 %v3488_v38, 16  ;;  %v3721_v44 = vshll.u32 %v3488_v38, 16  ;;  %3978 = vst [vmem:[#allocation3 + $0xb8] sm:$0xf] %v3488_v38  ;;  %v7844_v48 = vor.u32 %v9001_v41, %v7843_v11  ;;  %v3389_v59 = vadd.f32 %v3331_v20, %v10269_v50  ;;  %v3154_v36 = vpop.f32.mrf.mxu2  ;;  %v3544_v11 = vld [vmem:[#allocation3 + $0xf0] sm:$0x1] }
 0x2a7   : > { %v3545_v41 = vsel %vm9260_vm2, 0, %v3544_v11 }
 0x2a8   : > { %v3720_v25 = vrot.slane %v3718_v45, 7  ;;  %v4055_v13 = vrot.slane %v3721_v44, 5  ;;  %v4057_v21 = vrot.slane %v3718_v45, 4  ;;  %4895 = vmatmul.bf16.gmra.mxu1 %v7844_v48  ;;  %v3425_v50 = vadd.f32 %v10579_v28, %v3389_v59  ;;  %v3335_v5 = vpop.f32.mrf.mxu0  ;;  %3546 = vst [vmem:[#allocation3 + $0xf0] sm:$0x1] %v3545_v41 }
 0x2a9   : > { %v3243_v24 = vpop.f32.mrf.mxu3 }
 0x2aa   : > { %v3723_v1 = vor.u32 %v3721_v44, %v3720_v25  ;;  %v4056_v51 = vsel %vm9832_vm13, %v4054_v31, %v4055_v13  ;;  %v4058_v19 = vor.u32 %v4057_v21, %v4055_v13  ;;  %v3244_v12 = vadd.f32 %v3243_v24, %v3154_v36  ;;  %v3592_v36 = vld [vmem:[#allocation3 + $0x104] sm:$0x8] }
 0x2ab   : > { %4197 = vst [vmem:[#allocation3 + $0xb0] sm:$0xf] %v4056_v51  ;;  %v3457_v37 = vmax.f32 %v3425_v50, 0.0  ;;  %4959 = vmatmul.bf16.vlgmr.msrb.gmra.mxu2 %v7788_v7  ;;  %5537 = vmatmul.bf16.vlgmr.msrb.gmra.mxu0 %v8072_v63  ;;  %v3593_v63 = vsel %vm9803_vm10, 0, %v3592_v36  ;;  %v7797_v51 = vld [vmem:[#allocation3 + $0x3c] sm:$0xf0] }
 0x2ac   : > { %v3724_v33 = vsel %vm9303_vm6, %v3716_v60, %v3723_v1  ;;  %v4059_v30 = vrot.slane %v4058_v19, 4  ;;  %v3333_v0 = vadd.f32 %v3332_v55, %v3244_v12  ;;  %v7855_v31 = vld [vmem:[#allocation3 + $0xa8] sm:$0xf]  ;;  %3594 = vst [vmem:[#allocation3 + $0x104] sm:$0x8] %v3593_v63 }
 0x2ad   : > { %3928 = vst [vmem:[#allocation3 + $0xb4] sm:$0xf] %v3724_v33  ;;  %v3489_v9 = vpack.c.bf16 %v3457_v37, %v3457_v37  ;;  %v8990_v37 = vld [vmem:[#allocation3 + $0x40] sm:$0xf0] }
 0x2ae   : > { %v4199_v15 = vsel %vm9840_vm14, %v4059_v30, %v4198_v10  ;;  %v3390_v2 = vadd.f32 %v3333_v0, %v2552_v29  ;;  %5048 = vmatmul.bf16.vlgmr.msrb.gmra.mxu3 %v7792_v34  ;;  %v3157_v38 = vpop.f32.mrf.mxu2  ;;  %v8988_v34 = vld [vmem:[#allocation3 + $0x34] sm:$0xf] }
 0x2af   : > { %4200 = vst [vmem:[#allocation3 + $0xbc] sm:$0xf] %v4199_v15  ;;  %v3726_v53 = vshrl.u32 %v3489_v9, 16  ;;  %v3729_v40 = vshll.u32 %v3489_v9, 16  ;;  %v4202_v15 = vld [vmem:[#allocation3 + $0xd4] sm:$0xf] }
 0x2b0   : > { %3979 = vst [vmem:[#allocation3 + $0xc4] sm:$0xf] %v3489_v9  ;;  %v3426_v6 = vadd.f32 %v10579_v28, %v3390_v2  ;;  %v3337_v48 = vpop.f32.mrf.mxu0  ;;  %v8083_v9 = vld [vmem:[#allocation3 + $0x18] sm:$0xf] }
 0x2b1   : > { %v3728_v42 = vrot.slane %v3726_v53, 7  ;;  %v4060_v55 = vrot.slane %v3726_v53, 4  ;;  %v4061_v43 = vrot.slane %v3729_v40, 5  ;;  %v3246_v20 = vpop.f32.mrf.mxu3  ;;  %v7800_v53 = vor.u32 %v8988_v34, %v7797_v51 }
 0x2b2   : > { %v3458_v45 = vmax.f32 %v3426_v6, 0.0  ;;  %v3247_v44 = vadd.f32 %v3246_v20, %v3157_v38  ;;  %v8084_v6 = vor.u32 %v8917_v17, %v8083_v9 }
 0x2b3   : > { %v3731_v27 = vor.u32 %v3729_v40, %v3728_v42  ;;  %v4062_v59 = vor.u32 %v4061_v43, %v4060_v55  ;;  %v3732_v29 = vrot.slane %v3728_v42, 4  ;;  %v7803_v40 = vld [vmem:[#allocation3 + $0x38] sm:$0xf]  ;;  %v2557_v43 = vadd.f32 %v10275_v8, %v10283_v23 }
 0x2b4   : > { %v3490_v52 = vpack.c.bf16 %v3458_v45, %v3458_v45  ;;  %v3336_v56 = vadd.f32 %v3335_v5, %v3247_v44  ;;  %v9004_v25 = vld [vmem:[#allocation3 + $0xb0] sm:$0xf0]  ;;  %v7804_v55 = vor.u32 %v8990_v37, %v7803_v40  ;;  %v3933_v8 = vld [vmem:[#allocation3 + $0xd8] sm:$0xf] }
 0x2b5   : > { %v3930_v13 = vsel %vm9317_vm7, %v3731_v27, %v3929_v49  ;;  %v7856_v21 = vor.u32 %v9004_v25, %v7855_v31  ;;  %v4063_v1 = vrot.slane %v4062_v59, 4  ;;  %v3547_v27 = vld [vmem:[#allocation3 + $0x108] sm:$0x1] }
 0x2b6   : > { %3931 = vst [vmem:[#allocation3 + $0xc0] sm:$0xf] %v3930_v13  ;;  %v3734_v60 = vshrl.u32 %v3490_v52, 16  ;;  %v3737_v50 = vshll.u32 %v3490_v52, 16  ;;  %v3391_v24 = vadd.f32 %v3336_v56, %v10277_v3  ;;  %v3159_v57 = vpop.f32.mrf.mxu2  ;;  %v3548_v56 = vsel %vm9260_vm2, 0, %v3547_v27 }
 0x2b7   : > { %3980 = vst [vmem:[#allocation3 + $0xd0] sm:$0xf] %v3490_v52  ;;  %v4206_v27 = vld [vmem:[#allocation3 + $0xec] sm:$0xf] }
 0x2b8   : > { %v3736_v19 = vrot.slane %v3734_v60, 7  ;;  %v4064_v12 = vrot.slane %v3737_v50, 5  ;;  %v4066_v5 = vrot.slane %v3734_v60, 4  ;;  %v3427_v22 = vadd.f32 %v10579_v28, %v3391_v24  ;;  %4900 = vmatmul.bf16.gmra.mxu1 %v7856_v21  ;;  %v3340_v0 = vpop.f32.mrf.mxu0  ;;  %3549 = vst [vmem:[#allocation3 + $0x108] sm:$0x1] %v3548_v56 }
 0x2b9   : > { %v3248_v10 = vpop.f32.mrf.mxu3 }
 0x2ba   : > { %v3739_v7 = vor.u32 %v3737_v50, %v3736_v19  ;;  %v4065_v3 = vsel %vm9832_vm13, %v4063_v1, %v4064_v12  ;;  %v4067_v33 = vor.u32 %v4066_v5, %v4064_v12  ;;  %v3459_v30 = vmax.f32 %v3427_v22, 0.0  ;;  %v8920_v12 = vld [vmem:[#allocation3 + $0x38] sm:$0xf0]  ;;  %v7809_v22 = vld [vmem:[#allocation3 + $0x54] sm:$0xf0] }
 0x2bb   : > { %4201 = vst [vmem:[#allocation3 + $0xc8] sm:$0xf] %v4065_v3  ;;  %v3249_v2 = vadd.f32 %v3248_v10, %v3159_v57  ;;  %4964 = vmatmul.bf16.gmra.mxu2 %v7800_v53  ;;  %5542 = vmatmul.bf16.gmra.mxu0 %v8084_v6  ;;  %v8972_v57 = vld [vmem:[%s11452_s3 + $0x58] sm:$0xff]  ;;  %v8993_v53 = vld [vmem:[#allocation3 + $0x58] sm:$0xf0] }
 0x2bc   : > { %v3740_v38 = vsel %vm9303_vm6, %v3732_v29, %v3739_v7  ;;  %v4068_v11 = vrot.slane %v4067_v33, 4  ;;  %v3491_v42 = vpack.c.bf16 %v3459_v30, %v3459_v30  ;;  %v3595_v29 = vld [vmem:[#allocation3 + $0x11c] sm:$0x8]  ;;  %v8991_v30 = vld [vmem:[#allocation3 + $0x4c] sm:$0xf]  ;;  %5622 = vmatpush.bf16.msrb.mxu1 %v8972_v57 }
 0x2bd   : > { %3932 = vst [vmem:[#allocation3 + $0xcc] sm:$0xf] %v3740_v38  ;;  %v3338_v20 = vadd.f32 %v3337_v48, %v3249_v2  ;;  %v7867_v17 = vld [vmem:[#allocation3 + $0xc0] sm:$0xf]  ;;  %v3596_v7 = vsel %vm9803_vm10, 0, %v3595_v29 }
 0x2be   : > { %v4203_v41 = vsel %vm9840_vm14, %v4068_v11, %v4202_v15  ;;  %v3742_v49 = vshrl.u32 %v3491_v42, 16  ;;  %v3745_v45 = vshll.u32 %v3491_v42, 16  ;;  %3981 = vst [vmem:[#allocation3 + $0xdc] sm:$0xf] %v3491_v42  ;;  %5053 = vmatmul.bf16.gmra.mxu3 %v7804_v55  ;;  %v3162_v52 = vpop.f32.mrf.mxu2  ;;  %v7812_v11 = vor.u32 %v8991_v30, %v7809_v22 }
 0x2bf   : > { %4204 = vst [vmem:[#allocation3 + $0xd4] sm:$0xf] %v4203_v41  ;;  %v3392_v44 = vadd.f32 %v3338_v20, %v2557_v43 }
 0x2c0   : > { %v3744_v59 = vrot.slane %v3742_v49, 7  ;;  %v4069_v23 = vrot.slane %v3742_v49, 4  ;;  %v4070_v48 = vrot.slane %v3745_v45, 5  ;;  %v3342_v36 = vpop.f32.mrf.mxu0  ;;  %3597 = vst [vmem:[#allocation3 + $0x11c] sm:$0x8] %v3596_v7 }
 0x2c1   : > { %v3428_v31 = vadd.f32 %v10579_v28, %v3392_v44  ;;  %v3251_v25 = vpop.f32.mrf.mxu3  ;;  %v7815_v49 = vld [vmem:[#allocation3 + $0x50] sm:$0xf]  ;;  %v10623_v44 = vpop.f32.mrf.mxu1 }
 0x2c2   : > { %v3747_v13 = vor.u32 %v3745_v45, %v3744_v59  ;;  %v3252_v21 = vadd.f32 %v3251_v25, %v3162_v52  ;;  %v4071_v1 = vor.u32 %v4070_v48, %v4069_v23  ;;  %v3748_v55 = vrot.slane %v3744_v59, 4 }
 0x2c3   : > { %v3460_v60 = vmax.f32 %v3428_v31, 0.0  ;;  %v2562_v45 = vadd.f32 %v10286_v46, %v10291_v18  ;;  %v3550_v18 = vld [vmem:[#allocation3 + $0x120] sm:$0x1] }
 0x2c4   : > { %v3934_v50 = vsel %vm9317_vm7, %v3747_v13, %v3933_v8  ;;  %v3341_v24 = vadd.f32 %v3340_v0, %v3252_v21  ;;  %v9007_v63 = vld [vmem:[#allocation3 + $0xc8] sm:$0xf0]  ;;  %v8095_v0 = vld [vmem:[#allocation3 + $0x30] sm:$0xf]  ;;  %v7816_v8 = vor.u32 %v8993_v53, %v7815_v49 }
 0x2c5   : > { %3935 = vst [vmem:[#allocation3 + $0xd8] sm:$0xf] %v3934_v50  ;;  %v3492_v51 = vpack.c.bf16 %v3460_v60, %v3460_v60  ;;  %v7868_v19 = vor.u32 %v9007_v63, %v7867_v17  ;;  %v8096_v42 = vor.u32 %v8920_v12, %v8095_v0  ;;  %v3551_v63 = vsel %vm9260_vm2, 0, %v3550_v18 }
 0x2c6   : > { %v3393_v5 = vadd.f32 %v3341_v24, %v10288_v32  ;;  %v3164_v33 = vpop.f32.mrf.mxu2  ;;  %v4072_v32 = vrot.slane %v4071_v1, 4  ;;  %v3937_v24 = vld [vmem:[#allocation3 + $0xf0] sm:$0xf]  ;;  %3552 = vst [vmem:[#allocation3 + $0x120] sm:$0x1] %v3551_v63 }
 0x2c7   : > { %v3750_v10 = vshrl.u32 %v3492_v51, 16  ;;  %v3753_v37 = vshll.u32 %v3492_v51, 16  ;;  %3982 = vst [vmem:[#allocation3 + $0xe8] sm:$0xf] %v3492_v51  ;;  %v3553_v63 = vld [vmem:[#allocation3 + $0x138] sm:$0x1] }
 0x2c8   : > { %v3429_v3 = vadd.f32 %v10579_v28, %v3393_v5  ;;  %4905 = vmatmul.bf16.gmra.mxu1 %v7868_v19  ;;  %v3345_v38 = vpop.f32.mrf.mxu0 }
 0x2c9   : > { %v3752_v34 = vrot.slane %v3750_v10, 7  ;;  %v4073_v9 = vrot.slane %v3753_v37, 5  ;;  %v4075_v15 = vrot.slane %v3750_v10, 4  ;;  %v3253_v2 = vpop.f32.mrf.mxu3 }
 0x2ca   : > { %v3461_v40 = vmax.f32 %v3429_v3, 0.0  ;;  %v3254_v6 = vadd.f32 %v3253_v2, %v3164_v33  ;;  %v3598_v3 = vld [vmem:[#allocation3 + $0x134] sm:$0x8] }
 0x2cb   : > { %v3755_v43 = vor.u32 %v3753_v37, %v3752_v34  ;;  %v4074_v20 = vsel %vm9832_vm13, %v4072_v32, %v4073_v9  ;;  %v4076_v41 = vor.u32 %v4075_v15, %v4073_v9  ;;  %4969 = vmatmul.bf16.gmra.mxu2 %v7812_v11  ;;  %5547 = vmatmul.bf16.gmra.mxu0 %v8096_v42  ;;  %v3599_v32 = vsel %vm9803_vm10, 0, %v3598_v3  ;;  %v8923_v9 = vld [vmem:[#allocation3 + $0x50] sm:$0xf0] }
 0x2cc   : > { %4205 = vst [vmem:[#allocation3 + $0xe0] sm:$0xf] %v4074_v20  ;;  %v3493_v52 = vpack.c.bf16 %v3461_v40, %v3461_v40  ;;  %v3343_v56 = vadd.f32 %v3342_v36, %v3254_v6  ;;  %v7879_v10 = vld [vmem:[#allocation3 + $0xd8] sm:$0xf] }
 0x2cd   : > { %v3756_v23 = vsel %vm9303_vm6, %v3748_v55, %v3755_v43  ;;  %v4077_v59 = vrot.slane %v4076_v41, 4  ;;  %3600 = vst [vmem:[#allocation3 + $0x134] sm:$0x8] %v3599_v32  ;;  %v8996_v43 = vld [vmem:[#allocation3 + $0x70] sm:$0xf0] }
 0x2ce   : > { %3936 = vst [vmem:[#allocation3 + $0xe4] sm:$0xf] %v3756_v23  ;;  %v3758_v48 = vshrl.u32 %v3493_v52, 16  ;;  %v3761_v31 = vshll.u32 %v3493_v52, 16  ;;  %v3394_v25 = vadd.f32 %v3343_v56, %v2562_v45  ;;  %5058 = vmatmul.bf16.gmra.mxu3 %v7816_v8  ;;  %v3167_v50 = vpop.f32.mrf.mxu2  ;;  %v8107_v56 = vld [vmem:[#allocation3 + $0x48] sm:$0xf]  ;;  %v2567_v8 = vadd.f32 %v10294_v4, %v10302_v16 }
 0x2cf   : > { %v4207_v46 = vsel %vm9840_vm14, %v4077_v59, %v4206_v27  ;;  %3983 = vst [vmem:[#allocation3 + $0xf4] sm:$0xf] %v3493_v52  ;;  %v8994_v27 = vld [vmem:[#allocation3 + $0x64] sm:$0xf]  ;;  %v7827_v52 = vld [vmem:[#allocation3 + $0x68] sm:$0xf] }
 0x2d0   : > { %4208 = vst [vmem:[#allocation3 + $0xec] sm:$0xf] %v4207_v46  ;;  %v3760_v13 = vrot.slane %v3758_v48, 7  ;;  %v4078_v21 = vrot.slane %v3758_v48, 4  ;;  %v4079_v36 = vrot.slane %v3761_v31, 5  ;;  %v3430_v60 = vadd.f32 %v10579_v28, %v3394_v25  ;;  %v3347_v19 = vpop.f32.mrf.mxu0 }
 0x2d1   : > { %v3256_v17 = vpop.f32.mrf.mxu3  ;;  %v4210_v23 = vld [vmem:[#allocation3 + $0x104] sm:$0xf] }
 0x2d2   : > { %v3763_v1 = vor.u32 %v3761_v31, %v3760_v13  ;;  %v3462_v51 = vmax.f32 %v3430_v60, 0.0  ;;  %v3257_v12 = vadd.f32 %v3256_v17, %v3167_v50  ;;  %v4080_v22 = vor.u32 %v4079_v36, %v4078_v21 }
 0x2d3   : > { %v3764_v11 = vrot.slane %v3760_v13, 4  ;;  %v8108_v31 = vor.u32 %v8923_v9, %v8107_v56  ;;  %v7828_v21 = vor.u32 %v8996_v43, %v7827_v52  ;;  %v7833_v43 = vld [vmem:[#allocation3 + $0x84] sm:$0xf0]  ;;  %v8999_v56 = vld [vmem:[#allocation3 + $0x88] sm:$0xf0] }
 0x2d4   : > { %v3938_v5 = vsel %vm9317_vm7, %v3763_v1, %v3937_v24  ;;  %v3494_v57 = vpack.c.bf16 %v3462_v51, %v3462_v51  ;;  %v10634_v29 = vpop.f32.mrf.mxu1  ;;  %v3346_v37 = vadd.f32 %v3345_v38, %v3257_v12  ;;  %v4081_v15 = vrot.slane %v4080_v22, 4  ;;  %v7821_v38 = vld [vmem:[#allocation3 + $0x6c] sm:$0xf0]  ;;  %v3941_v22 = vld [vmem:[#allocation3 + $0x108] sm:$0xf] }
 0x2d5   : > { %3939 = vst [vmem:[#allocation3 + $0xf0] sm:$0xf] %v3938_v5  ;;  %v9010_v7 = vld [vmem:[#allocation3 + $0xe0] sm:$0xf0]  ;;  %v7824_v48 = vor.u32 %v8994_v27, %v7821_v38  ;;  %v3554_v5 = vsel %vm9260_vm2, 0, %v3553_v63  ;;  %v11611_v63 = vld [vmem:[#allocation11_spill] sm:$0xff] }
 0x2d6   : > { %v3766_v33 = vshrl.u32 %v3494_v57, 16  ;;  %v3769_v30 = vshll.u32 %v3494_v57, 16  ;;  %3984 = vst [vmem:[#allocation3 + $0x100] sm:$0xf] %v3494_v57  ;;  %v7880_v0 = vor.u32 %v9010_v7, %v7879_v10  ;;  %v3395_v34 = vadd.f32 %v3346_v37, %v10296_v14  ;;  %v3169_v6 = vpop.f32.mrf.mxu2 }
 0x2d7   : > { %3555 = vst [vmem:[#allocation3 + $0x138] sm:$0x1] %v3554_v5 }
 0x2d8   : > { %v3768_v2 = vrot.slane %v3766_v33, 7  ;;  %v4082_v53 = vrot.slane %v3769_v30, 5  ;;  %v4084_v40 = vrot.slane %v3766_v33, 4  ;;  %4910 = vmatmul.bf16.gmra.mxu1 %v7880_v0  ;;  %v3431_v42 = vadd.f32 %v10579_v28, %v3395_v34  ;;  %v3350_v45 = vpop.f32.mrf.mxu0 }
 0x2d9   : > { %v3258_v55 = vpop.f32.mrf.mxu3 }
 0x2da   : > { %v3771_v20 = vor.u32 %v3769_v30, %v3768_v2  ;;  %v4083_v41 = vsel %vm9832_vm13, %v4081_v15, %v4082_v53  ;;  %v4085_v49 = vor.u32 %v4084_v40, %v4082_v53  ;;  %v3259_v14 = vadd.f32 %v3258_v55, %v3169_v6  ;;  %v8971_v2 = vld [vmem:[%s11452_s3 + $0x50] sm:$0xff]  ;;  %v3601_v53 = vld [vmem:[#allocation3 + $0x14c] sm:$0x8] }
 0x2db   : > { %4209 = vst [vmem:[#allocation3 + $0xf8] sm:$0xf] %v4083_v41  ;;  %v3463_v59 = vmax.f32 %v3431_v42, 0.0  ;;  %4974 = vmatmul.bf16.gmra.mxu2 %v7824_v48  ;;  %5552 = vmatmul.bf16.gmra.mxu0 %v8108_v31  ;;  %v3602_v42 = vsel %vm9803_vm10, 0, %v3601_v53  ;;  %v8997_v31 = vld [vmem:[#allocation3 + $0x7c] sm:$0xf] }
 0x2dc   : > { %v3772_v25 = vsel %vm9303_vm6, %v3764_v11, %v3771_v20  ;;  %v4086_v46 = vrot.slane %v4085_v49, 4  ;;  %v3348_v18 = vadd.f32 %v3347_v19, %v3259_v14  ;;  %v10646_v13 = vpop.f32.mrf.mxu1  ;;  %v7891_v32 = vld [vmem:[#allocation3 + $0xf0] sm:$0xf]  ;;  %v8926_v11 = vld [vmem:[#allocation3 + $0x68] sm:$0xf0]  ;;  %5623 = vmatpush.bf16.msrb.mxu1 %v8971_v2 }
 0x2dd   : > { %3940 = vst [vmem:[#allocation3 + $0xfc] sm:$0xf] %v3772_v25  ;;  %v3495_v36 = vpack.c.bf16 %v3463_v59, %v3463_v59  ;;  %v8119_v25 = vld [vmem:[#allocation3 + $0x60] sm:$0xf] }
 0x2de   : > { %v4211_v4 = vsel %vm9840_vm14, %v4086_v46, %v4210_v23  ;;  %v3396_v16 = vadd.f32 %v3348_v18, %v2567_v8  ;;  %5063 = vmatmul.bf16.gmra.mxu3 %v7828_v21  ;;  %v3172_v17 = vpop.f32.mrf.mxu2  ;;  %3603 = vst [vmem:[#allocation3 + $0x14c] sm:$0x8] %v3602_v42  ;;  %v4214_v46 = vld [vmem:[#allocation3 + $0x11c] sm:$0xf]  ;;  %v7836_v21 = vor.u32 %v8997_v31, %v7833_v43  ;;  %v7893_v35 = vld [vmem:[#allocation3 + $0xfc] sm:$0xf0] }
 0x2df   : > { %4212 = vst [vmem:[#allocation3 + $0x104] sm:$0xf] %v4211_v4  ;;  %v3774_v60 = vshrl.u32 %v3495_v36, 16  ;;  %v3777_v50 = vshll.u32 %v3495_v36, 16  ;;  %v8120_v4 = vor.u32 %v8926_v11, %v8119_v25 }
 0x2e0   : > { %3985 = vst [vmem:[#allocation3 + $0x10c] sm:$0xf] %v3495_v36  ;;  %v3432_v24 = vadd.f32 %v10579_v28, %v3396_v16  ;;  %v3352_v37 = vpop.f32.mrf.mxu0  ;;  %v7839_v36 = vld [vmem:[#allocation3 + $0x80] sm:$0xf] }
 0x2e1   : > { %v3776_v1 = vrot.slane %v3774_v60, 7  ;;  %v4087_v51 = vrot.slane %v3774_v60, 4  ;;  %v4088_v19 = vrot.slane %v3777_v50, 5  ;;  %v3261_v12 = vpop.f32.mrf.mxu3 }
 0x2e2   : > { %v3464_v57 = vmax.f32 %v3432_v24, 0.0  ;;  %v3262_v10 = vadd.f32 %v3261_v12, %v3172_v17  ;;  %v7840_v17 = vor.u32 %v8999_v56, %v7839_v36 }
 0x2e3   : > { %v3779_v7 = vor.u32 %v3777_v50, %v3776_v1  ;;  %v4089_v3 = vor.u32 %v4088_v19, %v4087_v51  ;;  %v3780_v27 = vrot.slane %v3776_v1, 4  ;;  %v2572_v1 = vadd.f32 %v11611_v63, %v10310_v47  ;;  %v3945_v47 = vld [vmem:[#allocation3 + $0x120] sm:$0xf] }
 0x2e4   : > { %v3496_v33 = vpack.c.bf16 %v3464_v57, %v3464_v57  ;;  %v3351_v30 = vadd.f32 %v3350_v45, %v3262_v10  ;;  %v10653_v0 = vpop.f32.mrf.mxu1  ;;  %v9013_v34 = vld [vmem:[#allocation3 + $0xf8] sm:$0xf0]  ;;  %v3556_v57 = vld [vmem:[#allocation3 + $0x150] sm:$0x1] }
 0x2e5   : > { %v3942_v9 = vsel %vm9317_vm7, %v3779_v7, %v3941_v22  ;;  %v7892_v15 = vor.u32 %v9013_v34, %v7891_v32  ;;  %v4090_v55 = vrot.slane %v4089_v3, 4  ;;  %v3557_v3 = vsel %vm9260_vm2, 0, %v3556_v57  ;;  %v4218_v57 = vld [vmem:[#allocation3 + $0x134] sm:$0xf] }
 0x2e6   : > { %3943 = vst [vmem:[#allocation3 + $0x108] sm:$0xf] %v3942_v9  ;;  %v3782_v40 = vshrl.u32 %v3496_v33, 16  ;;  %v3785_v6 = vshll.u32 %v3496_v33, 16  ;;  %v3397_v38 = vadd.f32 %v3351_v30, %v10307_v39  ;;  %v3174_v45 = vpop.f32.mrf.mxu2 }
 0x2e7   : > { %3986 = vst [vmem:[#allocation3 + $0x118] sm:$0xf] %v3496_v33 }
 0x2e8   : > { %v3784_v20 = vrot.slane %v3782_v40, 7  ;;  %v4091_v41 = vrot.slane %v3785_v6, 5  ;;  %v4093_v49 = vrot.slane %v3782_v40, 4  ;;  %v3433_v14 = vadd.f32 %v10579_v28, %v3397_v38  ;;  %4915 = vmatmul.bf16.gmra.mxu1 %v7892_v15  ;;  %v3355_v48 = vpop.f32.mrf.mxu0  ;;  %3558 = vst [vmem:[#allocation3 + $0x150] sm:$0x1] %v3557_v3 }
 0x2e9   : > { %v3263_v52 = vpop.f32.mrf.mxu3 }
 0x2ea   : > { %v3787_v39 = vor.u32 %v3785_v6, %v3784_v20  ;;  %v4092_v8 = vsel %vm9832_vm13, %v4090_v55, %v4091_v41  ;;  %v4094_v23 = vor.u32 %v4093_v49, %v4091_v41  ;;  %v3465_v59 = vmax.f32 %v3433_v14, 0.0  ;;  %v11612_v20 = vld [vmem:[#allocation13_spill] sm:$0xff]  ;;  %v7845_v49 = vld [vmem:[#allocation3 + $0x9c] sm:$0xf0]  ;;  %v8929_v14 = vld [vmem:[#allocation3 + $0x80] sm:$0xf0] }
 0x2eb   : > { %4213 = vst [vmem:[#allocation3 + $0x110] sm:$0xf] %v4092_v8  ;;  %v3264_v18 = vadd.f32 %v3263_v52, %v3174_v45  ;;  %4979 = vmatmul.bf16.gmra.mxu2 %v7836_v21  ;;  %5557 = vmatmul.bf16.gmra.mxu0 %v8120_v4  ;;  %v3604_v45 = vld [vmem:[#allocation3 + $0x164] sm:$0x8] }
 0x2ec   : > { %v3788_v16 = vsel %vm9303_vm6, %v3780_v27, %v3787_v39  ;;  %v4095_v60 = vrot.slane %v4094_v23, 4  ;;  %v3497_v50 = vpack.c.bf16 %v3465_v59, %v3465_v59  ;;  %v10668_v24 = vpop.f32.mrf.mxu1  ;;  %v3605_v56 = vsel %vm9803_vm10, 0, %v3604_v45  ;;  %v9000_v23 = vld [vmem:[#allocation3 + $0x94] sm:$0xf]  ;;  %v8131_v59 = vld [vmem:[#allocation3 + $0x78] sm:$0xf] }
 0x2ed   : > { %3944 = vst [vmem:[#allocation3 + $0x114] sm:$0xf] %v3788_v16  ;;  %v3353_v51 = vadd.f32 %v3352_v37, %v3264_v18  ;;  %v7903_v6 = vld [vmem:[#allocation3 + $0x108] sm:$0xf]  ;;  %v9002_v21 = vld [vmem:[#allocation3 + $0xa0] sm:$0xf0] }
 0x2ee   : > { %v4215_v19 = vsel %vm9840_vm14, %v4095_v60, %v4214_v46  ;;  %v3790_v12 = vshrl.u32 %v3497_v50, 16  ;;  %v3793_v5 = vshll.u32 %v3497_v50, 16  ;;  %3987 = vst [vmem:[#allocation3 + $0x124] sm:$0xf] %v3497_v50  ;;  %5068 = vmatmul.bf16.gmra.mxu3 %v7840_v17  ;;  %v3177_v7 = vpop.f32.mrf.mxu2  ;;  %v7848_v60 = vor.u32 %v9000_v23, %v7845_v49 }
 0x2ef   : > { %4216 = vst [vmem:[#allocation3 + $0x11c] sm:$0xf] %v4215_v19  ;;  %v3398_v22 = vadd.f32 %v3353_v51, %v2572_v1  ;;  %v8132_v50 = vor.u32 %v8929_v14, %v8131_v59  ;;  %v7851_v19 = vld [vmem:[#allocation3 + $0x98] sm:$0xf] }
 0x2f0   : > { %v3792_v10 = vrot.slane %v3790_v12, 7  ;;  %v4096_v33 = vrot.slane %v3790_v12, 4  ;;  %v4097_v37 = vrot.slane %v3793_v5, 5  ;;  %v3357_v15 = vpop.f32.mrf.mxu0  ;;  %3606 = vst [vmem:[#allocation3 + $0x164] sm:$0x8] %v3605_v56  ;;  %v11613_v12 = vld [vmem:[#allocation14_spill] sm:$0xff] }
 0x2f1   : > { %v3434_v30 = vadd.f32 %v10579_v28, %v3398_v22  ;;  %v3266_v32 = vpop.f32.mrf.mxu3  ;;  %v8970_v59 = vld [vmem:[%s11452_s3 + $0x48] sm:$0xff] }
 0x2f2   : > { %v3795_v34 = vor.u32 %v3793_v5, %v3792_v10  ;;  %v3267_v9 = vadd.f32 %v3266_v32, %v3177_v7  ;;  %v4098_v11 = vor.u32 %v4097_v37, %v4096_v33  ;;  %v3796_v17 = vrot.slane %v3792_v10, 4  ;;  %v11614_v5 = vld [vmem:[#allocation12_spill] sm:$0xff]  ;;  %5624 = vmatpush.bf16.msrb.mxu1 %v8970_v59 }
 0x2f3   : > { %v3466_v2 = vmax.f32 %v3434_v30, 0.0  ;;  %v2577_v22 = vadd.f32 %v11614_v5, %v11613_v12  ;;  %v9005_v5 = vld [vmem:[#allocation3 + $0xb8] sm:$0xf0] }
 0x2f4   : > { %v3946_v53 = vsel %vm9317_vm7, %v3795_v34, %v3945_v47  ;;  %v3356_v40 = vadd.f32 %v3355_v48, %v3267_v9  ;;  %v9016_v38 = vld [vmem:[#allocation3 + $0x110] sm:$0xf0]  ;;  %v4099_v48 = vrot.slane %v4098_v11, 4  ;;  %v7852_v47 = vor.u32 %v9002_v21, %v7851_v19  ;;  %v3949_v11 = vld [vmem:[#allocation3 + $0x138] sm:$0xf] }
 0x2f5   : > { %3947 = vst [vmem:[#allocation3 + $0x120] sm:$0xf] %v3946_v53  ;;  %v3498_v42 = vpack.c.bf16 %v3466_v2, %v3466_v2  ;;  %v10679_v55 = vpop.f32.mrf.mxu1  ;;  %v7904_v43 = vor.u32 %v9016_v38, %v7903_v6  ;;  %v3559_v2 = vld [vmem:[#allocation3 + $0x168] sm:$0x1] }
 0x2f6   : > { %v3399_v41 = vadd.f32 %v3356_v40, %v11612_v20  ;;  %v3179_v8 = vpop.f32.mrf.mxu2 }
 0x2f7   : > { %v3798_v27 = vshrl.u32 %v3498_v42, 16  ;;  %v3801_v52 = vshll.u32 %v3498_v42, 16  ;;  %3988 = vst [vmem:[#allocation3 + $0x130] sm:$0xf] %v3498_v42 }
 0x2f8   : > { %v3435_v39 = vadd.f32 %v10579_v28, %v3399_v41  ;;  %4920 = vmatmul.bf16.gmra.mxu1 %v7904_v43  ;;  %v3360_v16 = vpop.f32.mrf.mxu0  ;;  %v3560_v43 = vsel %vm9260_vm2, 0, %v3559_v2  ;;  %v4222_v2 = vld [vmem:[#allocation3 + $0x14c] sm:$0xf] }
 0x2f9   : > { %v3800_v31 = vrot.slane %v3798_v27, 7  ;;  %v4100_v25 = vrot.slane %v3801_v52, 5  ;;  %v4102_v46 = vrot.slane %v3798_v27, 4  ;;  %v3268_v18 = vpop.f32.mrf.mxu3  ;;  %3561 = vst [vmem:[#allocation3 + $0x168] sm:$0x1] %v3560_v43 }
 0x2fa   : > { %v3467_v36 = vmax.f32 %v3435_v39, 0.0  ;;  %v3269_v4 = vadd.f32 %v3268_v18, %v3179_v8  ;;  %v11615_v18 = vld [vmem:[#allocation16_spill] sm:$0xff] }
 0x2fb   : > { %v3803_v63 = vor.u32 %v3801_v52, %v3800_v31  ;;  %v4101_v1 = vsel %vm9832_vm13, %v4099_v48, %v4100_v25  ;;  %v4103_v51 = vor.u32 %v4102_v46, %v4100_v25  ;;  %4984 = vmatmul.bf16.gmra.mxu2 %v7848_v60  ;;  %5562 = vmatmul.bf16.gmra.mxu0 %v8132_v50  ;;  %v3607_v46 = vld [vmem:[#allocation3 + $0x17c] sm:$0x8] }
 0x2fc   : > { %4217 = vst [vmem:[#allocation3 + $0x128] sm:$0xf] %v4101_v1  ;;  %v3499_v7 = vpack.c.bf16 %v3467_v36, %v3467_v36  ;;  %v3358_v3 = vadd.f32 %v3357_v15, %v3269_v4  ;;  %v7915_v56 = vld [vmem:[#allocation3 + $0x120] sm:$0xf]  ;;  %v7857_v36 = vld [vmem:[#allocation3 + $0xb4] sm:$0xf0] }
 0x2fd   : > { %v3804_v33 = vsel %vm9303_vm6, %v3796_v17, %v3803_v63  ;;  %v4104_v37 = vrot.slane %v4103_v51, 4  ;;  %v10691_v30 = vpop.f32.mrf.mxu1  ;;  %v8932_v4 = vld [vmem:[#allocation3 + $0x98] sm:$0xf0] }
 0x2fe   : > { %3948 = vst [vmem:[#allocation3 + $0x12c] sm:$0xf] %v3804_v33  ;;  %v3806_v10 = vshrl.u32 %v3499_v7, 16  ;;  %v3809_v32 = vshll.u32 %v3499_v7, 16  ;;  %v3400_v34 = vadd.f32 %v3358_v3, %v2577_v22  ;;  %5073 = vmatmul.bf16.gmra.mxu3 %v7852_v47  ;;  %v3182_v38 = vpop.f32.mrf.mxu2  ;;  %v9003_v33 = vld [vmem:[#allocation3 + $0xac] sm:$0xf] }
 0x2ff   : > { %v4219_v9 = vsel %vm9840_vm14, %v4104_v37, %v4218_v57  ;;  %3989 = vst [vmem:[#allocation3 + $0x13c] sm:$0xf] %v3499_v7  ;;  %v7863_v37 = vld [vmem:[#allocation3 + $0xb0] sm:$0xf] }
 0x300   : > { %4220 = vst [vmem:[#allocation3 + $0x134] sm:$0xf] %v4219_v9  ;;  %v3808_v15 = vrot.slane %v3806_v10, 7  ;;  %v4105_v53 = vrot.slane %v3806_v10, 4  ;;  %v4106_v40 = vrot.slane %v3809_v32, 5  ;;  %v3436_v6 = vadd.f32 %v10579_v28, %v3400_v34  ;;  %v3362_v49 = vpop.f32.mrf.mxu0  ;;  %v11617_v34 = vld [vmem:[#allocation15_spill] sm:$0xff] }
 0x301   : > { %v3271_v42 = vpop.f32.mrf.mxu3  ;;  %v8143_v10 = vld [vmem:[#allocation3 + $0x90] sm:$0xf] }
 0x302   : > { %v3811_v20 = vor.u32 %v3809_v32, %v3808_v15  ;;  %v3468_v41 = vmax.f32 %v3436_v6, 0.0  ;;  %v3272_v14 = vadd.f32 %v3271_v42, %v3182_v38  ;;  %v4107_v27 = vor.u32 %v4106_v40, %v4105_v53  ;;  %v11616_v32 = vld [vmem:[#allocation17_spill] sm:$0xff] }
 0x303   : > { %v3812_v51 = vrot.slane %v3808_v15, 4  ;;  %v2582_v9 = vadd.f32 %v11617_v34, %v11616_v32  ;;  %v7860_v53 = vor.u32 %v9003_v33, %v7857_v36  ;;  %v8144_v40 = vor.u32 %v8932_v4, %v8143_v10 }
 0x304   : > { %v3950_v45 = vsel %vm9317_vm7, %v3811_v20, %v3949_v11  ;;  %v3500_v52 = vpack.c.bf16 %v3468_v41, %v3468_v41  ;;  %v3361_v39 = vadd.f32 %v3360_v16, %v3272_v14  ;;  %v3608_v16 = vsel %vm9803_vm10, 0, %v3607_v46 }
 0x305   : > { %3951 = vst [vmem:[#allocation3 + $0x138] sm:$0xf] %v3950_v45  ;;  %v10700_v8 = vpop.f32.mrf.mxu1  ;;  %v9019_v23 = vld [vmem:[#allocation3 + $0x128] sm:$0xf0]  ;;  %v4108_v60 = vrot.slane %v4107_v27, 4  ;;  %v7864_v42 = vor.u32 %v9005_v5, %v7863_v37  ;;  %v11618_v5 = vld [vmem:[#allocation18_spill] sm:$0xff] }
 0x306   : > { %v3814_v48 = vshrl.u32 %v3500_v52, 16  ;;  %v3817_v31 = vshll.u32 %v3500_v52, 16  ;;  %3990 = vst [vmem:[#allocation3 + $0x148] sm:$0xf] %v3500_v52  ;;  %v7916_v25 = vor.u32 %v9019_v23, %v7915_v56  ;;  %v3401_v21 = vadd.f32 %v3361_v39, %v11615_v18  ;;  %v3184_v1 = vpop.f32.mrf.mxu2 }
 0x307   : > { %3609 = vst [vmem:[#allocation3 + $0x17c] sm:$0x8] %v3608_v16 }
 0x308   : > { %v3816_v50 = vrot.slane %v3814_v48, 7  ;;  %v4109_v17 = vrot.slane %v3817_v31, 5  ;;  %v4111_v63 = vrot.slane %v3814_v48, 4  ;;  %4925 = vmatmul.bf16.gmra.mxu1 %v7916_v25  ;;  %v3437_v19 = vadd.f32 %v10579_v28, %v3401_v21  ;;  %v3365_v47 = vpop.f32.mrf.mxu0  ;;  %v3953_v25 = vld [vmem:[#allocation3 + $0x150] sm:$0xf] }
 0x309   : > { %v3273_v12 = vpop.f32.mrf.mxu3 }
 0x30a   : > { %v3819_v22 = vor.u32 %v3817_v31, %v3816_v50  ;;  %v4110_v57 = vsel %vm9832_vm13, %v4108_v60, %v4109_v17  ;;  %v4112_v7 = vor.u32 %v4111_v63, %v4109_v17  ;;  %v3274_v3 = vadd.f32 %v3273_v12, %v3184_v1 }
 0x30b   : > { %4221 = vst [vmem:[#allocation3 + $0x140] sm:$0xf] %v4110_v57  ;;  %v3469_v15 = vmax.f32 %v3437_v19, 0.0  ;;  %4989 = vmatmul.bf16.gmra.mxu2 %v7860_v53  ;;  %5567 = vmatmul.bf16.gmra.mxu0 %v8144_v40  ;;  %v3610_v19 = vld [vmem:[#allocation3 + $0x194] sm:$0x8] }
 0x30c   : > { %v3820_v6 = vsel %vm9303_vm6, %v3812_v51, %v3819_v22  ;;  %v4113_v38 = vrot.slane %v4112_v7, 4  ;;  %v3363_v11 = vadd.f32 %v3362_v49, %v3274_v3  ;;  %v3562_v49 = vld [vmem:[#allocation3 + $0x180] sm:$0x1]  ;;  %v7927_v50 = vld [vmem:[#allocation3 + $0x138] sm:$0xf]  ;;  %v3611_v7 = vsel %vm9803_vm10, 0, %v3610_v19 }
 0x30d   : > { %3952 = vst [vmem:[#allocation3 + $0x144] sm:$0xf] %v3820_v6  ;;  %v3501_v43 = vpack.c.bf16 %v3469_v15, %v3469_v15  ;;  %v10715_v20 = vpop.f32.mrf.mxu1  ;;  %v3563_v31 = vsel %vm9260_vm2, 0, %v3562_v49  ;;  %v8935_v57 = vld [vmem:[#allocation3 + $0xb0] sm:$0xf0] }
 0x30e   : > { %v4223_v41 = vsel %vm9840_vm14, %v4113_v38, %v4222_v2  ;;  %v3402_v14 = vadd.f32 %v3363_v11, %v2582_v9  ;;  %5078 = vmatmul.bf16.gmra.mxu3 %v7864_v42  ;;  %v3187_v56 = vpop.f32.mrf.mxu2  ;;  %3564 = vst [vmem:[#allocation3 + $0x180] sm:$0x1] %v3563_v31  ;;  %v9008_v15 = vld [vmem:[#allocation3 + $0xd0] sm:$0xf0]  ;;  %v9006_v11 = vld [vmem:[#allocation3 + $0xc4] sm:$0xf] }
 0x30f   : > { %4224 = vst [vmem:[#allocation3 + $0x14c] sm:$0xf] %v4223_v41  ;;  %v3822_v45 = vshrl.u32 %v3501_v43, 16  ;;  %v3825_v27 = vshll.u32 %v3501_v43, 16  ;;  %v8155_v42 = vld [vmem:[#allocation3 + $0xa8] sm:$0xf] }
 0x310   : > { %3991 = vst [vmem:[#allocation3 + $0x154] sm:$0xf] %v3501_v43  ;;  %v3438_v52 = vadd.f32 %v10579_v28, %v3402_v14  ;;  %v3367_v21 = vpop.f32.mrf.mxu0  ;;  %v4226_v43 = vld [vmem:[#allocation3 + $0x164] sm:$0xf] }
 0x311   : > { %v3824_v39 = vrot.slane %v3822_v45, 7  ;;  %v4114_v23 = vrot.slane %v3822_v45, 4  ;;  %v4115_v59 = vrot.slane %v3825_v27, 5  ;;  %v3276_v48 = vpop.f32.mrf.mxu3  ;;  %3612 = vst [vmem:[#allocation3 + $0x194] sm:$0x8] %v3611_v7  ;;  %v8156_v45 = vor.u32 %v8935_v57, %v8155_v42 }
 0x312   : > { %v3470_v46 = vmax.f32 %v3438_v52, 0.0  ;;  %v3277_v18 = vadd.f32 %v3276_v48, %v3187_v56 }
 0x313   : > { %v3827_v36 = vor.u32 %v3825_v27, %v3824_v39  ;;  %v4116_v4 = vor.u32 %v4115_v59, %v4114_v23  ;;  %v3828_v9 = vrot.slane %v3824_v39, 4  ;;  %v11619_v39 = vld [vmem:[#allocation4_spill] sm:$0xff]  ;;  %v11620_v23 = vld [vmem:[#allocation7_spill] sm:$0xff] }
 0x314   : > { %v3502_v16 = vpack.c.bf16 %v3470_v46, %v3470_v46  ;;  %v3366_v60 = vadd.f32 %v3365_v47, %v3277_v18  ;;  %v9022_v17 = vld [vmem:[#allocation3 + $0x140] sm:$0xf0]  ;;  %v7869_v47 = vld [vmem:[#allocation3 + $0xcc] sm:$0xf0]  ;;  %v2587_v59 = vadd.f32 %v11620_v23, %v11619_v39 }
 0x315   : > { %v3954_v63 = vsel %vm9317_vm7, %v3827_v36, %v3953_v25  ;;  %v10724_v1 = vpop.f32.mrf.mxu1  ;;  %v7928_v51 = vor.u32 %v9022_v17, %v7927_v50  ;;  %v4117_v3 = vrot.slane %v4116_v4, 4  ;;  %v7872_v14 = vor.u32 %v9006_v11, %v7869_v47  ;;  %v8969_v4 = vld [vmem:[%s11452_s3 + $0x40] sm:$0xff]  ;;  %v8167_v11 = vld [vmem:[#allocation3 + $0xc0] sm:$0xf] }
 0x316   : > { %3955 = vst [vmem:[#allocation3 + $0x150] sm:$0xf] %v3954_v63  ;;  %v3830_v61 = vshrl.u32 %v3502_v16, 16  ;;  %v3833_v12 = vshll.u32 %v3502_v16, 16  ;;  %v3403_v22 = vadd.f32 %v3366_v60, %v11618_v5  ;;  %v3189_v34 = vpop.f32.mrf.mxu2  ;;  %v10746_v63 = vld [vmem:[%s11451_s2] ss:$0 sm:$0xff]  ;;  %5625 = vmatpush.bf16.msrb.mxu1 %v8969_v4 }
 0x317   : > { %3992 = vst [vmem:[#allocation3 + $0x160] sm:$0xf] %v3502_v16  ;;  %v4230_v4 = vld [vmem:[#allocation3 + $0x17c] sm:$0xf] }
 0x318   : > { %v3832_v33 = vrot.slane %v3830_v61, 7  ;;  %v4118_v37 = vrot.slane %v3833_v12, 5  ;;  %v4120_v10 = vrot.slane %v3830_v61, 4  ;;  %v3439_v32 = vadd.f32 %v10579_v28, %v3403_v22  ;;  %4930 = vmatmul.bf16.gmra.mxu1 %v7928_v51  ;;  %v3370_v38 = vpop.f32.mrf.mxu0  ;;  %v7875_v28 = vld [vmem:[#allocation3 + $0xc8] sm:$0xf] }
 0x319   : > { %v3278_v2 = vpop.f32.mrf.mxu3  ;;  %v7876_v49 = vor.u32 %v9008_v15, %v7875_v28 }
 0x31a   : > { %v3835_v53 = vor.u32 %v3833_v12, %v3832_v33  ;;  %v4119_v40 = vsel %vm9832_vm13, %v4117_v3, %v4118_v37  ;;  %v4121_v58 = vor.u32 %v4120_v10, %v4118_v37  ;;  %v3471_v6 = vmax.f32 %v3439_v32, 0.0 }
 0x31b   : > { %4225 = vst [vmem:[#allocation3 + $0x158] sm:$0xf] %v4119_v40  ;;  %v3279_v41 = vadd.f32 %v3278_v2, %v3189_v34  ;;  %4994 = vmatmul.bf16.gmra.mxu2 %v7872_v14  ;;  %5572 = vmatmul.bf16.gmra.mxu0 %v8156_v45  ;;  %v11621_v34 = vld [vmem:[#allocation8_spill] sm:$0xff]  ;;  %v8938_v2 = vld [vmem:[#allocation3 + $0xc8] sm:$0xf0] }
 0x31c   : > { %v3836_v27 = vsel %vm9303_vm6, %v3828_v9, %v3835_v53  ;;  %v4122_v52 = vrot.slane %v4121_v58, 4  ;;  %v3503_v56 = vpack.c.bf16 %v3471_v6, %v3471_v6  ;;  %v7881_v40 = vld [vmem:[#allocation3 + $0xe4] sm:$0xf0]  ;;  %v9011_v45 = vld [vmem:[#allocation3 + $0xe8] sm:$0xf0]  ;;  %v8168_v39 = vor.u32 %v8938_v2, %v8167_v11 }
 0x31d   : > { %3956 = vst [vmem:[#allocation3 + $0x15c] sm:$0xf] %v3836_v27  ;;  %v3368_v48 = vadd.f32 %v3367_v21, %v3279_v41  ;;  %v10736_v31 = vpop.f32.mrf.mxu1  ;;  %v3957_v21 = vld [vmem:[#allocation3 + $0x168] sm:$0xf]  ;;  %v7939_v3 = vld [vmem:[#allocation3 + $0x150] sm:$0xf] }
 0x31e   : > { %v4227_v25 = vsel %vm9840_vm14, %v4122_v52, %v4226_v43  ;;  %v3838_v46 = vshrl.u32 %v3503_v56, 16  ;;  %v3841_v18 = vshll.u32 %v3503_v56, 16  ;;  %3993 = vst [vmem:[#allocation3 + $0x16c] sm:$0xf] %v3503_v56  ;;  %5083 = vmatmul.bf16.gmra.mxu3 %v7876_v49  ;;  %v3192_v60 = vpop.f32.mrf.mxu2 }
 0x31f   : > { %4228 = vst [vmem:[#allocation3 + $0x164] sm:$0xf] %v4227_v25  ;;  %v3404_v36 = vadd.f32 %v3368_v48, %v2587_v59 }
 0x320   : > { %v3840_v16 = vrot.slane %v3838_v46, 7  ;;  %v4123_v50 = vrot.slane %v3838_v46, 4  ;;  %v4124_v17 = vrot.slane %v3841_v18, 5  ;;  %v3372_v5 = vpop.f32.mrf.mxu0  ;;  %v7887_v46 = vld [vmem:[#allocation3 + $0xe0] sm:$0xf] }
 0x321   : > { %v3440_v51 = vadd.f32 %v10746_v63, %v3404_v36  ;;  %v3281_v19 = vpop.f32.mrf.mxu3 }
 0x322   : > { %v3843_v61 = vor.u32 %v3841_v18, %v3840_v16  ;;  %v3282_v12 = vadd.f32 %v3281_v19, %v3192_v60  ;;  %v4125_v33 = vor.u32 %v4124_v17, %v4123_v50  ;;  %v3844_v23 = vrot.slane %v3840_v16, 4  ;;  %v11622_v18 = vld [vmem:[#allocation9_spill] sm:$0xff] }
 0x323   : > { %v3472_v22 = vmax.f32 %v3440_v51, 0.0  ;;  %v2592_v36 = vadd.f32 %v10623_v44, %v11622_v18  ;;  %v7888_v50 = vor.u32 %v9011_v45, %v7887_v46  ;;  %v9112_v44 = vld [vmem:[%s11452_s3 + $0x1b8] sm:$0xff] }
 0x324   : > { %v3958_v57 = vsel %vm9317_vm7, %v3843_v61, %v3957_v21  ;;  %v3371_v7 = vadd.f32 %v3370_v38, %v3282_v12  ;;  %v9025_v47 = vld [vmem:[#allocation3 + $0x158] sm:$0xf0]  ;;  %v4126_v42 = vrot.slane %v4125_v33, 4  ;;  %6310 = vmatpush.bf16.msra.mxu3 %v9112_v44  ;;  %v3961_v33 = vld [vmem:[#allocation3 + $0x180] sm:$0xf] }
 0x325   : > { %3959 = vst [vmem:[#allocation3 + $0x168] sm:$0xf] %v3958_v57  ;;  %v3504_v37 = vpack.c.bf16 %v3472_v22, %v3472_v22  ;;  %v10751_v10 = vpop.f32.mrf.mxu1  ;;  %v7940_v32 = vor.u32 %v9025_v47, %v7939_v3  ;;  %v9009_v38 = vld [vmem:[#allocation3 + $0xdc] sm:$0xf] }
 0x326   : > { %v3405_v9 = vadd.f32 %v3371_v7, %v11621_v34  ;;  %v3194_v6 = vpop.f32.mrf.mxu2  ;;  %v7884_v49 = vor.u32 %v9009_v38, %v7881_v40 }
 0x327   : > { %v3846_v15 = vshrl.u32 %v3504_v37, 16  ;;  %v3849_v53 = vshll.u32 %v3504_v37, 16  ;;  %3994 = vst [vmem:[#allocation3 + $0x178] sm:$0xf] %v3504_v37 }
 0x328   : > { %v3441_v58 = vadd.f32 %v10746_v63, %v3405_v9  ;;  %4935 = vmatmul.bf16.gmra.mxu1 %v7940_v32  ;;  %v5538_v56 = vpop.f32.mrf.mxu0 }
 0x329   : > { %v3848_v43 = vrot.slane %v3846_v15, 7  ;;  %v4127_v41 = vrot.slane %v3849_v53, 5  ;;  %v4129_v14 = vrot.slane %v3846_v15, 4  ;;  %v3283_v28 = vpop.f32.mrf.mxu3 }
 0x32a   : > { %v3473_v27 = vmax.f32 %v3441_v58, 0.0  ;;  %v3284_v52 = vadd.f32 %v3283_v28, %v3194_v6  ;;  %v8941_v28 = vld [vmem:[#allocation3 + $0xe0] sm:$0xf0] }
 0x32b   : > { %v3851_v59 = vor.u32 %v3849_v53, %v3848_v43  ;;  %v4128_v48 = vsel %vm9832_vm13, %v4126_v42, %v4127_v41  ;;  %v4130_v25 = vor.u32 %v4129_v14, %v4127_v41  ;;  %4999 = vmatmul.bf16.gmra.mxu2 %v7884_v49  ;;  %5577 = vmatmul.bf16.gmra.mxu0 %v8168_v39  ;;  %v8984_v53 = vld [vmem:[%s11452_s3 + $0xb8] sm:$0xff] }
 0x32c   : > { %4229 = vst [vmem:[#allocation3 + $0x170] sm:$0xf] %v4128_v48  ;;  %v3505_v60 = vpack.c.bf16 %v3473_v27, %v3473_v27  ;;  %v3373_v21 = vadd.f32 %v3372_v5, %v3284_v52  ;;  %5707 = vmatpush.bf16.msra.mxu2 %v8984_v53  ;;  %v9014_v48 = vld [vmem:[#allocation3 + $0x100] sm:$0xf0] }
 0x32d   : > { %v3852_v17 = vsel %vm9303_vm6, %v3844_v23, %v3851_v59  ;;  %v4131_v51 = vrot.slane %v4130_v25, 4  ;;  %v10761_v19 = vpop.f32.mrf.mxu1  ;;  %v9128_v23 = vld [vmem:[%s11452_s3 + $0x238] sm:$0xff] }
 0x32e   : > { %3960 = vst [vmem:[#allocation3 + $0x174] sm:$0xf] %v3852_v17  ;;  %v3854_v16 = vshrl.u32 %v3505_v60, 16  ;;  %v3857_v61 = vshll.u32 %v3505_v60, 16  ;;  %v3406_v12 = vadd.f32 %v3373_v21, %v2592_v36  ;;  %5088 = vmatmul.bf16.gmra.mxu3 %v7888_v50  ;;  %v4960_v47 = vpop.f32.mrf.mxu2  ;;  %v8179_v21 = vld [vmem:[#allocation3 + $0xd8] sm:$0xf]  ;;  %6488 = vmatpush.bf16.msra.mxu1 %v9128_v23 }
 0x32f   : > { %v4231_v5 = vsel %vm9840_vm14, %v4131_v51, %v4230_v4  ;;  %3995 = vst [vmem:[#allocation3 + $0x184] sm:$0xf] %v3505_v60  ;;  %v4961_v37 = vadd.f32 %v4960_v47, %v10634_v29  ;;  %v9120_v29 = vld [vmem:[%s11452_s3 + $0x1f8] sm:$0xff]  ;;  %v9012_v60 = vld [vmem:[#allocation3 + $0xf4] sm:$0xf] }
 0x330   : > { %4232 = vst [vmem:[#allocation3 + $0x17c] sm:$0xf] %v4231_v5  ;;  %v3856_v22 = vrot.slane %v3854_v16, 7  ;;  %v4132_v57 = vrot.slane %v3854_v16, 4  ;;  %v4133_v7 = vrot.slane %v3857_v61, 5  ;;  %v3442_v3 = vadd.f32 %v10746_v63, %v3406_v12  ;;  %v5540_v2 = vpop.f32.mrf.mxu0  ;;  %6399 = vmatpush.bf16.msra.mxu0 %v9120_v29 }
 0x331   : > { %v5049_v32 = vpop.f32.mrf.mxu3  ;;  %v7951_v63 = vld [vmem:[#allocation3 + $0x168] sm:$0xf]  ;;  %v4234_v50 = vld [vmem:[#allocation3 + $0x194] sm:$0xf]  ;;  %v7896_v51 = vor.u32 %v9012_v60, %v7893_v35  ;;  %v7899_v16 = vld [vmem:[#allocation3 + $0xf8] sm:$0xf] }
 0x332   : > { %v3859_v34 = vor.u32 %v3857_v61, %v3856_v22  ;;  %v3474_v9 = vmax.f32 %v3442_v3, 0.0  ;;  %v5050_v15 = vadd.f32 %v5049_v32, %v4961_v37  ;;  %v4134_v58 = vor.u32 %v4133_v7, %v4132_v57 }
 0x333   : > { %v3860_v25 = vrot.slane %v3856_v22, 4  ;;  %v8180_v61 = vor.u32 %v8941_v28, %v8179_v21  ;;  %v7900_v44 = vor.u32 %v9014_v48, %v7899_v16  ;;  %v8203_v16 = vld [vmem:[#allocation3 + $0x108] sm:$0xf] }
 0x334   : > { %v3962_v40 = vsel %vm9317_vm7, %v3859_v34, %v3961_v33  ;;  %v3506_v6 = vpack.c.bf16 %v3474_v9, %v3474_v9  ;;  %v10780_v42 = vadd.f32 %v5538_v56, %v5050_v15  ;;  %v4135_v45 = vrot.slane %v4134_v58, 4  ;;  %v8944_v15 = vld [vmem:[#allocation3 + $0xf8] sm:$0xf0] }
 0x335   : > { %3963 = vst [vmem:[#allocation3 + $0x180] sm:$0xf] %v3962_v40  ;;  %v10775_v38 = vpop.f32.mrf.mxu1  ;;  %v9028_v11 = vld [vmem:[#allocation3 + $0x170] sm:$0xf0]  ;;  %v9017_v40 = vld [vmem:[#allocation3 + $0x118] sm:$0xf0] }
 0x336   : > { %v3862_v43 = vshrl.u32 %v3506_v6, 16  ;;  %v3865_v41 = vshll.u32 %v3506_v6, 16  ;;  %3996 = vst [vmem:[#allocation3 + $0x190] sm:$0xf] %v3506_v6  ;;  %v7952_v14 = vor.u32 %v9028_v11, %v7951_v63  ;;  %v4962_v39 = vpop.f32.mrf.mxu2  ;;  %v9015_v6 = vld [vmem:[#allocation3 + $0x10c] sm:$0xf] }
 0x337   : > { %v4963_v56 = vadd.f32 %v4962_v39, %v10646_v13  ;;  %v8191_v63 = vld [vmem:[#allocation3 + $0xf0] sm:$0xf] }
 0x338   : > { %v3864_v27 = vrot.slane %v3862_v43, 7  ;;  %v4136_v52 = vrot.slane %v3865_v41, 5  ;;  %v4138_v49 = vrot.slane %v3862_v43, 4  ;;  %4940 = vmatmul.bf16.gmra.mxu1 %v7952_v14  ;;  %v5543_v4 = vpop.f32.mrf.mxu0  ;;  %v7911_v43 = vld [vmem:[#allocation3 + $0x110] sm:$0xf] }
 0x339   : > { %v5051_v59 = vpop.f32.mrf.mxu3  ;;  %v7912_v14 = vor.u32 %v9017_v40, %v7911_v43  ;;  %v8950_v40 = vld [vmem:[#allocation3 + $0x128] sm:$0xf0] }
 0x33a   : > { %v3867_v46 = vor.u32 %v3865_v41, %v3864_v27  ;;  %v4137_v18 = vsel %vm9832_vm13, %v4135_v45, %v4136_v52  ;;  %v4139_v36 = vor.u32 %v4138_v49, %v4136_v52  ;;  %v5052_v17 = vadd.f32 %v5051_v59, %v4963_v56  ;;  %v8913_v52 = vld [vmem:[#allocation3 + $0x4] sm:$0xf]  ;;  %v8073_v49 = vld [vmem:[#allocation3 + $0xc] sm:$0xf0] }
 0x33b   : > { %4233 = vst [vmem:[#allocation3 + $0x188] sm:$0xf] %v4137_v18  ;;  %5004 = vmatmul.bf16.gmra.mxu2 %v7896_v51  ;;  %5582 = vmatmul.bf16.gmra.mxu0 %v8180_v61  ;;  %v8192_v41 = vor.u32 %v8944_v15, %v8191_v63  ;;  %v8983_v59 = vld [vmem:[%s11452_s3 + $0xb0] sm:$0xff]  ;;  %v8076_v48 = vor.u32 %v8913_v52, %v8073_v49  ;;  %v7917_v18 = vld [vmem:[#allocation3 + $0x12c] sm:$0xf0] }
 0x33c   : > { %v3868_v13 = vsel %vm9303_vm6, %v3860_v25, %v3867_v46  ;;  %v4140_v12 = vrot.slane %v4139_v36, 4  ;;  %v10792_v26 = vadd.f32 %v5540_v2, %v5052_v17  ;;  %v7963_v33 = vld [vmem:[#allocation3 + $0x180] sm:$0xf]  ;;  %v7905_v2 = vld [vmem:[#allocation3 + $0x114] sm:$0xf0]  ;;  %5708 = vmatpush.bf16.msra.mxu2 %v8983_v59 }
 0x33d   : > { %3964 = vst [vmem:[#allocation3 + $0x18c] sm:$0xf] %v3868_v13  ;;  %v10790_v5 = vpop.f32.mrf.mxu1  ;;  %v7908_v29 = vor.u32 %v9015_v6, %v7905_v2  ;;  %v9119_v46 = vld [vmem:[%s11452_s3 + $0x1f0] sm:$0xff]  ;;  %v8947_v36 = vld [vmem:[#allocation3 + $0x110] sm:$0xf0] }
 0x33e   : > { %v4235_v22 = vsel %vm9840_vm14, %v4140_v12, %v4234_v50  ;;  %5093 = vmatmul.bf16.gmra.mxu3 %v7900_v44  ;;  %v4965_v57 = vpop.f32.mrf.mxu2  ;;  %6400 = vmatpush.bf16.msra.mxu0 %v9119_v46  ;;  %v9020_v50 = vld [vmem:[#allocation3 + $0x130] sm:$0xf0]  ;;  %v9018_v51 = vld [vmem:[#allocation3 + $0x124] sm:$0xf]  ;;  %v7923_v44 = vld [vmem:[#allocation3 + $0x128] sm:$0xf] }
 0x33f   : > { %4236 = vst [vmem:[#allocation3 + $0x194] sm:$0xf] %v4235_v22  ;;  %v4966_v7 = vadd.f32 %v4965_v57, %v10653_v0  ;;  %v7920_v12 = vor.u32 %v9018_v51, %v7917_v18  ;;  %v8204_v22 = vor.u32 %v8947_v36, %v8203_v16  ;;  %v7924_v57 = vor.u32 %v9020_v50, %v7923_v44  ;;  %v8916_v2 = vld [vmem:[#allocation3 + $0x1c] sm:$0xf]  ;;  %v9023_v63 = vld [vmem:[#allocation3 + $0x148] sm:$0xf0] }
 0x340   : > { %v5545_v62 = vpop.f32.mrf.mxu0  ;;  %v8097_v46 = vld [vmem:[#allocation3 + $0x3c] sm:$0xf0]  ;;  %v8919_v36 = vld [vmem:[#allocation3 + $0x34] sm:$0xf]  ;;  %v8953_v50 = vld [vmem:[#allocation3 + $0x140] sm:$0xf0] }
 0x341   : > { %v5054_v3 = vpop.f32.mrf.mxu3  ;;  %v9024_v44 = vld [vmem:[#allocation3 + $0x154] sm:$0xf] }
 0x342   : > { %v5055_v47 = vadd.f32 %v5054_v3, %v4966_v7 }
 0x344   : > { %v9031_v37 = vld [vmem:[#allocation3 + $0x188] sm:$0xf0]  ;;  %v10800_v0 = vadd.f32 %v5543_v4, %v5055_v47  ;;  %v9127_v4 = vld [vmem:[%s11452_s3 + $0x230] sm:$0xff] }
 0x345   : > { %v10797_v32 = vpop.f32.mrf.mxu1  ;;  %v7964_v34 = vor.u32 %v9031_v37, %v7963_v33  ;;  %6489 = vmatpush.bf16.msra.mxu1 %v9127_v4  ;;  %v9118_v4 = vld [vmem:[%s11452_s3 + $0x1e8] sm:$0xff] }
 0x346   : > { %v4967_v9 = vpop.f32.mrf.mxu2  ;;  %6401 = vmatpush.bf16.msra.mxu0 %v9118_v4  ;;  %v9029_v4 = vld [vmem:[#allocation3 + $0x178] sm:$0xf0] }
 0x347   : > { %v4968_v54 = vadd.f32 %v4967_v9, %v10668_v24  ;;  %v9111_v24 = vld [vmem:[%s11452_s3 + $0x1b0] sm:$0xff] }
 0x348   : > { %4945 = vmatmul.bf16.gmra.mxu1 %v7964_v34  ;;  %v5548_v58 = vpop.f32.mrf.mxu0  ;;  %6311 = vmatpush.bf16.msra.mxu3 %v9111_v24  ;;  %v8085_v34 = vld [vmem:[#allocation3 + $0x24] sm:$0xf0]  ;;  %v7935_v24 = vld [vmem:[#allocation3 + $0x140] sm:$0xf] }
 0x349   : > { %v5056_v53 = vpop.f32.mrf.mxu3  ;;  %v8088_v15 = vor.u32 %v8916_v2, %v8085_v34  ;;  %v9117_v34 = vld [vmem:[%s11452_s3 + $0x1e0] sm:$0xff] }
 0x34a   : > { %v5057_v11 = vadd.f32 %v5056_v53, %v4968_v54  ;;  %v7929_v53 = vld [vmem:[#allocation3 + $0x144] sm:$0xf0]  ;;  %6402 = vmatpush.bf16.msra.mxu0 %v9117_v34 }
 0x34b   : > { %5009 = vmatmul.bf16.gmra.mxu2 %v7908_v29  ;;  %5587 = vmatmul.bf16.gmra.mxu0 %v8192_v41  ;;  %v8215_v29 = vld [vmem:[#allocation3 + $0x120] sm:$0xf] }
 0x34c   : > { %v10808_v23 = vadd.f32 %v5545_v62, %v5057_v11 }
 0x34d   : > { %v10802_v35 = vpop.f32.mrf.mxu1 }
 0x34e   : > { %5098 = vmatmul.bf16.gmra.mxu3 %v7912_v14  ;;  %v4970_v28 = vpop.f32.mrf.mxu2 }
 0x34f   : > { %v4971_v45 = vadd.f32 %v4970_v28, %v10679_v55  ;;  %v8216_v28 = vor.u32 %v8950_v40, %v8215_v29  ;;  %v9116_v40 = vld [vmem:[%s11452_s3 + $0x1d8] sm:$0xff] }
 0x350   : > { %v5550_v39 = vpop.f32.mrf.mxu0  ;;  %6403 = vmatpush.bf16.msra.mxu0 %v9116_v40 }
 0x351   : > { %v5059_v27 = vpop.f32.mrf.mxu3 }
 0x352   : > { %v5060_v56 = vadd.f32 %v5059_v27, %v4971_v45  ;;  %v7936_v45 = vor.u32 %v9023_v63, %v7935_v24  ;;  %v9107_v24 = vld [vmem:[%s11452_s3 + $0x190] sm:$0xff] }
 0x354   : > { %v10822_v61 = vadd.f32 %v5548_v58, %v5060_v56 }
 0x355   : > { %v10813_v25 = vpop.f32.mrf.mxu1 }
 0x356   : > { %v4972_v55 = vpop.f32.mrf.mxu2 }
 0x357   : > { %v4973_v60 = vadd.f32 %v4972_v55, %v10691_v30  ;;  %v8982_v55 = vld [vmem:[%s11452_s3 + $0xa8] sm:$0xff] }
 0x358   : > { %5626 = vmatmul.bf16.vlgmr.msrb.gmra.mxu1 %v8076_v48  ;;  %v5553_v17 = vpop.f32.mrf.mxu0  ;;  %5709 = vmatpush.bf16.msra.mxu2 %v8982_v55 }
 0x359   : > { %v5061_v21 = vpop.f32.mrf.mxu3 }
 0x35a   : > { %v5062_v13 = vadd.f32 %v5061_v21, %v4973_v60  ;;  %v8100_v60 = vor.u32 %v8919_v36, %v8097_v46  ;;  %v7941_v21 = vld [vmem:[#allocation3 + $0x15c] sm:$0xf0]  ;;  %v9114_v46 = vld [vmem:[%s11452_s3 + $0x1c8] sm:$0xff] }
 0x35b   : > { %5014 = vmatmul.bf16.gmra.mxu2 %v7920_v12  ;;  %5592 = vmatmul.bf16.gmra.mxu0 %v8204_v22  ;;  %v7947_v22 = vld [vmem:[#allocation3 + $0x158] sm:$0xf] }
 0x35c   : > { %v10827_v33 = vadd.f32 %v5550_v39, %v5062_v13  ;;  %v9026_v13 = vld [vmem:[#allocation3 + $0x160] sm:$0xf0] }
 0x35d   : > { %v10824_v7 = vpop.f32.mrf.mxu1  ;;  %v7948_v2 = vor.u32 %v9026_v13, %v7947_v22  ;;  %v9113_v22 = vld [vmem:[%s11452_s3 + $0x1c0] sm:$0xff] }
 0x35e   : > { %5103 = vmatmul.bf16.gmra.mxu3 %v7924_v57  ;;  %v4975_v3 = vpop.f32.mrf.mxu2  ;;  %v8227_v57 = vld [vmem:[#allocation3 + $0x138] sm:$0xf] }
 0x35f   : > { %v4976_v30 = vadd.f32 %v4975_v3, %v10700_v8  ;;  %v9021_v8 = vld [vmem:[#allocation3 + $0x13c] sm:$0xf] }
 0x360   : > { %v5555_v47 = vpop.f32.mrf.mxu0  ;;  %v7932_v14 = vor.u32 %v9021_v8, %v7929_v53  ;;  %v9108_v53 = vld [vmem:[%s11452_s3 + $0x198] sm:$0xff]  ;;  %v8109_v8 = vld [vmem:[#allocation3 + $0x54] sm:$0xf0] }
 0x361   : > { %v5064_v62 = vpop.f32.mrf.mxu3 }
 0x362   : > { %v5065_v37 = vadd.f32 %v5064_v62, %v4976_v30  ;;  %v7944_v62 = vor.u32 %v9024_v44, %v7941_v21  ;;  %v7959_v21 = vld [vmem:[#allocation3 + $0x170] sm:$0xf] }
 0x363   : > { %v8977_v44 = vld [vmem:[%s11452_s3 + $0x80] sm:$0xff] }
 0x364   : > { %v10832_v43 = vadd.f32 %v5553_v17, %v5065_v37  ;;  %v9126_v17 = vld [vmem:[%s11452_s3 + $0x228] sm:$0xff]  ;;  %v8981_v37 = vld [vmem:[%s11452_s3 + $0xa0] sm:$0xff] }
 0x365   : > { %v10829_v9 = vpop.f32.mrf.mxu1  ;;  %6490 = vmatpush.bf16.msra.mxu1 %v9126_v17  ;;  %5710 = vmatpush.bf16.msra.mxu2 %v8981_v37 }
 0x366   : > { %v4977_v54 = vpop.f32.mrf.mxu2 }
 0x367   : > { %v4978_v58 = vadd.f32 %v4977_v54, %v10715_v20  ;;  %v9110_v20 = vld [vmem:[%s11452_s3 + $0x1a8] sm:$0xff]  ;;  %v8980_v54 = vld [vmem:[%s11452_s3 + $0x98] sm:$0xff] }
 0x368   : > { %5631 = vmatmul.bf16.gmra.mxu1 %v8088_v15  ;;  %v5558_v11 = vpop.f32.mrf.mxu0  ;;  %6312 = vmatpush.bf16.msra.mxu3 %v9110_v20 }
 0x369   : > { %v5066_v6 = vpop.f32.mrf.mxu3  ;;  %5711 = vmatpush.bf16.msra.mxu2 %v8980_v54 }
 0x36a   : > { %v5067_v41 = vadd.f32 %v5066_v6, %v4978_v58 }
 0x36b   : > { %5019 = vmatmul.bf16.gmra.mxu2 %v7932_v14  ;;  %5597 = vmatmul.bf16.gmra.mxu0 %v8216_v28  ;;  %v8979_v14 = vld [vmem:[%s11452_s3 + $0x90] sm:$0xff] }
 0x36c   : > { %v10840_v59 = vadd.f32 %v5555_v47, %v5067_v41  ;;  %v8228_v47 = vor.u32 %v8953_v50, %v8227_v57  ;;  %v8239_v50 = vld [vmem:[#allocation3 + $0x150] sm:$0xf]  ;;  %v7960_v57 = vor.u32 %v9029_v4, %v7959_v21 }
 0x36d   : > { %v10834_v27 = vpop.f32.mrf.mxu1  ;;  %5712 = vmatpush.bf16.msra.mxu2 %v8979_v14  ;;  %v9032_v14 = vld [vmem:[#allocation3 + $0x190] sm:$0xf0] }
 0x36e   : > { %5108 = vmatmul.bf16.gmra.mxu3 %v7936_v45  ;;  %v4980_v52 = vpop.f32.mrf.mxu2  ;;  %v8922_v45 = vld [vmem:[#allocation3 + $0x4c] sm:$0xf] }
 0x36f   : > { %v4981_v49 = vadd.f32 %v4980_v52, %v10724_v1  ;;  %v8112_v20 = vor.u32 %v8922_v45, %v8109_v8  ;;  %v7953_v52 = vld [vmem:[#allocation3 + $0x174] sm:$0xf0]  ;;  %v9125_v8 = vld [vmem:[%s11452_s3 + $0x220] sm:$0xff] }
 0x370   : > { %v5560_v56 = vpop.f32.mrf.mxu0  ;;  %6491 = vmatpush.bf16.msra.mxu1 %v9125_v8 }
 0x371   : > { %v5069_v39 = vpop.f32.mrf.mxu3 }
 0x372   : > { %v5070_v48 = vadd.f32 %v5069_v39, %v4981_v49  ;;  %v8956_v49 = vld [vmem:[#allocation3 + $0x158] sm:$0xf0] }
 0x373   : > { %v8240_v13 = vor.u32 %v8956_v49, %v8239_v50  ;;  %v7971_v49 = vld [vmem:[#allocation3 + $0x188] sm:$0xf]  ;;  %v8928_v50 = vld [vmem:[#allocation3 + $0x7c] sm:$0xf] }
 0x374   : > { %v10854_v3 = vadd.f32 %v5558_v11, %v5070_v48  ;;  %v9106_v48 = vld [vmem:[%s11452_s3 + $0x188] sm:$0xff] }
 0x375   : > { %v10845_v18 = vpop.f32.mrf.mxu1 }
 0x376   : > { %v4982_v1 = vpop.f32.mrf.mxu2 }
 0x377   : > { %v4983_v51 = vadd.f32 %v4982_v1, %v10736_v31  ;;  %v9109_v31 = vld [vmem:[%s11452_s3 + $0x1a0] sm:$0xff]  ;;  %v9027_v1 = vld [vmem:[#allocation3 + $0x16c] sm:$0xf] }
 0x378   : > { %5636 = vmatmul.bf16.gmra.mxu1 %v8100_v60  ;;  %v5563_v12 = vpop.f32.mrf.mxu0  ;;  %6313 = vmatpush.bf16.msra.mxu3 %v9109_v31 }
 0x379   : > { %v5071_v16 = vpop.f32.mrf.mxu3 }
 0x37a   : > { %v5072_v30 = vadd.f32 %v5071_v16, %v4983_v51  ;;  %v7956_v16 = vor.u32 %v9027_v1, %v7953_v52 }
 0x37b   : > { %5024 = vmatmul.bf16.gmra.mxu2 %v7944_v62  ;;  %5602 = vmatmul.bf16.gmra.mxu0 %v8228_v47 }
 0x37c   : > { %v10877_v29 = vadd.f32 %v5560_v56, %v5072_v30  ;;  %6314 = vmatpush.bf16.msra.mxu3 %v9108_v53  ;;  %v8978_v56 = vld [vmem:[%s11452_s3 + $0x88] sm:$0xff]  ;;  %v8925_v53 = vld [vmem:[#allocation3 + $0x64] sm:$0xf] }
 0x37d   : > { %v10865_v15 = vpop.f32.mrf.mxu1  ;;  %5713 = vmatpush.bf16.msra.mxu2 %v8978_v56  ;;  %v7972_v56 = vor.u32 %v9032_v14, %v7971_v49  ;;  %v8145_v14 = vld [vmem:[#allocation3 + $0x9c] sm:$0xf0]  ;;  %v8421_v49 = vld [vmem:[#allocation3 + $0x54] sm:$0xf0] }
 0x37e   : > { %5113 = vmatmul.bf16.gmra.mxu3 %v7948_v2  ;;  %v4985_v58 = vpop.f32.mrf.mxu2  ;;  %v8121_v2 = vld [vmem:[#allocation3 + $0x6c] sm:$0xf0] }
 0x37f   : > { %v4986_v6 = vadd.f32 %v4985_v58, %v10751_v10  ;;  %v9115_v10 = vld [vmem:[%s11452_s3 + $0x1d0] sm:$0xff]  ;;  %v8124_v40 = vor.u32 %v8925_v53, %v8121_v2  ;;  %v8407_v2 = vld [vmem:[#allocation3 + $0x30] sm:$0xf] }
 0x380   : > { %v5565_v11 = vpop.f32.mrf.mxu0  ;;  %6315 = vmatpush.bf16.msra.mxu3 %v9107_v24  ;;  %6404 = vmatpush.bf16.msra.mxu0 %v9115_v10  ;;  %v9030_v24 = vld [vmem:[#allocation3 + $0x184] sm:$0xf]  ;;  %v8251_v10 = vld [vmem:[#allocation3 + $0x168] sm:$0xf] }
 0x381   : > { %v5074_v63 = vpop.f32.mrf.mxu3  ;;  %5714 = vmatpush.bf16.msra.mxu2 %v8977_v44 }
 0x382   : > { %v5075_v41 = vadd.f32 %v5074_v63, %v4986_v6  ;;  %v7965_v6 = vld [vmem:[#allocation3 + $0x18c] sm:$0xf0]  ;;  %v8959_v63 = vld [vmem:[#allocation3 + $0x170] sm:$0xf0] }
 0x383   : > { %v7968_v52 = vor.u32 %v9030_v24, %v7965_v6  ;;  %v8931_v24 = vld [vmem:[#allocation3 + $0x94] sm:$0xf] }
 0x384   : > { %v10900_v17 = vadd.f32 %v5563_v12, %v5075_v41  ;;  %6316 = vmatpush.bf16.msra.mxu3 %v9106_v48  ;;  %6405 = vmatpush.bf16.msra.mxu0 %v9114_v46 }
 0x385   : > { %v10888_v28 = vpop.f32.mrf.mxu1 }
 0x386   : > { %v4987_v39 = vpop.f32.mrf.mxu2 }
 0x387   : > { %v4988_v55 = vadd.f32 %v4987_v39, %v10761_v19  ;;  %v9105_v19 = vld [vmem:[%s11452_s3 + $0x180] sm:$0xff]  ;;  %v8252_v39 = vor.u32 %v8959_v63, %v8251_v10  ;;  %v8148_v10 = vor.u32 %v8931_v24, %v8145_v14  ;;  %v9063_v14 = vld [vmem:[#allocation3 + $0x64] sm:$0xf] }
 0x388   : > { %5641 = vmatmul.bf16.gmra.mxu1 %v8112_v20  ;;  %v5568_v60 = vpop.f32.mrf.mxu0  ;;  %6317 = vmatpush.bf16.msra.mxu3 %v9105_v19  ;;  %v8409_v19 = vld [vmem:[#allocation3 + $0x3c] sm:$0xf0] }
 0x389   : > { %v5076_v36 = vpop.f32.mrf.mxu3  ;;  %6406 = vmatpush.bf16.msra.mxu0 %v9113_v22 }
 0x38a   : > { %v5077_v51 = vadd.f32 %v5076_v36, %v4988_v55 }
 0x38b   : > { %5029 = vmatmul.bf16.gmra.mxu2 %v7956_v16  ;;  %5607 = vmatmul.bf16.gmra.mxu0 %v8240_v13  ;;  %v8079_v16 = vld [vmem:[#allocation3 + $0x8] sm:$0xf]  ;;  %v8915_v13 = vld [vmem:[#allocation3 + $0x10] sm:$0xf0] }
 0x38c   : > { %v10914_v31 = vadd.f32 %v5565_v11, %v5077_v51 }
 0x38d   : > { %v10911_v12 = vpop.f32.mrf.mxu1 }
 0x38e   : > { %5118 = vmatmul.bf16.gmra.mxu3 %v7960_v57  ;;  %v4990_v30 = vpop.f32.mrf.mxu2 }
 0x38f   : > { %v4991_v62 = vadd.f32 %v4990_v30, %v10775_v38  ;;  %v8080_v30 = vor.u32 %v8915_v13, %v8079_v16 }
 0x390   : > { %v5570_v37 = vpop.f32.mrf.mxu0 }
 0x391   : > { %v5079_v47 = vpop.f32.mrf.mxu3 }
 0x392   : > { %v5080_v34 = vadd.f32 %v5079_v47, %v4991_v62  ;;  %v9057_v47 = vld [vmem:[#allocation3 + $0x34] sm:$0xf] }
 0x393   : > { %v8412_v53 = vor.u32 %v9057_v47, %v8409_v19  ;;  %v8934_v47 = vld [vmem:[#allocation3 + $0xac] sm:$0xf] }
 0x394   : > { %v10922_v45 = vadd.f32 %v5568_v60, %v5080_v34  ;;  %v8133_v60 = vld [vmem:[#allocation3 + $0x84] sm:$0xf0] }
 0x395   : > { %v10916_v54 = vpop.f32.mrf.mxu1  ;;  %v8136_v51 = vor.u32 %v8928_v50, %v8133_v60 }
 0x396   : > { %v4992_v58 = vpop.f32.mrf.mxu2 }
 0x397   : > { %v4993_v38 = vadd.f32 %v4992_v58, %v10790_v5 }
 0x398   : > { %5646 = vmatmul.bf16.gmra.mxu1 %v8124_v40  ;;  %v5573_v11 = vpop.f32.mrf.mxu0 }
 0x399   : > { %v5081_v41 = vpop.f32.mrf.mxu3 }
 0x39a   : > { %v5082_v20 = vadd.f32 %v5081_v41, %v4993_v38 }
 0x39b   : > { %5034 = vmatmul.bf16.gmra.mxu2 %v7968_v52  ;;  %5612 = vmatmul.bf16.gmra.mxu0 %v8252_v39  ;;  %v8918_v52 = vld [vmem:[#allocation3 + $0x28] sm:$0xf0] }
 0x39c   : > { %v10927_v4 = vadd.f32 %v5570_v37, %v5082_v20  ;;  %v9124_v39 = vld [vmem:[%s11452_s3 + $0x218] sm:$0xff] }
 0x39d   : > { %v10924_v48 = vpop.f32.mrf.mxu1  ;;  %6492 = vmatpush.bf16.msra.mxu1 %v9124_v39 }
 0x39e   : > { %5123 = vmatmul.bf16.gmra.mxu3 %v7972_v56  ;;  %v4995_v46 = vpop.f32.mrf.mxu2 }
 0x39f   : > { %v4996_v5 = vadd.f32 %v4995_v46, %v10797_v32  ;;  %v9058_v32 = vld [vmem:[#allocation3 + $0x38] sm:$0xf0]  ;;  %v9061_v46 = vld [vmem:[#allocation3 + $0x50] sm:$0xf0] }
 0x3a0   : > { %v5575_v36 = vpop.f32.mrf.mxu0  ;;  %v8408_v40 = vor.u32 %v9058_v32, %v8407_v2  ;;  %v8157_v32 = vld [vmem:[#allocation3 + $0xb4] sm:$0xf0] }
 0x3a1   : > { %v5084_v55 = vpop.f32.mrf.mxu3 }
 0x3a2   : > { %v5085_v1 = vadd.f32 %v5084_v55, %v4996_v5  ;;  %v8091_v55 = vld [vmem:[#allocation3 + $0x20] sm:$0xf] }
 0x3a3   : > { %v8092_v50 = vor.u32 %v8918_v52, %v8091_v55 }
 0x3a4   : > { %v10932_v37 = vadd.f32 %v5573_v11, %v5085_v1 }
 0x3a5   : > { %v10929_v21 = vpop.f32.mrf.mxu1 }
 0x3a6   : > { %v4997_v44 = vpop.f32.mrf.mxu2 }
 0x3a7   : > { %v4998_v22 = vadd.f32 %v4997_v44, %v10802_v35 }
 0x3a8   : > { %5651 = vmatmul.bf16.gmra.mxu1 %v8136_v51  ;;  %v5578_v62 = vpop.f32.mrf.mxu0  ;;  %v8419_v51 = vld [vmem:[#allocation3 + $0x48] sm:$0xf] }
 0x3a9   : > { %v5086_v57 = vpop.f32.mrf.mxu3  ;;  %v8420_v13 = vor.u32 %v9061_v46, %v8419_v51  ;;  %v8937_v51 = vld [vmem:[#allocation3 + $0xc4] sm:$0xf] }
 0x3aa   : > { %v5087_v34 = vadd.f32 %v5086_v57, %v4998_v22 }
 0x3ab   : > { %5715 = vmatmul.bf16.vlgmr.msra.gmra.mxu2 %v8080_v30  ;;  %6407 = vmatmul.bf16.vlgmr.msra.gmra.mxu0 %v8412_v53  ;;  %v8921_v53 = vld [vmem:[#allocation3 + $0x40] sm:$0xf0] }
 0x3ac   : > { %v10939_v38 = vadd.f32 %v5575_v36, %v5087_v34  ;;  %v9060_v36 = vld [vmem:[#allocation3 + $0x4c] sm:$0xf]  ;;  %v8160_v34 = vor.u32 %v8934_v47, %v8157_v32 }
 0x3ad   : > { %v10934_v58 = vpop.f32.mrf.mxu1  ;;  %v8424_v16 = vor.u32 %v9060_v36, %v8421_v49  ;;  %v8169_v36 = vld [vmem:[#allocation3 + $0xcc] sm:$0xf0] }
 0x3ae   : > { %6318 = vmatmul.bf16.vlgmr.msra.gmra.mxu3 %v8408_v40  ;;  %v5000_v6 = vpop.f32.mrf.mxu2  ;;  %v8433_v40 = vld [vmem:[#allocation3 + $0x6c] sm:$0xf0] }
 0x3af   : > { %v5001_v63 = vadd.f32 %v5000_v6, %v10813_v25  ;;  %v8436_v52 = vor.u32 %v9063_v14, %v8433_v40  ;;  %v9066_v40 = vld [vmem:[#allocation3 + $0x7c] sm:$0xf] }
 0x3b0   : > { %v10937_v8 = vpop.f32.mrf.mxu0 }
 0x3b1   : > { %v5089_v35 = vpop.f32.mrf.mxu3 }
 0x3b2   : > { %v5090_v41 = vadd.f32 %v5089_v35, %v5001_v63  ;;  %v9064_v35 = vld [vmem:[#allocation3 + $0x68] sm:$0xf0] }
 0x3b4   : > { %v10949_v1 = vadd.f32 %v5578_v62, %v5090_v41 }
 0x3b5   : > { %v10941_v11 = vpop.f32.mrf.mxu1 }
 0x3b6   : > { %v5002_v20 = vpop.f32.mrf.mxu2 }
 0x3b7   : > { %v5003_v25 = vadd.f32 %v5002_v20, %v10824_v7  ;;  %v8431_v20 = vld [vmem:[#allocation3 + $0x60] sm:$0xf] }
 0x3b8   : > { %5656 = vmatmul.bf16.gmra.mxu1 %v8148_v10  ;;  %v10947_v5 = vpop.f32.mrf.mxu0  ;;  %v8432_v49 = vor.u32 %v9064_v35, %v8431_v20 }
 0x3b9   : > { %v5091_v56 = vpop.f32.mrf.mxu3 }
 0x3ba   : > { %v10951_v60 = vadd.f32 %v5091_v56, %v5003_v25 }
 0x3bb   : > { %5720 = vmatmul.bf16.gmra.mxu2 %v8092_v50  ;;  %6412 = vmatmul.bf16.gmra.mxu0 %v8424_v16 }
 0x3bd   : > { %v10953_v44 = vpop.f32.mrf.mxu1 }
 0x3be   : > { %6323 = vmatmul.bf16.gmra.mxu3 %v8420_v13  ;;  %v5005_v7 = vpop.f32.mrf.mxu2  ;;  %v8172_v13 = vor.u32 %v8937_v51, %v8169_v36 }
 0x3bf   : > { %v5006_v19 = vadd.f32 %v5005_v7, %v10829_v9  ;;  %v8103_v9 = vld [vmem:[#allocation3 + $0x38] sm:$0xf] }
 0x3c0   : > { %v10956_v57 = vpop.f32.mrf.mxu0  ;;  %v8104_v10 = vor.u32 %v8921_v53, %v8103_v9  ;;  %v8115_v53 = vld [vmem:[#allocation3 + $0x50] sm:$0xf] }
 0x3c1   : > { %v5094_v22 = vpop.f32.mrf.mxu3 }
 0x3c2   : > { %v10958_v30 = vadd.f32 %v5094_v22, %v5006_v19  ;;  %v8924_v19 = vld [vmem:[#allocation3 + $0x58] sm:$0xf0]  ;;  %v8445_v22 = vld [vmem:[#allocation3 + $0x84] sm:$0xf0] }
 0x3c3   : > { %v8448_v35 = vor.u32 %v9066_v40, %v8445_v22  ;;  %v9070_v22 = vld [vmem:[#allocation3 + $0x98] sm:$0xf0] }
 0x3c5   : > { %v10960_v62 = vpop.f32.mrf.mxu1 }
 0x3c6   : > { %v5007_v2 = vpop.f32.mrf.mxu2 }
 0x3c7   : > { %v5008_v6 = vadd.f32 %v5007_v2, %v10834_v27 }
 0x3c8   : > { %5661 = vmatmul.bf16.gmra.mxu1 %v8160_v34  ;;  %v10963_v41 = vpop.f32.mrf.mxu0  ;;  %v9067_v34 = vld [vmem:[#allocation3 + $0x80] sm:$0xf0] }
 0x3c9   : > { %v5096_v63 = vpop.f32.mrf.mxu3 }
 0x3ca   : > { %v10965_v24 = vadd.f32 %v5096_v63, %v5008_v6  ;;  %v8116_v6 = vor.u32 %v8924_v19, %v8115_v53  ;;  %v8443_v63 = vld [vmem:[#allocation3 + $0x78] sm:$0xf]  ;;  %v8455_v53 = vld [vmem:[#allocation3 + $0x90] sm:$0xf] }
 0x3cb   : > { %5725 = vmatmul.bf16.gmra.mxu2 %v8104_v10  ;;  %6417 = vmatmul.bf16.gmra.mxu0 %v8436_v52  ;;  %v8444_v9 = vor.u32 %v9067_v34, %v8443_v63 }
 0x3cd   : > { %v10967_v39 = vpop.f32.mrf.mxu1 }
 0x3ce   : > { %6328 = vmatmul.bf16.gmra.mxu3 %v8432_v49  ;;  %v5010_v25 = vpop.f32.mrf.mxu2 }
 0x3cf   : > { %v5011_v27 = vadd.f32 %v5010_v25, %v10845_v18  ;;  %v9123_v18 = vld [vmem:[%s11452_s3 + $0x210] sm:$0xff] }
 0x3d0   : > { %v10970_v46 = vpop.f32.mrf.mxu0  ;;  %6493 = vmatpush.bf16.msra.mxu1 %v9123_v18 }
 0x3d1   : > { %v5099_v56 = vpop.f32.mrf.mxu3 }
 0x3d2   : > { %v10972_v55 = vadd.f32 %v5099_v56, %v5011_v27  ;;  %v8181_v56 = vld [vmem:[#allocation3 + $0xe4] sm:$0xf0] }
 0x3d5   : > { %v5627_v50 = vpop.f32.mrf.mxu1 }
 0x3d6   : > { %v10975_v16 = vadd.f32 %v5627_v50, %v10780_v42  ;;  %v5012_v7 = vpop.f32.mrf.mxu2  ;;  %v8940_v50 = vld [vmem:[#allocation3 + $0xdc] sm:$0xf] }
 0x3d7   : > { %v5013_v32 = vadd.f32 %v5012_v7, %v10865_v15  ;;  %v10990_v15 = vadd.f32 %v10937_v8, %v10951_v60  ;;  %v8927_v60 = vld [vmem:[#allocation3 + $0x70] sm:$0xf0] }
 0x3d8   : > { %5666 = vmatmul.bf16.gmra.mxu1 %v8172_v13  ;;  %v10981_v2 = vpop.f32.mrf.mxu0  ;;  %v11002_v13 = vadd.f32 %v10947_v5, %v10958_v30 }
 0x3d9   : > { %v5101_v47 = vpop.f32.mrf.mxu3 }
 0x3da   : > { %v10983_v42 = vadd.f32 %v5101_v47, %v5013_v32  ;;  %v8127_v32 = vld [vmem:[#allocation3 + $0x68] sm:$0xf]  ;;  %v9069_v47 = vld [vmem:[#allocation3 + $0x94] sm:$0xf] }
 0x3db   : > { %5730 = vmatmul.bf16.gmra.mxu2 %v8116_v6  ;;  %6422 = vmatmul.bf16.gmra.mxu0 %v8448_v35  ;;  %v8456_v6 = vor.u32 %v9070_v22, %v8455_v53 }
 0x3dd   : > { %v5629_v14 = vpop.f32.mrf.mxu1 }
 0x3de   : > { %v10986_v10 = vadd.f32 %v5629_v14, %v10792_v26  ;;  %6333 = vmatmul.bf16.gmra.mxu3 %v8444_v9  ;;  %v5015_v20 = vpop.f32.mrf.mxu2  ;;  %v8184_v26 = vor.u32 %v8940_v50, %v8181_v56  ;;  %v8943_v56 = vld [vmem:[#allocation3 + $0xf4] sm:$0xf]  ;;  %v11026_v50 = vadd.f32 %v10963_v41, %v10972_v55  ;;  %v8467_v55 = vld [vmem:[#allocation3 + $0xa8] sm:$0xf] }
 0x3df   : > { %v5016_v52 = vadd.f32 %v5015_v20, %v10888_v28  ;;  %v8457_v28 = vld [vmem:[#allocation3 + $0x9c] sm:$0xf0] }
 0x3e0   : > { %v10993_v25 = vpop.f32.mrf.mxu0  ;;  %v8460_v40 = vor.u32 %v9069_v47, %v8457_v28  ;;  %v9073_v28 = vld [vmem:[#allocation3 + $0xb0] sm:$0xf0] }
 0x3e1   : > { %v5104_v49 = vpop.f32.mrf.mxu3  ;;  %v8468_v47 = vor.u32 %v9073_v28, %v8467_v55 }
 0x3e2   : > { %v10995_v27 = vadd.f32 %v5104_v49, %v5016_v52  ;;  %v8193_v52 = vld [vmem:[#allocation3 + $0xfc] sm:$0xf0] }
 0x3e5   : > { %v5632_v36 = vpop.f32.mrf.mxu1 }
 0x3e6   : > { %v10998_v51 = vadd.f32 %v5632_v36, %v10800_v0  ;;  %v5017_v8 = vpop.f32.mrf.mxu2  ;;  %v8128_v0 = vor.u32 %v8927_v60, %v8127_v32 }
 0x3e7   : > { %v5018_v7 = vadd.f32 %v5017_v8, %v10911_v12  ;;  %v11014_v12 = vadd.f32 %v10956_v57, %v10965_v24  ;;  %v8930_v24 = vld [vmem:[#allocation3 + $0x88] sm:$0xf0] }
 0x3e8   : > { %5671 = vmatmul.bf16.gmra.mxu1 %v8184_v26  ;;  %v11005_v18 = vpop.f32.mrf.mxu0  ;;  %v9122_v26 = vld [vmem:[%s11452_s3 + $0x208] sm:$0xff] }
 0x3e9   : > { %v5106_v19 = vpop.f32.mrf.mxu3  ;;  %6494 = vmatpush.bf16.msra.mxu1 %v9122_v26 }
 0x3ea   : > { %v11007_v34 = vadd.f32 %v5106_v19, %v5018_v7  ;;  %v9072_v19 = vld [vmem:[#allocation3 + $0xac] sm:$0xf] }
 0x3eb   : > { %5735 = vmatmul.bf16.gmra.mxu2 %v8128_v0  ;;  %6427 = vmatmul.bf16.gmra.mxu0 %v8460_v40 }
 0x3ed   : > { %v5634_v5 = vpop.f32.mrf.mxu1 }
 0x3ee   : > { %v11010_v30 = vadd.f32 %v5634_v5, %v10808_v23  ;;  %6338 = vmatmul.bf16.gmra.mxu3 %v8456_v6  ;;  %v5020_v63 = vpop.f32.mrf.mxu2  ;;  %v8196_v23 = vor.u32 %v8943_v56, %v8193_v52 }
 0x3ef   : > { %v5021_v35 = vadd.f32 %v5020_v63, %v10916_v54  ;;  %v8469_v54 = vld [vmem:[#allocation3 + $0xb4] sm:$0xf0] }
 0x3f0   : > { %v11017_v14 = vpop.f32.mrf.mxu0  ;;  %v8472_v32 = vor.u32 %v9072_v19, %v8469_v54  ;;  %v9076_v54 = vld [vmem:[#allocation3 + $0xc8] sm:$0xf0] }
 0x3f1   : > { %v5109_v9 = vpop.f32.mrf.mxu3 }
 0x3f2   : > { %v11019_v20 = vadd.f32 %v5109_v9, %v5021_v35  ;;  %v8205_v9 = vld [vmem:[#allocation3 + $0x114] sm:$0xf0] }
 0x3f5   : > { %v5637_v49 = vpop.f32.mrf.mxu1 }
 0x3f6   : > { %v11022_v36 = vadd.f32 %v5637_v49, %v10822_v61  ;;  %v5022_v57 = vpop.f32.mrf.mxu2  ;;  %v8139_v61 = vld [vmem:[#allocation3 + $0x80] sm:$0xf]  ;;  %v8946_v49 = vld [vmem:[#allocation3 + $0x10c] sm:$0xf] }
 0x3f7   : > { %v5023_v8 = vadd.f32 %v5022_v57, %v10924_v48  ;;  %v8140_v41 = vor.u32 %v8930_v24, %v8139_v61  ;;  %v11041_v48 = vadd.f32 %v10970_v46, %v10983_v42  ;;  %v8933_v42 = vld [vmem:[#allocation3 + $0xa0] sm:$0xf0]  ;;  %v8479_v61 = vld [vmem:[#allocation3 + $0xc0] sm:$0xf] }
 0x3f8   : > { %5676 = vmatmul.bf16.gmra.mxu1 %v8196_v23  ;;  %v11032_v7 = vpop.f32.mrf.mxu0  ;;  %v11053_v23 = vadd.f32 %v10981_v2, %v10995_v27 }
 0x3f9   : > { %v5111_v60 = vpop.f32.mrf.mxu3 }
 0x3fa   : > { %v11034_v22 = vadd.f32 %v5111_v60, %v5023_v8  ;;  %v8151_v8 = vld [vmem:[#allocation3 + $0x98] sm:$0xf]  ;;  %v9075_v60 = vld [vmem:[#allocation3 + $0xc4] sm:$0xf] }
 0x3fb   : > { %5740 = vmatmul.bf16.gmra.mxu2 %v8140_v41  ;;  %6432 = vmatmul.bf16.gmra.mxu0 %v8472_v32  ;;  %v8480_v41 = vor.u32 %v9076_v54, %v8479_v61 }
 0x3fd   : > { %v5639_v0 = vpop.f32.mrf.mxu1 }
 0x3fe   : > { %v11037_v53 = vadd.f32 %v5639_v0, %v10827_v33  ;;  %6343 = vmatmul.bf16.gmra.mxu3 %v8468_v47  ;;  %v5025_v40 = vpop.f32.mrf.mxu2  ;;  %v8208_v33 = vor.u32 %v8946_v49, %v8205_v9  ;;  %v8949_v9 = vld [vmem:[#allocation3 + $0x124] sm:$0xf]  ;;  %v11077_v49 = vadd.f32 %v11005_v18, %v11019_v20  ;;  %v8491_v20 = vld [vmem:[#allocation3 + $0xd8] sm:$0xf] }
 0x3ff   : > { %v5026_v6 = vadd.f32 %v5025_v40, %v10929_v21  ;;  %v8481_v21 = vld [vmem:[#allocation3 + $0xcc] sm:$0xf0] }
 0x400   : > { %v11044_v63 = vpop.f32.mrf.mxu0  ;;  %v8484_v19 = vor.u32 %v9075_v60, %v8481_v21  ;;  %v9079_v21 = vld [vmem:[#allocation3 + $0xe0] sm:$0xf0] }
 0x401   : > { %v5114_v5 = vpop.f32.mrf.mxu3  ;;  %v8492_v60 = vor.u32 %v9079_v21, %v8491_v20 }
 0x402   : > { %v11046_v35 = vadd.f32 %v5114_v5, %v5026_v6  ;;  %v8217_v6 = vld [vmem:[#allocation3 + $0x12c] sm:$0xf0] }
 0x405   : > { %v5642_v52 = vpop.f32.mrf.mxu1 }
 0x406   : > { %v11049_v56 = vadd.f32 %v5642_v52, %v10832_v43  ;;  %v5027_v46 = vpop.f32.mrf.mxu2  ;;  %v8152_v43 = vor.u32 %v8933_v42, %v8151_v8 }
 0x407   : > { %v5028_v57 = vadd.f32 %v5027_v46, %v10934_v58  ;;  %v11065_v58 = vadd.f32 %v10993_v25, %v11007_v34  ;;  %v8936_v34 = vld [vmem:[#allocation3 + $0xb8] sm:$0xf0] }
 0x408   : > { %5681 = vmatmul.bf16.gmra.mxu1 %v8208_v33  ;;  %v11056_v26 = vpop.f32.mrf.mxu0  ;;  %v9121_v33 = vld [vmem:[%s11452_s3 + $0x200] sm:$0xff] }
 0x409   : > { %v5116_v24 = vpop.f32.mrf.mxu3  ;;  %6495 = vmatpush.bf16.msra.mxu1 %v9121_v33 }
 0x40a   : > { %v11058_v28 = vadd.f32 %v5116_v24, %v5028_v57  ;;  %v9078_v24 = vld [vmem:[#allocation3 + $0xdc] sm:$0xf] }
 0x40b   : > { %5745 = vmatmul.bf16.gmra.mxu2 %v8152_v43  ;;  %6437 = vmatmul.bf16.gmra.mxu0 %v8484_v19 }
 0x40d   : > { %v5644_v2 = vpop.f32.mrf.mxu1 }
 0x40e   : > { %v11061_v27 = vadd.f32 %v5644_v2, %v10840_v59  ;;  %6348 = vmatmul.bf16.gmra.mxu3 %v8480_v41  ;;  %v5030_v55 = vpop.f32.mrf.mxu2  ;;  %v8220_v59 = vor.u32 %v8949_v9, %v8217_v6 }
 0x40f   : > { %v5031_v32 = vadd.f32 %v5030_v55, %v10941_v11  ;;  %v8493_v11 = vld [vmem:[#allocation3 + $0xe4] sm:$0xf0] }
 0x410   : > { %v11068_v0 = vpop.f32.mrf.mxu0  ;;  %v8496_v8 = vor.u32 %v9078_v24, %v8493_v11  ;;  %v9082_v11 = vld [vmem:[#allocation3 + $0xf8] sm:$0xf0] }
 0x411   : > { %v5119_v47 = vpop.f32.mrf.mxu3 }
 0x412   : > { %v11070_v40 = vadd.f32 %v5119_v47, %v5031_v32  ;;  %v8229_v47 = vld [vmem:[#allocation3 + $0x144] sm:$0xf0] }
 0x415   : > { %v5647_v5 = vpop.f32.mrf.mxu1 }
 0x416   : > { %v11073_v52 = vadd.f32 %v5647_v5, %v10854_v3  ;;  %v5032_v25 = vpop.f32.mrf.mxu2  ;;  %v8163_v3 = vld [vmem:[#allocation3 + $0xb0] sm:$0xf]  ;;  %v8952_v5 = vld [vmem:[#allocation3 + $0x13c] sm:$0xf] }
 0x417   : > { %v5033_v46 = vadd.f32 %v5032_v25, %v10953_v44  ;;  %v8164_v18 = vor.u32 %v8936_v34, %v8163_v3  ;;  %v11092_v44 = vadd.f32 %v11017_v14, %v11034_v22  ;;  %v8939_v22 = vld [vmem:[#allocation3 + $0xd0] sm:$0xf0]  ;;  %v8503_v3 = vld [vmem:[#allocation3 + $0xf0] sm:$0xf] }
 0x418   : > { %5686 = vmatmul.bf16.gmra.mxu1 %v8220_v59  ;;  %v11083_v57 = vpop.f32.mrf.mxu0  ;;  %v11104_v59 = vadd.f32 %v11032_v7, %v11046_v35 }
 0x419   : > { %v5121_v42 = vpop.f32.mrf.mxu3 }
 0x41a   : > { %v11085_v54 = vadd.f32 %v5121_v42, %v5033_v46  ;;  %v8175_v46 = vld [vmem:[#allocation3 + $0xc8] sm:$0xf]  ;;  %v9081_v42 = vld [vmem:[#allocation3 + $0xf4] sm:$0xf] }
 0x41b   : > { %5750 = vmatmul.bf16.gmra.mxu2 %v8164_v18  ;;  %6442 = vmatmul.bf16.gmra.mxu0 %v8496_v8  ;;  %v8504_v18 = vor.u32 %v9082_v11, %v8503_v3 }
 0x41d   : > { %v5649_v43 = vpop.f32.mrf.mxu1 }
 0x41e   : > { %v11088_v61 = vadd.f32 %v5649_v43, %v10877_v29  ;;  %6353 = vmatmul.bf16.gmra.mxu3 %v8492_v60  ;;  %v5035_v19 = vpop.f32.mrf.mxu2  ;;  %v8232_v29 = vor.u32 %v8952_v5, %v8229_v47  ;;  %v8955_v47 = vld [vmem:[#allocation3 + $0x154] sm:$0xf]  ;;  %v11126_v5 = vadd.f32 %v11056_v26, %v11070_v40 }
 0x41f   : > { %v5036_v41 = vadd.f32 %v5035_v19, %v10960_v62  ;;  %v8505_v62 = vld [vmem:[#allocation3 + $0xfc] sm:$0xf0] }
 0x420   : > { %v11095_v55 = vpop.f32.mrf.mxu0  ;;  %v8508_v24 = vor.u32 %v9081_v42, %v8505_v62 }
 0x421   : > { %v5124_v2 = vpop.f32.mrf.mxu3 }
 0x422   : > { %v11097_v32 = vadd.f32 %v5124_v2, %v5036_v41  ;;  %v8241_v41 = vld [vmem:[#allocation3 + $0x15c] sm:$0xf0] }
 0x425   : > { %v5652_v6 = vpop.f32.mrf.mxu1 }
 0x426   : > { %v11100_v9 = vadd.f32 %v5652_v6, %v10900_v17  ;;  %v5037_v14 = vpop.f32.mrf.mxu2  ;;  %v8176_v17 = vor.u32 %v8939_v22, %v8175_v46  ;;  %v9085_v22 = vld [vmem:[#allocation3 + $0x110] sm:$0xf0] }
 0x427   : > { %v5038_v25 = vadd.f32 %v5037_v14, %v10967_v39  ;;  %v11114_v39 = vadd.f32 %v11044_v63, %v11058_v28  ;;  %v8942_v28 = vld [vmem:[#allocation3 + $0xe8] sm:$0xf0] }
 0x428   : > { %5691 = vmatmul.bf16.gmra.mxu1 %v8232_v29  ;;  %v6408_v33 = vpop.f32.mrf.mxu0 }
 0x429   : > { %v5126_v34 = vpop.f32.mrf.mxu3 }
 0x42a   : > { %v11107_v21 = vadd.f32 %v5126_v34, %v5038_v25  ;;  %v8187_v25 = vld [vmem:[#allocation3 + $0xe0] sm:$0xf]  ;;  %v9084_v34 = vld [vmem:[#allocation3 + $0x10c] sm:$0xf] }
 0x42b   : > { %5755 = vmatmul.bf16.gmra.mxu2 %v8176_v17  ;;  %6447 = vmatmul.bf16.gmra.mxu0 %v8508_v24  ;;  %v8188_v11 = vor.u32 %v8942_v28, %v8187_v25 }
 0x42d   : > { %v5654_v20 = vpop.f32.mrf.mxu1 }
 0x42e   : > { %v11110_v7 = vadd.f32 %v5654_v20, %v10914_v31  ;;  %6358 = vmatmul.bf16.gmra.mxu3 %v8504_v18  ;;  %v5716_v35 = vpop.f32.mrf.mxu2  ;;  %v8244_v31 = vor.u32 %v8955_v47, %v8241_v41  ;;  %v8253_v20 = vld [vmem:[#allocation3 + $0x174] sm:$0xf0] }
 0x42f   : > { %v11117_v8 = vadd.f32 %v5716_v35, %v10975_v16  ;;  %v8517_v16 = vld [vmem:[#allocation3 + $0x114] sm:$0xf0] }
 0x430   : > { %v6410_v19 = vpop.f32.mrf.mxu0  ;;  %v8520_v46 = vor.u32 %v9084_v34, %v8517_v16  ;;  %v8199_v16 = vld [vmem:[#allocation3 + $0xf8] sm:$0xf] }
 0x431   : > { %v6319_v60 = vpop.f32.mrf.mxu3 }
 0x432   : > { %v11119_v43 = vadd.f32 %v6408_v33, %v6319_v60  ;;  %v8515_v33 = vld [vmem:[#allocation3 + $0x108] sm:$0xf] }
 0x433   : > { %v8516_v42 = vor.u32 %v9085_v22, %v8515_v33  ;;  %v8527_v22 = vld [vmem:[#allocation3 + $0x120] sm:$0xf] }
 0x435   : > { %v5657_v2 = vpop.f32.mrf.mxu1 }
 0x436   : > { %v11122_v6 = vadd.f32 %v5657_v2, %v10922_v45  ;;  %v5718_v63 = vpop.f32.mrf.mxu2  ;;  %v11150_v2 = vadd.f32 %v11083_v57, %v11097_v32 }
 0x437   : > { %v11129_v29 = vadd.f32 %v5718_v63, %v10986_v10  ;;  %v11138_v10 = vadd.f32 %v11068_v0, %v11085_v54  ;;  %v8945_v54 = vld [vmem:[#allocation3 + $0x100] sm:$0xf0]  ;;  %v9088_v63 = vld [vmem:[#allocation3 + $0x128] sm:$0xf0] }
 0x438   : > { %5696 = vmatmul.bf16.gmra.mxu1 %v8244_v31  ;;  %v6413_v45 = vpop.f32.mrf.mxu0  ;;  %v8528_v34 = vor.u32 %v9088_v63, %v8527_v22  ;;  %v8539_v63 = vld [vmem:[#allocation3 + $0x138] sm:$0xf] }
 0x439   : > { %v6321_v14 = vpop.f32.mrf.mxu3 }
 0x43a   : > { %v11131_v62 = vadd.f32 %v6410_v19, %v6321_v14  ;;  %v8958_v19 = vld [vmem:[#allocation3 + $0x16c] sm:$0xf]  ;;  %v9087_v14 = vld [vmem:[#allocation3 + $0x124] sm:$0xf] }
 0x43b   : > { %5760 = vmatmul.bf16.gmra.mxu2 %v8188_v11  ;;  %6452 = vmatmul.bf16.gmra.mxu0 %v8520_v46 }
 0x43d   : > { %v5659_v26 = vpop.f32.mrf.mxu1 }
 0x43e   : > { %v11134_v40 = vadd.f32 %v5659_v26, %v10927_v4  ;;  %6363 = vmatmul.bf16.gmra.mxu3 %v8516_v42  ;;  %v5721_v17 = vpop.f32.mrf.mxu2  ;;  %v8256_v4 = vor.u32 %v8958_v19, %v8253_v20  ;;  %v9059_v26 = vld [vmem:[#allocation3 + $0x40] sm:$0xf0]  ;;  %v8541_v19 = vld [vmem:[#allocation3 + $0x144] sm:$0xf0] }
 0x43f   : > { %v11141_v3 = vadd.f32 %v5721_v17, %v10998_v51  ;;  %v8529_v51 = vld [vmem:[#allocation3 + $0x12c] sm:$0xf0] }
 0x440   : > { %v6415_v35 = vpop.f32.mrf.mxu0  ;;  %v8532_v25 = vor.u32 %v9087_v14, %v8529_v51  ;;  %v9090_v51 = vld [vmem:[#allocation3 + $0x13c] sm:$0xf] }
 0x441   : > { %v6324_v24 = vpop.f32.mrf.mxu3 }
 0x442   : > { %v11143_v18 = vadd.f32 %v6413_v45, %v6324_v24  ;;  %v8415_v24 = vld [vmem:[#allocation3 + $0x38] sm:$0xf] }
 0x445   : > { %v5662_v60 = vpop.f32.mrf.mxu1 }
 0x446   : > { %v11146_v41 = vadd.f32 %v5662_v60, %v10932_v37  ;;  %v5723_v0 = vpop.f32.mrf.mxu2  ;;  %v8200_v37 = vor.u32 %v8945_v54, %v8199_v16  ;;  %v8948_v60 = vld [vmem:[#allocation3 + $0x118] sm:$0xf0]  ;;  %v8211_v54 = vld [vmem:[#allocation3 + $0x110] sm:$0xf]  ;;  %v8544_v16 = vor.u32 %v9090_v51, %v8541_v19  ;;  %v8439_v51 = vld [vmem:[#allocation3 + $0x68] sm:$0xf] }
 0x447   : > { %v11153_v47 = vadd.f32 %v5723_v0, %v11010_v30  ;;  %v11162_v30 = vadd.f32 %v11095_v55, %v11107_v21 }
 0x448   : > { %5701 = vmatmul.bf16.gmra.mxu1 %v8256_v4  ;;  %v6418_v32 = vpop.f32.mrf.mxu0  ;;  %v9091_v4 = vld [vmem:[#allocation3 + $0x140] sm:$0xf0] }
 0x449   : > { %v6326_v31 = vpop.f32.mrf.mxu3 }
 0x44a   : > { %v11155_v28 = vadd.f32 %v6415_v35, %v6326_v31  ;;  %v8212_v31 = vor.u32 %v8948_v60, %v8211_v54 }
 0x44b   : > { %5765 = vmatmul.bf16.gmra.mxu2 %v8200_v37  ;;  %6457 = vmatmul.bf16.gmra.mxu0 %v8532_v25  ;;  %v9062_v25 = vld [vmem:[#allocation3 + $0x58] sm:$0xf0] }
 0x44d   : > { %v5664_v45 = vpop.f32.mrf.mxu1 }
 0x44e   : > { %v11158_v57 = vadd.f32 %v5664_v45, %v10939_v38  ;;  %6368 = vmatmul.bf16.gmra.mxu3 %v8528_v34  ;;  %v5726_v11 = vpop.f32.mrf.mxu2  ;;  %v8416_v38 = vor.u32 %v9059_v26, %v8415_v24  ;;  %v8427_v45 = vld [vmem:[#allocation3 + $0x50] sm:$0xf]  ;;  %v8951_v26 = vld [vmem:[#allocation3 + $0x130] sm:$0xf0] }
 0x44f   : > { %v11165_v33 = vadd.f32 %v5726_v11, %v11022_v36  ;;  %v8428_v11 = vor.u32 %v9062_v25, %v8427_v45 }
 0x450   : > { %v6420_v55 = vpop.f32.mrf.mxu0 }
 0x451   : > { %v6329_v46 = vpop.f32.mrf.mxu3 }
 0x452   : > { %v11167_v42 = vadd.f32 %v6418_v32, %v6329_v46 }
 0x455   : > { %v5667_v17 = vpop.f32.mrf.mxu1 }
 0x456   : > { %v11170_v20 = vadd.f32 %v5667_v17, %v10949_v1  ;;  %v5728_v35 = vpop.f32.mrf.mxu2  ;;  %v8540_v1 = vor.u32 %v9091_v4, %v8539_v63  ;;  %v8553_v17 = vld [vmem:[#allocation3 + $0x15c] sm:$0xf0]  ;;  %v9065_v4 = vld [vmem:[#allocation3 + $0x70] sm:$0xf0]  ;;  %v8954_v63 = vld [vmem:[#allocation3 + $0x148] sm:$0xf0] }
 0x457   : > { %v11173_v21 = vadd.f32 %v5728_v35, %v11037_v53  ;;  %v9093_v35 = vld [vmem:[#allocation3 + $0x154] sm:$0xf] }
 0x458   : > { %6496 = vmatmul.bf16.vlgmr.msra.gmra.mxu1 %v8416_v38  ;;  %v8223_v38 = vld [vmem:[#allocation3 + $0x128] sm:$0xf]  ;;  %v8556_v19 = vor.u32 %v9093_v35, %v8553_v17  ;;  %v8451_v17 = vld [vmem:[#allocation3 + $0x80] sm:$0xf]  ;;  %v8957_v35 = vld [vmem:[#allocation3 + $0x160] sm:$0xf0] }
 0x459   : > { %v6331_v36 = vpop.f32.mrf.mxu3  ;;  %v8224_v60 = vor.u32 %v8951_v26, %v8223_v38 }
 0x45a   : > { %v11175_v0 = vadd.f32 %v6420_v55, %v6331_v36 }
 0x45b   : > { %5770 = vmatmul.bf16.gmra.mxu2 %v8212_v31  ;;  %6462 = vmatmul.bf16.gmra.mxu0 %v8544_v16  ;;  %v8440_v31 = vor.u32 %v9065_v4, %v8439_v51  ;;  %v8565_v16 = vld [vmem:[#allocation3 + $0x174] sm:$0xf0]  ;;  %v8575_v4 = vld [vmem:[#allocation3 + $0x180] sm:$0xf] }
 0x45d   : > { %v5669_v14 = vpop.f32.mrf.mxu1 }
 0x45e   : > { %v11178_v37 = vadd.f32 %v5669_v14, %v10990_v15  ;;  %6373 = vmatmul.bf16.gmra.mxu3 %v8540_v1  ;;  %v5731_v22 = vpop.f32.mrf.mxu2  ;;  %v9094_v15 = vld [vmem:[#allocation3 + $0x158] sm:$0xf0]  ;;  %v9097_v1 = vld [vmem:[#allocation3 + $0x170] sm:$0xf0]  ;;  %v8235_v14 = vld [vmem:[#allocation3 + $0x140] sm:$0xf] }
 0x45f   : > { %v11181_v53 = vadd.f32 %v5731_v22, %v11049_v56  ;;  %v8551_v56 = vld [vmem:[#allocation3 + $0x150] sm:$0xf]  ;;  %v9096_v22 = vld [vmem:[#allocation3 + $0x16c] sm:$0xf]  ;;  %v8236_v25 = vor.u32 %v8954_v63, %v8235_v14 }
 0x460   : > { %v8552_v55 = vor.u32 %v9094_v15, %v8551_v56  ;;  %v8568_v45 = vor.u32 %v9096_v22, %v8565_v16  ;;  %v9100_v56 = vld [vmem:[#allocation3 + $0x188] sm:$0xf0]  ;;  %v8463_v16 = vld [vmem:[#allocation3 + $0x98] sm:$0xf]  ;;  %v8960_v22 = vld [vmem:[#allocation3 + $0x178] sm:$0xf0] }
 0x461   : > { %v8576_v51 = vor.u32 %v9100_v56, %v8575_v4  ;;  %v8487_v56 = vld [vmem:[#allocation3 + $0xc8] sm:$0xf] }
 0x465   : > { %v5672_v34 = vpop.f32.mrf.mxu1 }
 0x466   : > { %v11184_v32 = vadd.f32 %v5672_v34, %v11002_v13  ;;  %v5733_v46 = vpop.f32.mrf.mxu2  ;;  %v8563_v34 = vld [vmem:[#allocation3 + $0x168] sm:$0xf] }
 0x467   : > { %v11187_v24 = vadd.f32 %v5733_v46, %v11061_v27 }
 0x468   : > { %6501 = vmatmul.bf16.gmra.mxu1 %v8428_v11  ;;  %v8564_v11 = vor.u32 %v9097_v1, %v8563_v34 }
 0x46b   : > { %5775 = vmatmul.bf16.gmra.mxu2 %v8224_v60  ;;  %6467 = vmatmul.bf16.gmra.mxu0 %v8556_v19  ;;  %v8577_v60 = vld [vmem:[#allocation3 + $0x18c] sm:$0xf0]  ;;  %v8247_v19 = vld [vmem:[#allocation3 + $0x158] sm:$0xf] }
 0x46d   : > { %v5674_v36 = vpop.f32.mrf.mxu1 }
 0x46e   : > { %v11190_v13 = vadd.f32 %v5674_v36, %v11014_v12  ;;  %6378 = vmatmul.bf16.gmra.mxu3 %v8552_v55  ;;  %v9099_v55 = vld [vmem:[#allocation3 + $0x184] sm:$0xf]  ;;  %v8248_v36 = vor.u32 %v8957_v35, %v8247_v19  ;;  %v9077_v35 = vld [vmem:[#allocation3 + $0xd0] sm:$0xf0] }
 0x475   : > { %v5677_v54 = vpop.f32.mrf.mxu1 }
 0x476   : > { %v11193_v27 = vadd.f32 %v5677_v54, %v11026_v50  ;;  %v9068_v50 = vld [vmem:[#allocation3 + $0x88] sm:$0xf0]  ;;  %v8580_v54 = vor.u32 %v9099_v55, %v8577_v60 }
 0x477   : > { %v8452_v38 = vor.u32 %v9068_v50, %v8451_v17  ;;  %v8475_v50 = vld [vmem:[#allocation3 + $0xb0] sm:$0xf] }
 0x478   : > { %6506 = vmatmul.bf16.gmra.mxu1 %v8440_v31 }
 0x47b   : > { %5780 = vmatmul.bf16.gmra.mxu2 %v8236_v25  ;;  %6472 = vmatmul.bf16.gmra.mxu0 %v8568_v45  ;;  %v8259_v25 = vld [vmem:[#allocation3 + $0x170] sm:$0xf] }
 0x47c   : > { %v8260_v34 = vor.u32 %v8960_v22, %v8259_v25 }
 0x47d   : > { %v5679_v12 = vpop.f32.mrf.mxu1 }
 0x47e   : > { %v11196_v46 = vadd.f32 %v5679_v12, %v11041_v48  ;;  %6383 = vmatmul.bf16.gmra.mxu3 %v8564_v11  ;;  %v9074_v12 = vld [vmem:[#allocation3 + $0xb8] sm:$0xf0] }
 0x47f   : > { %v8476_v17 = vor.u32 %v9074_v12, %v8475_v50 }
 0x485   : > { %v5682_v26 = vpop.f32.mrf.mxu1 }
 0x486   : > { %v11199_v15 = vadd.f32 %v5682_v26, %v11053_v23  ;;  %v9071_v23 = vld [vmem:[#allocation3 + $0xa0] sm:$0xf0] }
 0x487   : > { %v8464_v14 = vor.u32 %v9071_v23, %v8463_v16  ;;  %v11228_v23 = vpop.f32.mrf.mxu0 }
 0x488   : > { %6511 = vmatmul.bf16.gmra.mxu1 %v8452_v38 }
 0x48b   : > { %5785 = vmatmul.bf16.gmra.mxu2 %v8248_v36  ;;  %6477 = vmatmul.bf16.gmra.mxu0 %v8580_v54  ;;  %v8499_v54 = vld [vmem:[#allocation3 + $0xe0] sm:$0xf] }
 0x48d   : > { %v5684_v48 = vpop.f32.mrf.mxu1 }
 0x48e   : > { %v11202_v31 = vadd.f32 %v5684_v48, %v11065_v58  ;;  %6388 = vmatmul.bf16.gmra.mxu3 %v8576_v51 }
 0x495   : > { %v5687_v63 = vpop.f32.mrf.mxu1 }
 0x496   : > { %v11205_v1 = vadd.f32 %v5687_v63, %v11077_v49  ;;  %v11230_v63 = vpop.f32.mrf.mxu3 }
 0x498   : > { %6516 = vmatmul.bf16.gmra.mxu1 %v8464_v14  ;;  %v8511_v14 = vld [vmem:[#allocation3 + $0xf8] sm:$0xf] }
 0x49b   : > { %5790 = vmatmul.bf16.gmra.mxu2 %v8260_v34 }
 0x49d   : > { %v5689_v45 = vpop.f32.mrf.mxu1 }
 0x49e   : > { %v11208_v11 = vadd.f32 %v5689_v45, %v11092_v44  ;;  %v8488_v44 = vor.u32 %v9077_v35, %v8487_v56  ;;  %v11242_v12 = vpop.f32.mrf.mxu3  ;;  %v9086_v35 = vld [vmem:[#allocation3 + $0x118] sm:$0xf0]  ;;  %v11258_v56 = vpop.f32.mrf.mxu2 }
 0x4a5   : > { %v5692_v58 = vpop.f32.mrf.mxu1 }
 0x4a6   : > { %v11211_v26 = vadd.f32 %v5692_v58, %v11104_v59  ;;  %v9080_v59 = vld [vmem:[#allocation3 + $0xe8] sm:$0xf0] }
 0x4a8   : > { %6521 = vmatmul.bf16.gmra.mxu1 %v8476_v17 }
 0x4ad   : > { %v5694_v49 = vpop.f32.mrf.mxu1 }
 0x4ae   : > { %v11214_v38 = vadd.f32 %v5694_v49, %v11114_v39  ;;  %v8500_v39 = vor.u32 %v9080_v59, %v8499_v54  ;;  %v11261_v59 = vpop.f32.mrf.mxu3  ;;  %v8523_v54 = vld [vmem:[#allocation3 + $0x110] sm:$0xf] }
 0x4b5   : > { %v5697_v60 = vpop.f32.mrf.mxu1 }
 0x4b6   : > { %v11217_v19 = vadd.f32 %v5697_v60, %v11126_v5 }
 0x4b8   : > { %6526 = vmatmul.bf16.gmra.mxu1 %v8488_v44  ;;  %v9159_v44 = vld [vmem:[%s9257_s6 + $0x8] sm:$0xff] }
 0x4bd   : > { %v5699_v55 = vpop.f32.mrf.mxu1 }
 0x4be   : > { %v11220_v36 = vadd.f32 %v5699_v55, %v11138_v10  ;;  %v9083_v10 = vld [vmem:[#allocation3 + $0x100] sm:$0xf0] }
 0x4bf   : > { %v8512_v25 = vor.u32 %v9083_v10, %v8511_v14  ;;  %v9160_v10 = vld [vmem:[%s9257_s6 + $0x10] sm:$0xff] }
 0x4c5   : > { %v5702_v4 = vpop.f32.mrf.mxu1 }
 0x4c6   : > { %v11223_v51 = vadd.f32 %v5702_v4, %v11150_v2  ;;  %v11236_v2 = vld [vmem:[%s11453_s4] ss:$0 sm:$0xff] }
 0x4c8   : > { %6531 = vmatmul.bf16.gmra.mxu1 %v8500_v39 }
 0x4cd   : > { %v5704_v48 = vpop.f32.mrf.mxu1 }
 0x4ce   : > { %v11226_v5 = vadd.f32 %v5704_v48, %v11162_v30  ;;  %v11239_v30 = vpop.f32.mrf.mxu0 }
 0x4d5   : > { %v6497_v16 = vpop.f32.mrf.mxu1 }
 0x4d6   : > { %v6498_v22 = vadd.f32 %v6497_v16, %v11119_v43  ;;  %v9158_v43 = vld [vmem:[%s9257_s6] sm:$0xff]  ;;  %v11256_v60 = vpop.f32.mrf.mxu0 }
 0x4d8   : > { %v6577_v34 = vadd.f32 %v6498_v22, %v11117_v8  ;;  %6536 = vmatmul.bf16.gmra.mxu1 %v8512_v25  ;;  %v11270_v25 = vpop.f32.mrf.mxu2 }
 0x4da   : > { %v6613_v45 = vadd.f32 %v11236_v2, %v6577_v34 }
 0x4dc   : > { %v6645_v58 = vadd.f32 %v9158_v43, %v6613_v45  ;;  %v11274_v45 = vpop.f32.mrf.mxu3  ;;  %v9089_v43 = vld [vmem:[#allocation3 + $0x130] sm:$0xf0] }
 0x4dd   : > { %v6499_v50 = vpop.f32.mrf.mxu1 }
 0x4de   : > { %6677 = vst [vmem:[%s11249_s26] sm:$0xff] %v6645_v58  ;;  %v6500_v8 = vadd.f32 %v6499_v50, %v11131_v62  ;;  %v11268_v22 = vpop.f32.mrf.mxu0  ;;  %v9161_v58 = vld [vmem:[%s9257_s6 + $0x18] sm:$0xff] }
 0x4e0   : > { %v6578_v17 = vadd.f32 %v6500_v8, %v11129_v29  ;;  %v8524_v29 = vor.u32 %v9086_v35, %v8523_v54  ;;  %v9162_v54 = vld [vmem:[%s9257_s6 + $0x20] sm:$0xff] }
 0x4e2   : > { %v6614_v49 = vadd.f32 %v11236_v2, %v6578_v17  ;;  %v8535_v17 = vld [vmem:[#allocation3 + $0x128] sm:$0xf] }
 0x4e3   : > { %v8536_v35 = vor.u32 %v9089_v43, %v8535_v17  ;;  %v6426_v17 = vadd.f32 %v11239_v30, %v11242_v12  ;;  %v6429_v30 = vadd.f32 %v11256_v60, %v11261_v59  ;;  %v9165_v12 = vld [vmem:[%s9257_s6 + $0x38] sm:$0xff]  ;;  %v6431_v59 = vadd.f32 %v11268_v22, %v11274_v45  ;;  %v9098_v45 = vld [vmem:[#allocation3 + $0x178] sm:$0xf0] }
 0x4e4   : > { %v6646_v55 = vadd.f32 %v9159_v44, %v6614_v49 }
 0x4e5   : > { %v6502_v4 = vpop.f32.mrf.mxu1 }
 0x4e6   : > { %6678 = vst [vmem:[%s11249_s26 + $0x8] sm:$0xff] %v6646_v55  ;;  %v6503_v62 = vadd.f32 %v6502_v4, %v11143_v18  ;;  %v11281_v44 = vpop.f32.mrf.mxu0 }
 0x4e8   : > { %v6579_v39 = vadd.f32 %v6503_v62, %v11141_v3  ;;  %6541 = vmatmul.bf16.gmra.mxu1 %v8524_v29 }
 0x4ea   : > { %v6615_v48 = vadd.f32 %v11236_v2, %v6579_v39 }
 0x4ec   : > { %v6647_v16 = vadd.f32 %v9160_v10, %v6615_v48 }
 0x4ed   : > { %v6504_v14 = vpop.f32.mrf.mxu1 }
 0x4ee   : > { %6679 = vst [vmem:[%s11249_s26 + $0x10] sm:$0xff] %v6647_v16  ;;  %v6505_v34 = vadd.f32 %v6504_v14, %v11155_v28  ;;  %v11283_v28 = vpop.f32.mrf.mxu2  ;;  %v11293_v48 = vpop.f32.mrf.mxu0  ;;  %v9092_v14 = vld [vmem:[#allocation3 + $0x148] sm:$0xf0] }
 0x4f0   : > { %v6580_v18 = vadd.f32 %v6505_v34, %v11153_v47  ;;  %v11286_v47 = vpop.f32.mrf.mxu3  ;;  %v6424_v34 = vadd.f32 %v11228_v23, %v11230_v63  ;;  %v9164_v63 = vld [vmem:[%s9257_s6 + $0x30] sm:$0xff] }
 0x4f2   : > { %v6616_v3 = vadd.f32 %v11236_v2, %v6580_v18  ;;  %v9163_v18 = vld [vmem:[%s9257_s6 + $0x28] sm:$0xff] }
 0x4f4   : > { %v6648_v50 = vadd.f32 %v9161_v58, %v6616_v3 }
 0x4f5   : > { %v6507_v8 = vpop.f32.mrf.mxu1 }
 0x4f6   : > { %6680 = vst [vmem:[%s11249_s26 + $0x18] sm:$0xff] %v6648_v50  ;;  %v6508_v49 = vadd.f32 %v6507_v8, %v11167_v42  ;;  %v11295_v10 = vpop.f32.mrf.mxu2 }
 0x4f8   : > { %v6581_v55 = vadd.f32 %v6508_v49, %v11165_v33  ;;  %6546 = vmatmul.bf16.gmra.mxu1 %v8536_v35  ;;  %v11298_v16 = vpop.f32.mrf.mxu3  ;;  %v11308_v49 = vpop.f32.mrf.mxu0 }
 0x4fa   : > { %v6617_v4 = vadd.f32 %v11236_v2, %v6581_v55 }
 0x4fc   : > { %v6649_v62 = vadd.f32 %v9162_v54, %v6617_v4 }
 0x4fd   : > { %v6509_v29 = vpop.f32.mrf.mxu1 }
 0x4fe   : > { %6681 = vst [vmem:[%s11249_s26 + $0x20] sm:$0xff] %v6649_v62  ;;  %v6510_v42 = vadd.f32 %v6509_v29, %v11175_v0  ;;  %v8547_v0 = vld [vmem:[#allocation3 + $0x140] sm:$0xf]  ;;  %v11310_v23 = vpop.f32.mrf.mxu2  ;;  %v9095_v29 = vld [vmem:[#allocation3 + $0x160] sm:$0xf0] }
 0x4ff   : > { %v8548_v58 = vor.u32 %v9092_v14, %v8547_v0  ;;  %v5737_v14 = vadd.f32 %v11258_v56, %v11073_v52  ;;  %v5739_v56 = vadd.f32 %v11270_v25, %v11088_v61  ;;  %v9167_v61 = vld [vmem:[%s9257_s6 + $0x48] sm:$0xff] }
 0x500   : > { %v6582_v39 = vadd.f32 %v6510_v42, %v11173_v21  ;;  %v11313_v55 = vpop.f32.mrf.mxu3 }
 0x502   : > { %v6618_v33 = vadd.f32 %v11236_v2, %v6582_v39 }
 0x504   : > { %v6650_v3 = vadd.f32 %v9163_v18, %v6618_v33  ;;  %v8559_v33 = vld [vmem:[#allocation3 + $0x158] sm:$0xf] }
 0x505   : > { %v6512_v43 = vpop.f32.mrf.mxu1 }
 0x506   : > { %6682 = vst [vmem:[%s11249_s26 + $0x28] sm:$0xff] %v6650_v3  ;;  %v6513_v21 = vadd.f32 %v6512_v43, %v6424_v34  ;;  %v11323_v34 = vpop.f32.mrf.mxu0  ;;  %v11325_v18 = vpop.f32.mrf.mxu2  ;;  %v8560_v3 = vor.u32 %v9095_v29, %v8559_v33  ;;  %v9102_v33 = vld [vmem:[#allocation3 + $0x19c] sm:$0xf] }
 0x508   : > { %v6583_v50 = vadd.f32 %v6513_v21, %v11181_v53  ;;  %6551 = vmatmul.bf16.gmra.mxu1 %v8548_v58  ;;  %v11328_v43 = vpop.f32.mrf.mxu3  ;;  %v9166_v21 = vld [vmem:[%s9257_s6 + $0x40] sm:$0xff] }
 0x50a   : > { %v6619_v8 = vadd.f32 %v11236_v2, %v6583_v50 }
 0x50c   : > { %v6651_v35 = vadd.f32 %v9164_v63, %v6619_v8  ;;  %v8587_v8 = vld [vmem:[#allocation3 + $0x198] sm:$0xf] }
 0x50d   : > { %v6514_v4 = vpop.f32.mrf.mxu1 }
 0x50e   : > { %6683 = vst [vmem:[%s11249_s26 + $0x30] sm:$0xff] %v6651_v35  ;;  %v6515_v54 = vadd.f32 %v6514_v4, %v6426_v17  ;;  %v9103_v17 = vld [vmem:[#allocation3 + $0x1a0] sm:$0xf0]  ;;  %v11337_v35 = vpop.f32.mrf.mxu0  ;;  %v11339_v4 = vpop.f32.mrf.mxu2 }
 0x50f   : > { %v8588_v63 = vor.u32 %v9103_v17, %v8587_v8  ;;  %v9101_v8 = vld [vmem:[#allocation3 + $0x190] sm:$0xf0]  ;;  %v6439_v17 = vadd.f32 %v11308_v49, %v11313_v55  ;;  %v6441_v49 = vadd.f32 %v11323_v34, %v11328_v43  ;;  %v9171_v43 = vld [vmem:[%s9257_s6 + $0x68] sm:$0xff] }
 0x510   : > { %v6584_v53 = vadd.f32 %v6515_v54, %v11187_v24  ;;  %v9170_v55 = vld [vmem:[%s9257_s6 + $0x60] sm:$0xff] }
 0x511   : > { %6393 = vmatmul.bf16.gmra.mxu3 %v8588_v63 }
 0x512   : > { %v6620_v62 = vadd.f32 %v11236_v2, %v6584_v53  ;;  %v6354_v53 = vpop.f32.mrf.mxu3 }
 0x513   : > { %v6444_v34 = vadd.f32 %v11337_v35, %v6354_v53  ;;  %v9172_v35 = vld [vmem:[%s9257_s6 + $0x70] sm:$0xff] }
 0x514   : > { %v6652_v42 = vadd.f32 %v9165_v12, %v6620_v62  ;;  %v6434_v62 = vadd.f32 %v11281_v44, %v11286_v47  ;;  %v5742_v12 = vadd.f32 %v11283_v28, %v11100_v9  ;;  %v9168_v9 = vld [vmem:[%s9257_s6 + $0x50] sm:$0xff] }
 0x515   : > { %v6517_v39 = vpop.f32.mrf.mxu1 }
 0x516   : > { %6684 = vst [vmem:[%s11249_s26 + $0x38] sm:$0xff] %v6652_v42  ;;  %v6518_v24 = vadd.f32 %v6517_v39, %v6429_v30  ;;  %v8571_v30 = vld [vmem:[#allocation3 + $0x170] sm:$0xf]  ;;  %v5753_v44 = vpop.f32.mrf.mxu2 }
 0x517   : > { %v8572_v39 = vor.u32 %v9098_v45, %v8571_v30 }
 0x518   : > { %v6585_v0 = vadd.f32 %v6518_v24, %v5737_v14  ;;  %6556 = vmatmul.bf16.gmra.mxu1 %v8560_v3  ;;  %v8589_v14 = vld [vmem:[#allocation3 + $0x1a4] sm:$0xf0] }
 0x519   : > { %v8592_v24 = vor.u32 %v9102_v33, %v8589_v14 }
 0x51a   : > { %v6621_v60 = vadd.f32 %v11236_v2, %v6585_v0  ;;  %v6445_v0 = vpop.f32.mrf.mxu0 }
 0x51b   : > { %6482 = vmatmul.bf16.gmra.mxu0 %v8592_v24  ;;  %v8595_v24 = vld [vmem:[#allocation3 + $0x1a0] sm:$0xf] }
 0x51c   : > { %v6653_v58 = vadd.f32 %v9166_v21, %v6621_v60  ;;  %v6356_v60 = vpop.f32.mrf.mxu3 }
 0x51d   : > { %v6519_v52 = vpop.f32.mrf.mxu1 }
 0x51e   : > { %6685 = vst [vmem:[%s11249_s26 + $0x40] sm:$0xff] %v6653_v58  ;;  %v6520_v50 = vadd.f32 %v6519_v52, %v6431_v59  ;;  %v6436_v59 = vadd.f32 %v11293_v48, %v11298_v16  ;;  %v5744_v58 = vadd.f32 %v11295_v10, %v11110_v7  ;;  %v9169_v48 = vld [vmem:[%s9257_s6 + $0x58] sm:$0xff]  ;;  %v5747_v7 = vadd.f32 %v11310_v23, %v11122_v6 }
 0x520   : > { %v6586_v54 = vadd.f32 %v6520_v50, %v5739_v56 }
 0x522   : > { %v6622_v22 = vadd.f32 %v11236_v2, %v6586_v54  ;;  %v6448_v63 = vpop.f32.mrf.mxu0  ;;  %v5756_v54 = vpop.f32.mrf.mxu2 }
 0x524   : > { %v6654_v25 = vadd.f32 %v9167_v61, %v6622_v22  ;;  %v6359_v22 = vpop.f32.mrf.mxu3 }
 0x525   : > { %v6522_v29 = vpop.f32.mrf.mxu1 }
 0x526   : > { %6686 = vst [vmem:[%s11249_s26 + $0x48] sm:$0xff] %v6654_v25  ;;  %v6523_v42 = vadd.f32 %v6522_v29, %v6434_v62  ;;  %v8583_v62 = vld [vmem:[#allocation3 + $0x188] sm:$0xf] }
 0x527   : > { %v8584_v61 = vor.u32 %v9101_v8, %v8583_v62  ;;  %v6446_v8 = vadd.f32 %v6445_v0, %v6356_v60  ;;  %v5757_v60 = vadd.f32 %v5756_v54, %v11170_v20 }
 0x528   : > { %v6587_v3 = vadd.f32 %v6523_v42, %v5742_v12  ;;  %6561 = vmatmul.bf16.gmra.mxu1 %v8572_v39  ;;  %v5749_v42 = vadd.f32 %v11325_v18, %v11134_v40  ;;  %v5752_v40 = vadd.f32 %v11339_v4, %v11146_v41 }
 0x52a   : > { %v6623_v47 = vadd.f32 %v11236_v2, %v6587_v3  ;;  %v6450_v39 = vpop.f32.mrf.mxu0  ;;  %v5758_v6 = vpop.f32.mrf.mxu2  ;;  %v9104_v3 = vld [vmem:[#allocation3 + $0x1a8] sm:$0xf0] }
 0x52c   : > { %v6655_v28 = vadd.f32 %v9168_v9, %v6623_v47  ;;  %v6361_v33 = vpop.f32.mrf.mxu3  ;;  %v8596_v9 = vor.u32 %v9104_v3, %v8595_v24  ;;  %v9175_v3 = vld [vmem:[%s9257_s6 + $0x88] sm:$0xff] }
 0x52d   : > { %v6524_v21 = vpop.f32.mrf.mxu1 }
 0x52e   : > { %6687 = vst [vmem:[%s11249_s26 + $0x50] sm:$0xff] %v6655_v28  ;;  %v6525_v52 = vadd.f32 %v6524_v21, %v6436_v59 }
 0x530   : > { %v6588_v56 = vadd.f32 %v6525_v52, %v5744_v58 }
 0x532   : > { %v6624_v50 = vadd.f32 %v11236_v2, %v6588_v56  ;;  %v6453_v21 = vpop.f32.mrf.mxu0  ;;  %v5761_v58 = vpop.f32.mrf.mxu2 }
 0x534   : > { %v6656_v16 = vadd.f32 %v9169_v48, %v6624_v50  ;;  %v6364_v56 = vpop.f32.mrf.mxu3  ;;  %v5754_v48 = vadd.f32 %v5753_v44, %v11158_v57 }
 0x535   : > { %v6527_v45 = vpop.f32.mrf.mxu1  ;;  %v6454_v24 = vadd.f32 %v6453_v21, %v6364_v56 }
 0x536   : > { %6688 = vst [vmem:[%s11249_s26 + $0x58] sm:$0xff] %v6656_v16  ;;  %v6528_v10 = vadd.f32 %v6527_v45, %v6439_v17 }
 0x538   : > { %v6589_v25 = vadd.f32 %v6528_v10, %v5747_v7  ;;  %6566 = vmatmul.bf16.gmra.mxu1 %v8584_v61  ;;  %v6449_v10 = vadd.f32 %v6448_v63, %v6359_v22  ;;  %v9173_v61 = vld [vmem:[%s9257_s6 + $0x78] sm:$0xff]  ;;  %v5759_v22 = vadd.f32 %v5758_v6, %v11178_v37 }
 0x53a   : > { %v6625_v29 = vadd.f32 %v11236_v2, %v6589_v25  ;;  %v6455_v4 = vpop.f32.mrf.mxu0  ;;  %v5763_v45 = vpop.f32.mrf.mxu2 }
 0x53c   : > { %v6657_v30 = vadd.f32 %v9170_v55, %v6625_v29  ;;  %v6366_v7 = vpop.f32.mrf.mxu3 }
 0x53d   : > { %v6529_v12 = vpop.f32.mrf.mxu1 }
 0x53e   : > { %6689 = vst [vmem:[%s11249_s26 + $0x60] sm:$0xff] %v6657_v30  ;;  %v6530_v23 = vadd.f32 %v6529_v12, %v6441_v49  ;;  %v6451_v49 = vadd.f32 %v6450_v39, %v6361_v33  ;;  %v9174_v12 = vld [vmem:[%s9257_s6 + $0x80] sm:$0xff]  ;;  %v5762_v33 = vadd.f32 %v5761_v58, %v11184_v32 }
 0x540   : > { %v6590_v14 = vadd.f32 %v6530_v23, %v5749_v42 }
 0x542   : > { %v6626_v47 = vadd.f32 %v11236_v2, %v6590_v14  ;;  %v6458_v55 = vpop.f32.mrf.mxu0  ;;  %v5766_v30 = vpop.f32.mrf.mxu2 }
 0x544   : > { %v6658_v59 = vadd.f32 %v9171_v43, %v6626_v47  ;;  %v6369_v23 = vpop.f32.mrf.mxu3 }
 0x545   : > { %v6532_v28 = vpop.f32.mrf.mxu1 }
 0x546   : > { %6690 = vst [vmem:[%s11249_s26 + $0x68] sm:$0xff] %v6658_v59  ;;  %v6533_v18 = vadd.f32 %v6532_v28, %v6444_v34  ;;  %v6456_v28 = vadd.f32 %v6455_v4, %v6366_v7 }
 0x548   : > { %v6591_v52 = vadd.f32 %v6533_v18, %v5752_v40  ;;  %6571 = vmatmul.bf16.gmra.mxu1 %v8596_v9  ;;  %v9176_v40 = vld [vmem:[%s9257_s6 + $0x90] sm:$0xff] }
 0x54a   : > { %v6627_v50 = vadd.f32 %v11236_v2, %v6591_v52  ;;  %v6460_v34 = vpop.f32.mrf.mxu0  ;;  %v5768_v43 = vpop.f32.mrf.mxu2  ;;  %v5764_v52 = vadd.f32 %v5763_v45, %v11190_v13 }
 0x54c   : > { %v6659_v53 = vadd.f32 %v9172_v35, %v6627_v50  ;;  %v6371_v9 = vpop.f32.mrf.mxu3 }
 0x54d   : > { %v6534_v17 = vpop.f32.mrf.mxu1 }
 0x54e   : > { %6691 = vst [vmem:[%s11249_s26 + $0x70] sm:$0xff] %v6659_v53  ;;  %v6535_v16 = vadd.f32 %v6534_v17, %v6446_v8  ;;  %v6459_v53 = vadd.f32 %v6458_v55, %v6369_v23  ;;  %v9177_v17 = vld [vmem:[%s9257_s6 + $0x98] sm:$0xff] }
 0x550   : > { %v6592_v41 = vadd.f32 %v6535_v16, %v5754_v48 }
 0x552   : > { %v6628_v62 = vadd.f32 %v11236_v2, %v6592_v41  ;;  %v6463_v50 = vpop.f32.mrf.mxu0  ;;  %v5771_v32 = vpop.f32.mrf.mxu2  ;;  %v5767_v41 = vadd.f32 %v5766_v30, %v11193_v27 }
 0x554   : > { %v6660_v25 = vadd.f32 %v9173_v61, %v6628_v62  ;;  %v6374_v8 = vpop.f32.mrf.mxu3  ;;  %v6461_v61 = vadd.f32 %v6460_v34, %v6371_v9 }
 0x555   : > { %v6537_v0 = vpop.f32.mrf.mxu1 }
 0x556   : > { %6692 = vst [vmem:[%s11249_s26 + $0x78] sm:$0xff] %v6660_v25  ;;  %v6538_v29 = vadd.f32 %v6537_v0, %v6449_v10  ;;  %v9178_v25 = vld [vmem:[%s9257_s6 + $0xa0] sm:$0xff] }
 0x558   : > { %v6593_v57 = vadd.f32 %v6538_v29, %v5757_v60  ;;  %v5769_v29 = vadd.f32 %v5768_v43, %v11196_v46 }
 0x55a   : > { %v6629_v44 = vadd.f32 %v11236_v2, %v6593_v57  ;;  %v6465_v13 = vpop.f32.mrf.mxu0  ;;  %v5773_v45 = vpop.f32.mrf.mxu2 }
 0x55c   : > { %v6661_v42 = vadd.f32 %v9174_v12, %v6629_v44  ;;  %v6376_v10 = vpop.f32.mrf.mxu3  ;;  %v9179_v12 = vld [vmem:[%s9257_s6 + $0xa8] sm:$0xff] }
 0x55d   : > { %v6539_v63 = vpop.f32.mrf.mxu1 }
 0x55e   : > { %6693 = vst [vmem:[%s11249_s26 + $0x80] sm:$0xff] %v6661_v42  ;;  %v6540_v14 = vadd.f32 %v6539_v63, %v6451_v49  ;;  %v6464_v49 = vadd.f32 %v6463_v50, %v6374_v8  ;;  %v9182_v8 = vld [vmem:[%s9257_s6 + $0xc0] sm:$0xff] }
 0x560   : > { %v6594_v20 = vadd.f32 %v6540_v14, %v5759_v22  ;;  %v5772_v22 = vadd.f32 %v5771_v32, %v11199_v15 }
 0x562   : > { %v6630_v54 = vadd.f32 %v11236_v2, %v6594_v20  ;;  %v6468_v55 = vpop.f32.mrf.mxu0  ;;  %v5776_v30 = vpop.f32.mrf.mxu2 }
 0x564   : > { %v6662_v47 = vadd.f32 %v9175_v3, %v6630_v54  ;;  %v6379_v23 = vpop.f32.mrf.mxu3  ;;  %v6466_v54 = vadd.f32 %v6465_v13, %v6376_v10 }
 0x565   : > { %v6542_v39 = vpop.f32.mrf.mxu1 }
 0x566   : > { %6694 = vst [vmem:[%s11249_s26 + $0x88] sm:$0xff] %v6662_v47  ;;  %v6543_v59 = vadd.f32 %v6542_v39, %v6454_v24  ;;  %v9180_v24 = vld [vmem:[%s9257_s6 + $0xb0] sm:$0xff]  ;;  %v5774_v39 = vadd.f32 %v5773_v45, %v11202_v31  ;;  %v9183_v45 = vld [vmem:[%s9257_s6 + $0xc8] sm:$0xff] }
 0x568   : > { %v6595_v37 = vadd.f32 %v6543_v59, %v5762_v33 }
 0x56a   : > { %v6631_v6 = vadd.f32 %v11236_v2, %v6595_v37  ;;  %v6470_v33 = vpop.f32.mrf.mxu0  ;;  %v5778_v34 = vpop.f32.mrf.mxu2  ;;  %v6469_v37 = vadd.f32 %v6468_v55, %v6379_v23 }
 0x56c   : > { %v6663_v18 = vadd.f32 %v9176_v40, %v6631_v6  ;;  %v6381_v59 = vpop.f32.mrf.mxu3  ;;  %v9181_v6 = vld [vmem:[%s9257_s6 + $0xb8] sm:$0xff] }
 0x56d   : > { %v6544_v21 = vpop.f32.mrf.mxu1 }
 0x56e   : > { %6695 = vst [vmem:[%s11249_s26 + $0x90] sm:$0xff] %v6663_v18  ;;  %v6545_v56 = vadd.f32 %v6544_v21, %v6456_v28  ;;  %v5777_v18 = vadd.f32 %v5776_v30, %v11205_v1 }
 0x570   : > { %v6596_v58 = vadd.f32 %v6545_v56, %v5764_v52 }
 0x572   : > { %v6632_v35 = vadd.f32 %v11236_v2, %v6596_v58  ;;  %v6473_v52 = vpop.f32.mrf.mxu0  ;;  %v5781_v31 = vpop.f32.mrf.mxu2  ;;  %v6471_v58 = vadd.f32 %v6470_v33, %v6381_v59  ;;  %v9186_v33 = vld [vmem:[%s9257_s6 + $0xe0] sm:$0xff] }
 0x574   : > { %v6664_v48 = vadd.f32 %v9177_v17, %v6632_v35  ;;  %v6384_v50 = vpop.f32.mrf.mxu3  ;;  %v5779_v17 = vadd.f32 %v5778_v34, %v11208_v11 }
 0x575   : > { %v6547_v16 = vpop.f32.mrf.mxu1  ;;  %v6474_v13 = vadd.f32 %v6473_v52, %v6384_v50 }
 0x576   : > { %6696 = vst [vmem:[%s11249_s26 + $0x98] sm:$0xff] %v6664_v48  ;;  %v6548_v4 = vadd.f32 %v6547_v16, %v6459_v53 }
 0x578   : > { %v6597_v62 = vadd.f32 %v6548_v4, %v5767_v41 }
 0x57a   : > { %v6633_v7 = vadd.f32 %v11236_v2, %v6597_v62  ;;  %v6475_v1 = vpop.f32.mrf.mxu0  ;;  %v5783_v41 = vpop.f32.mrf.mxu2 }
 0x57b   : > { %v5784_v30 = vadd.f32 %v5783_v41, %v11214_v38 }
 0x57c   : > { %v6665_v0 = vadd.f32 %v9178_v25, %v6633_v7  ;;  %v6386_v62 = vpop.f32.mrf.mxu3 }
 0x57d   : > { %v6549_v60 = vpop.f32.mrf.mxu1 }
 0x57e   : > { %6697 = vst [vmem:[%s11249_s26 + $0xa0] sm:$0xff] %v6665_v0  ;;  %v6550_v57 = vadd.f32 %v6549_v60, %v6461_v61  ;;  %v5782_v61 = vadd.f32 %v5781_v31, %v11211_v26  ;;  %v6476_v60 = vadd.f32 %v6475_v1, %v6386_v62 }
 0x580   : > { %v6598_v27 = vadd.f32 %v6550_v57, %v5769_v29 }
 0x582   : > { %v6634_v44 = vadd.f32 %v11236_v2, %v6598_v27  ;;  %v6478_v29 = vpop.f32.mrf.mxu0  ;;  %v5786_v57 = vpop.f32.mrf.mxu2  ;;  %v9184_v27 = vld [vmem:[%s9257_s6 + $0xd0] sm:$0xff] }
 0x584   : > { %v6666_v42 = vadd.f32 %v9179_v12, %v6634_v44 }
 0x585   : > { %v6552_v63 = vpop.f32.mrf.mxu1 }
 0x586   : > { %6698 = vst [vmem:[%s11249_s26 + $0xa8] sm:$0xff] %v6666_v42  ;;  %v6553_v14 = vadd.f32 %v6552_v63, %v6464_v49  ;;  %v6389_v49 = vpop.f32.mrf.mxu3  ;;  %v9185_v63 = vld [vmem:[%s9257_s6 + $0xd8] sm:$0xff] }
 0x587   : > { %v6479_v23 = vadd.f32 %v6478_v29, %v6389_v49 }
 0x588   : > { %v6599_v46 = vadd.f32 %v6553_v14, %v5772_v22 }
 0x58a   : > { %v6635_v20 = vadd.f32 %v11236_v2, %v6599_v46  ;;  %v5787_v46 = vadd.f32 %v5786_v57, %v11217_v19 }
 0x58c   : > { %v6667_v3 = vadd.f32 %v9180_v24, %v6635_v20  ;;  %v6480_v20 = vpop.f32.mrf.mxu0  ;;  %v5788_v24 = vpop.f32.mrf.mxu2 }
 0x58d   : > { %v6554_v47 = vpop.f32.mrf.mxu1  ;;  %v5789_v59 = vadd.f32 %v5788_v24, %v11220_v36 }
 0x58e   : > { %6699 = vst [vmem:[%s11249_s26 + $0xb0] sm:$0xff] %v6667_v3  ;;  %v6555_v43 = vadd.f32 %v6554_v47, %v6466_v54  ;;  %v6391_v3 = vpop.f32.mrf.mxu3 }
 0x590   : > { %v6600_v15 = vadd.f32 %v6555_v43, %v5774_v39  ;;  %v6481_v39 = vadd.f32 %v6480_v20, %v6391_v3 }
 0x592   : > { %v6636_v9 = vadd.f32 %v11236_v2, %v6600_v15 }
 0x594   : > { %v6668_v28 = vadd.f32 %v9181_v6, %v6636_v9  ;;  %v5791_v6 = vpop.f32.mrf.mxu2 }
 0x595   : > { %v6557_v40 = vpop.f32.mrf.mxu1  ;;  %v5792_v31 = vadd.f32 %v5791_v6, %v11223_v51 }
 0x596   : > { %6700 = vst [vmem:[%s11249_s26 + $0xb8] sm:$0xff] %v6668_v28  ;;  %v6558_v21 = vadd.f32 %v6557_v40, %v6469_v37  ;;  %v6394_v9 = vpop.f32.mrf.mxu3 }
 0x598   : > { %v6601_v56 = vadd.f32 %v6558_v21, %v5777_v18  ;;  %v6483_v19 = vpop.f32.mrf.mxu0  ;;  %v9187_v18 = vld [vmem:[%s9257_s6 + $0xe8] sm:$0xff] }
 0x599   : > { %v6484_v28 = vadd.f32 %v6483_v19, %v6394_v9 }
 0x59a   : > { %v6637_v32 = vadd.f32 %v11236_v2, %v6601_v56 }
 0x59c   : > { %v6669_v35 = vadd.f32 %v9182_v8, %v6637_v32  ;;  %v5793_v8 = vpop.f32.mrf.mxu2 }
 0x59d   : > { %v6559_v53 = vpop.f32.mrf.mxu1 }
 0x59e   : > { %6701 = vst [vmem:[%s11249_s26 + $0xc0] sm:$0xff] %v6669_v35  ;;  %v6560_v48 = vadd.f32 %v6559_v53, %v6471_v58  ;;  %v6396_v50 = vpop.f32.mrf.mxu3  ;;  %v9188_v53 = vld [vmem:[%s9257_s6 + $0xf0] sm:$0xff] }
 0x5a0   : > { %v6602_v16 = vadd.f32 %v6560_v48, %v5779_v17  ;;  %v6485_v32 = vpop.f32.mrf.mxu0 }
 0x5a1   : > { %v6486_v35 = vadd.f32 %v6485_v32, %v6396_v50 }
 0x5a2   : > { %v6638_v4 = vadd.f32 %v11236_v2, %v6602_v16  ;;  %v5794_v16 = vadd.f32 %v5793_v8, %v11226_v5 }
 0x5a4   : > { %v6670_v7 = vadd.f32 %v9183_v45, %v6638_v4  ;;  %v9189_v4 = vld [vmem:[%s9257_s6 + $0xf8] sm:$0xff] }
 0x5a5   : > { %v6562_v10 = vpop.f32.mrf.mxu1 }
 0x5a6   : > { %6702 = vst [vmem:[%s11249_s26 + $0xc8] sm:$0xff] %v6670_v7  ;;  %v6563_v25 = vadd.f32 %v6562_v10, %v6474_v13 }
 0x5a8   : > { %v6603_v11 = vadd.f32 %v6563_v25, %v5782_v61 }
 0x5aa   : > { %v6639_v0 = vadd.f32 %v11236_v2, %v6603_v11 }
 0x5ac   : > { %v6671_v44 = vadd.f32 %v9184_v27, %v6639_v0 }
 0x5ad   : > { %v6564_v55 = vpop.f32.mrf.mxu1 }
 0x5ae   : > { %6703 = vst [vmem:[%s11249_s26 + $0xd0] sm:$0xff] %v6671_v44  ;;  %v6565_v12 = vadd.f32 %v6564_v55, %v6476_v60 }
 0x5b0   : > { %v6604_v26 = vadd.f32 %v6565_v12, %v5784_v30 }
 0x5b2   : > { %v6640_v42 = vadd.f32 %v11236_v2, %v6604_v26 }
 0x5b4   : > { %v6672_v22 = vadd.f32 %v9185_v63, %v6640_v42 }
 0x5b5   : > { %v6567_v14 = vpop.f32.mrf.mxu1 }
 0x5b6   : > { %6704 = vst [vmem:[%s11249_s26 + $0xd8] sm:$0xff] %v6672_v22  ;;  %v6568_v54 = vadd.f32 %v6567_v14, %v6479_v23 }
 0x5b8   : > { %v6605_v38 = vadd.f32 %v6568_v54, %v5787_v46 }
 0x5ba   : > { %v6641_v47 = vadd.f32 %v11236_v2, %v6605_v38 }
 0x5bc   : > { %v6673_v34 = vadd.f32 %v9186_v33, %v6641_v47 }
 0x5bd   : > { %v6569_v43 = vpop.f32.mrf.mxu1 }
 0x5be   : > { %6705 = vst [vmem:[%s11249_s26 + $0xe0] sm:$0xff] %v6673_v34  ;;  %v6570_v15 = vadd.f32 %v6569_v43, %v6481_v39 }
 0x5c0   : > { %v6606_v37 = vadd.f32 %v6570_v15, %v5789_v59 }
 0x5c2   : > { %v6642_v40 = vadd.f32 %v11236_v2, %v6606_v37 }
 0x5c4   : > { %v6674_v21 = vadd.f32 %v9187_v18, %v6642_v40 }
 0x5c5   : > { %v6572_v52 = vpop.f32.mrf.mxu1 }
 0x5c6   : > { %6706 = vst [vmem:[%s11249_s26 + $0xe8] sm:$0xff] %v6674_v21  ;;  %v6573_v56 = vadd.f32 %v6572_v52, %v6484_v28 }
 0x5c8   : > { %v6607_v36 = vadd.f32 %v6573_v56, %v5792_v31 }
 0x5ca   : > { %v6643_v58 = vadd.f32 %v11236_v2, %v6607_v36 }
 0x5cc   : > { %v6675_v17 = vadd.f32 %v9188_v53, %v6643_v58 }
 0x5cd   : > { %v6574_v48 = vpop.f32.mrf.mxu1 }
 0x5ce   : > { %6707 = vst [vmem:[%s11249_s26 + $0xf0] sm:$0xff] %v6675_v17  ;;  %v6575_v1 = vadd.f32 %v6574_v48, %v6486_v35 }
 0x5d0   : > { %v6608_v41 = vadd.f32 %v6575_v1, %v5794_v16 }
 0x5d2   : > { %v6644_v51 = vadd.f32 %v11236_v2, %v6608_v41 }
 0x5d4   : > { %v6676_v62 = vadd.f32 %v9189_v4, %v6644_v51 }
 0x5d6   : > { %6708 = vst [vmem:[%s11249_s26 + $0xf8] sm:$0xff] %v6676_v62 }
 0x5d7 PF: > { %s15_s18 = sadd.s32 1, %s9196_s18  }
 0x5d8   : > { %p12_p4 = scmp.ge.s32.totalorder %s15_s18, 4  }
 0x5da   :  { %14 = sbr.rel (!%p12_p4) target bundleno = 1 (0x1), region = 80 }

</bundles_post_ra>
